<compile_context>
chip_gen: v6e
topology: v6e:2x2x1
jax: 0.10.0
libtpu: 0.0.40
codegen_flags: <defaults>
</compile_context>

<pallas_src>
import functools

import jax
import jax.numpy as jnp
from jax.experimental import pallas as pl
from jax.experimental.pallas import tpu as pltpu

LANE = 128


def _round_up(n, m):
    return ((n + m - 1) // m) * m


def _fused_convblock_kernel(x_ref, w1_ref, b1_ref, w2_ref, b2_ref, o_ref,
                            xpad_ref, mid_ref, slab1_ref, slab2_ref,
                            *, kh, kw, pad):
    # x_ref   : (1, H, W, Cin) bf16        input tile (one batch element), NHWC
    # w1_ref  : (K1, C1p) bf16             conv1 im2col weights, K1 = kh*kw*Cin
    # b1_ref  : (1, C1p) f32
    # w2_ref  : (K2, C2p) bf16             conv2 im2col weights, K2 = kh*kw*C1
    # b2_ref  : (1, C2p) f32
    # o_ref   : (1, Ho2, Wo2, C2) f32      true-channel output tile
    # xpad_ref: VMEM (H+2p, W+2p, Cin) bf16       zero-haloed padded input
    # mid_ref : VMEM (Ho1+2p, Wo1+2p, C1) bf16    zero-haloed intermediate
    # slab1/2 : VMEM (Ho*Wo, K) bf16              im2col patch slabs
    _, H, W, Cin = x_ref.shape
    Hp1, Wp1, _ = xpad_ref.shape
    Hp2, Wp2, C1 = mid_ref.shape
    M1, K1 = slab1_ref.shape
    M2, K2 = slab2_ref.shape
    C1p = w1_ref.shape[1]
    C2p = w2_ref.shape[1]
    _, Ho2, Wo2, C2 = o_ref.shape
    Ho1, Wo1 = Hp1 - kh + 1, Wp1 - kw + 1

    def zero_halo(ref):
        # Zero only the `pad`-wide border ring (4 thin stores); the interior
        # is fully overwritten right afterwards -- no full-buffer zero pass.
        hh, ww, cc = ref.shape
        zrow = jnp.zeros((pad, ww, cc), ref.dtype)
        zcol = jnp.zeros((hh, pad, cc), ref.dtype)
        ref[pl.ds(0, pad), :, :] = zrow
        ref[pl.ds(hh - pad, pad), :, :] = zrow
        ref[:, pl.ds(0, pad), :] = zcol
        ref[:, pl.ds(ww - pad, pad), :] = zcol

    def fill_im2col(src_ref, slab_ref, ho, wo, cin):
        # One thin (ho*wo, cin) column-group copy per tap into the slab; the
        # conv then becomes a single dense MXU matmul over the true K.
        for i in range(kh):
            for j in range(kw):
                t = i * kw + j
                patch = src_ref[pl.ds(i, ho), pl.ds(j, wo), :]
                slab_ref[:, pl.ds(t * cin, cin)] = patch.reshape(ho * wo, cin)

    # ---- in-kernel zero padding (halo ring only) ----
    zero_halo(xpad_ref)
    zero_halo(mid_ref)
    xpad_ref[pl.ds(pad, H), pl.ds(pad, W), :] = x_ref[0].astype(xpad_ref.dtype)

    # ---- conv1 + ReLU: one (M1, K1) x (K1, C1p) bf16 matmul, f32 accum ----
    fill_im2col(xpad_ref, slab1_ref, Ho1, Wo1, Cin)
    h1 = jnp.dot(slab1_ref[...], w1_ref[...],
                 preferred_element_type=jnp.float32)
    h1 = jnp.maximum(h1 + b1_ref[...], 0.0)                      # f32 epilogue
    # Keep only the true C1 channels in the (small, bf16) mid buffer; its zero
    # halo is conv2's padding, so the activation stays on-chip.
    mid_ref[pl.ds(pad, Ho1), pl.ds(pad, Wo1), :] = (
        h1.reshape(Ho1, Wo1, C1p)[:, :, :C1].astype(mid_ref.dtype))

    # ---- conv2 + ReLU: one (M2, K2) x (K2, C2p) bf16 matmul, f32 accum ----
    fill_im2col(mid_ref, slab2_ref, Ho2, Wo2, C1)
    h2 = jnp.dot(slab2_ref[...], w2_ref[...],
                 preferred_element_type=jnp.float32)
    h2 = jnp.maximum(h2 + b2_ref[...], 0.0)
    # HBM writeback of the TRUE channels only (no 16x padded output store).
    o_ref[0] = h2.reshape(Ho2, Wo2, C2p)[:, :, :C2]


def conv_block_forward(x_nchw, params, *, pad=1):
    """ConvBlock.forward (conv -> relu -> conv -> relu). NCHW in / NCHW out."""
    w1, b1, w2, b2 = params                     # HWIO weights, true channel counts
    N, Cin, H, W = x_nchw.shape
    KH, KW, _, C1 = w1.shape
    C2 = w2.shape[-1]
    C1p = _round_up(C1, LANE)                   # pad ONLY the matmul N side
    C2p = _round_up(C2, LANE)
    K1, K2 = KH * KW * Cin, KH * KW * C1        # true im2col reduction sizes

    Ho1, Wo1 = H + 2 * pad - KH + 1, W + 2 * pad - KW + 1
    Ho2, Wo2 = Ho1 + 2 * pad - KH + 1, Wo1 + 2 * pad - KW + 1

    # NCHW -> NHWC + bf16 cast for the kernel (one small fused XLA pass).
    x_nhwc = jnp.transpose(x_nchw, (0, 2, 3, 1)).astype(jnp.bfloat16)

    # im2col weight matrices, rows ordered (kh, kw, cin) to match the slab
    # columns built in-kernel.  Padded output columns produce ReLU(0)=0 and
    # are never stored, so numerics are exact; the reduction (K) side stays at
    # its true size (36 / 72).
    w1m = jnp.pad(w1.reshape(K1, C1), ((0, 0), (0, C1p - C1))).astype(jnp.bfloat16)
    w2m = jnp.pad(w2.reshape(K2, C2), ((0, 0), (0, C2p - C2))).astype(jnp.bfloat16)
    b1p = jnp.pad(b1, (0, C1p - C1)).reshape(1, C1p).astype(jnp.float32)
    b2p = jnp.pad(b2, (0, C2p - C2)).reshape(1, C2p).astype(jnp.float32)

    kernel = functools.partial(_fused_convblock_kernel, kh=KH, kw=KW, pad=pad)

    out = pl.pallas_call(
        kernel,
        out_shape=jax.ShapeDtypeStruct((N, Ho2, Wo2, C2), jnp.float32),
        grid=(N,),
        in_specs=[
            pl.BlockSpec((1, H, W, Cin), lambda n: (n, 0, 0, 0)),
            pl.BlockSpec((K1, C1p), lambda n: (0, 0)),
            pl.BlockSpec((1, C1p), lambda n: (0, 0)),
            pl.BlockSpec((K2, C2p), lambda n: (0, 0)),
            pl.BlockSpec((1, C2p), lambda n: (0, 0)),
        ],
        out_specs=pl.BlockSpec((1, Ho2, Wo2, C2), lambda n: (n, 0, 0, 0)),
        scratch_shapes=[
            pltpu.VMEM((H + 2 * pad, W + 2 * pad, Cin), jnp.bfloat16),     # xpad
            pltpu.VMEM((Ho1 + 2 * pad, Wo1 + 2 * pad, C1), jnp.bfloat16),  # mid
            pltpu.VMEM((Ho1 * Wo1, K1), jnp.bfloat16),                     # slab1
            pltpu.VMEM((Ho2 * Wo2, K2), jnp.bfloat16),                     # slab2
        ],
        compiler_params=pltpu.CompilerParams(
            dimension_semantics=("parallel",)),    # megacore-shard over batch
    )(x_nhwc, w1m, b1p, w2m, b2p)

    return jnp.transpose(out, (0, 3, 1, 2))        # NHWC -> NCHW (true C2 only)


def init_conv_block_params(key, in_channels, out_channels, kernel_size):
    """Deterministic synthetic init matching PyTorch Conv2d shapes.
    PyTorch weight layout is (O, I, KH, KW); we store HWIO for the kernel."""
    k1, k2, k3, k4 = jax.random.split(key, 4)
    fan_in1 = in_channels * kernel_size * kernel_size
    fan_in2 = out_channels * kernel_size * kernel_size
    bnd1 = 1.0 / jnp.sqrt(fan_in1)
    bnd2 = 1.0 / jnp.sqrt(fan_in2)
    w1_oihw = jax.random.uniform(k1, (out_channels, in_channels, kernel_size, kernel_size),
                                 jnp.float32, -bnd1, bnd1)
    b1 = jax.random.uniform(k2, (out_channels,), jnp.float32, -bnd1, bnd1)
    w2_oihw = jax.random.uniform(k3, (out_channels, out_channels, kernel_size, kernel_size),
                                 jnp.float32, -bnd2, bnd2)
    b2 = jax.random.uniform(k4, (out_channels,), jnp.float32, -bnd2, bnd2)
    # OIHW -> HWIO
    w1 = jnp.transpose(w1_oihw, (2, 3, 1, 0))
    w2 = jnp.transpose(w2_oihw, (2, 3, 1, 0))
    return (w1, b1, w2, b2)


def _reference_forward(x_nchw, params):
    """Pure-JAX reference (lax.conv, f32) for correctness checking."""
    w1, b1, w2, b2 = params
    def conv(x, w, b):
        y = jax.lax.conv_general_dilated(
            x, w, window_strides=(1, 1), padding=((1, 1), (1, 1)),
            dimension_numbers=("NCHW", "HWIO", "NCHW"))
        return jax.nn.relu(y + b[None, :, None, None])
    return conv(conv(x_nchw, w1, b1), w2, b2)


if __name__ == "__main__":
    key = jax.random.PRNGKey(0)
    k_x, k_p = jax.random.split(key)

    in_channels, out_channels, kernel_size = 4, 8, 3
    x = jax.random.normal(k_x, (2, in_channels, 16, 16), jnp.float32)   # NCHW

    params = init_conv_block_params(k_p, in_channels, out_channels, kernel_size)

    fwd = jax.jit(conv_block_forward)
    out = jax.block_until_ready(fwd(x, params))

    ref = _reference_forward(x, params)
    assert out.shape == (2, out_channels, 16, 16), out.shape
    # bf16 MXU operands with f32 accumulation -> looser tolerance than pure f32.
    assert jnp.allclose(out, ref, rtol=2e-2, atol=2e-2), "mismatch vs JAX reference"

    print("KERNEL_OK")
</pallas_src>

<mosaic_0001>
module attributes {stable_mosaic.version = 11 : i64} {
  func.func @_fused_convblock_kernel(%arg0: i32, %arg1: memref<1x16x16x4xbf16, #tpu.memory_space<vmem>>, %arg2: memref<36x128xbf16, #tpu.memory_space<vmem>>, %arg3: memref<1x128xf32, #tpu.memory_space<vmem>>, %arg4: memref<72x128xbf16, #tpu.memory_space<vmem>>, %arg5: memref<1x128xf32, #tpu.memory_space<vmem>>, %arg6: memref<1x16x16x8xf32, #tpu.memory_space<vmem>>, %arg7: memref<18x18x4xbf16, #tpu.memory_space<vmem>>, %arg8: memref<18x18x8xbf16, #tpu.memory_space<vmem>>, %arg9: memref<256x36xbf16, #tpu.memory_space<vmem>>, %arg10: memref<256x72xbf16, #tpu.memory_space<vmem>>) attributes {dimension_semantics = [#tpu.dimension_semantics<parallel>], iteration_bounds = array<i64: 2>, scalar_prefetch = 0 : i64, scratch_operands = 4 : i64, tpu.core_type = #tpu.core_type<tc>, window_params = [{transform_indices = @transform_0, window_bounds = array<i64: 1, 16, 16, 4>}, {pipeline_mode = #tpu.pipeline_mode<synchronous>, transform_indices = @transform_1, window_bounds = array<i64: 36, 128>}, {pipeline_mode = #tpu.pipeline_mode<synchronous>, transform_indices = @transform_2, window_bounds = array<i64: 1, 128>}, {pipeline_mode = #tpu.pipeline_mode<synchronous>, transform_indices = @transform_3, window_bounds = array<i64: 72, 128>}, {pipeline_mode = #tpu.pipeline_mode<synchronous>, transform_indices = @transform_4, window_bounds = array<i64: 1, 128>}, {transform_indices = @transform_5, window_bounds = array<i64: 1, 16, 16, 8>}]} {
    %cst = arith.constant 0.000000e+00 : bf16
    %0 = vector.broadcast %cst : bf16 to vector<1x18x4xbf16>
    %cst_0 = arith.constant 0.000000e+00 : bf16
    %1 = vector.broadcast %cst_0 : bf16 to vector<18x1x4xbf16>
    %c0 = arith.constant 0 : index
    %c0_1 = arith.constant 0 : index
    %c0_2 = arith.constant 0 : index
    %2 = vector.load %arg7[%c0, %c0_1, %c0_2] : memref<18x18x4xbf16, #tpu.memory_space<vmem>>, vector<1x18x4xbf16>
    tpu.vector_store %arg7[%c0, %c0_1, %c0_2], %0 {strides = array<i32>} : memref<18x18x4xbf16, #tpu.memory_space<vmem>>, vector<1x18x4xbf16>,
    %c17 = arith.constant 17 : index
    %c0_3 = arith.constant 0 : index
    %c0_4 = arith.constant 0 : index
    %3 = vector.load %arg7[%c17, %c0_3, %c0_4] : memref<18x18x4xbf16, #tpu.memory_space<vmem>>, vector<1x18x4xbf16>
    tpu.vector_store %arg7[%c17, %c0_3, %c0_4], %0 {strides = array<i32>} : memref<18x18x4xbf16, #tpu.memory_space<vmem>>, vector<1x18x4xbf16>,
    %c0_5 = arith.constant 0 : index
    %c0_6 = arith.constant 0 : index
    %c0_7 = arith.constant 0 : index
    %4 = vector.load %arg7[%c0_5, %c0_6, %c0_7] : memref<18x18x4xbf16, #tpu.memory_space<vmem>>, vector<18x1x4xbf16>
    tpu.vector_store %arg7[%c0_5, %c0_6, %c0_7], %1 {strides = array<i32>} : memref<18x18x4xbf16, #tpu.memory_space<vmem>>, vector<18x1x4xbf16>,
    %c0_8 = arith.constant 0 : index
    %c17_9 = arith.constant 17 : index
    %c0_10 = arith.constant 0 : index
    %5 = vector.load %arg7[%c0_8, %c17_9, %c0_10] : memref<18x18x4xbf16, #tpu.memory_space<vmem>>, vector<18x1x4xbf16>
    tpu.vector_store %arg7[%c0_8, %c17_9, %c0_10], %1 {strides = array<i32>} : memref<18x18x4xbf16, #tpu.memory_space<vmem>>, vector<18x1x4xbf16>,
    %cst_11 = arith.constant 0.000000e+00 : bf16
    %6 = vector.broadcast %cst_11 : bf16 to vector<1x18x8xbf16>
    %cst_12 = arith.constant 0.000000e+00 : bf16
    %7 = vector.broadcast %cst_12 : bf16 to vector<18x1x8xbf16>
    %c0_13 = arith.constant 0 : index
    %c0_14 = arith.constant 0 : index
    %c0_15 = arith.constant 0 : index
    %8 = vector.load %arg8[%c0_13, %c0_14, %c0_15] : memref<18x18x8xbf16, #tpu.memory_space<vmem>>, vector<1x18x8xbf16>
    tpu.vector_store %arg8[%c0_13, %c0_14, %c0_15], %6 {strides = array<i32>} : memref<18x18x8xbf16, #tpu.memory_space<vmem>>, vector<1x18x8xbf16>,
    %c17_16 = arith.constant 17 : index
    %c0_17 = arith.constant 0 : index
    %c0_18 = arith.constant 0 : index
    %9 = vector.load %arg8[%c17_16, %c0_17, %c0_18] : memref<18x18x8xbf16, #tpu.memory_space<vmem>>, vector<1x18x8xbf16>
    tpu.vector_store %arg8[%c17_16, %c0_17, %c0_18], %6 {strides = array<i32>} : memref<18x18x8xbf16, #tpu.memory_space<vmem>>, vector<1x18x8xbf16>,
    %c0_19 = arith.constant 0 : index
    %c0_20 = arith.constant 0 : index
    %c0_21 = arith.constant 0 : index
    %10 = vector.load %arg8[%c0_19, %c0_20, %c0_21] : memref<18x18x8xbf16, #tpu.memory_space<vmem>>, vector<18x1x8xbf16>
    tpu.vector_store %arg8[%c0_19, %c0_20, %c0_21], %7 {strides = array<i32>} : memref<18x18x8xbf16, #tpu.memory_space<vmem>>, vector<18x1x8xbf16>,
    %c0_22 = arith.constant 0 : index
    %c17_23 = arith.constant 17 : index
    %c0_24 = arith.constant 0 : index
    %11 = vector.load %arg8[%c0_22, %c17_23, %c0_24] : memref<18x18x8xbf16, #tpu.memory_space<vmem>>, vector<18x1x8xbf16>
    tpu.vector_store %arg8[%c0_22, %c17_23, %c0_24], %7 {strides = array<i32>} : memref<18x18x8xbf16, #tpu.memory_space<vmem>>, vector<18x1x8xbf16>,
    %c0_25 = arith.constant 0 : index
    %c0_26 = arith.constant 0 : index
    %c0_27 = arith.constant 0 : index
    %c0_28 = arith.constant 0 : index
    %12 = vector.load %arg1[%c0_25, %c0_26, %c0_27, %c0_28] : memref<1x16x16x4xbf16, #tpu.memory_space<vmem>>, vector<1x16x16x4xbf16>
    %13 = vector.shape_cast %12 : vector<1x16x16x4xbf16> to vector<16x16x4xbf16>
    %c1 = arith.constant 1 : index
    %c1_29 = arith.constant 1 : index
    %c0_30 = arith.constant 0 : index
    %14 = vector.load %arg7[%c1, %c1_29, %c0_30] : memref<18x18x4xbf16, #tpu.memory_space<vmem>>, vector<16x16x4xbf16>
    tpu.vector_store %arg7[%c1, %c1_29, %c0_30], %13 {strides = array<i32>} : memref<18x18x4xbf16, #tpu.memory_space<vmem>>, vector<16x16x4xbf16>,
    %c0_31 = arith.constant 0 : index
    %c0_32 = arith.constant 0 : index
    %c0_33 = arith.constant 0 : index
    %15 = vector.load %arg7[%c0_31, %c0_32, %c0_33] : memref<18x18x4xbf16, #tpu.memory_space<vmem>>, vector<16x16x4xbf16>
    %16 = vector.shape_cast %15 : vector<16x16x4xbf16> to vector<256x4xbf16>
    %c0_34 = arith.constant 0 : index
    %c0_35 = arith.constant 0 : index
    %17 = vector.load %arg9[%c0_34, %c0_35] : memref<256x36xbf16, #tpu.memory_space<vmem>>, vector<256x4xbf16>
    tpu.vector_store %arg9[%c0_34, %c0_35], %16 {strides = array<i32>} : memref<256x36xbf16, #tpu.memory_space<vmem>>, vector<256x4xbf16>,
    %c0_36 = arith.constant 0 : index
    %c1_37 = arith.constant 1 : index
    %c0_38 = arith.constant 0 : index
    %18 = vector.load %arg7[%c0_36, %c1_37, %c0_38] : memref<18x18x4xbf16, #tpu.memory_space<vmem>>, vector<16x16x4xbf16>
    %19 = vector.shape_cast %18 : vector<16x16x4xbf16> to vector<256x4xbf16>
    %c0_39 = arith.constant 0 : index
    %c4 = arith.constant 4 : index
    %20 = vector.load %arg9[%c0_39, %c4] : memref<256x36xbf16, #tpu.memory_space<vmem>>, vector<256x4xbf16>
    tpu.vector_store %arg9[%c0_39, %c4], %19 {strides = array<i32>} : memref<256x36xbf16, #tpu.memory_space<vmem>>, vector<256x4xbf16>,
    %c0_40 = arith.constant 0 : index
    %c2 = arith.constant 2 : index
    %c0_41 = arith.constant 0 : index
    %21 = vector.load %arg7[%c0_40, %c2, %c0_41] : memref<18x18x4xbf16, #tpu.memory_space<vmem>>, vector<16x16x4xbf16>
    %22 = vector.shape_cast %21 : vector<16x16x4xbf16> to vector<256x4xbf16>
    %c0_42 = arith.constant 0 : index
    %c8 = arith.constant 8 : index
    %23 = vector.load %arg9[%c0_42, %c8] : memref<256x36xbf16, #tpu.memory_space<vmem>>, vector<256x4xbf16>
    tpu.vector_store %arg9[%c0_42, %c8], %22 {strides = array<i32>} : memref<256x36xbf16, #tpu.memory_space<vmem>>, vector<256x4xbf16>,
    %c1_43 = arith.constant 1 : index
    %c0_44 = arith.constant 0 : index
    %c0_45 = arith.constant 0 : index
    %24 = vector.load %arg7[%c1_43, %c0_44, %c0_45] : memref<18x18x4xbf16, #tpu.memory_space<vmem>>, vector<16x16x4xbf16>
    %25 = vector.shape_cast %24 : vector<16x16x4xbf16> to vector<256x4xbf16>
    %c0_46 = arith.constant 0 : index
    %c12 = arith.constant 12 : index
    %26 = vector.load %arg9[%c0_46, %c12] : memref<256x36xbf16, #tpu.memory_space<vmem>>, vector<256x4xbf16>
    tpu.vector_store %arg9[%c0_46, %c12], %25 {strides = array<i32>} : memref<256x36xbf16, #tpu.memory_space<vmem>>, vector<256x4xbf16>,
    %c1_47 = arith.constant 1 : index
    %c1_48 = arith.constant 1 : index
    %c0_49 = arith.constant 0 : index
    %27 = vector.load %arg7[%c1_47, %c1_48, %c0_49] : memref<18x18x4xbf16, #tpu.memory_space<vmem>>, vector<16x16x4xbf16>
    %28 = vector.shape_cast %27 : vector<16x16x4xbf16> to vector<256x4xbf16>
    %c0_50 = arith.constant 0 : index
    %c16 = arith.constant 16 : index
    %29 = vector.load %arg9[%c0_50, %c16] : memref<256x36xbf16, #tpu.memory_space<vmem>>, vector<256x4xbf16>
    tpu.vector_store %arg9[%c0_50, %c16], %28 {strides = array<i32>} : memref<256x36xbf16, #tpu.memory_space<vmem>>, vector<256x4xbf16>,
    %c1_51 = arith.constant 1 : index
    %c2_52 = arith.constant 2 : index
    %c0_53 = arith.constant 0 : index
    %30 = vector.load %arg7[%c1_51, %c2_52, %c0_53] : memref<18x18x4xbf16, #tpu.memory_space<vmem>>, vector<16x16x4xbf16>
    %31 = vector.shape_cast %30 : vector<16x16x4xbf16> to vector<256x4xbf16>
    %c0_54 = arith.constant 0 : index
    %c20 = arith.constant 20 : index
    %32 = vector.load %arg9[%c0_54, %c20] : memref<256x36xbf16, #tpu.memory_space<vmem>>, vector<256x4xbf16>
    tpu.vector_store %arg9[%c0_54, %c20], %31 {strides = array<i32>} : memref<256x36xbf16, #tpu.memory_space<vmem>>, vector<256x4xbf16>,
    %c2_55 = arith.constant 2 : index
    %c0_56 = arith.constant 0 : index
    %c0_57 = arith.constant 0 : index
    %33 = vector.load %arg7[%c2_55, %c0_56, %c0_57] : memref<18x18x4xbf16, #tpu.memory_space<vmem>>, vector<16x16x4xbf16>
    %34 = vector.shape_cast %33 : vector<16x16x4xbf16> to vector<256x4xbf16>
    %c0_58 = arith.constant 0 : index
    %c24 = arith.constant 24 : index
    %35 = vector.load %arg9[%c0_58, %c24] : memref<256x36xbf16, #tpu.memory_space<vmem>>, vector<256x4xbf16>
    tpu.vector_store %arg9[%c0_58, %c24], %34 {strides = array<i32>} : memref<256x36xbf16, #tpu.memory_space<vmem>>, vector<256x4xbf16>,
    %c2_59 = arith.constant 2 : index
    %c1_60 = arith.constant 1 : index
    %c0_61 = arith.constant 0 : index
    %36 = vector.load %arg7[%c2_59, %c1_60, %c0_61] : memref<18x18x4xbf16, #tpu.memory_space<vmem>>, vector<16x16x4xbf16>
    %37 = vector.shape_cast %36 : vector<16x16x4xbf16> to vector<256x4xbf16>
    %c0_62 = arith.constant 0 : index
    %c28 = arith.constant 28 : index
    %38 = vector.load %arg9[%c0_62, %c28] : memref<256x36xbf16, #tpu.memory_space<vmem>>, vector<256x4xbf16>
    tpu.vector_store %arg9[%c0_62, %c28], %37 {strides = array<i32>} : memref<256x36xbf16, #tpu.memory_space<vmem>>, vector<256x4xbf16>,
    %c2_63 = arith.constant 2 : index
    %c2_64 = arith.constant 2 : index
    %c0_65 = arith.constant 0 : index
    %39 = vector.load %arg7[%c2_63, %c2_64, %c0_65] : memref<18x18x4xbf16, #tpu.memory_space<vmem>>, vector<16x16x4xbf16>
    %40 = vector.shape_cast %39 : vector<16x16x4xbf16> to vector<256x4xbf16>
    %c0_66 = arith.constant 0 : index
    %c32 = arith.constant 32 : index
    %41 = vector.load %arg9[%c0_66, %c32] : memref<256x36xbf16, #tpu.memory_space<vmem>>, vector<256x4xbf16>
    tpu.vector_store %arg9[%c0_66, %c32], %40 {strides = array<i32>} : memref<256x36xbf16, #tpu.memory_space<vmem>>, vector<256x4xbf16>,
    %c0_67 = arith.constant 0 : index
    %c0_68 = arith.constant 0 : index
    %42 = vector.load %arg9[%c0_67, %c0_68] : memref<256x36xbf16, #tpu.memory_space<vmem>>, vector<256x36xbf16>
    %c0_69 = arith.constant 0 : index
    %c0_70 = arith.constant 0 : index
    %43 = vector.load %arg2[%c0_69, %c0_70] : memref<36x128xbf16, #tpu.memory_space<vmem>>, vector<36x128xbf16>
    %cst_71 = arith.constant dense<0.000000e+00> : vector<256x128xf32>
    %44 = tpu.matmul %42, %43, %cst_71 {dimension_numbers = #tpu.dot_dimension_numbers<[1], [0], [0], [1], [0, 0, 1, 1], [], []>} : vector<256x36xbf16>, vector<36x128xbf16>, vector<256x128xf32> -> vector<256x128xf32>
    %c0_72 = arith.constant 0 : index
    %c0_73 = arith.constant 0 : index
    %45 = vector.load %arg3[%c0_72, %c0_73] : memref<1x128xf32, #tpu.memory_space<vmem>>, vector<1x128xf32>
    %46 = vector.broadcast %45 : vector<1x128xf32> to vector<256x128xf32>
    %47 = arith.addf %44, %46 : vector<256x128xf32>
    %cst_74 = arith.constant 0.000000e+00 : f32
    %48 = vector.broadcast %cst_74 : f32 to vector<256x128xf32>
    %49 = arith.maximumf %47, %48 : vector<256x128xf32>
    %50 = vector.shape_cast %49 : vector<256x128xf32> to vector<16x16x128xf32>
    %51 = vector.extract_strided_slice %50 {offsets = [0, 0, 0], sizes = [16, 16, 8], strides = [1, 1, 1]} : vector<16x16x128xf32> to vector<16x16x8xf32>
    %52 = arith.truncf %51 : vector<16x16x8xf32> to vector<16x16x8xbf16>
    %c1_75 = arith.constant 1 : index
    %c1_76 = arith.constant 1 : index
    %c0_77 = arith.constant 0 : index
    %53 = vector.load %arg8[%c1_75, %c1_76, %c0_77] : memref<18x18x8xbf16, #tpu.memory_space<vmem>>, vector<16x16x8xbf16>
    tpu.vector_store %arg8[%c1_75, %c1_76, %c0_77], %52 {strides = array<i32>} : memref<18x18x8xbf16, #tpu.memory_space<vmem>>, vector<16x16x8xbf16>,
    %c0_78 = arith.constant 0 : index
    %c0_79 = arith.constant 0 : index
    %c0_80 = arith.constant 0 : index
    %54 = vector.load %arg8[%c0_78, %c0_79, %c0_80] : memref<18x18x8xbf16, #tpu.memory_space<vmem>>, vector<16x16x8xbf16>
    %55 = vector.shape_cast %54 : vector<16x16x8xbf16> to vector<256x8xbf16>
    %c0_81 = arith.constant 0 : index
    %c0_82 = arith.constant 0 : index
    %56 = vector.load %arg10[%c0_81, %c0_82] : memref<256x72xbf16, #tpu.memory_space<vmem>>, vector<256x8xbf16>
    tpu.vector_store %arg10[%c0_81, %c0_82], %55 {strides = array<i32>} : memref<256x72xbf16, #tpu.memory_space<vmem>>, vector<256x8xbf16>,
    %c0_83 = arith.constant 0 : index
    %c1_84 = arith.constant 1 : index
    %c0_85 = arith.constant 0 : index
    %57 = vector.load %arg8[%c0_83, %c1_84, %c0_85] : memref<18x18x8xbf16, #tpu.memory_space<vmem>>, vector<16x16x8xbf16>
    %58 = vector.shape_cast %57 : vector<16x16x8xbf16> to vector<256x8xbf16>
    %c0_86 = arith.constant 0 : index
    %c8_87 = arith.constant 8 : index
    %59 = vector.load %arg10[%c0_86, %c8_87] : memref<256x72xbf16, #tpu.memory_space<vmem>>, vector<256x8xbf16>
    tpu.vector_store %arg10[%c0_86, %c8_87], %58 {strides = array<i32>} : memref<256x72xbf16, #tpu.memory_space<vmem>>, vector<256x8xbf16>,
    %c0_88 = arith.constant 0 : index
    %c2_89 = arith.constant 2 : index
    %c0_90 = arith.constant 0 : index
    %60 = vector.load %arg8[%c0_88, %c2_89, %c0_90] : memref<18x18x8xbf16, #tpu.memory_space<vmem>>, vector<16x16x8xbf16>
    %61 = vector.shape_cast %60 : vector<16x16x8xbf16> to vector<256x8xbf16>
    %c0_91 = arith.constant 0 : index
    %c16_92 = arith.constant 16 : index
    %62 = vector.load %arg10[%c0_91, %c16_92] : memref<256x72xbf16, #tpu.memory_space<vmem>>, vector<256x8xbf16>
    tpu.vector_store %arg10[%c0_91, %c16_92], %61 {strides = array<i32>} : memref<256x72xbf16, #tpu.memory_space<vmem>>, vector<256x8xbf16>,
    %c1_93 = arith.constant 1 : index
    %c0_94 = arith.constant 0 : index
    %c0_95 = arith.constant 0 : index
    %63 = vector.load %arg8[%c1_93, %c0_94, %c0_95] : memref<18x18x8xbf16, #tpu.memory_space<vmem>>, vector<16x16x8xbf16>
    %64 = vector.shape_cast %63 : vector<16x16x8xbf16> to vector<256x8xbf16>
    %c0_96 = arith.constant 0 : index
    %c24_97 = arith.constant 24 : index
    %65 = vector.load %arg10[%c0_96, %c24_97] : memref<256x72xbf16, #tpu.memory_space<vmem>>, vector<256x8xbf16>
    tpu.vector_store %arg10[%c0_96, %c24_97], %64 {strides = array<i32>} : memref<256x72xbf16, #tpu.memory_space<vmem>>, vector<256x8xbf16>,
    %c1_98 = arith.constant 1 : index
    %c1_99 = arith.constant 1 : index
    %c0_100 = arith.constant 0 : index
    %66 = vector.load %arg8[%c1_98, %c1_99, %c0_100] : memref<18x18x8xbf16, #tpu.memory_space<vmem>>, vector<16x16x8xbf16>
    %67 = vector.shape_cast %66 : vector<16x16x8xbf16> to vector<256x8xbf16>
    %c0_101 = arith.constant 0 : index
    %c32_102 = arith.constant 32 : index
    %68 = vector.load %arg10[%c0_101, %c32_102] : memref<256x72xbf16, #tpu.memory_space<vmem>>, vector<256x8xbf16>
    tpu.vector_store %arg10[%c0_101, %c32_102], %67 {strides = array<i32>} : memref<256x72xbf16, #tpu.memory_space<vmem>>, vector<256x8xbf16>,
    %c1_103 = arith.constant 1 : index
    %c2_104 = arith.constant 2 : index
    %c0_105 = arith.constant 0 : index
    %69 = vector.load %arg8[%c1_103, %c2_104, %c0_105] : memref<18x18x8xbf16, #tpu.memory_space<vmem>>, vector<16x16x8xbf16>
    %70 = vector.shape_cast %69 : vector<16x16x8xbf16> to vector<256x8xbf16>
    %c0_106 = arith.constant 0 : index
    %c40 = arith.constant 40 : index
    %71 = vector.load %arg10[%c0_106, %c40] : memref<256x72xbf16, #tpu.memory_space<vmem>>, vector<256x8xbf16>
    tpu.vector_store %arg10[%c0_106, %c40], %70 {strides = array<i32>} : memref<256x72xbf16, #tpu.memory_space<vmem>>, vector<256x8xbf16>,
    %c2_107 = arith.constant 2 : index
    %c0_108 = arith.constant 0 : index
    %c0_109 = arith.constant 0 : index
    %72 = vector.load %arg8[%c2_107, %c0_108, %c0_109] : memref<18x18x8xbf16, #tpu.memory_space<vmem>>, vector<16x16x8xbf16>
    %73 = vector.shape_cast %72 : vector<16x16x8xbf16> to vector<256x8xbf16>
    %c0_110 = arith.constant 0 : index
    %c48 = arith.constant 48 : index
    %74 = vector.load %arg10[%c0_110, %c48] : memref<256x72xbf16, #tpu.memory_space<vmem>>, vector<256x8xbf16>
    tpu.vector_store %arg10[%c0_110, %c48], %73 {strides = array<i32>} : memref<256x72xbf16, #tpu.memory_space<vmem>>, vector<256x8xbf16>,
    %c2_111 = arith.constant 2 : index
    %c1_112 = arith.constant 1 : index
    %c0_113 = arith.constant 0 : index
    %75 = vector.load %arg8[%c2_111, %c1_112, %c0_113] : memref<18x18x8xbf16, #tpu.memory_space<vmem>>, vector<16x16x8xbf16>
    %76 = vector.shape_cast %75 : vector<16x16x8xbf16> to vector<256x8xbf16>
    %c0_114 = arith.constant 0 : index
    %c56 = arith.constant 56 : index
    %77 = vector.load %arg10[%c0_114, %c56] : memref<256x72xbf16, #tpu.memory_space<vmem>>, vector<256x8xbf16>
    tpu.vector_store %arg10[%c0_114, %c56], %76 {strides = array<i32>} : memref<256x72xbf16, #tpu.memory_space<vmem>>, vector<256x8xbf16>,
    %c2_115 = arith.constant 2 : index
    %c2_116 = arith.constant 2 : index
    %c0_117 = arith.constant 0 : index
    %78 = vector.load %arg8[%c2_115, %c2_116, %c0_117] : memref<18x18x8xbf16, #tpu.memory_space<vmem>>, vector<16x16x8xbf16>
    %79 = vector.shape_cast %78 : vector<16x16x8xbf16> to vector<256x8xbf16>
    %c0_118 = arith.constant 0 : index
    %c64 = arith.constant 64 : index
    %80 = vector.load %arg10[%c0_118, %c64] : memref<256x72xbf16, #tpu.memory_space<vmem>>, vector<256x8xbf16>
    tpu.vector_store %arg10[%c0_118, %c64], %79 {strides = array<i32>} : memref<256x72xbf16, #tpu.memory_space<vmem>>, vector<256x8xbf16>,
    %c0_119 = arith.constant 0 : index
    %c0_120 = arith.constant 0 : index
    %81 = vector.load %arg10[%c0_119, %c0_120] : memref<256x72xbf16, #tpu.memory_space<vmem>>, vector<256x72xbf16>
    %c0_121 = arith.constant 0 : index
    %c0_122 = arith.constant 0 : index
    %82 = vector.load %arg4[%c0_121, %c0_122] : memref<72x128xbf16, #tpu.memory_space<vmem>>, vector<72x128xbf16>
    %cst_123 = arith.constant dense<0.000000e+00> : vector<256x128xf32>
    %83 = tpu.matmul %81, %82, %cst_123 {dimension_numbers = #tpu.dot_dimension_numbers<[1], [0], [0], [1], [0, 0, 1, 1], [], []>} : vector<256x72xbf16>, vector<72x128xbf16>, vector<256x128xf32> -> vector<256x128xf32>
    %c0_124 = arith.constant 0 : index
    %c0_125 = arith.constant 0 : index
    %84 = vector.load %arg5[%c0_124, %c0_125] : memref<1x128xf32, #tpu.memory_space<vmem>>, vector<1x128xf32>
    %85 = vector.broadcast %84 : vector<1x128xf32> to vector<256x128xf32>
    %86 = arith.addf %83, %85 : vector<256x128xf32>
    %cst_126 = arith.constant 0.000000e+00 : f32
    %87 = vector.broadcast %cst_126 : f32 to vector<256x128xf32>
    %88 = arith.maximumf %86, %87 : vector<256x128xf32>
    %89 = vector.shape_cast %88 : vector<256x128xf32> to vector<16x16x128xf32>
    %90 = vector.extract_strided_slice %89 {offsets = [0, 0, 0], sizes = [16, 16, 8], strides = [1, 1, 1]} : vector<16x16x128xf32> to vector<16x16x8xf32>
    %c0_127 = arith.constant 0 : index
    %c0_128 = arith.constant 0 : index
    %c0_129 = arith.constant 0 : index
    %c0_130 = arith.constant 0 : index
    %91 = vector.load %arg6[%c0_127, %c0_128, %c0_129, %c0_130] : memref<1x16x16x8xf32, #tpu.memory_space<vmem>>, vector<1x16x16x8xf32>
    %92 = vector.shape_cast %91 : vector<1x16x16x8xf32> to vector<16x16x8xf32>
    %93 = vector.shape_cast %90 : vector<16x16x8xf32> to vector<1x16x16x8xf32>
    tpu.vector_store %arg6[%c0_127, %c0_128, %c0_129, %c0_130], %93 {strides = array<i32>} : memref<1x16x16x8xf32, #tpu.memory_space<vmem>>, vector<1x16x16x8xf32>,
    return
  }
  func.func @transform_0(%arg0: i32) -> (i32, i32, i32, i32) {
    %c0_i32 = arith.constant 0 : i32
    %c0_i32_0 = arith.constant 0 : i32
    %c0_i32_1 = arith.constant 0 : i32
    %c0_i32_2 = arith.constant 0 : i32
    return %arg0, %c0_i32, %c0_i32_0, %c0_i32_1 : i32, i32, i32, i32
  }
  func.func @transform_1(%arg0: i32) -> (i32, i32) {
    %c0_i32 = arith.constant 0 : i32
    %c0_i32_0 = arith.constant 0 : i32
    %c0_i32_1 = arith.constant 0 : i32
    return %c0_i32, %c0_i32_0 : i32, i32
  }
  func.func @transform_2(%arg0: i32) -> (i32, i32) {
    %c0_i32 = arith.constant 0 : i32
    %c0_i32_0 = arith.constant 0 : i32
    %c0_i32_1 = arith.constant 0 : i32
    return %c0_i32, %c0_i32_0 : i32, i32
  }
  func.func @transform_3(%arg0: i32) -> (i32, i32) {
    %c0_i32 = arith.constant 0 : i32
    %c0_i32_0 = arith.constant 0 : i32
    %c0_i32_1 = arith.constant 0 : i32
    return %c0_i32, %c0_i32_0 : i32, i32
  }
  func.func @transform_4(%arg0: i32) -> (i32, i32) {
    %c0_i32 = arith.constant 0 : i32
    %c0_i32_0 = arith.constant 0 : i32
    %c0_i32_1 = arith.constant 0 : i32
    return %c0_i32, %c0_i32_0 : i32, i32
  }
  func.func @transform_5(%arg0: i32) -> (i32, i32, i32, i32) {
    %c0_i32 = arith.constant 0 : i32
    %c0_i32_0 = arith.constant 0 : i32
    %c0_i32_1 = arith.constant 0 : i32
    %c0_i32_2 = arith.constant 0 : i32
    return %arg0, %c0_i32, %c0_i32_0, %c0_i32_1 : i32, i32, i32, i32
  }
}

</mosaic_0001>

<bundles_post_ra>
// kernel: conv_block_forward.1
= control target key start
LH: loop header
LB: loop body
LE: loop exit
PB: predicated region body
PF: predicated region fallthrough
CT: control target
= control target key end

     0   :  { %s9120_s18 = smov 0   ;;  %s11853_s0 = inlined_call_operand.vmem [shape: bf16[2,16,16,4], index: 0, kind: input, shape index: {}]   ;;  %s11854_s1 = inlined_call_operand.vmem [shape: bf16[36,128], index: 1, kind: input, shape index: {}]   ;;  %s11855_s2 = inlined_call_operand.vmem [shape: f32[1,128], index: 2, kind: input, shape index: {}]   ;;  %s11856_s3 = inlined_call_operand.vmem [shape: bf16[72,128], index: 3, kind: input, shape index: {}]   ;;  %s11857_s4 = inlined_call_operand.vmem [shape: f32[1,128], index: 4, kind: input, shape index: {}]   ;;  %s11858_s5 = inlined_call_operand.vmem [shape: f32[2,16,16,8], index: 5, kind: output, shape index: {}]  }
   0x1 LB: > { %s8638_s19 = sadd.s32 4294967295, %s9075_s18   ;;  %p8642_p0 = scmp.ge.s32.totalorder %s9075_s18, 1  ;;  %s9075_s18 = sphi %s9120_s18, %s15_s18  }
   0x2   : > { %p187_p1 = scmp.lt.s32.totalorder %s9075_s18, 3 }
   0x4   : > { %p188_p2 = pnand %p8642_p0, %p187_p1 }
   0x5   : > { %p215_p3 = scmp.lt.s32.totalorder (!%p188_p2), %s8638_s19, 1  ;;  %s9078_s24 = smov (!%p188_p2), 4  }
   0x6   : > { %191 = sbr.rel (%p188_p2) target bundleno = 1757 (0x6dd), region = 40  ;;  %s9079_s25 = smov (!%p188_p2), 8  }
   0x7   : > { %s9080_s26 = smov (!%p188_p2), 12   ;;  %s9081_s27 = smov (!%p188_p2), 16  }
   0x8   : > { %s9082_s28 = smov (!%p188_p2), 20   ;;  %s9083_s29 = smov (!%p188_p2), 24  }
   0x9   : > { %s9084_s7 = smov (!%p188_p2), 28   ;;  %s9085_s12 = smov (!%p188_p2), 32  }
   0xa   : > { %s9086_s17 = smov (!%p188_p2), 40   ;;  %s9089_s6 = smov (!%p188_p2), 64  }
   0xb   : > { %vm226_vm0 = vcmask 27648   ;;  %vm229_vm1 = vcmask 24576   ;;  %vm236_vm2 = vsmask.f32 256  ;;  %v9077_v0 = vmov 0   ;;  %s11878_s19 = smov (!%p215_p3, %s8638_s19), 1 }
   0xc   : > { %228 = vst.msk [vmem:[#allocation2 + $0x4] sm:$0xf] %vm226_vm0, %v9077_v0  ;;  %vm9130_vm3 = vmand %vm229_vm1, %vm236_vm2  ;;  %vm292_vm4 = vsmask.f32 7938  ;;  %vm348_vm5 = vcmask 60416   ;;  %vm351_vm6 = vcmask 57344  }
   0xd   : > { %230 = vst.msk [vmem:[#allocation2 + $0x8] sm:$0x1] %vm229_vm1, %v9077_v0  ;;  %234 = vst.msk [vmem:[#allocation2 + $0xd4] sm:$0x1] %vm229_vm1, %v9077_v0  ;;  %v241_v3 = vld [vmem:[#allocation2 + $0xc] sm:$0x1] }
   0xe   : > { %227 = vst.msk [vmem:[#allocation2] sm:$0xf] %vm226_vm0, %v9077_v0  ;;  %232 = vst.msk [vmem:[#allocation2 + $0xcc] sm:$0xf] %vm226_vm0, %v9077_v0  ;;  %v242_v4 = vsel %vm9130_vm3, 0, %v241_v3  ;;  %s8851_s20 = sshll.u32 %s11878_s19, 7 }
   0xf   : > { %233 = vst.msk [vmem:[#allocation2 + $0xd0] sm:$0xf] %vm226_vm0, %v9077_v0  ;;  %vm9138_vm7 = vmand %vm229_vm1, %vm292_vm4  ;;  %vm500_vm8 = vsmask.f32 4368  ;;  %v297_v5 = vld [vmem:[#allocation2 + $0x14] sm:$0x1]  ;;  %s9170_s23 = scalar_lea.vmem %s11853_s0, %s8851_s20 }
  0x10   : > { %349 = vst.msk [vmem:[#allocation3] sm:$0xf] %vm348_vm5, %v9077_v0  ;;  %350 = vst.msk [vmem:[#allocation3 + $0x4] sm:$0xf] %vm348_vm5, %v9077_v0  ;;  %v298_v6 = vsel %vm9138_vm7, 0, %v297_v5  ;;  %vm1661_vm14 = vcmask 1042432  }
  0x11   : > { %352 = vst.msk [vmem:[#allocation3 + $0x8] sm:$0x1] %vm351_vm6, %v9077_v0  ;;  %356 = vst.msk [vmem:[#allocation3 + $0xd4] sm:$0x1] %vm351_vm6, %v9077_v0  ;;  %v244_v7 = vld [vmem:[#allocation2 + $0x18] sm:$0x1] }
  0x12   : > { %354 = vst.msk [vmem:[#allocation3 + $0xcc] sm:$0xf] %vm348_vm5, %v9077_v0  ;;  %355 = vst.msk [vmem:[#allocation3 + $0xd0] sm:$0xf] %vm348_vm5, %v9077_v0  ;;  %v300_v8 = vld [vmem:[#allocation2 + $0x20] sm:$0x1] }
  0x13   : > { %243 = vst [vmem:[#allocation2 + $0xc] sm:$0x1] %v242_v4  ;;  %299 = vst [vmem:[#allocation2 + $0x14] sm:$0x1] %v298_v6  ;;  %v245_v9 = vsel %vm9130_vm3, 0, %v244_v7  ;;  %v301_v10 = vsel %vm9138_vm7, 0, %v300_v8 }
  0x14   : > { %v247_v11 = vld [vmem:[#allocation2 + $0x24] sm:$0x1]  ;;  %v303_v12 = vld [vmem:[#allocation2 + $0x2c] sm:$0x1]  ;;  %246 = vst [vmem:[#allocation2 + $0x18] sm:$0x1] %v245_v9  ;;  %vm9186_vm11 = vmand %vm226_vm0, %vm292_vm4 }
  0x15   : > { %302 = vst [vmem:[#allocation2 + $0x20] sm:$0x1] %v301_v10  ;;  %v248_v13 = vsel %vm9130_vm3, 0, %v247_v11  ;;  %v304_v14 = vsel %vm9138_vm7, 0, %v303_v12  ;;  %v250_v15 = vld [vmem:[#allocation2 + $0x30] sm:$0x1]  ;;  %vm9196_vm12 = vmor %vm236_vm2, %vm500_vm8 }
  0x16   : > { %249 = vst [vmem:[#allocation2 + $0x24] sm:$0x1] %v248_v13  ;;  %305 = vst [vmem:[#allocation2 + $0x2c] sm:$0x1] %v304_v14  ;;  %v251_v16 = vsel %vm9130_vm3, 0, %v250_v15  ;;  %vm1662_vm15 = vcmask 1046532  }
  0x17   : > { %v306_v17 = vld [vmem:[#allocation2 + $0x38] sm:$0x1]  ;;  %v253_v18 = vld [vmem:[#allocation2 + $0x3c] sm:$0x1]  ;;  %v294_v19 = vld [vmem:[#allocation2 + $0x8] sm:$0x1] }
  0x18   : > { %v1002_v20 = vld [vmem:[#allocation2 + $0x4] sm:$0xf]  ;;  %vm1049_vm9 = vsmask.f32 3328  ;;  %vm1050_vm10 = vsmask.f32 7440  ;;  %vm9508_vm1 = vmor %vm1661_vm14, %vm1662_vm15 }
  0x19   : > { %v468_v21 = vld [vmem:[%s9170_s23] sm:$0xf]  ;;  %252 = vst [vmem:[#allocation2 + $0x30] sm:$0x1] %v251_v16  ;;  %v295_v22 = vsel %vm9138_vm7, 0, %v294_v19  ;;  %v1062_v23 = vshll.u32 %v1002_v20, 16  ;;  %vm9212_vm13 = vmor %vm1049_vm9, %vm1050_vm10 }
  0x1a   : > { %v1066_v24 = vshrl.u32 %v1002_v20, 16  ;;  %v469_v25 = vld [vmem:[%s9170_s23 + $0x4] sm:$0xf]  ;;  %v503_v26 = vshrl.u32 %v468_v21, 16  ;;  %296 = vst [vmem:[#allocation2 + $0x8] sm:$0x1] %v295_v22 }
  0x1b   : > { %v506_v27 = vshll.u32 %v468_v21, 16  ;;  %v511_v28 = vshrl.u32 %v469_v25, 16  ;;  %v514_v29 = vshll.u32 %v469_v25, 16  ;;  %v238_v30 = vld [vmem:[#allocation2] sm:$0x1]  ;;  %v307_v31 = vsel %vm9138_vm7, 0, %v306_v17 }
  0x1c   : > { %v9180_v32 = vrot.slane %v1062_v23, 5  ;;  %v1068_v33 = vrot.slane %v1066_v24, 4  ;;  %v505_v34 = vrot.slane %v503_v26, 7  ;;  %v239_v35 = vsel %vm9130_vm3, 0, %v238_v30  ;;  %308 = vst [vmem:[#allocation2 + $0x38] sm:$0x1] %v307_v31 }
  0x1d   : > { %v513_v37 = vrot.slane %v511_v28, 7  ;;  %v825_v38 = vld [vmem:[#allocation2 + $0xc] sm:$0xf]  ;;  %240 = vst [vmem:[#allocation2] sm:$0x1] %v239_v35  ;;  %v254_v40 = vsel %vm9130_vm3, 0, %v253_v18 }
  0x1e   : > { %v470_v39 = vld [vmem:[%s9170_s23 + $0x8] sm:$0xf]  ;;  %v1069_v41 = vor.u32 %v1068_v33, %v9180_v32  ;;  %v508_v43 = vor.u32 %v506_v27, %v505_v34  ;;  %v509_v44 = vrot.slane %v505_v34, 4  ;;  %v829_v45 = vld [vmem:[#allocation2 + $0x14] sm:$0x1]  ;;  %vm1532_vm8 = vcmask 60448  }
  0x1f   : > { %v471_v46 = vld [vmem:[%s9170_s23 + $0xc] sm:$0xf]  ;;  %v520_v47 = vshrl.u32 %v470_v39, 16  ;;  %255 = vst [vmem:[#allocation2 + $0x3c] sm:$0x1] %v254_v40  ;;  %v516_v48 = vor.u32 %v514_v29, %v513_v37  ;;  %v518_v49 = vrot.slane %v513_v37, 4 }
  0x20   : > { %v523_v50 = vshll.u32 %v470_v39, 16  ;;  %v528_v51 = vshrl.u32 %v471_v46, 16  ;;  %v1070_v52 = vrot.slane %v1069_v41, 4  ;;  %v826_v53 = vsel %vm9186_vm11, %v508_v43, %v825_v38  ;;  %v472_v56 = vld [vmem:[%s9170_s23 + $0x10] sm:$0xf]  ;;  %s9087_s20 = smov 48  }
  0x21   : > { %v522_v54 = vrot.slane %v520_v47, 7  ;;  %v531_v55 = vshll.u32 %v471_v46, 16  ;;  %v517_v57 = vsel %vm9196_vm12, %v509_v44, %v516_v48  ;;  %827 = vst [vmem:[#allocation2 + $0xc] sm:$0xf] %v826_v53  ;;  %v830_v58 = vsel %vm9130_vm3, %v518_v49, %v829_v45  ;;  %v832_v60 = vld [vmem:[#allocation2 + $0x18] sm:$0xf] }
  0x22   : > { %v530_v59 = vrot.slane %v528_v51, 7  ;;  %v473_v61 = vld [vmem:[%s9170_s23 + $0x14] sm:$0xf]  ;;  %v537_v62 = vshrl.u32 %v472_v56, 16  ;;  %v1003_v63 = vld [vmem:[#allocation2 + $0x8] sm:$0x1] }
  0x23   : > { %828 = vst.msk [vmem:[#allocation2 + $0x10] sm:$0xf] %vm226_vm0, %v517_v57  ;;  %831 = vst [vmem:[#allocation2 + $0x14] sm:$0x1] %v830_v58  ;;  %v525_v0 = vor.u32 %v523_v50, %v522_v54  ;;  %v526_v3 = vrot.slane %v522_v54, 4  ;;  %v540_v4 = vshll.u32 %v472_v56, 16 }
  0x24   : > { %v545_v5 = vshrl.u32 %v473_v61, 16  ;;  %v1072_v6 = vshll.u32 %v1003_v63, 16  ;;  %v533_v7 = vor.u32 %v531_v55, %v530_v59  ;;  %v535_v8 = vrot.slane %v530_v59, 4  ;;  %v836_v9 = vld [vmem:[#allocation2 + $0x20] sm:$0x1]  ;;  %s8852_s10 = sshll.u32 %s11878_s19, 8 }
  0x25   : > { %v539_v10 = vrot.slane %v537_v62, 7  ;;  %v1001_v12 = vld [vmem:[#allocation2] sm:$0xf]  ;;  %v833_v13 = vsel %vm9186_vm11, %v525_v0, %v832_v60  ;;  %v548_v15 = vshll.u32 %v473_v61, 16  ;;  %v839_v16 = vld [vmem:[#allocation2 + $0x24] sm:$0xf]  ;;  %s11702_s13 = scalar_lea.vmem %s11858_s5, %s8852_s10 }
  0x26   : > { %v547_v14 = vrot.slane %v545_v5, 7  ;;  %v1074_v17 = vrot.slane %v1072_v6, 5  ;;  %v1053_v18 = vshrl.u32 %v1001_v12, 16  ;;  %v1056_v19 = vshll.u32 %v1001_v12, 16  ;;  %834 = vst [vmem:[#allocation2 + $0x18] sm:$0xf] %v833_v13 }
  0x27   : > { %v534_v20 = vsel %vm9196_vm12, %v526_v3, %v533_v7  ;;  %v474_v21 = vld [vmem:[%s9170_s23 + $0x18] sm:$0xf]  ;;  %v837_v22 = vsel %vm9130_vm3, %v535_v8, %v836_v9  ;;  %v542_v23 = vor.u32 %v540_v4, %v539_v10  ;;  %v543_v24 = vrot.slane %v539_v10, 4  ;;  %v843_v26 = vld [vmem:[#allocation2 + $0x2c] sm:$0x1] }
  0x28   : > { %835 = vst.msk [vmem:[#allocation2 + $0x1c] sm:$0xf] %vm226_vm0, %v534_v20  ;;  %v550_v25 = vor.u32 %v548_v15, %v547_v14  ;;  %v1075_v27 = vsel %vm9212_vm13, %v1070_v52, %v1074_v17  ;;  %v1055_v28 = vrot.slane %v1053_v18, 4  ;;  %v1058_v29 = vrot.slane %v1056_v19, 5  ;;  %838 = vst [vmem:[#allocation2 + $0x20] sm:$0x1] %v837_v22 }
  0x29   : > { %v552_v30 = vrot.slane %v547_v14, 4  ;;  %1438 = vrot.lane.b32.xlu0 %v1075_v27, %s9078_s24  ;;  %v1004_v31 = vld [vmem:[#allocation2 + $0xc] sm:$0xf]  ;;  %v840_v34 = vsel %vm9186_vm11, %v542_v23, %v839_v16  ;;  %v9232_v35 = vld [vmem:[%s9170_s23 + $0x1c] sm:$0xf]  ;;  %v554_v37 = vshrl.u32 %v474_v21, 16 }
  0x2a   : > { %v551_v33 = vsel %vm9196_vm12, %v543_v24, %v550_v25  ;;  %v557_v38 = vshll.u32 %v474_v21, 16  ;;  %v1005_v39 = vld [vmem:[#allocation2 + $0x10] sm:$0xf]  ;;  %v1077_v40 = vshrl.u32 %v1004_v31, 16  ;;  %v1080_v41 = vshll.u32 %v1004_v31, 16 }
  0x2b   : > { %v1059_v43 = vor.u32 %v1058_v29, %v1055_v28  ;;  %v1006_v44 = vld [vmem:[#allocation2 + $0x14] sm:$0x1]  ;;  %841 = vst [vmem:[#allocation2 + $0x24] sm:$0xf] %v840_v34  ;;  %842 = vst.msk [vmem:[#allocation2 + $0x28] sm:$0xf] %vm226_vm0, %v551_v33  ;;  %v844_v45 = vsel %vm9130_vm3, %v552_v30, %v843_v26 }
  0x2c   : > { %v1086_v46 = vshll.u32 %v1005_v39, 16  ;;  %v1090_v47 = vshrl.u32 %v1005_v39, 16  ;;  %v1096_v48 = vshll.u32 %v1006_v44, 16  ;;  %845 = vst [vmem:[#allocation2 + $0x2c] sm:$0x1] %v844_v45  ;;  %v9237_v49 = vrot.slane %v554_v37, 7 }
  0x2d   : > { %v1079_v50 = vrot.slane %v1077_v40, 4  ;;  %v1082_v51 = vrot.slane %v1080_v41, 5  ;;  %v1060_v52 = vrot.slane %v1059_v43, 4  ;;  %v562_v53 = vshrl.u32 %v9232_v35, 16  ;;  %v1007_v57 = vld [vmem:[#allocation2 + $0x18] sm:$0xf] }
  0x2e   : > { %v1088_v54 = vrot.slane %v1086_v46, 5  ;;  %v1092_v55 = vrot.slane %v1090_v47, 4  ;;  %v1098_v56 = vrot.slane %v1096_v48, 5  ;;  %v559_v58 = vor.u32 %v557_v38, %v9237_v49  ;;  %v846_v26 = vld [vmem:[#allocation2 + $0x30] sm:$0xf] }
  0x2f   : > { %v1083_v59 = vor.u32 %v1082_v51, %v1079_v50  ;;  %v1065_v60 = vsel %vm9212_vm13, %v1060_v52, %v9180_v32  ;;  %v1008_v61 = vld [vmem:[#allocation2 + $0x1c] sm:$0xf]  ;;  %v1101_v62 = vshrl.u32 %v1007_v57, 16  ;;  %v1104_v63 = vshll.u32 %v1007_v57, 16  ;;  %v1009_v5 = vld [vmem:[#allocation2 + $0x20] sm:$0x1] }
  0x30   : > { %1436 = vrot.lane.b32.xlu0 %v1065_v60, %s9078_s24  ;;  %v1093_v0 = vor.u32 %v1092_v55, %v1088_v54  ;;  %v1110_v3 = vshll.u32 %v1008_v61, 16  ;;  %v1114_v4 = vshrl.u32 %v1008_v61, 16  ;;  %v560_v6 = vrot.slane %v9237_v49, 4  ;;  %v476_v31 = vld [vmem:[%s9170_s23 + $0x20] sm:$0xf] }
  0x31   : > { %v1084_v7 = vrot.slane %v1083_v59, 4  ;;  %v1103_v8 = vrot.slane %v1101_v62, 4  ;;  %v1106_v9 = vrot.slane %v1104_v63, 5  ;;  %v1120_v10 = vshll.u32 %v1009_v5, 16  ;;  %v477_v39 = vld [vmem:[%s9170_s23 + $0x24] sm:$0xf] }
  0x32   : > { %v1094_v12 = vrot.slane %v1093_v0, 4  ;;  %v1112_v13 = vrot.slane %v1110_v3, 5  ;;  %v1116_v14 = vrot.slane %v1114_v4, 4  ;;  %v1010_v15 = vld [vmem:[#allocation2 + $0x24] sm:$0xf]  ;;  %v564_v32 = vrot.slane %v562_v53, 7 }
  0x33   : > { %v1089_v16 = vsel %vm9212_vm13, %v1084_v7, %v1088_v54  ;;  %v1107_v17 = vor.u32 %v1106_v9, %v1103_v8  ;;  %v1122_v18 = vrot.slane %v1120_v10, 5  ;;  %v1011_v19 = vld [vmem:[#allocation2 + $0x28] sm:$0xf]  ;;  %v1125_v20 = vshrl.u32 %v1010_v15, 16  ;;  %v1012_v21 = vld [vmem:[#allocation2 + $0x2c] sm:$0x1] }
  0x34   : > { %1440 = vrot.lane.b32.xlu1 %v1089_v16, %s9078_s24  ;;  %v1099_v22 = vsel %vm9212_vm13, %v1094_v12, %v1098_v56  ;;  %v1117_v23 = vor.u32 %v1116_v14, %v1112_v13  ;;  %v1128_v24 = vshll.u32 %v1010_v15, 16  ;;  %v1134_v25 = vshll.u32 %v1011_v19, 16  ;;  %v850_v45 = vld [vmem:[#allocation2 + $0x38] sm:$0x1]  ;;  %v309_v49 = vld [vmem:[#allocation2 + $0x44] sm:$0x1] }
  0x35   : > { %v1108_v27 = vrot.slane %v1107_v17, 4  ;;  %v1127_v28 = vrot.slane %v1125_v20, 4  ;;  %v1138_v29 = vshrl.u32 %v1011_v19, 16  ;;  %v1144_v30 = vshll.u32 %v1012_v21, 16  ;;  %v256_v50 = vld [vmem:[#allocation2 + $0x48] sm:$0x1] }
  0x36   : > { %v1118_v33 = vrot.slane %v1117_v23, 4  ;;  %v1130_v34 = vrot.slane %v1128_v24, 5  ;;  %v1136_v37 = vrot.slane %v1134_v25, 5  ;;  %v565_v38 = vshll.u32 %v9232_v35, 16  ;;  %v478_v55 = vld [vmem:[%s9170_s23 + $0x28] sm:$0xf] }
  0x37   : > { %v1113_v40 = vsel %vm9212_vm13, %v1108_v27, %v1112_v13  ;;  %v1140_v41 = vrot.slane %v1138_v29, 4  ;;  %v1146_v43 = vrot.slane %v1144_v30, 5  ;;  %v847_v44 = vsel %vm9186_vm11, %v559_v58, %v846_v26  ;;  %v853_v60 = vld [vmem:[#allocation2 + $0x3c] sm:$0xf]  ;;  %v479_v3 = vld [vmem:[%s9170_s23 + $0x2c] sm:$0xf] }
  0x38   : > { %1442 = vrot.lane.b32.xlu1 %v1099_v22, %s9078_s24  ;;  %1444 = vrot.lane.b32.xlu0 %v1113_v40, %s9078_s24  ;;  %v1123_v46 = vsel %vm9212_vm13, %v1118_v33, %v1122_v18  ;;  %v1131_v47 = vor.u32 %v1130_v34, %v1127_v28  ;;  %v567_v35 = vor.u32 %v565_v38, %v564_v32  ;;  %v569_v48 = vrot.slane %v564_v32, 4  ;;  %v312_v7 = vld [vmem:[#allocation2 + $0x50] sm:$0x1]  ;;  %v259_v8 = vld [vmem:[#allocation2 + $0x54] sm:$0x1] }
  0x39   : > { %848 = vst [vmem:[#allocation2 + $0x30] sm:$0xf] %v847_v44  ;;  %v1141_v51 = vor.u32 %v1140_v41, %v1136_v37  ;;  %v571_v52 = vshrl.u32 %v476_v31, 16  ;;  %v574_v53 = vshll.u32 %v476_v31, 16  ;;  %v579_v54 = vshrl.u32 %v477_v39, 16 }
  0x3a   : > { %v1132_v56 = vrot.slane %v1131_v47, 4  ;;  %v568_v57 = vsel %vm9196_vm12, %v560_v6, %v567_v35  ;;  %v851_v58 = vsel %vm9130_vm3, %v569_v48, %v850_v45  ;;  %v582_v59 = vshll.u32 %v477_v39, 16  ;;  %v480_v17 = vld [vmem:[%s9170_s23 + $0x30] sm:$0xf]  ;;  %v481_v28 = vld [vmem:[%s9170_s23 + $0x34] sm:$0xf] }
  0x3b   : > { %v1142_v61 = vrot.slane %v1141_v51, 4  ;;  %849 = vst.msk [vmem:[#allocation2 + $0x34] sm:$0xf] %vm226_vm0, %v568_v57  ;;  %852 = vst [vmem:[#allocation2 + $0x38] sm:$0x1] %v851_v58  ;;  %v573_v62 = vrot.slane %v571_v52, 7 }
  0x3c   : > { %v581_v63 = vrot.slane %v579_v54, 7  ;;  %v310_v0 = vsel %vm9138_vm7, 0, %v309_v49  ;;  %1446 = vrot.lane.b32.xlu1 %v1123_v46, %s9078_s24  ;;  %v1137_v4 = vsel %vm9212_vm13, %v1132_v56, %v1136_v37  ;;  %v257_v5 = vsel %vm9130_vm3, 0, %v256_v50  ;;  %v315_v57 = vld [vmem:[#allocation2 + $0x5c] sm:$0x1] }
  0x3d   : > { %311 = vst [vmem:[#allocation2 + $0x44] sm:$0x1] %v310_v0  ;;  %v588_v6 = vshrl.u32 %v478_v55, 16  ;;  %1448 = vrot.lane.b32.xlu0 %v1137_v4, %s9078_s24  ;;  %v1147_v9 = vsel %vm9212_vm13, %v1142_v61, %v1146_v43  ;;  %v576_v10 = vor.u32 %v574_v53, %v573_v62  ;;  %v577_v12 = vrot.slane %v573_v62, 4  ;;  %258 = vst [vmem:[#allocation2 + $0x48] sm:$0x1] %v257_v5 }
  0x3e   : > { %v584_v13 = vor.u32 %v582_v59, %v581_v63  ;;  %v591_v15 = vshll.u32 %v478_v55, 16  ;;  %v596_v32 = vshrl.u32 %v479_v3, 16  ;;  %v599_v16 = vshll.u32 %v479_v3, 16 }
  0x3f   : > { %v590_v14 = vrot.slane %v588_v6, 7  ;;  %v854_v20 = vsel %vm9186_vm11, %v576_v10, %v853_v60  ;;  %v313_v21 = vsel %vm9138_vm7, 0, %v312_v7  ;;  %v260_v22 = vsel %vm9130_vm3, 0, %v259_v8  ;;  %v262_v10 = vld [vmem:[#allocation2 + $0x60] sm:$0x1] }
  0x40   : > { %v1013_v18 = vld [vmem:[#allocation2 + $0x30] sm:$0xf]  ;;  %v585_v19 = vsel %vm9196_vm12, %v577_v12, %v584_v13  ;;  %1450 = vrot.lane.b32.xlu1 %v1147_v9, %s9078_s24  ;;  %855 = vst [vmem:[#allocation2 + $0x3c] sm:$0xf] %v854_v20  ;;  %v586_v25 = vrot.slane %v581_v63, 4  ;;  %v598_v27 = vrot.slane %v596_v32, 7 }
  0x41   : > { %v1149_v23 = vshrl.u32 %v1013_v18, 16  ;;  %v1152_v24 = vshll.u32 %v1013_v18, 16  ;;  %856 = vst.msk [vmem:[#allocation2 + $0x40] sm:$0xf] %vm226_vm0, %v585_v19  ;;  %314 = vst [vmem:[#allocation2 + $0x50] sm:$0x1] %v313_v21  ;;  %v593_v38 = vor.u32 %v591_v15, %v590_v14 }
  0x42   : > { %261 = vst [vmem:[#allocation2 + $0x54] sm:$0x1] %v260_v22  ;;  %v594_v26 = vrot.slane %v590_v14, 4  ;;  %v605_v29 = vshrl.u32 %v480_v17, 16  ;;  %v608_v30 = vshll.u32 %v480_v17, 16  ;;  %v601_v44 = vor.u32 %v599_v16, %v598_v27 }
  0x43   : > { %v1014_v31 = vld [vmem:[#allocation2 + $0x34] sm:$0xf]  ;;  %v1151_v33 = vrot.slane %v1149_v23, 4  ;;  %v1154_v34 = vrot.slane %v1152_v24, 5  ;;  %v1015_v37 = vld [vmem:[#allocation2 + $0x38] sm:$0x1] }
  0x44   : > { %v1158_v39 = vshll.u32 %v1014_v31, 16  ;;  %v1162_v40 = vshrl.u32 %v1014_v31, 16  ;;  %v1168_v41 = vshll.u32 %v1015_v37, 16  ;;  %v857_v43 = vld [vmem:[#allocation2 + $0x44] sm:$0x1]  ;;  %v607_v35 = vrot.slane %v605_v29, 7 }
  0x45   : > { %v1155_v45 = vor.u32 %v1154_v34, %v1151_v33  ;;  %v858_v46 = vsel %vm9130_vm3, %v586_v25, %v857_v43  ;;  %v860_v47 = vld [vmem:[#allocation2 + $0x48] sm:$0xf]  ;;  %v613_v48 = vshrl.u32 %v481_v28, 16  ;;  %v602_v51 = vsel %vm9196_vm12, %v594_v26, %v601_v44  ;;  %v482_v32 = vld [vmem:[%s9170_s23 + $0x38] sm:$0xf] }
  0x46   : > { %v1160_v49 = vrot.slane %v1158_v39, 5  ;;  %v1164_v50 = vrot.slane %v1162_v40, 4  ;;  %859 = vst [vmem:[#allocation2 + $0x44] sm:$0x1] %v858_v46  ;;  %v603_v52 = vrot.slane %v598_v27, 4  ;;  %v1170_v54 = vrot.slane %v1168_v41, 5 }
  0x47   : > { %v1156_v53 = vrot.slane %v1155_v45, 4  ;;  %v861_v55 = vsel %vm9186_vm11, %v593_v38, %v860_v47  ;;  %863 = vst.msk [vmem:[#allocation2 + $0x4c] sm:$0xf] %vm226_vm0, %v602_v51  ;;  %v611_v56 = vrot.slane %v607_v35, 4  ;;  %v1016_v59 = vld [vmem:[#allocation2 + $0x3c] sm:$0xf]  ;;  %v610_v62 = vor.u32 %v608_v30, %v607_v35 }
  0x48   : > { %v1165_v58 = vor.u32 %v1164_v50, %v1160_v49  ;;  %v1017_v60 = vld [vmem:[#allocation2 + $0x40] sm:$0xf]  ;;  %862 = vst [vmem:[#allocation2 + $0x48] sm:$0xf] %v861_v55  ;;  %v864_v61 = vld [vmem:[#allocation2 + $0x50] sm:$0x1] }
  0x49   : > { %v1161_v63 = vsel %vm9212_vm13, %v1156_v53, %v1160_v49  ;;  %v1173_v0 = vshrl.u32 %v1016_v59, 16  ;;  %v1176_v3 = vshll.u32 %v1016_v59, 16  ;;  %v1182_v4 = vshll.u32 %v1017_v60, 16  ;;  %v867_v5 = vld [vmem:[#allocation2 + $0x54] sm:$0xf] }
  0x4a   : > { %1452 = vrot.lane.b32.xlu0 %v1161_v63, %s9078_s24  ;;  %v1166_v6 = vrot.slane %v1165_v58, 4  ;;  %v1186_v7 = vshrl.u32 %v1017_v60, 16  ;;  %v865_v8 = vsel %vm9130_vm3, %v603_v52, %v864_v61  ;;  %v9303_v9 = vrot.slane %v613_v48, 7  ;;  %v483_v25 = vld [vmem:[%s9170_s23 + $0x3c] sm:$0xf] }
  0x4b   : > { %v1175_v12 = vrot.slane %v1173_v0, 4  ;;  %v1178_v13 = vrot.slane %v1176_v3, 5  ;;  %v1184_v14 = vrot.slane %v1182_v4, 5  ;;  %866 = vst [vmem:[#allocation2 + $0x50] sm:$0x1] %v865_v8  ;;  %v616_v15 = vshll.u32 %v481_v28, 16 }
  0x4c   : > { %v1171_v16 = vsel %vm9212_vm13, %v1166_v6, %v1170_v54  ;;  %v1188_v17 = vrot.slane %v1186_v7, 4  ;;  %v868_v18 = vsel %vm9186_vm11, %v610_v62, %v867_v5  ;;  %v316_v19 = vsel %vm9138_vm7, 0, %v315_v57  ;;  %v265_v62 = vld [vmem:[#allocation2 + $0x6c] sm:$0x1] }
  0x4d   : > { %1454 = vrot.lane.b32.xlu1 %v1171_v16, %s9078_s24  ;;  %v1179_v20 = vor.u32 %v1178_v13, %v1175_v12  ;;  %v1018_v21 = vld [vmem:[#allocation2 + $0x44] sm:$0x1]  ;;  %v618_v22 = vor.u32 %v616_v15, %v9303_v9  ;;  %869 = vst [vmem:[#allocation2 + $0x54] sm:$0xf] %v868_v18  ;;  %317 = vst [vmem:[#allocation2 + $0x5c] sm:$0x1] %v316_v19 }
  0x4e   : > { %v620_v23 = vrot.slane %v9303_v9, 4  ;;  %v263_v24 = vsel %vm9130_vm3, 0, %v262_v10  ;;  %v1189_v26 = vor.u32 %v1188_v17, %v1184_v14  ;;  %v1192_v27 = vshll.u32 %v1018_v21, 16  ;;  %v1020_v28 = vld [vmem:[#allocation2 + $0x4c] sm:$0xf] }
  0x4f   : > { %264 = vst [vmem:[#allocation2 + $0x60] sm:$0x1] %v263_v24  ;;  %v622_v29 = vshrl.u32 %v482_v32, 16  ;;  %v625_v30 = vshll.u32 %v482_v32, 16  ;;  %v1180_v31 = vrot.slane %v1179_v20, 4  ;;  %v1206_v34 = vshll.u32 %v1020_v28, 16 }
  0x50   : > { %v1019_v33 = vld [vmem:[#allocation2 + $0x48] sm:$0xf]  ;;  %v1210_v37 = vshrl.u32 %v1020_v28, 16  ;;  %v619_v38 = vsel %vm9196_vm12, %v611_v56, %v618_v22  ;;  %v1190_v39 = vrot.slane %v1189_v26, 4  ;;  %v1194_v40 = vrot.slane %v1192_v27, 5 }
  0x51   : > { %v1197_v41 = vshrl.u32 %v1019_v33, 16  ;;  %v1200_v43 = vshll.u32 %v1019_v33, 16  ;;  %870 = vst.msk [vmem:[#allocation2 + $0x58] sm:$0xf] %vm226_vm0, %v619_v38  ;;  %v1185_v44 = vsel %vm9212_vm13, %v1180_v31, %v1184_v14  ;;  %v1208_v45 = vrot.slane %v1206_v34, 5 }
  0x52   : > { %v1212_v46 = vrot.slane %v1210_v37, 4  ;;  %v624_v47 = vrot.slane %v622_v29, 7  ;;  %1456 = vrot.lane.b32.xlu0 %v1185_v44, %s9078_s24  ;;  %v1195_v35 = vsel %vm9212_vm13, %v1190_v39, %v1194_v40  ;;  %v1021_v50 = vld [vmem:[#allocation2 + $0x50] sm:$0x1]  ;;  %v630_v51 = vshrl.u32 %v483_v25, 16 }
  0x53   : > { %v1199_v48 = vrot.slane %v1197_v41, 4  ;;  %v1202_v49 = vrot.slane %v1200_v43, 5  ;;  %1458 = vrot.lane.b32.xlu1 %v1195_v35, %s9078_s24  ;;  %v1216_v53 = vshll.u32 %v1021_v50, 16  ;;  %v318_v56 = vld [vmem:[#allocation2 + $0x68] sm:$0x1]  ;;  %v633_v61 = vshll.u32 %v483_v25, 16 }
  0x54   : > { %v1213_v52 = vor.u32 %v1212_v46, %v1208_v45  ;;  %v627_v54 = vor.u32 %v625_v30, %v624_v47  ;;  %v628_v55 = vrot.slane %v624_v47, 4  ;;  %v1022_v58 = vld [vmem:[#allocation2 + $0x54] sm:$0xf]  ;;  %v871_v59 = vld [vmem:[#allocation2 + $0x5c] sm:$0x1]  ;;  %v9327_v60 = vrot.slane %v630_v51, 7 }
  0x55   : > { %v1203_v57 = vor.u32 %v1202_v49, %v1199_v48  ;;  %v1218_v0 = vrot.slane %v1216_v53, 5  ;;  %v1221_v3 = vshrl.u32 %v1022_v58, 16  ;;  %v1224_v4 = vshll.u32 %v1022_v58, 16  ;;  %v484_v10 = vld [vmem:[%s9170_s23 + $0x40] sm:$0xf] }
  0x56   : > { %v1214_v63 = vrot.slane %v1213_v52, 4  ;;  %v874_v5 = vld [vmem:[#allocation2 + $0x60] sm:$0xf]  ;;  %v872_v7 = vsel %vm9130_vm3, %v620_v23, %v871_v59  ;;  %v635_v8 = vor.u32 %v633_v61, %v9327_v60  ;;  %v485_v12 = vld [vmem:[%s9170_s23 + $0x44] sm:$0xf]  ;;  %v319_v16 = vsel %vm9138_vm7, 0, %v318_v56 }
  0x57   : > { %v1204_v6 = vrot.slane %v1203_v57, 4  ;;  %v875_v9 = vsel %vm9186_vm11, %v627_v54, %v874_v5  ;;  %v1223_v15 = vrot.slane %v1221_v3, 4  ;;  %v1226_v32 = vrot.slane %v1224_v4, 5  ;;  %873 = vst [vmem:[#allocation2 + $0x5c] sm:$0x1] %v872_v7 }
  0x58   : > { %v1219_v13 = vsel %vm9212_vm13, %v1214_v63, %v1218_v0  ;;  %v1023_v14 = vld [vmem:[#allocation2 + $0x58] sm:$0xf]  ;;  %876 = vst [vmem:[#allocation2 + $0x60] sm:$0xf] %v875_v9  ;;  %v636_v20 = vsel %vm9196_vm12, %v628_v55, %v635_v8  ;;  %320 = vst [vmem:[#allocation2 + $0x68] sm:$0x1] %v319_v16 }
  0x59   : > { %v1209_v17 = vsel %vm9212_vm13, %v1204_v6, %v1208_v45  ;;  %1462 = vrot.lane.b32.xlu1 %v1219_v13, %s9078_s24  ;;  %v1230_v18 = vshll.u32 %v1023_v14, 16  ;;  %v1234_v19 = vshrl.u32 %v1023_v14, 16  ;;  %v321_v21 = vld [vmem:[#allocation2 + $0x74] sm:$0x1]  ;;  %v268_v22 = vld [vmem:[#allocation2 + $0x78] sm:$0x1]  ;;  %v1227_v23 = vor.u32 %v1226_v32, %v1223_v15 }
  0x5a   : > { %1460 = vrot.lane.b32.xlu0 %v1209_v17, %s9078_s24  ;;  %877 = vst.msk [vmem:[#allocation2 + $0x64] sm:$0xf] %vm226_vm0, %v636_v20  ;;  %v637_v24 = vrot.slane %v9327_v60, 4  ;;  %v266_v25 = vsel %vm9130_vm3, 0, %v265_v62  ;;  %v639_v26 = vshrl.u32 %v484_v10, 16  ;;  %v642_v30 = vshll.u32 %v484_v10, 16 }
  0x5b   : > { %v486_v27 = vld [vmem:[%s9170_s23 + $0x48] sm:$0xf]  ;;  %v1232_v28 = vrot.slane %v1230_v18, 5  ;;  %v1236_v29 = vrot.slane %v1234_v19, 4  ;;  %267 = vst [vmem:[#allocation2 + $0x6c] sm:$0x1] %v266_v25 }
  0x5c   : > { %v647_v31 = vshrl.u32 %v485_v12, 16  ;;  %v1228_v33 = vrot.slane %v1227_v23, 4  ;;  %v641_v34 = vrot.slane %v639_v26, 7  ;;  %v650_v37 = vshll.u32 %v485_v12, 16  ;;  %v487_v46 = vld [vmem:[%s9170_s23 + $0x4c] sm:$0xf] }
  0x5d   : > { %v322_v38 = vsel %vm9138_vm7, 0, %v321_v21  ;;  %v1237_v39 = vor.u32 %v1236_v29, %v1232_v28  ;;  %v269_v41 = vsel %vm9130_vm3, 0, %v268_v22  ;;  %v656_v43 = vshrl.u32 %v486_v27, 16  ;;  %v324_v58 = vld [vmem:[#allocation2 + $0x80] sm:$0x1] }
  0x5e   : > { %v649_v40 = vrot.slane %v647_v31, 7  ;;  %323 = vst [vmem:[#allocation2 + $0x74] sm:$0x1] %v322_v38  ;;  %v1233_v44 = vsel %vm9212_vm13, %v1228_v33, %v1232_v28  ;;  %v645_v45 = vrot.slane %v641_v34, 4  ;;  %270 = vst [vmem:[#allocation2 + $0x78] sm:$0x1] %v269_v41  ;;  %v644_v50 = vor.u32 %v642_v30, %v641_v34 }
  0x5f   : > { %v659_v47 = vshll.u32 %v486_v27, 16  ;;  %1464 = vrot.lane.b32.xlu0 %v1233_v44, %s9078_s24  ;;  %v1024_v35 = vld [vmem:[#allocation2 + $0x5c] sm:$0x1]  ;;  %v1238_v48 = vrot.slane %v1237_v39, 4  ;;  %v1025_v49 = vld [vmem:[#allocation2 + $0x60] sm:$0xf] }
  0x60   : > { %v652_v51 = vor.u32 %v650_v37, %v649_v40  ;;  %v654_v52 = vrot.slane %v649_v40, 4  ;;  %v1240_v53 = vshll.u32 %v1024_v35, 16  ;;  %v1245_v54 = vshrl.u32 %v1025_v49, 16  ;;  %v878_v56 = vld [vmem:[#allocation2 + $0x68] sm:$0x1] }
  0x61   : > { %v1248_v55 = vshll.u32 %v1025_v49, 16  ;;  %v658_v57 = vrot.slane %v656_v43, 7  ;;  %v1026_v59 = vld [vmem:[#allocation2 + $0x64] sm:$0xf]  ;;  %v879_v60 = vsel %vm9130_vm3, %v637_v24, %v878_v56  ;;  %v664_v62 = vshrl.u32 %v487_v46, 16 }
  0x62   : > { %v653_v61 = vsel %vm9196_vm12, %v645_v45, %v652_v51  ;;  %v667_v63 = vshll.u32 %v487_v46, 16  ;;  %v271_v0 = vld [vmem:[#allocation2 + $0x84] sm:$0x1]  ;;  %v1242_v3 = vrot.slane %v1240_v53, 5  ;;  %v1247_v4 = vrot.slane %v1245_v54, 4 }
  0x63   : > { %v1250_v5 = vrot.slane %v1248_v55, 5  ;;  %v1254_v6 = vshll.u32 %v1026_v59, 16  ;;  %880 = vst [vmem:[#allocation2 + $0x68] sm:$0x1] %v879_v60  ;;  %v881_v7 = vld [vmem:[#allocation2 + $0x6c] sm:$0xf]  ;;  %v661_v10 = vor.u32 %v659_v47, %v658_v57 }
  0x64   : > { %884 = vst.msk [vmem:[#allocation2 + $0x70] sm:$0xf] %vm226_vm0, %v653_v61  ;;  %v1258_v8 = vshrl.u32 %v1026_v59, 16  ;;  %v882_v9 = vsel %vm9186_vm11, %v644_v50, %v881_v7  ;;  %v662_v12 = vrot.slane %v658_v57, 4  ;;  %v488_v13 = vld [vmem:[%s9170_s23 + $0x50] sm:$0xf]  ;;  %v1243_v15 = vsel %vm9212_vm13, %v1238_v48, %v1242_v3 }
  0x65   : > { %v489_v14 = vld [vmem:[%s9170_s23 + $0x54] sm:$0xf]  ;;  %v1251_v32 = vor.u32 %v1250_v5, %v1247_v4  ;;  %v1256_v16 = vrot.slane %v1254_v6, 5  ;;  %883 = vst [vmem:[#allocation2 + $0x6c] sm:$0xf] %v882_v9  ;;  %v9370_v18 = vrot.slane %v664_v62, 7  ;;  %1466 = vrot.lane.b32.xlu1 %v1243_v15, %s9078_s24 }
  0x66   : > { %v885_v17 = vld [vmem:[#allocation2 + $0x74] sm:$0x1]  ;;  %v327_v19 = vld [vmem:[#allocation2 + $0x8c] sm:$0x1]  ;;  %v1260_v20 = vrot.slane %v1258_v8, 4  ;;  %v325_v23 = vsel %vm9138_vm7, 0, %v324_v58 }
  0x67   : > { %v886_v21 = vsel %vm9130_vm3, %v654_v52, %v885_v17  ;;  %v888_v22 = vld [vmem:[#allocation2 + $0x78] sm:$0xf]  ;;  %v272_v24 = vsel %vm9130_vm3, 0, %v271_v0  ;;  %v1252_v25 = vrot.slane %v1251_v32, 4  ;;  %v669_v26 = vor.u32 %v667_v63, %v9370_v18  ;;  %326 = vst [vmem:[#allocation2 + $0x80] sm:$0x1] %v325_v23 }
  0x68   : > { %887 = vst [vmem:[#allocation2 + $0x74] sm:$0x1] %v886_v21  ;;  %v889_v27 = vsel %vm9186_vm11, %v661_v10, %v888_v22  ;;  %v671_v28 = vrot.slane %v9370_v18, 4  ;;  %273 = vst [vmem:[#allocation2 + $0x84] sm:$0x1] %v272_v24  ;;  %v1261_v29 = vor.u32 %v1260_v20, %v1256_v16  ;;  %v673_v30 = vshrl.u32 %v488_v13, 16 }
  0x69   : > { %890 = vst [vmem:[#allocation2 + $0x78] sm:$0xf] %v889_v27  ;;  %v676_v31 = vshll.u32 %v488_v13, 16  ;;  %v681_v33 = vshrl.u32 %v489_v14, 16  ;;  %v1257_v34 = vsel %vm9212_vm13, %v1252_v25, %v1256_v16  ;;  %v670_v37 = vsel %vm9196_vm12, %v662_v12, %v669_v26  ;;  %v274_v40 = vld [vmem:[#allocation2 + $0x90] sm:$0x1] }
  0x6a   : > { %v684_v38 = vshll.u32 %v489_v14, 16  ;;  %v328_v39 = vsel %vm9138_vm7, 0, %v327_v19  ;;  %v9390_v41 = vld [vmem:[%s9170_s23 + $0x58] sm:$0xf]  ;;  %1468 = vrot.lane.b32.xlu0 %v1257_v34, %s9078_s24  ;;  %v1027_v43 = vld [vmem:[#allocation2 + $0x68] sm:$0x1] }
  0x6b   : > { %v1262_v44 = vrot.slane %v1261_v29, 4  ;;  %v1029_v45 = vld [vmem:[#allocation2 + $0x70] sm:$0xf]  ;;  %891 = vst.msk [vmem:[#allocation2 + $0x7c] sm:$0xf] %vm226_vm0, %v670_v37  ;;  %v675_v46 = vrot.slane %v673_v30, 7 }
  0x6c   : > { %329 = vst [vmem:[#allocation2 + $0x8c] sm:$0x1] %v328_v39  ;;  %v1264_v47 = vshll.u32 %v1027_v43, 16  ;;  %v1278_v35 = vshll.u32 %v1029_v45, 16  ;;  %v1282_v48 = vshrl.u32 %v1029_v45, 16  ;;  %v683_v49 = vrot.slane %v681_v33, 7 }
  0x6d   : > { %v1028_v50 = vld [vmem:[#allocation2 + $0x6c] sm:$0xf]  ;;  %v678_v51 = vor.u32 %v676_v31, %v675_v46  ;;  %v679_v52 = vrot.slane %v675_v46, 4  ;;  %v275_v53 = vsel %vm9130_vm3, 0, %v274_v40  ;;  %v690_v54 = vshrl.u32 %v9390_v41, 16 }
  0x6e   : > { %v1266_v55 = vrot.slane %v1264_v47, 5  ;;  %v1269_v56 = vshrl.u32 %v1028_v50, 16  ;;  %v1272_v57 = vshll.u32 %v1028_v50, 16  ;;  %v1280_v58 = vrot.slane %v1278_v35, 5  ;;  %276 = vst [vmem:[#allocation2 + $0x90] sm:$0x1] %v275_v53 }
  0x6f   : > { %v1030_v59 = vld [vmem:[#allocation2 + $0x74] sm:$0x1]  ;;  %v1284_v60 = vrot.slane %v1282_v48, 4  ;;  %v892_v61 = vld [vmem:[#allocation2 + $0x80] sm:$0x1]  ;;  %v686_v62 = vor.u32 %v684_v38, %v683_v49  ;;  %v688_v63 = vrot.slane %v683_v49, 4 }
  0x70   : > { %v1267_v0 = vsel %vm9212_vm13, %v1262_v44, %v1266_v55  ;;  %v1271_v3 = vrot.slane %v1269_v56, 4  ;;  %v1274_v4 = vrot.slane %v1272_v57, 5  ;;  %v1288_v5 = vshll.u32 %v1030_v59, 16  ;;  %v1031_v6 = vld [vmem:[#allocation2 + $0x78] sm:$0xf] }
  0x71   : > { %1470 = vrot.lane.b32.xlu1 %v1267_v0, %s9078_s24  ;;  %v1285_v7 = vor.u32 %v1284_v60, %v1280_v58  ;;  %v1293_v8 = vshrl.u32 %v1031_v6, 16  ;;  %v1296_v9 = vshll.u32 %v1031_v6, 16  ;;  %v893_v10 = vsel %vm9130_vm3, %v671_v28, %v892_v61  ;;  %v895_v12 = vld [vmem:[#allocation2 + $0x84] sm:$0xf]  ;;  %v491_v13 = vld [vmem:[%s9170_s23 + $0x5c] sm:$0xf] }
  0x72   : > { %v1275_v14 = vor.u32 %v1274_v4, %v1271_v3  ;;  %v1290_v15 = vrot.slane %v1288_v5, 5  ;;  %v1032_v32 = vld [vmem:[#allocation2 + $0x7c] sm:$0xf]  ;;  %894 = vst [vmem:[#allocation2 + $0x80] sm:$0x1] %v893_v10  ;;  %v687_v16 = vsel %vm9196_vm12, %v679_v52, %v686_v62  ;;  %v896_v17 = vsel %vm9186_vm11, %v678_v51, %v895_v12 }
  0x73   : > { %v899_v18 = vld [vmem:[#allocation2 + $0x8c] sm:$0x1]  ;;  %v1286_v19 = vrot.slane %v1285_v7, 4  ;;  %v1295_v20 = vrot.slane %v1293_v8, 4  ;;  %v1298_v21 = vrot.slane %v1296_v9, 5  ;;  %v1302_v22 = vshll.u32 %v1032_v32, 16 }
  0x74   : > { %897 = vst [vmem:[#allocation2 + $0x84] sm:$0xf] %v896_v17  ;;  %898 = vst.msk [vmem:[#allocation2 + $0x88] sm:$0xf] %vm226_vm0, %v687_v16  ;;  %v330_v23 = vld [vmem:[#allocation2 + $0x98] sm:$0x1]  ;;  %v900_v26 = vsel %vm9130_vm3, %v688_v63, %v899_v18 }
  0x75   : > { %v1276_v24 = vrot.slane %v1275_v14, 4  ;;  %v1306_v25 = vshrl.u32 %v1032_v32, 16  ;;  %v692_v27 = vrot.slane %v690_v54, 7  ;;  %v277_v28 = vld [vmem:[#allocation2 + $0x9c] sm:$0x1]  ;;  %v1291_v29 = vsel %vm9212_vm13, %v1286_v19, %v1290_v15 }
  0x76   : > { %v1299_v30 = vor.u32 %v1298_v21, %v1295_v20  ;;  %v1304_v31 = vrot.slane %v1302_v22, 5  ;;  %901 = vst [vmem:[#allocation2 + $0x8c] sm:$0x1] %v900_v26  ;;  %v693_v33 = vshll.u32 %v9390_v41, 16  ;;  %v492_v34 = vld [vmem:[%s9170_s23 + $0x60] sm:$0xf]  ;;  %1474 = vrot.lane.b32.xlu1 %v1291_v29, %s9078_s24 }
  0x77   : > { %v9415_v37 = vld [vmem:[%s9170_s23 + $0x64] sm:$0xf]  ;;  %v1281_v38 = vsel %vm9212_vm13, %v1276_v24, %v1280_v58  ;;  %v1308_v39 = vrot.slane %v1306_v25, 4  ;;  %v696_v40 = vrot.slane %v692_v27, 4  ;;  %v698_v43 = vshrl.u32 %v491_v13, 16 }
  0x78   : > { %v902_v44 = vld [vmem:[#allocation2 + $0x90] sm:$0xf]  ;;  %1472 = vrot.lane.b32.xlu0 %v1281_v38, %s9078_s24  ;;  %v1300_v45 = vrot.slane %v1299_v30, 4  ;;  %v695_v46 = vor.u32 %v693_v33, %v692_v27  ;;  %v701_v47 = vshll.u32 %v491_v13, 16  ;;  %v331_v41 = vsel %vm9138_vm7, 0, %v330_v23 }
  0x79   : > { %v1309_v35 = vor.u32 %v1308_v39, %v1304_v31  ;;  %v700_v48 = vrot.slane %v698_v43, 7  ;;  %332 = vst [vmem:[#allocation2 + $0x98] sm:$0x1] %v331_v41  ;;  %v278_v49 = vsel %vm9130_vm3, 0, %v277_v28  ;;  %v707_v50 = vshrl.u32 %v492_v34, 16 }
  0x7a   : > { %v1305_v51 = vsel %vm9212_vm13, %v1300_v45, %v1304_v31  ;;  %v1033_v52 = vld [vmem:[#allocation2 + $0x80] sm:$0x1]  ;;  %v903_v53 = vsel %vm9186_vm11, %v695_v46, %v902_v44  ;;  %279 = vst [vmem:[#allocation2 + $0x9c] sm:$0x1] %v278_v49  ;;  %v710_v54 = vshll.u32 %v492_v34, 16  ;;  %v715_v55 = vshrl.u32 %v9415_v37, 16 }
  0x7b   : > { %v1310_v56 = vrot.slane %v1309_v35, 4  ;;  %v1312_v57 = vshll.u32 %v1033_v52, 16  ;;  %v1034_v58 = vld [vmem:[#allocation2 + $0x84] sm:$0xf]  ;;  %v1035_v59 = vld [vmem:[#allocation2 + $0x88] sm:$0xf]  ;;  %v703_v60 = vor.u32 %v701_v47, %v700_v48 }
  0x7c   : > { %904 = vst [vmem:[#allocation2 + $0x90] sm:$0xf] %v903_v53  ;;  %1476 = vrot.lane.b32.xlu0 %v1305_v51, %s9078_s24  ;;  %v1317_v61 = vshrl.u32 %v1034_v58, 16  ;;  %v1320_v62 = vshll.u32 %v1034_v58, 16  ;;  %v1326_v63 = vshll.u32 %v1035_v59, 16  ;;  %v1330_v0 = vshrl.u32 %v1035_v59, 16 }
  0x7d   : > { %v333_v3 = vld [vmem:[#allocation2 + $0xa4] sm:$0x1]  ;;  %v1314_v4 = vrot.slane %v1312_v57, 5  ;;  %v1036_v5 = vld [vmem:[#allocation2 + $0x8c] sm:$0x1]  ;;  %v704_v6 = vsel %vm9196_vm12, %v696_v40, %v703_v60  ;;  %v705_v7 = vrot.slane %v700_v48, 4 }
  0x7e   : > { %v709_v8 = vrot.slane %v707_v50, 7  ;;  %v1319_v9 = vrot.slane %v1317_v61, 4  ;;  %v1322_v10 = vrot.slane %v1320_v62, 5  ;;  %v1328_v12 = vrot.slane %v1326_v63, 5  ;;  %905 = vst.msk [vmem:[#allocation2 + $0x94] sm:$0xf] %vm226_vm0, %v704_v6 }
  0x7f   : > { %v1332_v13 = vrot.slane %v1330_v0, 4  ;;  %v280_v14 = vld [vmem:[#allocation2 + $0xa8] sm:$0x1]  ;;  %v1315_v15 = vsel %vm9212_vm13, %v1310_v56, %v1314_v4  ;;  %v1336_v32 = vshll.u32 %v1036_v5, 16  ;;  %v717_v21 = vrot.slane %v715_v55, 7 }
  0x80   : > { %v712_v16 = vor.u32 %v710_v54, %v709_v8  ;;  %v713_v17 = vrot.slane %v709_v8, 4  ;;  %1478 = vrot.lane.b32.xlu1 %v1315_v15, %s9078_s24  ;;  %v1323_v18 = vor.u32 %v1322_v10, %v1319_v9  ;;  %v906_v20 = vld [vmem:[#allocation2 + $0x98] sm:$0x1]  ;;  %v718_v22 = vshll.u32 %v9415_v37, 16  ;;  %v494_v23 = vld [vmem:[%s9170_s23 + $0x68] sm:$0xf] }
  0x81   : > { %v1333_v19 = vor.u32 %v1332_v13, %v1328_v12  ;;  %v1338_v24 = vrot.slane %v1336_v32, 5  ;;  %v907_v25 = vsel %vm9130_vm3, %v705_v7, %v906_v20  ;;  %v909_v26 = vld [vmem:[#allocation2 + $0x9c] sm:$0xf]  ;;  %v334_v27 = vsel %vm9138_vm7, 0, %v333_v3  ;;  %v495_v37 = vld [vmem:[%s9170_s23 + $0x6c] sm:$0xf] }
  0x82   : > { %v281_v28 = vsel %vm9130_vm3, 0, %v280_v14  ;;  %v1324_v29 = vrot.slane %v1323_v18, 4  ;;  %908 = vst [vmem:[#allocation2 + $0x98] sm:$0x1] %v907_v25  ;;  %v720_v33 = vor.u32 %v718_v22, %v717_v21  ;;  %v910_v34 = vsel %vm9186_vm11, %v712_v16, %v909_v26  ;;  %335 = vst [vmem:[#allocation2 + $0xa4] sm:$0x1] %v334_v27 }
  0x83   : > { %v1334_v30 = vrot.slane %v1333_v19, 4  ;;  %v1037_v31 = vld [vmem:[#allocation2 + $0x90] sm:$0xf]  ;;  %282 = vst [vmem:[#allocation2 + $0xa8] sm:$0x1] %v281_v28  ;;  %v722_v40 = vrot.slane %v717_v21, 4 }
  0x84   : > { %v1341_v38 = vshrl.u32 %v1037_v31, 16  ;;  %v1344_v39 = vshll.u32 %v1037_v31, 16  ;;  %911 = vst [vmem:[#allocation2 + $0x9c] sm:$0xf] %v910_v34  ;;  %v724_v43 = vshrl.u32 %v494_v23, 16  ;;  %v1329_v45 = vsel %vm9212_vm13, %v1324_v29, %v1328_v12 }
  0x85   : > { %v336_v44 = vld [vmem:[#allocation2 + $0xb0] sm:$0x1]  ;;  %v1339_v46 = vsel %vm9212_vm13, %v1334_v30, %v1338_v24  ;;  %v721_v47 = vsel %vm9196_vm12, %v713_v17, %v720_v33  ;;  %v727_v41 = vshll.u32 %v494_v23, 16  ;;  %v283_v35 = vld [vmem:[#allocation2 + $0xb4] sm:$0x1]  ;;  %1480 = vrot.lane.b32.xlu0 %v1329_v45, %s9078_s24  ;;  %v732_v53 = vshrl.u32 %v495_v37, 16 }
  0x86   : > { %v496_v48 = vld [vmem:[%s9170_s23 + $0x70] sm:$0xf]  ;;  %1482 = vrot.lane.b32.xlu1 %v1339_v46, %s9078_s24  ;;  %v1038_v49 = vld [vmem:[#allocation2 + $0x94] sm:$0xf]  ;;  %v1343_v50 = vrot.slane %v1341_v38, 4  ;;  %v1346_v51 = vrot.slane %v1344_v39, 5 }
  0x87   : > { %912 = vst.msk [vmem:[#allocation2 + $0xa0] sm:$0xf] %vm226_vm0, %v721_v47  ;;  %v726_v52 = vrot.slane %v724_v43, 7  ;;  %v1350_v54 = vshll.u32 %v1038_v49, 16  ;;  %v1354_v55 = vshrl.u32 %v1038_v49, 16  ;;  %v735_v56 = vshll.u32 %v495_v37, 16 }
  0x88   : > { %v337_v57 = vsel %vm9138_vm7, 0, %v336_v44  ;;  %v1347_v58 = vor.u32 %v1346_v51, %v1343_v50  ;;  %v734_v61 = vrot.slane %v732_v53, 7  ;;  %v284_v0 = vsel %vm9130_vm3, 0, %v283_v35  ;;  %v497_v19 = vld [vmem:[%s9170_s23 + $0x74] sm:$0xf] }
  0x89   : > { %v729_v59 = vor.u32 %v727_v41, %v726_v52  ;;  %v730_v60 = vrot.slane %v726_v52, 4  ;;  %338 = vst [vmem:[#allocation2 + $0xb0] sm:$0x1] %v337_v57  ;;  %v1352_v62 = vrot.slane %v1350_v54, 5  ;;  %v1356_v63 = vrot.slane %v1354_v55, 4 }
  0x8a   : > { %v741_v3 = vshrl.u32 %v496_v48, 16  ;;  %v1348_v4 = vrot.slane %v1347_v58, 4  ;;  %v1039_v5 = vld [vmem:[#allocation2 + $0x98] sm:$0x1]  ;;  %v913_v6 = vld [vmem:[#allocation2 + $0xa4] sm:$0x1]  ;;  %v737_v7 = vor.u32 %v735_v56, %v734_v61 }
  0x8b   : > { %v739_v8 = vrot.slane %v734_v61, 4  ;;  %285 = vst [vmem:[#allocation2 + $0xb4] sm:$0x1] %v284_v0  ;;  %v1357_v9 = vor.u32 %v1356_v63, %v1352_v62  ;;  %v1360_v10 = vshll.u32 %v1039_v5, 16  ;;  %v1040_v12 = vld [vmem:[#allocation2 + $0x9c] sm:$0xf]  ;;  %v914_v13 = vsel %vm9130_vm3, %v722_v40, %v913_v6 }
  0x8c   : > { %v916_v14 = vld [vmem:[#allocation2 + $0xa8] sm:$0xf]  ;;  %v743_v15 = vrot.slane %v741_v3, 7  ;;  %v1353_v32 = vsel %vm9212_vm13, %v1348_v4, %v1352_v62  ;;  %v1365_v16 = vshrl.u32 %v1040_v12, 16  ;;  %v1368_v17 = vshll.u32 %v1040_v12, 16 }
  0x8d   : > { %915 = vst [vmem:[#allocation2 + $0xa4] sm:$0x1] %v914_v13  ;;  %v738_v18 = vsel %vm9196_vm12, %v730_v60, %v737_v7  ;;  %1484 = vrot.lane.b32.xlu0 %v1353_v32, %s9078_s24  ;;  %v1358_v20 = vrot.slane %v1357_v9, 4  ;;  %v1362_v21 = vrot.slane %v1360_v10, 5  ;;  %v917_v23 = vsel %vm9186_vm11, %v729_v59, %v916_v14  ;;  %v339_v29 = vld [vmem:[#allocation2 + $0xbc] sm:$0x1] }
  0x8e   : > { %v1041_v22 = vld [vmem:[#allocation2 + $0xa0] sm:$0xf]  ;;  %919 = vst.msk [vmem:[#allocation2 + $0xac] sm:$0xf] %vm226_vm0, %v738_v18  ;;  %v744_v24 = vshll.u32 %v496_v48, 16  ;;  %v1367_v25 = vrot.slane %v1365_v16, 4 }
  0x8f   : > { %v1370_v26 = vrot.slane %v1368_v17, 5  ;;  %v1374_v27 = vshll.u32 %v1041_v22, 16  ;;  %v1378_v28 = vshrl.u32 %v1041_v22, 16  ;;  %918 = vst [vmem:[#allocation2 + $0xa8] sm:$0xf] %v917_v23  ;;  %v1363_v30 = vsel %vm9212_vm13, %v1358_v20, %v1362_v21 }
  0x90   : > { %v920_v31 = vld [vmem:[#allocation2 + $0xb0] sm:$0x1]  ;;  %v746_v33 = vor.u32 %v744_v24, %v743_v15  ;;  %v749_v34 = vshrl.u32 %v497_v19, 16  ;;  %v938_v37 = vld [vmem:[#allocation2 + $0x4] sm:$0xf]  ;;  %1486 = vrot.lane.b32.xlu1 %v1363_v30, %s9078_s24  ;;  %v747_v45 = vrot.slane %v743_v15, 4 }
  0x91   : > { %v1371_v38 = vor.u32 %v1370_v26, %v1367_v25  ;;  %v1376_v39 = vrot.slane %v1374_v27, 5  ;;  %v1380_v40 = vrot.slane %v1378_v28, 4  ;;  %v921_v43 = vsel %vm9130_vm3, %v739_v8, %v920_v31  ;;  %970 = vst.msk [vmem:[#allocation4 + $0x4] sm:$0xf] %vm226_vm0, %v938_v37  ;;  %v939_v44 = vld [vmem:[#allocation2 + $0xc] sm:$0xf] }
  0x92   : > { %922 = vst [vmem:[#allocation2 + $0xb0] sm:$0x1] %v921_v43  ;;  %v751_v46 = vrot.slane %v749_v34, 7  ;;  %v752_v47 = vshll.u32 %v497_v19, 16  ;;  %v923_v41 = vld [vmem:[#allocation2 + $0xb4] sm:$0xf] }
  0x93   : > { %v340_v35 = vsel %vm9138_vm7, 0, %v339_v29  ;;  %971 = vst.msk [vmem:[#allocation4 + $0x8] sm:$0xf] %vm226_vm0, %v939_v44  ;;  %v1372_v48 = vrot.slane %v1371_v38, 4  ;;  %v1381_v49 = vor.u32 %v1380_v40, %v1376_v39  ;;  %v924_v50 = vsel %vm9186_vm11, %v746_v33, %v923_v41  ;;  %v937_v51 = vld [vmem:[#allocation2] sm:$0xf] }
  0x94   : > { %341 = vst [vmem:[#allocation2 + $0xbc] sm:$0x1] %v340_v35  ;;  %v1042_v52 = vld [vmem:[#allocation2 + $0xa4] sm:$0x1]  ;;  %v754_v53 = vor.u32 %v752_v47, %v751_v46  ;;  %925 = vst [vmem:[#allocation2 + $0xb4] sm:$0xf] %v924_v50 }
  0x95   : > { %969 = vst.msk [vmem:[#allocation4] sm:$0xf] %vm226_vm0, %v937_v51  ;;  %v1377_v54 = vsel %vm9212_vm13, %v1372_v48, %v1376_v39  ;;  %v1382_v55 = vrot.slane %v1381_v49, 4  ;;  %v1384_v56 = vshll.u32 %v1042_v52, 16  ;;  %v1044_v57 = vld [vmem:[#allocation2 + $0xac] sm:$0xf] }
  0x96   : > { %1488 = vrot.lane.b32.xlu0 %v1377_v54, %s9078_s24  ;;  %v1043_v58 = vld [vmem:[#allocation2 + $0xa8] sm:$0xf]  ;;  %v1398_v59 = vshll.u32 %v1044_v57, 16  ;;  %v1402_v60 = vshrl.u32 %v1044_v57, 16  ;;  %v755_v61 = vsel %vm9196_vm12, %v747_v45, %v754_v53  ;;  %v756_v3 = vrot.slane %v751_v46, 4 }
  0x97   : > { %v1386_v62 = vrot.slane %v1384_v56, 5  ;;  %v1389_v63 = vshrl.u32 %v1043_v58, 16  ;;  %v1392_v0 = vshll.u32 %v1043_v58, 16  ;;  %926 = vst.msk [vmem:[#allocation2 + $0xb8] sm:$0xf] %vm226_vm0, %v755_v61  ;;  %vm2065_vm9 = vcmask 126048  }
  0x98   : > { %v940_v4 = vld [vmem:[#allocation2 + $0x10] sm:$0xf]  ;;  %v1400_v5 = vrot.slane %v1398_v59, 5  ;;  %v1404_v6 = vrot.slane %v1402_v60, 4  ;;  %v941_v17 = vld [vmem:[#allocation2 + $0x18] sm:$0xf] }
  0x99   : > { %972 = vst.msk [vmem:[#allocation4 + $0xc] sm:$0xf] %vm226_vm0, %v940_v4  ;;  %v1387_v7 = vsel %vm9212_vm13, %v1382_v55, %v1386_v62  ;;  %v1391_v8 = vrot.slane %v1389_v63, 4  ;;  %v1394_v9 = vrot.slane %v1392_v0, 5  ;;  %v1045_v10 = vld [vmem:[#allocation2 + $0xb0] sm:$0x1] }
  0x9a   : > { %1490 = vrot.lane.b32.xlu1 %v1387_v7, %s9078_s24  ;;  %v1405_v12 = vor.u32 %v1404_v6, %v1400_v5  ;;  %v1408_v13 = vshll.u32 %v1045_v10, 16  ;;  %973 = vst.msk [vmem:[#allocation4 + $0x10] sm:$0xf] %vm226_vm0, %v941_v17  ;;  %v942_v22 = vld [vmem:[#allocation2 + $0x1c] sm:$0xf]  ;;  %vm2963_vm10 = vcmask 191648  }
  0x9b   : > { %v927_v14 = vld [vmem:[#allocation2 + $0xbc] sm:$0x1]  ;;  %v1395_v15 = vor.u32 %v1394_v9, %v1391_v8  ;;  %v1046_v32 = vld [vmem:[#allocation2 + $0xb4] sm:$0xf]  ;;  %974 = vst.msk [vmem:[#allocation4 + $0x14] sm:$0xf] %vm226_vm0, %v942_v22  ;;  %v1439_v58 = vpop.permute.xlu0 %1438 }
  0x9c   : > { %v928_v16 = vsel %vm9130_vm3, %v756_v3, %v927_v14  ;;  %v1406_v18 = vrot.slane %v1405_v12, 4  ;;  %v1410_v19 = vrot.slane %v1408_v13, 5  ;;  %v1413_v20 = vshrl.u32 %v1046_v32, 16  ;;  %v1565_v28 = vld [vmem:[#allocation2] sm:$0xe] }
  0x9d   : > { %v1416_v21 = vshll.u32 %v1046_v32, 16  ;;  %929 = vst [vmem:[#allocation2 + $0xbc] sm:$0x1] %v928_v16  ;;  %v1396_v23 = vrot.slane %v1395_v15, 4  ;;  %v1566_v33 = vld [vmem:[#allocation2 + $0x4] sm:$0xf] }
  0x9e   : > { %v1411_v24 = vsel %vm9212_vm13, %v1406_v18, %v1410_v19  ;;  %v1047_v25 = vld [vmem:[#allocation2 + $0xb8] sm:$0xf]  ;;  %v1415_v26 = vrot.slane %v1413_v20, 4  ;;  %v943_v34 = vld [vmem:[#allocation2 + $0x24] sm:$0xf]  ;;  %v8647_v46 = vrot.slane %v1565_v28, 9 }
  0x9f   : > { %v1418_v27 = vrot.slane %v1416_v21, 5  ;;  %v1401_v29 = vsel %vm9212_vm13, %v1396_v23, %v1400_v5  ;;  %1494 = vrot.lane.b32.xlu1 %v1411_v24, %s9078_s24  ;;  %v1422_v30 = vshll.u32 %v1047_v25, 16  ;;  %v1426_v31 = vshrl.u32 %v1047_v25, 16  ;;  %975 = vst.msk [vmem:[#allocation4 + $0x18] sm:$0xf] %vm226_vm0, %v943_v34 }
  0xa0   : > { %1492 = vrot.lane.b32.xlu0 %v1401_v29, %s9078_s24  ;;  %v944_v38 = vld [vmem:[#allocation2 + $0x28] sm:$0xf]  ;;  %v1569_v44 = vld [vmem:[#allocation2 + $0x10] sm:$0xf]  ;;  %v1666_v47 = vrot.slane %v1566_v33, 5  ;;  %vm3718_vm14 = vcmask 257248  }
  0xa1   : > { %v1419_v37 = vor.u32 %v1418_v27, %v1415_v26  ;;  %v1424_v39 = vrot.slane %v1422_v30, 5  ;;  %v1428_v40 = vrot.slane %v1426_v31, 4  ;;  %v1567_v43 = vld [vmem:[#allocation2 + $0x8] sm:$0x1]  ;;  %976 = vst.msk [vmem:[#allocation4 + $0x1c] sm:$0xf] %vm226_vm0, %v944_v38 }
  0xa2   : > { %v945_v41 = vld [vmem:[#allocation2 + $0x30] sm:$0xf]  ;;  %v1568_v50 = vld [vmem:[#allocation2 + $0xc] sm:$0xe]  ;;  %v946_v53 = vld [vmem:[#allocation2 + $0x34] sm:$0xf]  ;;  %v1667_v60 = vsel %vm9508_vm1, %v8647_v46, %v1666_v47  ;;  %v1437_v17 = vpop.permute.xlu0 %1436 }
  0xa3   : > { %v1420_v45 = vrot.slane %v1419_v37, 4  ;;  %v1429_v48 = vor.u32 %v1428_v40, %v1424_v39  ;;  %977 = vst.msk [vmem:[#allocation4 + $0x20] sm:$0xf] %vm226_vm0, %v945_v41  ;;  %v1669_v55 = vrot.slane %v1567_v43, 5  ;;  %v1673_v56 = vrot.slane %v1569_v44, 5 }
  0xa4   : > { %v1048_v35 = vld [vmem:[#allocation2 + $0xbc] sm:$0x1]  ;;  %v1570_v57 = vld [vmem:[#allocation2 + $0x14] sm:$0x1]  ;;  %978 = vst.msk [vmem:[#allocation4 + $0x24] sm:$0xf] %vm226_vm0, %v946_v53 }
  0xa5   : > { %v1425_v51 = vsel %vm9212_vm13, %v1420_v45, %v1424_v39  ;;  %v1432_v52 = vshll.u32 %v1048_v35, 16  ;;  %v1430_v54 = vrot.slane %v1429_v48, 4  ;;  %v1668_v61 = vrot.slane %v1666_v47, 4  ;;  %v947_v63 = vld [vmem:[#allocation2 + $0x3c] sm:$0xf] }
  0xa6   : > { %1496 = vrot.lane.b32.xlu0 %v1425_v51, %s9078_s24  ;;  %v8648_v62 = vrot.slane %v1568_v50, 9  ;;  %v1571_v0 = vld [vmem:[#allocation2 + $0x18] sm:$0xe]  ;;  %v1572_v3 = vld [vmem:[#allocation2 + $0x1c] sm:$0xf]  ;;  %v1675_v6 = vrot.slane %v1673_v56, 4  ;;  %v1441_v22 = vpop.permute.xlu1 %1440 }
  0xa7   : > { %v1434_v59 = vrot.slane %v1432_v52, 5  ;;  %979 = vst.msk [vmem:[#allocation4 + $0x28] sm:$0xf] %vm226_vm0, %v947_v63  ;;  %v948_v4 = vld [vmem:[#allocation2 + $0x40] sm:$0xf]  ;;  %v1676_v7 = vrot.slane %v1570_v57, 5  ;;  %v1670_v10 = vsel %vm9508_vm1, %v1668_v61, %v1669_v55 }
  0xa8   : > { %980 = vst.msk [vmem:[#allocation4 + $0x2c] sm:$0xf] %vm226_vm0, %v948_v4  ;;  %v949_v8 = vld [vmem:[#allocation2 + $0x48] sm:$0xf]  ;;  %v950_v9 = vld [vmem:[#allocation2 + $0x4c] sm:$0xf]  ;;  %v1674_v12 = vsel %vm9508_vm1, %v8648_v62, %v1673_v56 }
  0xa9   : > { %v1435_v5 = vsel %vm9212_vm13, %v1430_v54, %v1434_v59  ;;  %v8649_v13 = vrot.slane %v1571_v0, 9  ;;  %v1680_v14 = vrot.slane %v1572_v3, 5  ;;  %v1573_v15 = vld [vmem:[#allocation2 + $0x20] sm:$0x1]  ;;  %981 = vst.msk [vmem:[#allocation4 + $0x30] sm:$0xf] %vm226_vm0, %v949_v8  ;;  %v1677_v19 = vsel %vm9508_vm1, %v1675_v6, %v1676_v7 }
  0xaa   : > { %1498 = vrot.lane.b32.xlu1 %v1435_v5, %s9078_s24  ;;  %1776 = vrot.lane.b32.xlu0 %v1667_v60, %s9079_s25  ;;  %982 = vst.msk [vmem:[#allocation4 + $0x34] sm:$0xf] %vm226_vm0, %v950_v9  ;;  %v1574_v32 = vld [vmem:[#allocation2 + $0x24] sm:$0xe]  ;;  %v1575_v16 = vld [vmem:[#allocation2 + $0x28] sm:$0xf]  ;;  %v1443_v37 = vpop.permute.xlu1 %1442  ;;  %v1445_v38 = vpop.permute.xlu0 %1444 }
  0xab   : > { %v951_v18 = vld [vmem:[#allocation2 + $0x54] sm:$0xf]  ;;  %v1683_v20 = vrot.slane %v1573_v15, 5  ;;  %v1576_v21 = vld [vmem:[#allocation2 + $0x2c] sm:$0x1]  ;;  %v1681_v24 = vsel %vm9508_vm1, %v8649_v13, %v1680_v14  ;;  %v1682_v25 = vrot.slane %v1680_v14, 4 }
  0xac   : > { %983 = vst.msk [vmem:[#allocation4 + $0x38] sm:$0xf] %vm226_vm0, %v951_v18  ;;  %v952_v23 = vld [vmem:[#allocation2 + $0x58] sm:$0xf]  ;;  %v8650_v26 = vrot.slane %v1574_v32, 9  ;;  %v1687_v27 = vrot.slane %v1575_v16, 5 }
  0xad   : > { %v1578_v28 = vld [vmem:[#allocation2 + $0x34] sm:$0xf]  ;;  %984 = vst.msk [vmem:[#allocation4 + $0x3c] sm:$0xf] %vm226_vm0, %v952_v23  ;;  %v1577_v29 = vld [vmem:[#allocation2 + $0x30] sm:$0xe]  ;;  %v1684_v39 = vsel %vm9508_vm1, %v1682_v25, %v1683_v20 }
  0xae   : > { %1778 = vrot.lane.b32.xlu1 %v1670_v10, %s9079_s25  ;;  %1780 = vrot.lane.b32.xlu0 %v1674_v12, %s9079_s25  ;;  %v953_v30 = vld [vmem:[#allocation2 + $0x60] sm:$0xf]  ;;  %v954_v31 = vld [vmem:[#allocation2 + $0x64] sm:$0xf]  ;;  %v1690_v33 = vrot.slane %v1576_v21, 5  ;;  %v1694_v34 = vrot.slane %v1578_v28, 5  ;;  %v1688_v40 = vsel %vm9508_vm1, %v8650_v26, %v1687_v27  ;;  %v1447_v51 = vpop.permute.xlu1 %1446 }
  0xaf   : > { %985 = vst.msk [vmem:[#allocation4 + $0x40] sm:$0xf] %vm226_vm0, %v953_v30  ;;  %986 = vst.msk [vmem:[#allocation4 + $0x44] sm:$0xf] %vm226_vm0, %v954_v31  ;;  %v1689_v43 = vrot.slane %v1687_v27, 4  ;;  %v8651_v44 = vrot.slane %v1577_v29, 9  ;;  %v1449_v60 = vpop.permute.xlu0 %1448 }
  0xb0   : > { %1534 = vst.msk [vmem:[#allocation4 + $0x4] sm:$0xf] %vm1532_vm8, %v1439_v58  ;;  %1535 = vst.msk [vmem:[#allocation4 + $0x8] sm:$0xf] %vm1532_vm8, %v1441_v22  ;;  %v1579_v45 = vld [vmem:[#allocation2 + $0x38] sm:$0x1] }
  0xb1   : > { %1533 = vst.msk [vmem:[#allocation4] sm:$0xf] %vm1532_vm8, %v1437_v17  ;;  %1536 = vst.msk [vmem:[#allocation4 + $0xc] sm:$0xf] %vm1532_vm8, %v1443_v37  ;;  %v955_v46 = vld [vmem:[#allocation2 + $0x6c] sm:$0xf]  ;;  %v1691_v54 = vsel %vm9508_vm1, %v1689_v43, %v1690_v33  ;;  %v1695_v55 = vsel %vm9508_vm1, %v8651_v44, %v1694_v34 }
  0xb2   : > { %1782 = vrot.lane.b32.xlu1 %v1677_v19, %s9079_s25  ;;  %1784 = vrot.lane.b32.xlu0 %v1681_v24, %s9079_s25  ;;  %1537 = vst.msk [vmem:[#allocation4 + $0x10] sm:$0xf] %vm1532_vm8, %v1445_v38  ;;  %v1580_v47 = vld [vmem:[#allocation2 + $0x3c] sm:$0xe]  ;;  %v1581_v41 = vld [vmem:[#allocation2 + $0x40] sm:$0xf]  ;;  %v1451_v9 = vpop.permute.xlu1 %1450 }
  0xb3   : > { %987 = vst.msk [vmem:[#allocation4 + $0x48] sm:$0xf] %vm226_vm0, %v955_v46  ;;  %v956_v35 = vld [vmem:[#allocation2 + $0x70] sm:$0xf]  ;;  %v1696_v48 = vrot.slane %v1694_v34, 4  ;;  %v1697_v50 = vrot.slane %v1579_v45, 5 }
  0xb4   : > { %988 = vst.msk [vmem:[#allocation4 + $0x4c] sm:$0xf] %vm226_vm0, %v956_v35  ;;  %v957_v52 = vld [vmem:[#allocation2 + $0x78] sm:$0xf]  ;;  %v958_v53 = vld [vmem:[#allocation2 + $0x7c] sm:$0xf] }
  0xb5   : > { %v8652_v56 = vrot.slane %v1580_v47, 9  ;;  %v1701_v57 = vrot.slane %v1581_v41, 5  ;;  %v1582_v58 = vld [vmem:[#allocation2 + $0x44] sm:$0x1]  ;;  %v1583_v59 = vld [vmem:[#allocation2 + $0x48] sm:$0xe]  ;;  %v1698_v6 = vsel %vm9508_vm1, %v1696_v48, %v1697_v50 }
  0xb6   : > { %1786 = vrot.lane.b32.xlu1 %v1684_v39, %s9079_s25  ;;  %1788 = vrot.lane.b32.xlu0 %v1688_v40, %s9079_s25  ;;  %1538 = vst.msk [vmem:[#allocation4 + $0x14] sm:$0xf] %vm1532_vm8, %v1447_v51  ;;  %v1584_v61 = vld [vmem:[#allocation2 + $0x4c] sm:$0xf]  ;;  %1539 = vst.msk [vmem:[#allocation4 + $0x18] sm:$0xf] %vm1532_vm8, %v1449_v60 }
  0xb7   : > { %989 = vst.msk [vmem:[#allocation4 + $0x50] sm:$0xf] %vm226_vm0, %v957_v52  ;;  %990 = vst.msk [vmem:[#allocation4 + $0x54] sm:$0xf] %vm226_vm0, %v958_v53  ;;  %v959_v62 = vld [vmem:[#allocation2 + $0x84] sm:$0xf]  ;;  %v1702_v12 = vsel %vm9508_vm1, %v8652_v56, %v1701_v57 }
  0xb8   : > { %v960_v63 = vld [vmem:[#allocation2 + $0x88] sm:$0xf]  ;;  %v1585_v0 = vld [vmem:[#allocation2 + $0x50] sm:$0x1]  ;;  %v1586_v3 = vld [vmem:[#allocation2 + $0x54] sm:$0xe] }
  0xb9   : > { %991 = vst.msk [vmem:[#allocation4 + $0x58] sm:$0xf] %vm226_vm0, %v959_v62  ;;  %992 = vst.msk [vmem:[#allocation4 + $0x5c] sm:$0xf] %vm226_vm0, %v960_v63  ;;  %v961_v4 = vld [vmem:[#allocation2 + $0x90] sm:$0xf] }
  0xba   : > { %v962_v5 = vld [vmem:[#allocation2 + $0x94] sm:$0xf]  ;;  %1790 = vrot.lane.b32.xlu1 %v1691_v54, %s9079_s25  ;;  %1792 = vrot.lane.b32.xlu0 %v1695_v55, %s9079_s25  ;;  %v1704_v7 = vrot.slane %v1582_v58, 5  ;;  %v1587_v8 = vld [vmem:[#allocation2 + $0x58] sm:$0xf]  ;;  %v1703_v13 = vrot.slane %v1701_v57, 4 }
  0xbb   : > { %993 = vst.msk [vmem:[#allocation4 + $0x60] sm:$0xf] %vm226_vm0, %v961_v4  ;;  %994 = vst.msk [vmem:[#allocation4 + $0x64] sm:$0xf] %vm226_vm0, %v962_v5  ;;  %v963_v10 = vld [vmem:[#allocation2 + $0x9c] sm:$0xf] }
  0xbc   : > { %v8653_v14 = vrot.slane %v1583_v59, 9  ;;  %v1708_v15 = vrot.slane %v1584_v61, 5  ;;  %1540 = vst.msk [vmem:[#allocation4 + $0x1c] sm:$0xf] %vm1532_vm8, %v1451_v9  ;;  %v964_v32 = vld [vmem:[#allocation2 + $0xa0] sm:$0xf]  ;;  %v1705_v24 = vsel %vm9508_vm1, %v1703_v13, %v1704_v7  ;;  %v1453_v48 = vpop.permute.xlu0 %1452 }
  0xbd   : > { %995 = vst.msk [vmem:[#allocation4 + $0x68] sm:$0xf] %vm226_vm0, %v963_v10  ;;  %v1588_v16 = vld [vmem:[#allocation2 + $0x5c] sm:$0x1]  ;;  %996 = vst.msk [vmem:[#allocation4 + $0x6c] sm:$0xf] %vm226_vm0, %v964_v32 }
  0xbe   : > { %v965_v17 = vld [vmem:[#allocation2 + $0xa8] sm:$0xf]  ;;  %v966_v18 = vld [vmem:[#allocation2 + $0xac] sm:$0xf]  ;;  %v8654_v19 = vrot.slane %v1586_v3, 9  ;;  %1794 = vrot.lane.b32.xlu1 %v1698_v6, %s9079_s25  ;;  %1796 = vrot.lane.b32.xlu0 %v1702_v12, %s9079_s25  ;;  %v1711_v22 = vrot.slane %v1585_v0, 5  ;;  %v1709_v25 = vsel %vm9508_vm1, %v8653_v14, %v1708_v15 }
  0xbf   : > { %997 = vst.msk [vmem:[#allocation4 + $0x70] sm:$0xf] %vm226_vm0, %v965_v17  ;;  %998 = vst.msk [vmem:[#allocation4 + $0x74] sm:$0xf] %vm226_vm0, %v966_v18  ;;  %v967_v20 = vld [vmem:[#allocation2 + $0xb4] sm:$0xf]  ;;  %v1455_v58 = vpop.permute.xlu1 %1454 }
  0xc0   : > { %v968_v21 = vld [vmem:[#allocation2 + $0xb8] sm:$0xf]  ;;  %v1715_v23 = vrot.slane %v1587_v8, 5  ;;  %999 = vst.msk [vmem:[#allocation4 + $0x78] sm:$0xf] %vm226_vm0, %v967_v20  ;;  %v1710_v26 = vrot.slane %v1708_v15, 4 }
  0xc1   : > { %1000 = vst.msk [vmem:[#allocation4 + $0x7c] sm:$0xf] %vm226_vm0, %v968_v21  ;;  %v1718_v27 = vrot.slane %v1588_v16, 5  ;;  %v1589_v28 = vld [vmem:[#allocation2 + $0x60] sm:$0xe]  ;;  %vm4055_vm15 = vcmask 290048  }
  0xc2   : > { %v1590_v29 = vld [vmem:[#allocation2 + $0x64] sm:$0xf]  ;;  %v286_v30 = vld [vmem:[#allocation2 + $0xc0] sm:$0x1]  ;;  %v498_v31 = vld [vmem:[%s9170_s23 + $0x78] sm:$0xf]  ;;  %v1716_v34 = vsel %vm9508_vm1, %v8654_v19, %v1715_v23  ;;  %1798 = vrot.lane.b32.xlu1 %v1705_v24, %s9079_s25  ;;  %1800 = vrot.lane.b32.xlu0 %v1709_v25, %s9079_s25  ;;  %v1712_v47 = vsel %vm9508_vm1, %v1710_v26, %v1711_v22 }
  0xc3   : > { %v499_v33 = vld [vmem:[%s9170_s23 + $0x7c] sm:$0xf]  ;;  %v287_v37 = vsel %vm9130_vm3, 0, %v286_v30  ;;  %v758_v38 = vshrl.u32 %v498_v31, 16  ;;  %v1717_v40 = vrot.slane %v1715_v23, 4  ;;  %v8655_v43 = vrot.slane %v1589_v28, 9 }
  0xc4   : > { %v766_v39 = vshrl.u32 %v499_v33, 16  ;;  %v1591_v44 = vld [vmem:[#allocation2 + $0x68] sm:$0x1]  ;;  %288 = vst [vmem:[#allocation2 + $0xc0] sm:$0x1] %v287_v37  ;;  %v761_v45 = vshll.u32 %v498_v31, 16  ;;  %v1457_v32 = vpop.permute.xlu0 %1456 }
  0xc5   : > { %v769_v46 = vshll.u32 %v499_v33, 16  ;;  %v1722_v41 = vrot.slane %v1590_v29, 5  ;;  %v1592_v35 = vld [vmem:[#allocation2 + $0x6c] sm:$0xe]  ;;  %v760_v50 = vrot.slane %v758_v38, 7  ;;  %v1719_v55 = vsel %vm9508_vm1, %v1717_v40, %v1718_v27  ;;  %v1459_v17 = vpop.permute.xlu1 %1458 }
  0xc6   : > { %v9597_v51 = vrot.slane %v766_v39, 7  ;;  %v1593_v52 = vld [vmem:[#allocation2 + $0x70] sm:$0xf]  ;;  %1541 = vst.msk [vmem:[#allocation4 + $0x20] sm:$0xf] %vm1532_vm8, %v1453_v48  ;;  %1802 = vrot.lane.b32.xlu1 %v1712_v47, %s9079_s25  ;;  %1804 = vrot.lane.b32.xlu0 %v1716_v34, %s9079_s25  ;;  %v1725_v56 = vrot.slane %v1591_v44, 5 }
  0xc7   : > { %v764_v53 = vrot.slane %v760_v50, 4  ;;  %v8656_v57 = vrot.slane %v1592_v35, 9  ;;  %v763_v59 = vor.u32 %v761_v45, %v760_v50  ;;  %v1723_v60 = vsel %vm9508_vm1, %v8655_v43, %v1722_v41  ;;  %v1594_v63 = vld [vmem:[#allocation2 + $0x74] sm:$0x1]  ;;  %v1595_v0 = vld [vmem:[#allocation2 + $0x78] sm:$0xe] }
  0xc8   : > { %v771_v54 = vor.u32 %v769_v46, %v9597_v51  ;;  %v1724_v61 = vrot.slane %v1722_v41, 4  ;;  %v1729_v62 = vrot.slane %v1593_v52, 5  ;;  %1542 = vst.msk [vmem:[#allocation4 + $0x24] sm:$0xf] %vm1532_vm8, %v1455_v58  ;;  %v1596_v4 = vld [vmem:[#allocation2 + $0x7c] sm:$0xf] }
  0xc9   : > { %v1732_v6 = vrot.slane %v1594_v63, 5  ;;  %v8657_v7 = vrot.slane %v1595_v0, 9  ;;  %v1736_v13 = vrot.slane %v1596_v4, 5  ;;  %v1597_v14 = vld [vmem:[#allocation2 + $0x80] sm:$0x1] }
  0xca   : > { %v772_v3 = vsel %vm9196_vm12, %v764_v53, %v771_v54  ;;  %1806 = vrot.lane.b32.xlu1 %v1719_v55, %s9079_s25  ;;  %1808 = vrot.lane.b32.xlu0 %v1723_v60, %s9079_s25  ;;  %v1726_v9 = vsel %vm9508_vm1, %v1724_v61, %v1725_v56  ;;  %v1730_v10 = vsel %vm9508_vm1, %v8656_v57, %v1729_v62  ;;  %v1731_v12 = vrot.slane %v1729_v62, 4  ;;  %v1599_v15 = vld [vmem:[#allocation2 + $0x88] sm:$0xf]  ;;  %v1598_v16 = vld [vmem:[#allocation2 + $0x84] sm:$0xe] }
  0xcb   : > { %933 = vst.msk [vmem:[#allocation2 + $0xc4] sm:$0xf] %vm226_vm0, %v772_v3  ;;  %v930_v5 = vld [vmem:[#allocation2 + $0xc0] sm:$0xf]  ;;  %v1739_v36 = vrot.slane %v1597_v14, 5  ;;  %v1743_v18 = vrot.slane %v1599_v15, 5  ;;  %v1737_v20 = vsel %vm9508_vm1, %v8657_v7, %v1736_v13  ;;  %v1463_v26 = vpop.permute.xlu1 %1462 }
  0xcc   : > { %v931_v8 = vsel %vm9186_vm11, %v763_v59, %v930_v5  ;;  %1543 = vst.msk [vmem:[#allocation4 + $0x28] sm:$0xf] %vm1532_vm8, %v1457_v32  ;;  %1544 = vst.msk [vmem:[#allocation4 + $0x2c] sm:$0xf] %vm1532_vm8, %v1459_v17  ;;  %v1733_v19 = vsel %vm9508_vm1, %v1731_v12, %v1732_v6  ;;  %v1738_v21 = vrot.slane %v1736_v13, 4  ;;  %v8658_v22 = vrot.slane %v1598_v16, 9  ;;  %v1461_v29 = vpop.permute.xlu0 %1460 }
  0xcd   : > { %932 = vst [vmem:[#allocation2 + $0xc0] sm:$0xf] %v931_v8  ;;  %v1600_v23 = vld [vmem:[#allocation2 + $0x8c] sm:$0x1]  ;;  %v1601_v24 = vld [vmem:[#allocation2 + $0x90] sm:$0xe] }
  0xce   : > { %1810 = vrot.lane.b32.xlu1 %v1726_v9, %s9079_s25  ;;  %1812 = vrot.lane.b32.xlu0 %v1730_v10, %s9079_s25  ;;  %v1602_v25 = vld [vmem:[#allocation2 + $0x94] sm:$0xf]  ;;  %v1745_v27 = vrot.slane %v1743_v18, 4  ;;  %v1746_v28 = vrot.slane %v1600_v23, 5  ;;  %1546 = vst.msk [vmem:[#allocation4 + $0x34] sm:$0xf] %vm1532_vm8, %v1463_v26  ;;  %v1740_v30 = vsel %vm9508_vm1, %v1738_v21, %v1739_v36  ;;  %v1744_v31 = vsel %vm9508_vm1, %v8658_v22, %v1743_v18 }
  0xcf   : > { %v8659_v33 = vrot.slane %v1601_v24, 9  ;;  %v1750_v34 = vrot.slane %v1602_v25, 5  ;;  %v1603_v37 = vld [vmem:[#allocation2 + $0x98] sm:$0x1]  ;;  %1545 = vst.msk [vmem:[#allocation4 + $0x30] sm:$0xf] %vm1532_vm8, %v1461_v29 }
  0xd0   : > { %v1604_v38 = vld [vmem:[#allocation2 + $0x9c] sm:$0xe]  ;;  %v1605_v39 = vld [vmem:[#allocation2 + $0xa0] sm:$0xf]  ;;  %v1747_v40 = vsel %vm9508_vm1, %v1745_v27, %v1746_v28  ;;  %v1753_v43 = vrot.slane %v1603_v37, 5  ;;  %vm1872_vm0 = vcmask 93248  }
  0xd1   : > { %v1606_v44 = vld [vmem:[#allocation2 + $0xa4] sm:$0x1]  ;;  %v1751_v45 = vsel %vm9508_vm1, %v8659_v33, %v1750_v34  ;;  %v1752_v46 = vrot.slane %v1750_v34, 4  ;;  %v8660_v47 = vrot.slane %v1604_v38, 9  ;;  %v1757_v41 = vrot.slane %v1605_v39, 5  ;;  %v1465_v48 = vpop.permute.xlu0 %1464 }
  0xd2   : > { %1814 = vrot.lane.b32.xlu1 %v1733_v19, %s9079_s25  ;;  %1816 = vrot.lane.b32.xlu0 %v1737_v20, %s9079_s25  ;;  %v1607_v35 = vld [vmem:[#allocation2 + $0xa8] sm:$0xe]  ;;  %v1608_v50 = vld [vmem:[#allocation2 + $0xac] sm:$0xf]  ;;  %1547 = vst.msk [vmem:[#allocation4 + $0x38] sm:$0xf] %vm1532_vm8, %v1465_v48 }
  0xd3   : > { %v1760_v52 = vrot.slane %v1606_v44, 5  ;;  %v8661_v53 = vrot.slane %v1607_v35, 9  ;;  %v1754_v54 = vsel %vm9508_vm1, %v1752_v46, %v1753_v43  ;;  %v1758_v55 = vsel %vm9508_vm1, %v8660_v47, %v1757_v41  ;;  %v1609_v58 = vld [vmem:[#allocation2 + $0xb0] sm:$0x1]  ;;  %v1610_v59 = vld [vmem:[#allocation2 + $0xb4] sm:$0xe] }
  0xd4   : > { %v1759_v56 = vrot.slane %v1757_v41, 4  ;;  %v1764_v57 = vrot.slane %v1608_v50, 5  ;;  %v1611_v60 = vld [vmem:[#allocation2 + $0xb8] sm:$0xf]  ;;  %v1767_v62 = vrot.slane %v1609_v58, 5  ;;  %v8662_v63 = vrot.slane %v1610_v59, 9 }
  0xd5   : > { %v1771_v5 = vrot.slane %v1611_v60, 5  ;;  %v1612_v6 = vld [vmem:[#allocation2 + $0xbc] sm:$0x1]  ;;  %v1905_v14 = vld [vmem:[#allocation2 + $0xc] sm:$0xf]  ;;  %v773_v43 = vrot.slane %v9597_v51, 4 }
  0xd6   : > { %1818 = vrot.lane.b32.xlu1 %v1740_v30, %s9079_s25  ;;  %1820 = vrot.lane.b32.xlu0 %v1744_v31, %s9079_s25  ;;  %v1761_v0 = vsel %vm9508_vm1, %v1759_v56, %v1760_v52  ;;  %v1765_v3 = vsel %vm9508_vm1, %v8661_v53, %v1764_v57  ;;  %v1766_v4 = vrot.slane %v1764_v57, 4  ;;  %v1774_v12 = vrot.slane %v1612_v6, 5  ;;  %v1906_v32 = vld [vmem:[#allocation2 + $0x10] sm:$0xf]  ;;  %v1907_v16 = vld [vmem:[#allocation2 + $0x18] sm:$0xf] }
  0xd7   : > { %v1467_v61 = vpop.permute.xlu1 %1466  ;;  %v1772_v9 = vsel %vm9508_vm1, %v8662_v63, %v1771_v5  ;;  %v1773_v10 = vrot.slane %v1771_v5, 4  ;;  %v1908_v18 = vld [vmem:[#allocation2 + $0x1c] sm:$0xf]  ;;  %v1909_v19 = vld [vmem:[#allocation2 + $0x24] sm:$0xf]  ;;  %vm3157_vm11 = vcmask 224448  }
  0xd8   : > { %1548 = vst.msk [vmem:[#allocation4 + $0x3c] sm:$0xf] %vm1532_vm8, %v1467_v61  ;;  %v1768_v8 = vsel %vm9508_vm1, %v1766_v4, %v1767_v62  ;;  %v1910_v21 = vld [vmem:[#allocation2 + $0x28] sm:$0xf]  ;;  %v1911_v22 = vld [vmem:[#allocation2 + $0x30] sm:$0xf] }
  0xd9   : > { %v1775_v13 = vsel %vm9508_vm1, %v1773_v10, %v1774_v12  ;;  %v1912_v24 = vld [vmem:[#allocation2 + $0x34] sm:$0xf]  ;;  %v1913_v25 = vld [vmem:[#allocation2 + $0x3c] sm:$0xf]  ;;  %v1914_v28 = vld [vmem:[#allocation2 + $0x40] sm:$0xf] }
  0xda   : > { %1822 = vrot.lane.b32.xlu1 %v1747_v40, %s9079_s25  ;;  %1824 = vrot.lane.b32.xlu0 %v1751_v45, %s9079_s25  ;;  %v1915_v29 = vld [vmem:[#allocation2 + $0x48] sm:$0xf]  ;;  %v1916_v31 = vld [vmem:[#allocation2 + $0x4c] sm:$0xf]  ;;  %v1917_v33 = vld [vmem:[#allocation2 + $0x54] sm:$0xf] }
  0xdb   : > { %v342_v30 = vld [vmem:[#allocation2 + $0xc8] sm:$0x1]  ;;  %v1918_v38 = vld [vmem:[#allocation2 + $0x58] sm:$0xf]  ;;  %v1919_v39 = vld [vmem:[#allocation2 + $0x60] sm:$0xf] }
  0xdc   : > { %v1469_v7 = vpop.permute.xlu0 %1468  ;;  %v343_v37 = vsel %vm9138_vm7, 0, %v342_v30  ;;  %v1920_v44 = vld [vmem:[#allocation2 + $0x64] sm:$0xf]  ;;  %v1921_v45 = vld [vmem:[#allocation2 + $0x6c] sm:$0xf] }
  0xdd   : > { %1549 = vst.msk [vmem:[#allocation4 + $0x40] sm:$0xf] %vm1532_vm8, %v1469_v7  ;;  %344 = vst [vmem:[#allocation2 + $0xc8] sm:$0x1] %v343_v37  ;;  %v1922_v35 = vld [vmem:[#allocation2 + $0x70] sm:$0xf] }
  0xde   : > { %1826 = vrot.lane.b32.xlu1 %v1754_v54, %s9079_s25  ;;  %1828 = vrot.lane.b32.xlu0 %v1758_v55, %s9079_s25  ;;  %v1923_v48 = vld [vmem:[#allocation2 + $0x78] sm:$0xf]  ;;  %v1924_v51 = vld [vmem:[#allocation2 + $0x7c] sm:$0xf]  ;;  %v1925_v52 = vld [vmem:[#allocation2 + $0x84] sm:$0xf] }
  0xdf   : > { %v2098_v53 = vld [vmem:[#allocation2 + $0xc] sm:$0xf]  ;;  %v1926_v55 = vld [vmem:[#allocation2 + $0x88] sm:$0xf]  ;;  %v1927_v57 = vld [vmem:[#allocation2 + $0x90] sm:$0xf] }
  0xe0   : > { %v2147_v58 = vshrl.u32 %v2098_v53, 16  ;;  %v2150_v59 = vshll.u32 %v2098_v53, 16  ;;  %v2099_v60 = vld [vmem:[#allocation2 + $0x10] sm:$0xf]  ;;  %v2101_v61 = vld [vmem:[#allocation2 + $0x18] sm:$0xf] }
  0xe1   : > { %v2102_v62 = vld [vmem:[#allocation2 + $0x1c] sm:$0xf]  ;;  %v1928_v63 = vld [vmem:[#allocation2 + $0x94] sm:$0xf]  ;;  %v2156_v7 = vshll.u32 %v2099_v60, 16  ;;  %v2174_v10 = vshll.u32 %v2101_v61, 16 }
  0xe2   : > { %1830 = vrot.lane.b32.xlu1 %v1761_v0, %s9079_s25  ;;  %1832 = vrot.lane.b32.xlu0 %v1765_v3, %s9079_s25  ;;  %v1929_v0 = vld [vmem:[#allocation2 + $0x9c] sm:$0xf]  ;;  %v2104_v3 = vld [vmem:[#allocation2 + $0x24] sm:$0xf]  ;;  %v2149_v5 = vrot.slane %v2147_v58, 4  ;;  %v2152_v6 = vrot.slane %v2150_v59, 5 }
  0xe3   : > { %v1471_v15 = vpop.permute.xlu1 %1470  ;;  %v2180_v12 = vshll.u32 %v2102_v62, 16  ;;  %v1933_v37 = vld [vmem:[#allocation2 + $0xb4] sm:$0xf] }
  0xe4   : > { %1550 = vst.msk [vmem:[#allocation4 + $0x44] sm:$0xf] %vm1532_vm8, %v1471_v15  ;;  %v934_v47 = vld [vmem:[#allocation2 + $0xc8] sm:$0x1]  ;;  %v2198_v15 = vshll.u32 %v2104_v3, 16 }
  0xe5   : > { %v935_v41 = vsel %vm9130_vm3, %v773_v43, %v934_v47 }
  0xe6   : > { %1834 = vrot.lane.b32.xlu1 %v1768_v8, %s9079_s25  ;;  %1836 = vrot.lane.b32.xlu0 %v1772_v9, %s9079_s25  ;;  %936 = vst [vmem:[#allocation2 + $0xc8] sm:$0x1] %v935_v41  ;;  %v2160_v8 = vshrl.u32 %v2099_v60, 16  ;;  %v2171_v9 = vshrl.u32 %v2101_v61, 16  ;;  %v2200_v30 = vrot.slane %v2198_v15, 5 }
  0xe8   : > { %v1475_v17 = vpop.permute.xlu1 %1474 }
  0xe9   : > { %1552 = vst.msk [vmem:[#allocation4 + $0x4c] sm:$0xf] %vm1532_vm8, %v1475_v17  ;;  %v2105_v17 = vld [vmem:[#allocation2 + $0x28] sm:$0xf] }
  0xea   : > { %1838 = vrot.lane.b32.xlu1 %v1775_v13, %s9079_s25  ;;  %1969 = vrot.lane.b32.xlu0 %v1905_v14, %s9080_s26  ;;  %v1473_v36 = vpop.permute.xlu0 %1472  ;;  %v2184_v13 = vshrl.u32 %v2102_v62, 16  ;;  %v2195_v14 = vshrl.u32 %v2104_v3, 16 }
  0xeb   : > { %1551 = vst.msk [vmem:[#allocation4 + $0x48] sm:$0xf] %vm1532_vm8, %v1473_v36 }
  0xee   : > { %1971 = vrot.lane.b32.xlu1 %v1906_v32, %s9080_s26  ;;  %1973 = vrot.lane.b32.xlu0 %v1907_v16, %s9080_s26  ;;  %v1477_v20 = vpop.permute.xlu0 %1476  ;;  %v1930_v32 = vld [vmem:[#allocation2 + $0xa0] sm:$0xf]  ;;  %v1931_v16 = vld [vmem:[#allocation2 + $0xa8] sm:$0xf] }
  0xef   : > { %1553 = vst.msk [vmem:[#allocation4 + $0x50] sm:$0xf] %vm1532_vm8, %v1477_v20  ;;  %v9711_v20 = vrot.slane %v2156_v7, 5  ;;  %v2111_v7 = vld [vmem:[#allocation2 + $0x40] sm:$0xf] }
  0xf2   : > { %1975 = vrot.lane.b32.xlu1 %v1908_v18, %s9080_s26  ;;  %1977 = vrot.lane.b32.xlu0 %v1909_v19, %s9080_s26  ;;  %v1479_v23 = vpop.permute.xlu1 %1478  ;;  %v2153_v19 = vor.u32 %v2152_v6, %v2149_v5 }
  0xf3   : > { %1554 = vst.msk [vmem:[#allocation4 + $0x54] sm:$0xf] %vm1532_vm8, %v1479_v23  ;;  %v2100_v23 = vld [vmem:[#allocation2 + $0x14] sm:$0x1] }
  0xf6   : > { %1979 = vrot.lane.b32.xlu1 %v1910_v21, %s9080_s26  ;;  %1981 = vrot.lane.b32.xlu0 %v1911_v22, %s9080_s26  ;;  %v2162_v21 = vrot.slane %v2160_v8, 4  ;;  %v2107_v22 = vld [vmem:[#allocation2 + $0x30] sm:$0xf] }
  0xf7   : > { %v1481_v26 = vpop.permute.xlu0 %1480 }
  0xf8   : > { %v1483_v27 = vpop.permute.xlu1 %1482  ;;  %1555 = vst.msk [vmem:[#allocation4 + $0x58] sm:$0xf] %vm1532_vm8, %v1481_v26  ;;  %v9715_v26 = vrot.slane %v2180_v12, 5  ;;  %v2163_v47 = vor.u32 %v2162_v21, %v9711_v20 }
  0xf9   : > { %1556 = vst.msk [vmem:[#allocation4 + $0x5c] sm:$0xf] %vm1532_vm8, %v1483_v27  ;;  %v2186_v27 = vrot.slane %v2184_v13, 4  ;;  %v2113_v13 = vld [vmem:[#allocation2 + $0x48] sm:$0xf] }
  0xfa   : > { %1983 = vrot.lane.b32.xlu1 %v1912_v24, %s9080_s26  ;;  %1985 = vrot.lane.b32.xlu0 %v1913_v25, %s9080_s26  ;;  %v2173_v24 = vrot.slane %v2171_v9, 4  ;;  %v2176_v25 = vrot.slane %v2174_v10, 5 }
  0xfc   : > { %v2177_v41 = vor.u32 %v2176_v25, %v2173_v24  ;;  %v2267_v24 = vshrl.u32 %v2113_v13, 16  ;;  %v2270_v25 = vshll.u32 %v2113_v13, 16 }
  0xfe   : > { %1987 = vrot.lane.b32.xlu1 %v1914_v28, %s9080_s26  ;;  %1989 = vrot.lane.b32.xlu0 %v1915_v29, %s9080_s26  ;;  %v2103_v28 = vld [vmem:[#allocation2 + $0x20] sm:$0x1]  ;;  %v2197_v29 = vrot.slane %v2195_v14, 4  ;;  %v2178_v8 = vrot.slane %v2177_v41, 4  ;;  %v1936_v14 = vld [vmem:[#allocation2 + $0xc4] sm:$0xf] }
  0xff   : > { %v1485_v34 = vpop.permute.xlu0 %1484  ;;  %v2119_v41 = vld [vmem:[#allocation2 + $0x60] sm:$0xf] }
 0x100   : > { %1557 = vst.msk [vmem:[#allocation4 + $0x60] sm:$0xf] %vm1532_vm8, %v1485_v34  ;;  %v1932_v34 = vld [vmem:[#allocation2 + $0xac] sm:$0xf] }
 0x102   : > { %1991 = vrot.lane.b32.xlu1 %v1916_v31, %s9080_s26  ;;  %1993 = vrot.lane.b32.xlu0 %v1917_v33, %s9080_s26  ;;  %v1487_v40 = vpop.permute.xlu1 %1486  ;;  %v2204_v31 = vshll.u32 %v2105_v17, 16  ;;  %v2208_v33 = vshrl.u32 %v2105_v17, 16 }
 0x103   : > { %1558 = vst.msk [vmem:[#allocation4 + $0x64] sm:$0xf] %vm1532_vm8, %v1487_v40 }
 0x104   : > { %v9725_v53 = vrot.slane %v2204_v31, 5  ;;  %v2114_v31 = vld [vmem:[#allocation2 + $0x4c] sm:$0xf] }
 0x106   : > { %1995 = vrot.lane.b32.xlu1 %v1918_v38, %s9080_s26  ;;  %1997 = vrot.lane.b32.xlu0 %v1919_v39, %s9080_s26  ;;  %v2219_v38 = vshrl.u32 %v2107_v22, 16  ;;  %v2222_v39 = vshll.u32 %v2107_v22, 16  ;;  %v2252_v22 = vshll.u32 %v2111_v7, 16 }
 0x108   : > { %v1489_v46 = vpop.permute.xlu0 %1488  ;;  %v2224_v58 = vrot.slane %v2222_v39, 5 }
 0x109   : > { %1559 = vst.msk [vmem:[#allocation4 + $0x68] sm:$0xf] %vm1532_vm8, %v1489_v46  ;;  %v2154_v46 = vrot.slane %v2153_v19, 4  ;;  %v2109_v19 = vld [vmem:[#allocation2 + $0x38] sm:$0x1] }
 0x10a   : > { %1999 = vrot.lane.b32.xlu1 %v1920_v44, %s9080_s26  ;;  %2001 = vrot.lane.b32.xlu0 %v1921_v45, %s9080_s26  ;;  %v2166_v44 = vshll.u32 %v2100_v23, 16  ;;  %v2108_v45 = vld [vmem:[#allocation2 + $0x34] sm:$0xf]  ;;  %v2256_v23 = vshrl.u32 %v2111_v7, 16  ;;  %v2238_v39 = vshll.u32 %v2109_v19, 16 }
 0x10b   : > { %v2228_v59 = vshll.u32 %v2108_v45, 16  ;;  %v2232_v60 = vshrl.u32 %v2108_v45, 16  ;;  %v2159_v3 = vsel %vm9212_vm13, %v2154_v46, %v9711_v20  ;;  %v9767_v46 = vrot.slane %v2252_v22, 5 }
 0x10c   : > { %v1491_v50 = vpop.permute.xlu1 %1490  ;;  %v2168_v5 = vrot.slane %v2166_v44, 5 }
 0x10d   : > { %1560 = vst.msk [vmem:[#allocation4 + $0x6c] sm:$0xf] %vm1532_vm8, %v1491_v50  ;;  %v1934_v50 = vld [vmem:[#allocation2 + $0xb8] sm:$0xf]  ;;  %v2234_v17 = vrot.slane %v2232_v60, 4  ;;  %v2318_v60 = vshll.u32 %v2119_v41, 16 }
 0x10e   : > { %2003 = vrot.lane.b32.xlu1 %v1922_v35, %s9080_s26  ;;  %2005 = vrot.lane.b32.xlu0 %v1923_v48, %s9080_s26  ;;  %v2190_v35 = vshll.u32 %v2103_v28, 16  ;;  %v2110_v48 = vld [vmem:[#allocation2 + $0x3c] sm:$0xf]  ;;  %v2183_v28 = vsel %vm9212_vm13, %v2178_v8, %v9715_v26 }
 0x110   : > { %v9732_v6 = vrot.slane %v2190_v35, 5  ;;  %v2112_v35 = vld [vmem:[#allocation2 + $0x44] sm:$0x1] }
 0x111   : > { %v1495_v54 = vpop.permute.xlu1 %1494 }
 0x112   : > { %2007 = vrot.lane.b32.xlu1 %v1924_v51, %s9080_s26  ;;  %2009 = vrot.lane.b32.xlu0 %v1925_v52, %s9080_s26  ;;  %v1493_v56 = vpop.permute.xlu0 %1492  ;;  %1562 = vst.msk [vmem:[#allocation4 + $0x74] sm:$0xf] %vm1532_vm8, %v1495_v54  ;;  %v2187_v51 = vor.u32 %v2186_v27, %v9715_v26  ;;  %v2201_v52 = vor.u32 %v2200_v30, %v2197_v29  ;;  %v2106_v54 = vld [vmem:[#allocation2 + $0x2c] sm:$0x1]  ;;  %v2117_v26 = vld [vmem:[#allocation2 + $0x58] sm:$0xf] }
 0x113   : > { %1561 = vst.msk [vmem:[#allocation4 + $0x70] sm:$0xf] %vm1532_vm8, %v1493_v56  ;;  %v1935_v56 = vld [vmem:[#allocation2 + $0xc0] sm:$0xf]  ;;  %v2214_v12 = vshll.u32 %v2106_v54, 16 }
 0x114   : > { %v9736_v9 = vrot.slane %v2187_v51, 4  ;;  %v9739_v15 = vrot.slane %v2201_v52, 4  ;;  %v2276_v51 = vshll.u32 %v2114_v31, 16  ;;  %v2280_v52 = vshrl.u32 %v2114_v31, 16 }
 0x115   : > { %v9756_v30 = vrot.slane %v2214_v12, 5  ;;  %v2115_v12 = vld [vmem:[#allocation2 + $0x50] sm:$0x1] }
 0x116   : > { %2011 = vrot.lane.b32.xlu1 %v1926_v55, %s9080_s26  ;;  %2013 = vrot.lane.b32.xlu0 %v1927_v57, %s9080_s26  ;;  %v2210_v55 = vrot.slane %v2208_v33, 4  ;;  %v2221_v57 = vrot.slane %v2219_v38, 4  ;;  %v2193_v29 = vsel %vm9212_vm13, %v9736_v9, %v9732_v6  ;;  %v2116_v33 = vld [vmem:[#allocation2 + $0x54] sm:$0xf]  ;;  %v9786_v8 = vrot.slane %v2276_v51, 5 }
 0x117   : > { %v2294_v54 = vshll.u32 %v2116_v33, 16  ;;  %v2282_v9 = vrot.slane %v2280_v52, 4 }
 0x118   : > { %v1497_v4 = vpop.permute.xlu0 %1496  ;;  %v2211_v10 = vor.u32 %v2210_v55, %v9725_v53  ;;  %v2300_v55 = vshll.u32 %v2117_v26, 16 }
 0x119   : > { %1563 = vst.msk [vmem:[#allocation4 + $0x78] sm:$0xf] %vm1532_vm8, %v1497_v4  ;;  %v2164_v4 = vrot.slane %v2163_v47, 4  ;;  %v2258_v47 = vrot.slane %v2256_v23, 4 }
 0x11a   : > { %2015 = vrot.lane.b32.xlu1 %v1928_v63, %s9080_s26  ;;  %2017 = vrot.lane.b32.xlu0 %v1929_v0, %s9080_s26  ;;  %v2243_v63 = vshrl.u32 %v2110_v48, 16  ;;  %v2246_v0 = vshll.u32 %v2110_v48, 16  ;;  %v2269_v48 = vrot.slane %v2267_v24, 4 }
 0x11b   : > { %v2169_v27 = vsel %vm9212_vm13, %v2164_v4, %v2168_v5  ;;  %v2262_v4 = vshll.u32 %v2112_v35, 16  ;;  %v2120_v5 = vld [vmem:[#allocation2 + $0x64] sm:$0xf]  ;;  %v2259_v6 = vor.u32 %v2258_v47, %v9767_v46 }
 0x11c   : > { %v1499_v36 = vpop.permute.xlu1 %1498  ;;  %v1777_v18 = vpop.permute.xlu0 %1776  ;;  %v2245_v20 = vrot.slane %v2243_v63, 4  ;;  %v2248_v21 = vrot.slane %v2246_v0, 5  ;;  %v2328_v19 = vshrl.u32 %v2120_v5, 16 }
 0x11d   : > { %1564 = vst.msk [vmem:[#allocation4 + $0x7c] sm:$0xf] %vm1532_vm8, %v1499_v36  ;;  %v2264_v22 = vrot.slane %v2262_v4, 5  ;;  %vm10434_vm8 = vmand %vm351_vm6, %vm236_vm2  ;;  %vm4227_vm2 = vcmask 293888  }
 0x11e   : > { %1873 = vst.msk [vmem:[#allocation4] sm:$0xf] %vm1872_vm0, %v1777_v18  ;;  %2019 = vrot.lane.b32.xlu1 %v1930_v32, %s9080_s26  ;;  %2021 = vrot.lane.b32.xlu0 %v1931_v16, %s9080_s26  ;;  %v2225_v32 = vor.u32 %v2224_v58, %v2221_v57  ;;  %v9741_v16 = vrot.slane %v2228_v59, 5  ;;  %v2249_v45 = vor.u32 %v2248_v21, %v2245_v20  ;;  %v9777_v58 = vrot.slane %v2238_v39, 5 }
 0x11f   : > { %v2315_v59 = vshrl.u32 %v2119_v41, 16 }
 0x120   : > { %v1779_v40 = vpop.permute.xlu1 %1778  ;;  %v1781_v43 = vpop.permute.xlu0 %1780  ;;  %v9764_v38 = vrot.slane %v2225_v32, 4  ;;  %v2235_v44 = vor.u32 %v2234_v17, %v9741_v16 }
 0x121   : > { %1874 = vst.msk [vmem:[#allocation4 + $0x4] sm:$0xf] %vm1872_vm0, %v1779_v40  ;;  %1875 = vst.msk [vmem:[#allocation4 + $0x8] sm:$0xf] %vm1872_vm0, %v1781_v43  ;;  %v2317_v17 = vrot.slane %v2315_v59, 4 }
 0x122   : > { %2023 = vrot.lane.b32.xlu1 %v1932_v34, %s9080_s26  ;;  %2025 = vrot.lane.b32.xlu0 %v1933_v37, %s9080_s26  ;;  %v2207_v34 = vsel %vm9212_vm13, %v9739_v15, %v9725_v53  ;;  %v9762_v37 = vrot.slane %v2211_v10, 4  ;;  %v2291_v53 = vshrl.u32 %v2116_v33, 16  ;;  %v2231_v63 = vsel %vm9212_vm13, %v9764_v38, %v9741_v16  ;;  %v2122_v10 = vld [vmem:[#allocation2 + $0x6c] sm:$0xf]  ;;  %v2118_v16 = vld [vmem:[#allocation2 + $0x5c] sm:$0x1] }
 0x123   : > { %v2236_v0 = vrot.slane %v2235_v44, 4  ;;  %v9790_v15 = vrot.slane %v2300_v55, 5  ;;  %v2339_v23 = vshrl.u32 %v2122_v10, 16  ;;  %v2342_v24 = vshll.u32 %v2122_v10, 16  ;;  %v2125_v38 = vld [vmem:[#allocation2 + $0x78] sm:$0xf] }
 0x124   : > { %v1783_v61 = vpop.permute.xlu1 %1782  ;;  %v1785_v62 = vpop.permute.xlu0 %1784  ;;  %v2217_v57 = vsel %vm9212_vm13, %v9762_v37, %v9756_v30  ;;  %v2293_v13 = vrot.slane %v2291_v53, 4  ;;  %v2123_v30 = vld [vmem:[#allocation2 + $0x70] sm:$0xf]  ;;  %v2283_v33 = vor.u32 %v2282_v9, %v9786_v8  ;;  %v2310_v37 = vshll.u32 %v2118_v16, 16 }
 0x125   : > { %1876 = vst.msk [vmem:[#allocation4 + $0xc] sm:$0xf] %vm1872_vm0, %v1783_v61  ;;  %1877 = vst.msk [vmem:[#allocation4 + $0x10] sm:$0xf] %vm1872_vm0, %v1785_v62  ;;  %v2341_v47 = vrot.slane %v2339_v23, 4  ;;  %v2344_v41 = vrot.slane %v2342_v24, 5 }
 0x126   : > { %2027 = vrot.lane.b32.xlu1 %v1934_v50, %s9080_s26  ;;  %2029 = vrot.lane.b32.xlu0 %v1935_v56, %s9080_s26  ;;  %v2272_v50 = vrot.slane %v2270_v25, 5  ;;  %v2304_v56 = vshrl.u32 %v2117_v26, 16  ;;  %v2241_v25 = vsel %vm9212_vm13, %v2236_v0, %v9777_v58  ;;  %v2348_v35 = vshll.u32 %v2123_v30, 16 }
 0x127   : > { %v2363_v51 = vshrl.u32 %v2125_v38, 16  ;;  %v2366_v52 = vshll.u32 %v2125_v38, 16  ;;  %v2284_v55 = vrot.slane %v2283_v33, 4  ;;  %v2345_v4 = vor.u32 %v2344_v41, %v2341_v47  ;;  %v2127_v33 = vld [vmem:[#allocation2 + $0x80] sm:$0x1] }
 0x128   : > { %v1787_v36 = vpop.permute.xlu1 %1786  ;;  %v1789_v18 = vpop.permute.xlu0 %1788  ;;  %v2273_v7 = vor.u32 %v2272_v50, %v2269_v48  ;;  %v2306_v32 = vrot.slane %v2304_v56, 4  ;;  %v2352_v48 = vshrl.u32 %v2123_v30, 16  ;;  %v9815_v56 = vrot.slane %v2310_v37, 5 }
 0x129   : > { %1878 = vst.msk [vmem:[#allocation4 + $0x14] sm:$0xf] %vm1872_vm0, %v1787_v36  ;;  %1879 = vst.msk [vmem:[#allocation4 + $0x18] sm:$0xf] %vm1872_vm0, %v1789_v18  ;;  %v2320_v36 = vrot.slane %v2318_v60, 5  ;;  %v2324_v18 = vshll.u32 %v2120_v5, 16 }
 0x12a   : > { %2031 = vrot.lane.b32.xlu1 %v1936_v14, %s9080_s26  ;;  %2530 = vrot.lane.b32.xlu0 %v2159_v3, %s9081_s27  ;;  %v2250_v3 = vrot.slane %v2249_v45, 4  ;;  %v2296_v14 = vrot.slane %v2294_v54, 5  ;;  %v2274_v31 = vrot.slane %v2273_v7, 4  ;;  %v2307_v39 = vor.u32 %v2306_v32, %v9790_v15  ;;  %v2124_v7 = vld [vmem:[#allocation2 + $0x74] sm:$0x1] }
 0x12b   : > { %v2321_v26 = vor.u32 %v2320_v36, %v2317_v17  ;;  %v9820_v5 = vrot.slane %v2348_v35, 5  ;;  %v2368_v9 = vrot.slane %v2366_v52, 5  ;;  %v2346_v24 = vrot.slane %v2345_v4, 4 }
 0x12c   : > { %v1791_v40 = vpop.permute.xlu1 %1790  ;;  %v1793_v43 = vpop.permute.xlu0 %1792  ;;  %v2279_v54 = vsel %vm9212_vm13, %v2274_v31, %v9786_v8  ;;  %v9817_v59 = vrot.slane %v2307_v39, 4  ;;  %v2365_v8 = vrot.slane %v2363_v51, 4  ;;  %v2134_v31 = vld [vmem:[#allocation2 + $0x9c] sm:$0xf] }
 0x12d   : > { %1880 = vst.msk [vmem:[#allocation4 + $0x1c] sm:$0xf] %vm1872_vm0, %v1791_v40  ;;  %1881 = vst.msk [vmem:[#allocation4 + $0x20] sm:$0xf] %vm1872_vm0, %v1793_v43  ;;  %v9804_v40 = vrot.slane %v2324_v18, 5  ;;  %v2330_v43 = vrot.slane %v2328_v19, 4 }
 0x12e   : > { %2532 = vrot.lane.b32.xlu1 %v2169_v27, %s9081_s27  ;;  %2534 = vrot.lane.b32.xlu0 %v2183_v28, %s9081_s27  ;;  %v2255_v27 = vsel %vm9212_vm13, %v2250_v3, %v9767_v46  ;;  %v2260_v28 = vrot.slane %v2259_v6, 4  ;;  %v2121_v46 = vld [vmem:[#allocation2 + $0x68] sm:$0x1]  ;;  %v2322_v3 = vrot.slane %v2321_v26, 4  ;;  %v2354_v6 = vrot.slane %v2352_v48, 4 }
 0x12f   : > { %v2331_v60 = vor.u32 %v2330_v43, %v9804_v40  ;;  %v2313_v17 = vsel %vm9212_vm13, %v9817_v59, %v9815_v56  ;;  %v2129_v18 = vld [vmem:[#allocation2 + $0x88] sm:$0xf]  ;;  %v2131_v19 = vld [vmem:[#allocation2 + $0x90] sm:$0xf]  ;;  %v2435_v35 = vshrl.u32 %v2134_v31, 16  ;;  %v2438_v48 = vshll.u32 %v2134_v31, 16 }
 0x130   : > { %v1795_v61 = vpop.permute.xlu1 %1794  ;;  %v1797_v62 = vpop.permute.xlu0 %1796  ;;  %v2265_v53 = vsel %vm9212_vm13, %v2260_v28, %v2264_v22  ;;  %v2327_v22 = vsel %vm9212_vm13, %v2322_v3, %v9804_v40  ;;  %v2369_v28 = vor.u32 %v2368_v9, %v2365_v8  ;;  %v2396_v38 = vshll.u32 %v2129_v18, 16  ;;  %v2137_v59 = vld [vmem:[#allocation2 + $0xa8] sm:$0xf] }
 0x131   : > { %1882 = vst.msk [vmem:[#allocation4 + $0x24] sm:$0xf] %vm1872_vm0, %v1795_v61  ;;  %1883 = vst.msk [vmem:[#allocation4 + $0x28] sm:$0xf] %vm1872_vm0, %v1797_v62  ;;  %v2334_v61 = vshll.u32 %v2121_v46, 16  ;;  %v2332_v23 = vrot.slane %v2331_v60, 4 }
 0x132   : > { %2536 = vrot.lane.b32.xlu1 %v2193_v29, %s9081_s27  ;;  %2538 = vrot.lane.b32.xlu0 %v2207_v34, %s9081_s27  ;;  %v2286_v29 = vshll.u32 %v2115_v12, 16  ;;  %v2297_v34 = vor.u32 %v2296_v14, %v2293_v13  ;;  %v2128_v62 = vld [vmem:[#allocation2 + $0x84] sm:$0xf]  ;;  %v2400_v39 = vshrl.u32 %v2129_v18, 16  ;;  %v2411_v26 = vshrl.u32 %v2131_v19, 16 }
 0x133   : > { %v2387_v13 = vshrl.u32 %v2128_v62, 16  ;;  %v2390_v14 = vshll.u32 %v2128_v62, 16  ;;  %v9835_v36 = vrot.slane %v2334_v61, 5  ;;  %v2414_v40 = vshll.u32 %v2131_v19, 16  ;;  %v2130_v60 = vld [vmem:[#allocation2 + $0x8c] sm:$0x1] }
 0x134   : > { %v1799_v20 = vpop.permute.xlu1 %1798  ;;  %v1801_v21 = vpop.permute.xlu0 %1800  ;;  %v2288_v50 = vrot.slane %v2286_v29, 5  ;;  %v2298_v58 = vrot.slane %v2297_v34, 4  ;;  %v2370_v52 = vrot.slane %v2369_v28, 4  ;;  %v2413_v61 = vrot.slane %v2411_v26, 4 }
 0x135   : > { %1884 = vst.msk [vmem:[#allocation4 + $0x2c] sm:$0xf] %vm1872_vm0, %v1799_v20  ;;  %1885 = vst.msk [vmem:[#allocation4 + $0x30] sm:$0xf] %vm1872_vm0, %v1801_v21  ;;  %v2389_v34 = vrot.slane %v2387_v13, 4  ;;  %v2392_v37 = vrot.slane %v2390_v14, 5  ;;  %v2337_v47 = vsel %vm9212_vm13, %v2332_v23, %v9835_v36 }
 0x136   : > { %2540 = vrot.lane.b32.xlu1 %v2217_v57, %s9081_s27  ;;  %2542 = vrot.lane.b32.xlu0 %v2231_v63, %s9081_s27  ;;  %v2126_v57 = vld [vmem:[#allocation2 + $0x7c] sm:$0xf]  ;;  %v2289_v32 = vsel %vm9212_vm13, %v2284_v55, %v2288_v50  ;;  %v2303_v16 = vsel %vm9212_vm13, %v2298_v58, %v9790_v15  ;;  %v2355_v15 = vor.u32 %v2354_v6, %v9820_v5  ;;  %v2402_v58 = vrot.slane %v2400_v39, 4  ;;  %v2138_v36 = vld [vmem:[#allocation2 + $0xac] sm:$0xf] }
 0x137   : > { %v2372_v10 = vshll.u32 %v2126_v57, 16  ;;  %v2376_v12 = vshrl.u32 %v2126_v57, 16  ;;  %v2351_v50 = vsel %vm9212_vm13, %v2346_v24, %v9820_v5  ;;  %v2393_v56 = vor.u32 %v2392_v37, %v2389_v34  ;;  %v2133_v5 = vld [vmem:[#allocation2 + $0x98] sm:$0x1] }
 0x138   : > { %v1803_v44 = vpop.permute.xlu1 %1802  ;;  %v1805_v45 = vpop.permute.xlu0 %1804  ;;  %v2356_v51 = vrot.slane %v2355_v15, 4  ;;  %v9858_v57 = vrot.slane %v2396_v38, 5  ;;  %v2416_v62 = vrot.slane %v2414_v40, 5  ;;  %v2437_v6 = vrot.slane %v2435_v35, 4 }
 0x139   : > { %1886 = vst.msk [vmem:[#allocation4 + $0x34] sm:$0xf] %vm1872_vm0, %v1803_v44  ;;  %1887 = vst.msk [vmem:[#allocation4 + $0x38] sm:$0xf] %vm1872_vm0, %v1805_v45  ;;  %v9843_v29 = vrot.slane %v2372_v10, 5  ;;  %v2378_v30 = vrot.slane %v2376_v12, 4 }
 0x13a   : > { %2544 = vrot.lane.b32.xlu1 %v2241_v25, %s9081_s27  ;;  %2546 = vrot.lane.b32.xlu0 %v2255_v27, %s9081_s27  ;;  %v2358_v25 = vshll.u32 %v2124_v7, 16  ;;  %v2132_v27 = vld [vmem:[#allocation2 + $0x94] sm:$0xf]  ;;  %v2440_v7 = vrot.slane %v2438_v48, 5  ;;  %v2459_v12 = vshrl.u32 %v2137_v59, 16  ;;  %v2462_v13 = vshll.u32 %v2137_v59, 16 }
 0x13b   : > { %v2420_v43 = vshll.u32 %v2132_v27, 16  ;;  %v2424_v44 = vshrl.u32 %v2132_v27, 16  ;;  %v2379_v55 = vor.u32 %v2378_v30, %v9843_v29  ;;  %v2394_v18 = vrot.slane %v2393_v56, 4  ;;  %v2139_v56 = vld [vmem:[#allocation2 + $0xb0] sm:$0x1] }
 0x13c   : > { %v1807_v63 = vpop.permute.xlu1 %1806  ;;  %v1809_v0 = vpop.permute.xlu0 %1808  ;;  %v2360_v41 = vrot.slane %v2358_v25, 5  ;;  %v2403_v19 = vor.u32 %v2402_v58, %v9858_v57  ;;  %v2441_v27 = vor.u32 %v2440_v7, %v2437_v6  ;;  %v2461_v30 = vrot.slane %v2459_v12, 4 }
 0x13d   : > { %1888 = vst.msk [vmem:[#allocation4 + $0x3c] sm:$0xf] %vm1872_vm0, %v1807_v63  ;;  %1889 = vst.msk [vmem:[#allocation4 + $0x40] sm:$0xf] %vm1872_vm0, %v1809_v0  ;;  %v9860_v63 = vrot.slane %v2420_v43, 5  ;;  %v2426_v0 = vrot.slane %v2424_v44, 4  ;;  %v2399_v40 = vsel %vm9212_vm13, %v2394_v18, %v9858_v57 }
 0x13e   : > { %2548 = vrot.lane.b32.xlu1 %v2265_v53, %s9081_s27  ;;  %2550 = vrot.lane.b32.xlu0 %v2279_v54, %s9081_s27  ;;  %v2382_v53 = vshll.u32 %v2127_v33, 16  ;;  %v2135_v54 = vld [vmem:[#allocation2 + $0xa0] sm:$0xf]  ;;  %v2361_v14 = vsel %vm9212_vm13, %v2356_v51, %v2360_v41  ;;  %v2464_v31 = vrot.slane %v2462_v13, 5  ;;  %v2468_v33 = vshll.u32 %v2138_v36, 16 }
 0x13f   : > { %v2444_v8 = vshll.u32 %v2135_v54, 16  ;;  %v2448_v9 = vshrl.u32 %v2135_v54, 16  ;;  %v2427_v25 = vor.u32 %v2426_v0, %v9860_v63  ;;  %v2472_v34 = vshrl.u32 %v2138_v36, 16  ;;  %v2143_v51 = vld [vmem:[#allocation2 + $0xc0] sm:$0xf] }
 0x140   : > { %v1811_v20 = vpop.permute.xlu1 %1810  ;;  %v1813_v21 = vpop.permute.xlu0 %1812  ;;  %v2384_v10 = vrot.slane %v2382_v53, 5  ;;  %v2404_v43 = vrot.slane %v2403_v19, 4  ;;  %v2465_v53 = vor.u32 %v2464_v31, %v2461_v30  ;;  %v2470_v54 = vrot.slane %v2468_v33, 5 }
 0x141   : > { %1890 = vst.msk [vmem:[#allocation4 + $0x44] sm:$0xf] %vm1872_vm0, %v1811_v20  ;;  %1891 = vst.msk [vmem:[#allocation4 + $0x48] sm:$0xf] %vm1872_vm0, %v1813_v21  ;;  %v2417_v20 = vor.u32 %v2416_v62, %v2413_v61  ;;  %v2430_v21 = vshll.u32 %v2133_v5, 16  ;;  %v9873_v15 = vrot.slane %v2444_v8, 5 }
 0x142   : > { %2552 = vrot.lane.b32.xlu1 %v2289_v32, %s9081_s27  ;;  %2554 = vrot.lane.b32.xlu0 %v2303_v16, %s9081_s27  ;;  %v2375_v32 = vsel %vm9212_vm13, %v2370_v52, %v9843_v29  ;;  %v2380_v16 = vrot.slane %v2379_v55, 4  ;;  %v2450_v28 = vrot.slane %v2448_v9, 4  ;;  %v2136_v29 = vld [vmem:[#allocation2 + $0xa4] sm:$0x1]  ;;  %v2428_v41 = vrot.slane %v2427_v25, 4 }
 0x143   : > { %v2418_v44 = vrot.slane %v2417_v20, 4  ;;  %v2432_v35 = vrot.slane %v2430_v21, 5  ;;  %v2442_v52 = vrot.slane %v2441_v27, 4  ;;  %v2474_v55 = vrot.slane %v2472_v34, 4  ;;  %v2144_v8 = vld [vmem:[#allocation2 + $0xc4] sm:$0xf] }
 0x144   : > { %v1815_v45 = vpop.permute.xlu1 %1814  ;;  %v1817_v46 = vpop.permute.xlu0 %1816  ;;  %v2385_v26 = vsel %vm9212_vm13, %v2380_v16, %v2384_v10  ;;  %v2451_v48 = vor.u32 %v2450_v28, %v9873_v15  ;;  %v2507_v0 = vshrl.u32 %v2143_v51, 16  ;;  %v2466_v12 = vrot.slane %v2465_v53, 4 }
 0x145   : > { %1892 = vst.msk [vmem:[#allocation4 + $0x4c] sm:$0xf] %vm1872_vm0, %v1815_v45  ;;  %1893 = vst.msk [vmem:[#allocation4 + $0x50] sm:$0xf] %vm1872_vm0, %v1817_v46  ;;  %v2141_v45 = vld [vmem:[#allocation2 + $0xb8] sm:$0xf]  ;;  %v2423_v62 = vsel %vm9212_vm13, %v2418_v44, %v9860_v63  ;;  %v2433_v6 = vsel %vm9212_vm13, %v2428_v41, %v2432_v35  ;;  %v2447_v9 = vsel %vm9212_vm13, %v2442_v52, %v9873_v15 }
 0x146   : > { %2556 = vrot.lane.b32.xlu1 %v2313_v17, %s9081_s27  ;;  %2558 = vrot.lane.b32.xlu0 %v2327_v22, %s9081_s27  ;;  %v2406_v17 = vshll.u32 %v2130_v60, 16  ;;  %v2140_v22 = vld [vmem:[#allocation2 + $0xb4] sm:$0xf]  ;;  %v2492_v59 = vshll.u32 %v2141_v45, 16  ;;  %v2496_v60 = vshrl.u32 %v2141_v45, 16  ;;  %v2452_v10 = vrot.slane %v2451_v48, 4 }
 0x147   : > { %v2483_v38 = vshrl.u32 %v2140_v22, 16  ;;  %v2486_v39 = vshll.u32 %v2140_v22, 16  ;;  %v2478_v63 = vshll.u32 %v2139_v56, 16  ;;  %v2475_v13 = vor.u32 %v2474_v55, %v2470_v54  ;;  %v2659_v41 = vld [vmem:[#allocation2 + $0xc] sm:$0xe] }
 0x148   : > { %v1819_v3 = vpop.permute.xlu1 %1818  ;;  %v1821_v4 = vpop.permute.xlu0 %1820  ;;  %v2408_v37 = vrot.slane %v2406_v17, 5  ;;  %v2498_v16 = vrot.slane %v2496_v60, 4  ;;  %v2142_v17 = vld [vmem:[#allocation2 + $0xbc] sm:$0x1]  ;;  %v2509_v36 = vrot.slane %v2507_v0, 4  ;;  %v2516_v19 = vshll.u32 %v2144_v8, 16 }
 0x149   : > { %1894 = vst.msk [vmem:[#allocation4 + $0x54] sm:$0xf] %vm1872_vm0, %v1819_v3  ;;  %1895 = vst.msk [vmem:[#allocation4 + $0x58] sm:$0xf] %vm1872_vm0, %v1821_v4  ;;  %v2485_v57 = vrot.slane %v2483_v38, 4  ;;  %v2488_v58 = vrot.slane %v2486_v39, 5  ;;  %v2471_v25 = vsel %vm9212_vm13, %v2466_v12, %v2470_v54 }
 0x14a   : > { %2560 = vrot.lane.b32.xlu1 %v2337_v47, %s9081_s27  ;;  %2562 = vrot.lane.b32.xlu0 %v2351_v50, %s9081_s27  ;;  %v2454_v50 = vshll.u32 %v2136_v29, 16  ;;  %v2409_v61 = vsel %vm9212_vm13, %v2404_v43, %v2408_v37  ;;  %v2510_v3 = vshll.u32 %v2143_v51, 16  ;;  %v2520_v20 = vshrl.u32 %v2144_v8, 16  ;;  %v2145_v38 = vld [vmem:[#allocation2 + $0xc8] sm:$0x1] }
 0x14b   : > { %v2476_v27 = vrot.slane %v2475_v13, 4  ;;  %v2502_v28 = vshll.u32 %v2142_v17, 16  ;;  %v2518_v31 = vrot.slane %v2516_v19, 5  ;;  %v2660_v43 = vld [vmem:[#allocation2 + $0x10] sm:$0xf]  ;;  %v8663_v52 = vrot.slane %v2659_v41, 9 }
 0x14c   : > { %v1823_v23 = vpop.permute.xlu1 %1822  ;;  %v1825_v24 = vpop.permute.xlu0 %1824  ;;  %v2456_v7 = vrot.slane %v2454_v50, 5  ;;  %v2512_v18 = vrot.slane %v2510_v3, 5  ;;  %v2522_v33 = vrot.slane %v2520_v20, 4  ;;  %v289_v50 = vld [vmem:[#allocation2 + $0xcc] sm:$0x1]  ;;  %v2757_v53 = vrot.slane %v2660_v43, 5 }
 0x14d   : > { %1896 = vst.msk [vmem:[#allocation4 + $0x5c] sm:$0xf] %vm1872_vm0, %v1823_v23  ;;  %1897 = vst.msk [vmem:[#allocation4 + $0x60] sm:$0xf] %vm1872_vm0, %v1825_v24  ;;  %v2480_v24 = vrot.slane %v2478_v63, 5  ;;  %v290_v51 = vsel %vm9130_vm3, 0, %v289_v50 }
 0x14e   : > { %2564 = vrot.lane.b32.xlu1 %v2361_v14, %s9081_s27  ;;  %2566 = vrot.lane.b32.xlu0 %v2375_v32, %s9081_s27  ;;  %v2489_v14 = vor.u32 %v2488_v58, %v2485_v57  ;;  %v2494_v32 = vrot.slane %v2492_v59, 5  ;;  %v2457_v23 = vsel %vm9212_vm13, %v2452_v10, %v2456_v7  ;;  %v2513_v30 = vor.u32 %v2512_v18, %v2509_v36  ;;  %v2661_v58 = vld [vmem:[#allocation2 + $0x14] sm:$0x1]  ;;  %v2663_v59 = vld [vmem:[#allocation2 + $0x1c] sm:$0xf] }
 0x14f   : > { %v2481_v39 = vsel %vm9212_vm13, %v2476_v27, %v2480_v24  ;;  %291 = vst [vmem:[#allocation2 + $0xcc] sm:$0x1] %v290_v51  ;;  %v2764_v0 = vrot.slane %v2663_v59, 5  ;;  %v2664_v7 = vld [vmem:[#allocation2 + $0x20] sm:$0x1]  ;;  %vm2626_vm3 = vcmask 158848  }
 0x150   : > { %v1827_v46 = vpop.permute.xlu1 %1826  ;;  %v1829_v47 = vpop.permute.xlu0 %1828  ;;  %v2490_v15 = vrot.slane %v2489_v14, 4  ;;  %v2499_v29 = vor.u32 %v2498_v16, %v2494_v32  ;;  %v2514_v45 = vrot.slane %v2513_v30, 4  ;;  %v2665_v10 = vld [vmem:[#allocation2 + $0x24] sm:$0xe]  ;;  %v2666_v12 = vld [vmem:[#allocation2 + $0x28] sm:$0xf] }
 0x151   : > { %1898 = vst.msk [vmem:[#allocation4 + $0x64] sm:$0xf] %vm1872_vm0, %v1827_v46  ;;  %1899 = vst.msk [vmem:[#allocation4 + $0x68] sm:$0xf] %vm1872_vm0, %v1829_v47  ;;  %v2523_v46 = vor.u32 %v2522_v33, %v2518_v31  ;;  %v2526_v47 = vshll.u32 %v2145_v38, 16  ;;  %v2766_v63 = vrot.slane %v2764_v0, 4 }
 0x152   : > { %2568 = vrot.lane.b32.xlu1 %v2385_v26, %s9081_s27  ;;  %2570 = vrot.lane.b32.xlu0 %v2399_v40, %s9081_s27  ;;  %v2495_v26 = vsel %vm9212_vm13, %v2490_v15, %v2494_v32  ;;  %v2504_v40 = vrot.slane %v2502_v28, 5  ;;  %v2500_v44 = vrot.slane %v2499_v29, 4  ;;  %v2519_v55 = vsel %vm9212_vm13, %v2514_v45, %v2518_v31  ;;  %v2667_v36 = vld [vmem:[#allocation2 + $0x2c] sm:$0x1]  ;;  %v2668_v20 = vld [vmem:[#allocation2 + $0x30] sm:$0xe] }
 0x153   : > { %v2524_v56 = vrot.slane %v2523_v46, 4  ;;  %v2528_v57 = vrot.slane %v2526_v47, 5  ;;  %v2767_v13 = vrot.slane %v2664_v7, 5  ;;  %v8665_v16 = vrot.slane %v2665_v10, 9  ;;  %v2670_v24 = vld [vmem:[#allocation2 + $0x38] sm:$0x1] }
 0x154   : > { %v1831_v4 = vpop.permute.xlu1 %1830  ;;  %v1833_v5 = vpop.permute.xlu0 %1832  ;;  %v2505_v54 = vsel %vm9212_vm13, %v2500_v44, %v2504_v40  ;;  %v2771_v17 = vrot.slane %v2666_v12, 5  ;;  %v8666_v15 = vrot.slane %v2668_v20, 9  ;;  %v2671_v29 = vld [vmem:[#allocation2 + $0x3c] sm:$0xe]  ;;  %v2672_v33 = vld [vmem:[#allocation2 + $0x40] sm:$0xf] }
 0x155   : > { %1900 = vst.msk [vmem:[#allocation4 + $0x6c] sm:$0xf] %vm1872_vm0, %v1831_v4  ;;  %1901 = vst.msk [vmem:[#allocation4 + $0x70] sm:$0xf] %vm1872_vm0, %v1833_v5  ;;  %v2529_v3 = vsel %vm9212_vm13, %v2524_v56, %v2528_v57  ;;  %v2758_v4 = vsel %vm9508_vm1, %v8663_v52, %v2757_v53  ;;  %v2759_v5 = vrot.slane %v2757_v53, 4  ;;  %v2785_v40 = vrot.slane %v2672_v33, 5 }
 0x156   : > { %2572 = vrot.lane.b32.xlu1 %v2409_v61, %s9081_s27  ;;  %2574 = vrot.lane.b32.xlu0 %v2423_v62, %s9081_s27  ;;  %v2662_v61 = vld [vmem:[#allocation2 + $0x18] sm:$0xe]  ;;  %v2760_v62 = vrot.slane %v2661_v58, 5  ;;  %v2773_v27 = vrot.slane %v2771_v17, 4  ;;  %v2673_v43 = vld [vmem:[#allocation2 + $0x44] sm:$0x1] }
 0x157   : > { %v2674_v46 = vld [vmem:[#allocation2 + $0x48] sm:$0xe]  ;;  %v2675_v47 = vld [vmem:[#allocation2 + $0x4c] sm:$0xf]  ;;  %v2787_v51 = vrot.slane %v2785_v40, 4 }
 0x158   : > { %v1835_v21 = vpop.permute.xlu1 %1834  ;;  %v1837_v22 = vpop.permute.xlu0 %1836  ;;  %v2761_v14 = vsel %vm9508_vm1, %v2759_v5, %v2760_v62  ;;  %v8668_v52 = vrot.slane %v2674_v46, 9  ;;  %v2792_v53 = vrot.slane %v2675_v47, 5  ;;  %v2678_v57 = vld [vmem:[#allocation2 + $0x58] sm:$0xf] }
 0x159   : > { %1902 = vst.msk [vmem:[#allocation4 + $0x74] sm:$0xf] %vm1872_vm0, %v1835_v21  ;;  %1903 = vst.msk [vmem:[#allocation4 + $0x78] sm:$0xf] %vm1872_vm0, %v1837_v22  ;;  %v2669_v21 = vld [vmem:[#allocation2 + $0x34] sm:$0xf]  ;;  %v2768_v22 = vsel %vm9508_vm1, %v2766_v63, %v2767_v13 }
 0x15a   : > { %2576 = vrot.lane.b32.xlu1 %v2433_v6, %s9081_s27  ;;  %2578 = vrot.lane.b32.xlu0 %v2447_v9, %s9081_s27  ;;  %v8664_v6 = vrot.slane %v2662_v61, 9  ;;  %v2778_v28 = vrot.slane %v2669_v21, 5  ;;  %v2794_v61 = vrot.slane %v2792_v53, 4  ;;  %v2799_v62 = vrot.slane %v2678_v57, 5  ;;  %v2682_v13 = vld [vmem:[#allocation2 + $0x68] sm:$0x1] }
 0x15c   : > { %v1839_v34 = vpop.permute.xlu1 %1838  ;;  %v1970_v37 = vpop.permute.xlu0 %1969  ;;  %v2765_v32 = vsel %vm9508_vm1, %v8664_v6, %v2764_v0  ;;  %v2679_v0 = vld [vmem:[#allocation2 + $0x5c] sm:$0x1]  ;;  %v2681_v6 = vld [vmem:[#allocation2 + $0x64] sm:$0xf]  ;;  %v2801_v12 = vrot.slane %v2799_v62, 4 }
 0x15d   : > { %1904 = vst.msk [vmem:[#allocation4 + $0x7c] sm:$0xf] %vm1872_vm0, %v1839_v34  ;;  %v2781_v34 = vrot.slane %v2670_v24, 5  ;;  %v2802_v7 = vrot.slane %v2679_v0, 5  ;;  %v2806_v63 = vrot.slane %v2681_v6, 5  ;;  %vm10497_vm0 = vmand %vm351_vm6, %vm292_vm4 }
 0x15e   : > { %2066 = vst.msk [vmem:[#allocation4] sm:$0xf] %vm2065_vm9, %v1970_v37  ;;  %2580 = vrot.lane.b32.xlu1 %v2457_v23, %s9081_s27  ;;  %2582 = vrot.lane.b32.xlu0 %v2471_v25, %s9081_s27  ;;  %v2774_v23 = vrot.slane %v2667_v36, 5  ;;  %v2772_v25 = vsel %vm9508_vm1, %v8665_v16, %v2771_v17  ;;  %v8667_v37 = vrot.slane %v2671_v29, 9  ;;  %v2684_v17 = vld [vmem:[#allocation2 + $0x70] sm:$0xf]  ;;  %vm10605_vm6 = vmand %vm348_vm5, %vm292_vm4 }
 0x15f   : > { %v2809_v36 = vrot.slane %v2682_v13, 5  ;;  %v2808_v21 = vrot.slane %v2806_v63, 4  ;;  %vm5596_vm4 = vcmask 126016  }
 0x160   : > { %v1972_v35 = vpop.permute.xlu1 %1971  ;;  %v1974_v48 = vpop.permute.xlu0 %1973  ;;  %v2775_v38 = vsel %vm9508_vm1, %v2773_v27, %v2774_v23  ;;  %v2786_v41 = vsel %vm9508_vm1, %v8667_v37, %v2785_v40  ;;  %v2685_v23 = vld [vmem:[#allocation2 + $0x74] sm:$0x1]  ;;  %v2686_v27 = vld [vmem:[#allocation2 + $0x78] sm:$0xe]  ;;  %v2689_v40 = vld [vmem:[#allocation2 + $0x84] sm:$0xe] }
 0x161   : > { %2067 = vst.msk [vmem:[#allocation4 + $0x4] sm:$0xf] %vm2065_vm9, %v1972_v35  ;;  %2068 = vst.msk [vmem:[#allocation4 + $0x8] sm:$0xf] %vm2065_vm9, %v1974_v48  ;;  %v2788_v35 = vrot.slane %v2673_v43, 5  ;;  %v2816_v29 = vrot.slane %v2685_v23, 5 }
 0x162   : > { %2584 = vrot.lane.b32.xlu1 %v2481_v39, %s9081_s27  ;;  %2586 = vrot.lane.b32.xlu0 %v2495_v26, %s9081_s27  ;;  %v2779_v39 = vsel %vm9508_vm1, %v8666_v15, %v2778_v28  ;;  %v2780_v26 = vrot.slane %v2778_v28, 4  ;;  %v2676_v48 = vld [vmem:[#allocation2 + $0x50] sm:$0x1]  ;;  %v2687_v15 = vld [vmem:[#allocation2 + $0x7c] sm:$0xf] }
 0x163   : > { %v2795_v58 = vrot.slane %v2676_v48, 5  ;;  %v2820_v37 = vrot.slane %v2687_v15, 5 }
 0x164   : > { %v1976_v60 = vpop.permute.xlu1 %1975  ;;  %v1978_v1 = vpop.permute.xlu0 %1977  ;;  %v2782_v50 = vsel %vm9508_vm1, %v2780_v26, %v2781_v34  ;;  %v8672_v34 = vrot.slane %v2686_v27, 9 }
 0x165   : > { %2069 = vst.msk [vmem:[#allocation4 + $0xc] sm:$0xf] %vm2065_vm9, %v1976_v60  ;;  %2070 = vst.msk [vmem:[#allocation4 + $0x10] sm:$0xf] %vm2065_vm9, %v1978_v1  ;;  %v2789_v60 = vsel %vm9508_vm1, %v2787_v51, %v2788_v35  ;;  %v2793_v1 = vsel %vm9508_vm1, %v8668_v52, %v2792_v53  ;;  %v2822_v47 = vrot.slane %v2820_v37, 4 }
 0x166   : > { %2588 = vrot.lane.b32.xlu1 %v2505_v54, %s9081_s27  ;;  %2590 = vrot.lane.b32.xlu0 %v2519_v55, %s9081_s27  ;;  %v2677_v54 = vld [vmem:[#allocation2 + $0x54] sm:$0xe]  ;;  %v2821_v46 = vsel %vm9508_vm1, %v8672_v34, %v2820_v37  ;;  %v2691_v35 = vld [vmem:[#allocation2 + $0x8c] sm:$0x1]  ;;  %v2692_v51 = vld [vmem:[#allocation2 + $0x90] sm:$0xe] }
 0x167   : > { %v8669_v59 = vrot.slane %v2677_v54, 9  ;;  %v2693_v52 = vld [vmem:[#allocation2 + $0x94] sm:$0xf]  ;;  %v2830_v54 = vrot.slane %v2691_v35, 5  ;;  %v8674_v57 = vrot.slane %v2692_v51, 9 }
 0x168   : > { %v1980_v8 = vpop.permute.xlu1 %1979  ;;  %v1982_v9 = vpop.permute.xlu0 %1981  ;;  %v2705_v34 = vld [vmem:[#allocation2 + $0xc4] sm:$0xf] }
 0x169   : > { %2071 = vst.msk [vmem:[#allocation4 + $0x14] sm:$0xf] %vm2065_vm9, %v1980_v8  ;;  %2072 = vst.msk [vmem:[#allocation4 + $0x18] sm:$0xf] %vm2065_vm9, %v1982_v9  ;;  %v2796_v9 = vsel %vm9508_vm1, %v2794_v61, %v2795_v58  ;;  %v2800_v10 = vsel %vm9508_vm1, %v8669_v59, %v2799_v62  ;;  %v2834_v58 = vrot.slane %v2693_v52, 5 }
 0x16a   : > { %2592 = vrot.lane.b32.xlu1 %v2529_v3, %s9081_s27  ;;  %2867 = vrot.lane.b32.xlu0 %v2758_v4, %s9082_s28  ;;  %v2680_v3 = vld [vmem:[#allocation2 + $0x60] sm:$0xe]  ;;  %v2694_v61 = vld [vmem:[#allocation2 + $0x98] sm:$0x1]  ;;  %v2695_v62 = vld [vmem:[#allocation2 + $0x9c] sm:$0xe] }
 0x16b   : > { %v8670_v8 = vrot.slane %v2680_v3, 9  ;;  %v2696_v59 = vld [vmem:[#allocation2 + $0xa0] sm:$0xf]  ;;  %v2837_v6 = vrot.slane %v2694_v61, 5 }
 0x16c   : > { %v1984_v18 = vpop.permute.xlu1 %1983  ;;  %v1986_v19 = vpop.permute.xlu0 %1985  ;;  %v2841_v3 = vrot.slane %v2696_v59, 5 }
 0x16d   : > { %2073 = vst.msk [vmem:[#allocation4 + $0x1c] sm:$0xf] %vm2065_vm9, %v1984_v18  ;;  %2074 = vst.msk [vmem:[#allocation4 + $0x20] sm:$0xf] %vm2065_vm9, %v1986_v19  ;;  %v2803_v19 = vsel %vm9508_vm1, %v2801_v12, %v2802_v7  ;;  %v2807_v20 = vsel %vm9508_vm1, %v8670_v8, %v2806_v63  ;;  %v8675_v7 = vrot.slane %v2695_v62, 9 }
 0x16e   : > { %2869 = vrot.lane.b32.xlu1 %v2761_v14, %s9082_s28  ;;  %2871 = vrot.lane.b32.xlu0 %v2765_v32, %s9082_s28  ;;  %v2683_v14 = vld [vmem:[#allocation2 + $0x6c] sm:$0xe]  ;;  %v2697_v12 = vld [vmem:[#allocation2 + $0xa4] sm:$0x1]  ;;  %v2698_v63 = vld [vmem:[#allocation2 + $0xa8] sm:$0xe] }
 0x16f   : > { %v8671_v18 = vrot.slane %v2683_v14, 9  ;;  %v2699_v8 = vld [vmem:[#allocation2 + $0xac] sm:$0xf]  ;;  %v2843_v13 = vrot.slane %v2841_v3, 4 }
 0x170   : > { %v1988_v30 = vpop.permute.xlu1 %1987  ;;  %v1990_v31 = vpop.permute.xlu0 %1989  ;;  %v2848_v14 = vrot.slane %v2699_v8, 5 }
 0x171   : > { %2075 = vst.msk [vmem:[#allocation4 + $0x24] sm:$0xf] %vm2065_vm9, %v1988_v30  ;;  %2076 = vst.msk [vmem:[#allocation4 + $0x28] sm:$0xf] %vm2065_vm9, %v1990_v31  ;;  %v2688_v30 = vld [vmem:[#allocation2 + $0x80] sm:$0x1]  ;;  %v2810_v31 = vsel %vm9508_vm1, %v2808_v21, %v2809_v36 }
 0x172   : > { %2873 = vrot.lane.b32.xlu1 %v2768_v22, %s9082_s28  ;;  %2875 = vrot.lane.b32.xlu0 %v2772_v25, %s9082_s28  ;;  %v2813_v22 = vrot.slane %v2684_v17, 5  ;;  %v2823_v43 = vrot.slane %v2688_v30, 5  ;;  %v2844_v17 = vrot.slane %v2697_v12, 5  ;;  %v8676_v36 = vrot.slane %v2698_v63, 9  ;;  %v3007_v12 = vld [vmem:[#allocation2 + $0x54] sm:$0xf] }
 0x173   : > { %v2850_v23 = vrot.slane %v2848_v14, 4 }
 0x174   : > { %v1992_v44 = vpop.permute.xlu1 %1991  ;;  %v1994_v45 = vpop.permute.xlu0 %1993  ;;  %v2814_v28 = vsel %vm9508_vm1, %v8671_v18, %v2813_v22  ;;  %v2815_v33 = vrot.slane %v2813_v22, 4  ;;  %v2700_v18 = vld [vmem:[#allocation2 + $0xb0] sm:$0x1]  ;;  %v2701_v22 = vld [vmem:[#allocation2 + $0xb4] sm:$0xe]  ;;  %v2845_v27 = vsel %vm9508_vm1, %v2843_v13, %v2844_v17  ;;  %v2849_v15 = vsel %vm9508_vm1, %v8676_v36, %v2848_v14 }
 0x175   : > { %2077 = vst.msk [vmem:[#allocation4 + $0x2c] sm:$0xf] %vm2065_vm9, %v1992_v44  ;;  %2078 = vst.msk [vmem:[#allocation4 + $0x30] sm:$0xf] %vm2065_vm9, %v1994_v45  ;;  %v3008_v14 = vld [vmem:[#allocation2 + $0x58] sm:$0xf] }
 0x176   : > { %2877 = vrot.lane.b32.xlu1 %v2775_v38, %s9082_s28  ;;  %2879 = vrot.lane.b32.xlu0 %v2779_v39, %s9082_s28  ;;  %v2690_v38 = vld [vmem:[#allocation2 + $0x88] sm:$0xf]  ;;  %v2817_v45 = vsel %vm9508_vm1, %v2815_v33, %v2816_v29  ;;  %v2704_v33 = vld [vmem:[#allocation2 + $0xc0] sm:$0xe]  ;;  %v3010_v36 = vld [vmem:[#allocation2 + $0x64] sm:$0xf] }
 0x177   : > { %v2827_v44 = vrot.slane %v2690_v38, 5 }
 0x178   : > { %v1996_v55 = vpop.permute.xlu1 %1995  ;;  %v1998_v56 = vpop.permute.xlu0 %1997 }
 0x179   : > { %2079 = vst.msk [vmem:[#allocation4 + $0x34] sm:$0xf] %vm2065_vm9, %v1996_v55  ;;  %2080 = vst.msk [vmem:[#allocation4 + $0x38] sm:$0xf] %vm2065_vm9, %v1998_v56  ;;  %v2829_v53 = vrot.slane %v2827_v44, 4  ;;  %v2824_v55 = vsel %vm9508_vm1, %v2822_v47, %v2823_v43  ;;  %v2862_v43 = vrot.slane %v2705_v34, 5 }
 0x17a   : > { %2881 = vrot.lane.b32.xlu1 %v2782_v50, %s9082_s28  ;;  %2883 = vrot.lane.b32.xlu0 %v2786_v41, %s9082_s28  ;;  %v8673_v41 = vrot.slane %v2689_v40, 9  ;;  %v8678_v40 = vrot.slane %v2704_v33, 9  ;;  %v3018_v34 = vld [vmem:[#allocation2 + $0x94] sm:$0xf] }
 0x17b   : > { %v2831_v0 = vsel %vm9508_vm1, %v2829_v53, %v2830_v54  ;;  %v2864_v35 = vrot.slane %v2862_v43, 4  ;;  %v2997_v53 = vld [vmem:[#allocation2 + $0x18] sm:$0xf] }
 0x17c   : > { %v2000_v4 = vpop.permute.xlu1 %1999  ;;  %v2002_v5 = vpop.permute.xlu0 %2001  ;;  %v2828_v56 = vsel %vm9508_vm1, %v8673_v41, %v2827_v44  ;;  %v2863_v41 = vsel %vm9508_vm1, %v8678_v40, %v2862_v43  ;;  %v3191_v40 = vld [vmem:[#allocation2 + $0x1c] sm:$0xf]  ;;  %v345_v43 = vld [vmem:[#allocation2 + $0xd4] sm:$0x1] }
 0x17d   : > { %2081 = vst.msk [vmem:[#allocation4 + $0x3c] sm:$0xf] %vm2065_vm9, %v2000_v4  ;;  %2082 = vst.msk [vmem:[#allocation4 + $0x40] sm:$0xf] %vm2065_vm9, %v2002_v5  ;;  %v2835_v4 = vsel %vm9508_vm1, %v8674_v57, %v2834_v58  ;;  %v2836_v5 = vrot.slane %v2834_v58, 4 }
 0x17e   : > { %2885 = vrot.lane.b32.xlu1 %v2789_v60, %s9082_s28  ;;  %2887 = vrot.lane.b32.xlu0 %v2793_v1, %s9082_s28  ;;  %v2999_v57 = vld [vmem:[#allocation2 + $0x24] sm:$0xf] }
 0x180   : > { %v2004_v32 = vpop.permute.xlu1 %2003  ;;  %v2006_v16 = vpop.permute.xlu0 %2005 }
 0x181   : > { %2083 = vst.msk [vmem:[#allocation4 + $0x44] sm:$0xf] %vm2065_vm9, %v2004_v32  ;;  %2084 = vst.msk [vmem:[#allocation4 + $0x48] sm:$0xf] %vm2065_vm9, %v2006_v16  ;;  %v2838_v32 = vsel %vm9508_vm1, %v2836_v5, %v2837_v6  ;;  %v2842_v16 = vsel %vm9508_vm1, %v8675_v7, %v2841_v3  ;;  %v3003_v3 = vld [vmem:[#allocation2 + $0x3c] sm:$0xf] }
 0x182   : > { %2889 = vrot.lane.b32.xlu1 %v2796_v9, %s9082_s28  ;;  %2891 = vrot.lane.b32.xlu0 %v2800_v10, %s9082_s28  ;;  %v3004_v6 = vld [vmem:[#allocation2 + $0x40] sm:$0xf]  ;;  %v3005_v7 = vld [vmem:[#allocation2 + $0x48] sm:$0xf] }
 0x184   : > { %v2008_v24 = vpop.permute.xlu1 %2007  ;;  %v2010_v25 = vpop.permute.xlu0 %2009 }
 0x185   : > { %2085 = vst.msk [vmem:[#allocation4 + $0x4c] sm:$0xf] %vm2065_vm9, %v2008_v24  ;;  %2086 = vst.msk [vmem:[#allocation4 + $0x50] sm:$0xf] %vm2065_vm9, %v2010_v25  ;;  %v2851_v24 = vrot.slane %v2700_v18, 5 }
 0x186   : > { %2893 = vrot.lane.b32.xlu1 %v2803_v19, %s9082_s28  ;;  %2895 = vrot.lane.b32.xlu0 %v2807_v20, %s9082_s28  ;;  %v2702_v19 = vld [vmem:[#allocation2 + $0xb8] sm:$0xf]  ;;  %v3011_v18 = vld [vmem:[#allocation2 + $0x6c] sm:$0xf] }
 0x187   : > { %v2855_v25 = vrot.slane %v2702_v19, 5  ;;  %v2852_v37 = vsel %vm9508_vm1, %v2850_v23, %v2851_v24 }
 0x188   : > { %v2012_v39 = vpop.permute.xlu1 %2011  ;;  %v2014_v26 = vpop.permute.xlu0 %2013 }
 0x189   : > { %2087 = vst.msk [vmem:[#allocation4 + $0x54] sm:$0xf] %vm2065_vm9, %v2012_v39  ;;  %2088 = vst.msk [vmem:[#allocation4 + $0x58] sm:$0xf] %vm2065_vm9, %v2014_v26  ;;  %v2857_v38 = vrot.slane %v2855_v25, 4 }
 0x18a   : > { %2897 = vrot.lane.b32.xlu1 %v2810_v31, %s9082_s28  ;;  %2899 = vrot.lane.b32.xlu0 %v2814_v28, %s9082_s28  ;;  %v8677_v28 = vrot.slane %v2701_v22, 9  ;;  %v2703_v31 = vld [vmem:[#allocation2 + $0xbc] sm:$0x1]  ;;  %v3013_v22 = vld [vmem:[#allocation2 + $0x78] sm:$0xf] }
 0x18b   : > { %v2858_v26 = vrot.slane %v2703_v31, 5 }
 0x18c   : > { %v2016_v48 = vpop.permute.xlu1 %2015  ;;  %v2018_v50 = vpop.permute.xlu0 %2017  ;;  %v2856_v39 = vsel %vm9508_vm1, %v8677_v28, %v2855_v25  ;;  %v3014_v25 = vld [vmem:[#allocation2 + $0x7c] sm:$0xf] }
 0x18d   : > { %2089 = vst.msk [vmem:[#allocation4 + $0x5c] sm:$0xf] %vm2065_vm9, %v2016_v48  ;;  %2090 = vst.msk [vmem:[#allocation4 + $0x60] sm:$0xf] %vm2065_vm9, %v2018_v50  ;;  %v2859_v47 = vsel %vm9508_vm1, %v2857_v38, %v2858_v26  ;;  %v3190_v26 = vld [vmem:[#allocation2 + $0x18] sm:$0xf] }
 0x18e   : > { %2901 = vrot.lane.b32.xlu1 %v2817_v45, %s9082_s28  ;;  %2903 = vrot.lane.b32.xlu0 %v2821_v46, %s9082_s28  ;;  %v2706_v46 = vld [vmem:[#allocation2 + $0xc8] sm:$0x1] }
 0x18f   : > { %v2865_v48 = vrot.slane %v2706_v46, 5  ;;  %v3239_v46 = vshrl.u32 %v3190_v26, 16 }
 0x190   : > { %v2020_v60 = vpop.permute.xlu1 %2019  ;;  %v2022_v1 = vpop.permute.xlu0 %2021 }
 0x191   : > { %2091 = vst.msk [vmem:[#allocation4 + $0x64] sm:$0xf] %vm2065_vm9, %v2020_v60  ;;  %2092 = vst.msk [vmem:[#allocation4 + $0x68] sm:$0xf] %vm2065_vm9, %v2022_v1  ;;  %v2866_v52 = vsel %vm9508_vm1, %v2864_v35, %v2865_v48  ;;  %v3000_v60 = vld [vmem:[#allocation2 + $0x28] sm:$0xf] }
 0x192   : > { %2905 = vrot.lane.b32.xlu1 %v2824_v55, %s9082_s28  ;;  %2907 = vrot.lane.b32.xlu0 %v2828_v56, %s9082_s28  ;;  %v2998_v56 = vld [vmem:[#allocation2 + $0x1c] sm:$0xf]  ;;  %v3001_v1 = vld [vmem:[#allocation2 + $0x30] sm:$0xf]  ;;  %v3248_v48 = vshll.u32 %v3191_v40, 16 }
 0x194   : > { %v2024_v9 = vpop.permute.xlu1 %2023  ;;  %v2026_v10 = vpop.permute.xlu0 %2025 }
 0x195   : > { %2093 = vst.msk [vmem:[#allocation4 + $0x6c] sm:$0xf] %vm2065_vm9, %v2024_v9  ;;  %2094 = vst.msk [vmem:[#allocation4 + $0x70] sm:$0xf] %vm2065_vm9, %v2026_v10  ;;  %v3006_v10 = vld [vmem:[#allocation2 + $0x4c] sm:$0xf] }
 0x196   : > { %2909 = vrot.lane.b32.xlu1 %v2831_v0, %s9082_s28  ;;  %2911 = vrot.lane.b32.xlu0 %v2835_v4, %s9082_s28  ;;  %v3002_v0 = vld [vmem:[#allocation2 + $0x34] sm:$0xf] }
 0x198   : > { %v2028_v20 = vpop.permute.xlu1 %2027  ;;  %v2030_v21 = vpop.permute.xlu0 %2029 }
 0x199   : > { %2095 = vst.msk [vmem:[#allocation4 + $0x74] sm:$0xf] %vm2065_vm9, %v2028_v20  ;;  %2096 = vst.msk [vmem:[#allocation4 + $0x78] sm:$0xf] %vm2065_vm9, %v2030_v21  ;;  %v3012_v21 = vld [vmem:[#allocation2 + $0x70] sm:$0xf] }
 0x19a   : > { %2913 = vrot.lane.b32.xlu1 %v2838_v32, %s9082_s28  ;;  %2915 = vrot.lane.b32.xlu0 %v2842_v16, %s9082_s28  ;;  %v3009_v32 = vld [vmem:[#allocation2 + $0x60] sm:$0xf] }
 0x19c   : > { %v2032_v29 = vpop.permute.xlu1 %2031  ;;  %v2531_v30 = vpop.permute.xlu0 %2530 }
 0x19d   : > { %2097 = vst.msk [vmem:[#allocation4 + $0x7c] sm:$0xf] %vm2065_vm9, %v2032_v29  ;;  %v3016_v29 = vld [vmem:[#allocation2 + $0x88] sm:$0xf]  ;;  %vm6126_vm9 = vcmask 257216  }
 0x19e   : > { %2627 = vst.msk [vmem:[#allocation4] sm:$0xf] %vm2626_vm3, %v2531_v30  ;;  %2917 = vrot.lane.b32.xlu1 %v2845_v27, %s9082_s28  ;;  %2919 = vrot.lane.b32.xlu0 %v2849_v15, %s9082_s28  ;;  %v3015_v27 = vld [vmem:[#allocation2 + $0x84] sm:$0xf]  ;;  %v3017_v30 = vld [vmem:[#allocation2 + $0x90] sm:$0xf] }
 0x1a0   : > { %v2533_v44 = vpop.permute.xlu1 %2532  ;;  %v2535_v45 = vpop.permute.xlu0 %2534 }
 0x1a1   : > { %2628 = vst.msk [vmem:[#allocation4 + $0x4] sm:$0xf] %vm2626_vm3, %v2533_v44  ;;  %2629 = vst.msk [vmem:[#allocation4 + $0x8] sm:$0xf] %vm2626_vm3, %v2535_v45  ;;  %v3020_v44 = vld [vmem:[#allocation2 + $0xa0] sm:$0xf] }
 0x1a2   : > { %2921 = vrot.lane.b32.xlu1 %v2852_v37, %s9082_s28  ;;  %2923 = vrot.lane.b32.xlu0 %v2856_v39, %s9082_s28  ;;  %v3019_v37 = vld [vmem:[#allocation2 + $0x9c] sm:$0xf]  ;;  %v3021_v45 = vld [vmem:[#allocation2 + $0xa8] sm:$0xf] }
 0x1a4   : > { %v2537_v50 = vpop.permute.xlu1 %2536  ;;  %v2539_v51 = vpop.permute.xlu0 %2538 }
 0x1a5   : > { %2630 = vst.msk [vmem:[#allocation4 + $0xc] sm:$0xf] %vm2626_vm3, %v2537_v50  ;;  %2631 = vst.msk [vmem:[#allocation4 + $0x10] sm:$0xf] %vm2626_vm3, %v2539_v51  ;;  %v3252_v50 = vshrl.u32 %v3191_v40, 16 }
 0x1a6   : > { %2925 = vrot.lane.b32.xlu1 %v2859_v47, %s9082_s28  ;;  %2927 = vrot.lane.b32.xlu0 %v2863_v41, %s9082_s28  ;;  %v3242_v47 = vshll.u32 %v3190_v26, 16  ;;  %v3193_v51 = vld [vmem:[#allocation2 + $0x24] sm:$0xf]  ;;  %v3751_v26 = vld [vmem:[#allocation2 + $0x18] sm:$0xe] }
 0x1a8   : > { %v2541_v54 = vpop.permute.xlu1 %2540  ;;  %v2543_v55 = vpop.permute.xlu0 %2542 }
 0x1a9   : > { %2632 = vst.msk [vmem:[#allocation4 + $0x14] sm:$0xf] %vm2626_vm3, %v2541_v54  ;;  %2633 = vst.msk [vmem:[#allocation4 + $0x18] sm:$0xf] %vm2626_vm3, %v2543_v55  ;;  %v3023_v54 = vld [vmem:[#allocation2 + $0xb4] sm:$0xf] }
 0x1aa   : > { %2929 = vrot.lane.b32.xlu1 %v2866_v52, %s9082_s28  ;;  %3061 = vrot.lane.b32.xlu0 %v2997_v53, %s9083_s29  ;;  %v346_v52 = vsel %vm9138_vm7, 0, %v345_v43  ;;  %v3022_v53 = vld [vmem:[#allocation2 + $0xac] sm:$0xf]  ;;  %v3241_v55 = vrot.slane %v3239_v46, 4  ;;  %vm4276_vm7 = vcmask 1041408  }
 0x1ab   : > { %347 = vst [vmem:[#allocation2 + $0xd4] sm:$0x1] %v346_v52  ;;  %v9028_v43 = vld [vmem:[%s11854_s1 + $0x10] ss:$0 sps:$4 sm:$0x33]   ;;  %v8679_v52 = vrot.slane %v3751_v26, 9 }
 0x1ac   : > { %v2545_v58 = vpop.permute.xlu1 %2544  ;;  %v2547_v59 = vpop.permute.xlu0 %2546  ;;  %9005 = vmatprep.subr.msk.bf16.mxu0 %vm4276_vm7, %v9028_v43  ;;  %v3203_v26 = vld [vmem:[#allocation2 + $0x4c] sm:$0xf] }
 0x1ad   : > { %2634 = vst.msk [vmem:[#allocation4 + $0x1c] sm:$0xf] %vm2626_vm3, %v2545_v58  ;;  %2635 = vst.msk [vmem:[#allocation4 + $0x20] sm:$0xf] %vm2626_vm3, %v2547_v59  ;;  %v3263_v58 = vshrl.u32 %v3193_v51, 16  ;;  %v3266_v59 = vshll.u32 %v3193_v51, 16 }
 0x1ae   : > { %3063 = vrot.lane.b32.xlu1 %v2998_v56, %s9083_s29  ;;  %3065 = vrot.lane.b32.xlu0 %v2999_v57, %s9083_s29  ;;  %v3244_v56 = vrot.slane %v3242_v47, 5  ;;  %v3194_v57 = vld [vmem:[#allocation2 + $0x28] sm:$0xf] }
 0x1b0   : > { %v2549_v61 = vpop.permute.xlu1 %2548  ;;  %v2551_v62 = vpop.permute.xlu0 %2550 }
 0x1b1   : > { %2636 = vst.msk [vmem:[#allocation4 + $0x24] sm:$0xf] %vm2626_vm3, %v2549_v61  ;;  %2637 = vst.msk [vmem:[#allocation4 + $0x28] sm:$0xf] %vm2626_vm3, %v2551_v62  ;;  %v3254_v61 = vrot.slane %v3252_v50, 4  ;;  %v4278_v50 = vsel %vm4276_vm7, %v9028_v43, 0 }
 0x1b2   : > { %3067 = vrot.lane.b32.xlu1 %v3000_v60, %s9083_s29  ;;  %3069 = vrot.lane.b32.xlu0 %v3001_v1, %s9083_s29  ;;  %v3250_v1 = vrot.slane %v3248_v48, 5  ;;  %v3192_v62 = vld [vmem:[#allocation2 + $0x20] sm:$0x1]  ;;  %vm7218_vm7 = vcmask 454016  }
 0x1b3   : > { %8926 = vmatpush3.bf16.msra.mxu0 %v4278_v50 }
 0x1b4   : > { %v2553_v4 = vpop.permute.xlu1 %2552  ;;  %v2555_v5 = vpop.permute.xlu0 %2554 }
 0x1b5   : > { %2638 = vst.msk [vmem:[#allocation4 + $0x2c] sm:$0xf] %vm2626_vm3, %v2553_v4  ;;  %2639 = vst.msk [vmem:[#allocation4 + $0x30] sm:$0xf] %vm2626_vm3, %v2555_v5  ;;  %v3024_v4 = vld [vmem:[#allocation2 + $0xb8] sm:$0xf] }
 0x1b6   : > { %3071 = vrot.lane.b32.xlu1 %v3002_v0, %s9083_s29  ;;  %3073 = vrot.lane.b32.xlu0 %v3003_v3, %s9083_s29  ;;  %v3272_v0 = vshll.u32 %v3194_v57, 16  ;;  %v3276_v3 = vshrl.u32 %v3194_v57, 16  ;;  %v3025_v5 = vld [vmem:[#allocation2 + $0xc0] sm:$0xf] }
 0x1b8   : > { %v2557_v8 = vpop.permute.xlu1 %2556  ;;  %v2559_v9 = vpop.permute.xlu0 %2558 }
 0x1b9   : > { %2640 = vst.msk [vmem:[#allocation4 + $0x34] sm:$0xf] %vm2626_vm3, %v2557_v8  ;;  %2641 = vst.msk [vmem:[#allocation4 + $0x38] sm:$0xf] %vm2626_vm3, %v2559_v9  ;;  %v3268_v8 = vrot.slane %v3266_v59, 5 }
 0x1ba   : > { %3075 = vrot.lane.b32.xlu1 %v3004_v6, %s9083_s29  ;;  %3077 = vrot.lane.b32.xlu0 %v3005_v7, %s9083_s29  ;;  %v3245_v6 = vor.u32 %v3244_v56, %v3241_v55  ;;  %v3265_v7 = vrot.slane %v3263_v58, 4  ;;  %v3754_v59 = vld [vmem:[#allocation2 + $0x24] sm:$0xe] }
 0x1bc   : > { %v2561_v63 = vpop.permute.xlu1 %2560  ;;  %v2563_v13 = vpop.permute.xlu0 %2562 }
 0x1bd   : > { %2642 = vst.msk [vmem:[#allocation4 + $0x3c] sm:$0xf] %vm2626_vm3, %v2561_v63  ;;  %2643 = vst.msk [vmem:[#allocation4 + $0x40] sm:$0xf] %vm2626_vm3, %v2563_v13  ;;  %v3258_v63 = vshll.u32 %v3192_v62, 16  ;;  %v10125_v13 = vrot.slane %v3272_v0, 5 }
 0x1be   : > { %3079 = vrot.lane.b32.xlu1 %v3006_v10, %s9083_s29  ;;  %3081 = vrot.lane.b32.xlu0 %v3007_v12, %s9083_s29  ;;  %v3255_v12 = vor.u32 %v3254_v61, %v3250_v1 }
 0x1c0   : > { %v2565_v16 = vpop.permute.xlu1 %2564  ;;  %v2567_v17 = vpop.permute.xlu0 %2566 }
 0x1c1   : > { %2644 = vst.msk [vmem:[#allocation4 + $0x44] sm:$0xf] %vm2626_vm3, %v2565_v16  ;;  %2645 = vst.msk [vmem:[#allocation4 + $0x48] sm:$0xf] %vm2626_vm3, %v2567_v17  ;;  %v3026_v16 = vld [vmem:[#allocation2 + $0xc4] sm:$0xf] }
 0x1c2   : > { %3083 = vrot.lane.b32.xlu1 %v3008_v14, %s9083_s29  ;;  %3085 = vrot.lane.b32.xlu0 %v3009_v32, %s9083_s29  ;;  %v3195_v14 = vld [vmem:[#allocation2 + $0x2c] sm:$0x1]  ;;  %v3278_v32 = vrot.slane %v3276_v3, 4 }
 0x1c3   : > { %v3027_v17 = vld [vmem:[#allocation2 + $0xcc] sm:$0xf] }
 0x1c4   : > { %v2569_v19 = vpop.permute.xlu1 %2568  ;;  %v2571_v20 = vpop.permute.xlu0 %2570 }
 0x1c5   : > { %2646 = vst.msk [vmem:[#allocation4 + $0x4c] sm:$0xf] %vm2626_vm3, %v2569_v19  ;;  %2647 = vst.msk [vmem:[#allocation4 + $0x50] sm:$0xf] %vm2626_vm3, %v2571_v20 }
 0x1c6   : > { %3087 = vrot.lane.b32.xlu1 %v3010_v36, %s9083_s29  ;;  %3089 = vrot.lane.b32.xlu0 %v3011_v18, %s9083_s29  ;;  %v3246_v36 = vrot.slane %v3245_v6, 4  ;;  %v3269_v18 = vor.u32 %v3268_v8, %v3265_v7 }
 0x1c8   : > { %v2573_v23 = vpop.permute.xlu1 %2572  ;;  %v2575_v24 = vpop.permute.xlu0 %2574 }
 0x1c9   : > { %2648 = vst.msk [vmem:[#allocation4 + $0x54] sm:$0xf] %vm2626_vm3, %v2573_v23  ;;  %2649 = vst.msk [vmem:[#allocation4 + $0x58] sm:$0xf] %vm2626_vm3, %v2575_v24  ;;  %v3196_v23 = vld [vmem:[#allocation2 + $0x30] sm:$0xf] }
 0x1ca   : > { %3091 = vrot.lane.b32.xlu1 %v3012_v21, %s9083_s29  ;;  %3093 = vrot.lane.b32.xlu0 %v3013_v22, %s9083_s29  ;;  %v3256_v21 = vrot.slane %v3255_v12, 4  ;;  %v3260_v22 = vrot.slane %v3258_v63, 5  ;;  %v3282_v24 = vshll.u32 %v3195_v14, 16  ;;  %v3756_v14 = vld [vmem:[#allocation2 + $0x2c] sm:$0x1] }
 0x1cc   : > { %v2577_v15 = vpop.permute.xlu1 %2576  ;;  %v2579_v28 = vpop.permute.xlu0 %2578 }
 0x1cd   : > { %2650 = vst.msk [vmem:[#allocation4 + $0x5c] sm:$0xf] %vm2626_vm3, %v2577_v15  ;;  %2651 = vst.msk [vmem:[#allocation4 + $0x60] sm:$0xf] %vm2626_vm3, %v2579_v28  ;;  %v3279_v15 = vor.u32 %v3278_v32, %v10125_v13  ;;  %v3197_v28 = vld [vmem:[#allocation2 + $0x34] sm:$0xf] }
 0x1ce   : > { %3095 = vrot.lane.b32.xlu1 %v3014_v25, %s9083_s29  ;;  %3097 = vrot.lane.b32.xlu0 %v3015_v27, %s9083_s29  ;;  %v3752_v25 = vld [vmem:[#allocation2 + $0x1c] sm:$0xf]  ;;  %v3028_v27 = vld [vmem:[#allocation2 + $0xd0] sm:$0xf]  ;;  %v3300_v46 = vshrl.u32 %v3197_v28, 16  ;;  %v9030_v32 = vld [vmem:[%s11854_s1] sm:$0xff]  }
 0x1cf   : > { %v3849_v40 = vrot.slane %v3752_v25, 5  ;;  %v3280_v47 = vrot.slane %v3279_v15, 4 }
 0x1d0   : > { %v2581_v31 = vpop.permute.xlu1 %2580  ;;  %v2583_v33 = vpop.permute.xlu0 %2582  ;;  %v3302_v61 = vrot.slane %v3300_v46, 4 }
 0x1d1   : > { %2652 = vst.msk [vmem:[#allocation4 + $0x64] sm:$0xf] %vm2626_vm3, %v2581_v31  ;;  %2653 = vst.msk [vmem:[#allocation4 + $0x68] sm:$0xf] %vm2626_vm3, %v2583_v33  ;;  %v3287_v31 = vshrl.u32 %v3196_v23, 16  ;;  %v3290_v33 = vshll.u32 %v3196_v23, 16  ;;  %v3850_v8 = vsel %vm9508_vm1, %v8679_v52, %v3849_v40 }
 0x1d2   : > { %3099 = vrot.lane.b32.xlu1 %v3016_v29, %s9083_s29  ;;  %3101 = vrot.lane.b32.xlu0 %v3017_v30, %s9083_s29  ;;  %v3251_v29 = vsel %vm9212_vm13, %v3246_v36, %v3250_v1  ;;  %v3270_v30 = vrot.slane %v3269_v18, 4  ;;  %v3851_v58 = vrot.slane %v3849_v40, 4  ;;  %v3759_v52 = vld [vmem:[#allocation2 + $0x38] sm:$0x1] }
 0x1d3   : > { %v3292_v55 = vrot.slane %v3290_v33, 5 }
 0x1d4   : > { %v2585_v38 = vpop.permute.xlu1 %2584  ;;  %v2587_v39 = vpop.permute.xlu0 %2586  ;;  %v3275_v51 = vsel %vm9212_vm13, %v3270_v30, %v10125_v13 }
 0x1d5   : > { %2654 = vst.msk [vmem:[#allocation4 + $0x6c] sm:$0xf] %vm2626_vm3, %v2585_v38  ;;  %2655 = vst.msk [vmem:[#allocation4 + $0x70] sm:$0xf] %vm2626_vm3, %v2587_v39  ;;  %v3261_v39 = vsel %vm9212_vm13, %v3256_v21, %v3260_v22  ;;  %v3201_v21 = vld [vmem:[#allocation2 + $0x44] sm:$0x1] }
 0x1d6   : > { %3103 = vrot.lane.b32.xlu1 %v3018_v34, %s9083_s29  ;;  %3105 = vrot.lane.b32.xlu0 %v3019_v37, %s9083_s29  ;;  %v3199_v34 = vld [vmem:[#allocation2 + $0x3c] sm:$0xf]  ;;  %v3330_v33 = vshll.u32 %v3201_v21, 16 }
 0x1d7   : > { %v3314_v48 = vshll.u32 %v3199_v34, 16 }
 0x1d8   : > { %v2589_v41 = vpop.permute.xlu1 %2588  ;;  %v2591_v35 = vpop.permute.xlu0 %2590 }
 0x1d9   : > { %2656 = vst.msk [vmem:[#allocation4 + $0x74] sm:$0xf] %vm2626_vm3, %v2589_v41  ;;  %2657 = vst.msk [vmem:[#allocation4 + $0x78] sm:$0xf] %vm2626_vm3, %v2591_v35  ;;  %v3200_v41 = vld [vmem:[#allocation2 + $0x40] sm:$0xf] }
 0x1da   : > { %3107 = vrot.lane.b32.xlu1 %v3020_v44, %s9083_s29  ;;  %3109 = vrot.lane.b32.xlu0 %v3021_v45, %s9083_s29  ;;  %v3284_v44 = vrot.slane %v3282_v24, 5  ;;  %v3296_v45 = vshll.u32 %v3197_v28, 16  ;;  %v3311_v35 = vshrl.u32 %v3199_v34, 16  ;;  %v3320_v62 = vshll.u32 %v3200_v41, 16  ;;  %v3202_v28 = vld [vmem:[#allocation2 + $0x48] sm:$0xf] }
 0x1db   : > { %v3324_v0 = vshrl.u32 %v3200_v41, 16  ;;  %v3316_v7 = vrot.slane %v3314_v48, 5  ;;  %v3859_v24 = vrot.slane %v3756_v14, 5  ;;  %v3335_v40 = vshrl.u32 %v3202_v28, 16 }
 0x1dc   : > { %v2593_v60 = vpop.permute.xlu1 %2592  ;;  %v2868_v2 = vpop.permute.xlu0 %2867  ;;  %v10151_v1 = vrot.slane %v3296_v45, 5  ;;  %v3285_v3 = vsel %vm9212_vm13, %v3280_v47, %v3284_v44  ;;  %v3313_v6 = vrot.slane %v3311_v35, 4  ;;  %v10165_v36 = vrot.slane %v3320_v62, 5  ;;  %v3205_v44 = vld [vmem:[#allocation2 + $0x54] sm:$0xf] }
 0x1dd   : > { %2658 = vst.msk [vmem:[#allocation4 + $0x7c] sm:$0xf] %vm2626_vm3, %v2593_v60  ;;  %v3755_v60 = vld [vmem:[#allocation2 + $0x28] sm:$0xf]  ;;  %v3326_v18 = vrot.slane %v3324_v0, 4  ;;  %v3338_v43 = vshll.u32 %v3202_v28, 16 }
 0x1de   : > { %2964 = vst.msk [vmem:[#allocation4] sm:$0xf] %vm2963_vm10, %v2868_v2  ;;  %3111 = vrot.lane.b32.xlu1 %v3022_v53, %s9083_s29  ;;  %3113 = vrot.lane.b32.xlu0 %v3023_v54, %s9083_s29  ;;  %v3753_v53 = vld [vmem:[#allocation2 + $0x20] sm:$0x1]  ;;  %v3289_v54 = vrot.slane %v3287_v31, 4  ;;  %v9029_v2 = vld [vmem:[%s11854_s1 + $0x8] sm:$0xff]  }
 0x1df   : > { %8927 = vmatprep.subr.bf16.mxu0 %v9029_v2  ;;  %v3327_v31 = vor.u32 %v3326_v18, %v10165_v36  ;;  %v3757_v47 = vld [vmem:[#allocation2 + $0x30] sm:$0xe]  ;;  %v3332_v48 = vrot.slane %v3330_v33, 5  ;;  %v3761_v62 = vld [vmem:[#allocation2 + $0x40] sm:$0xf]  ;;  %vm6687_vm3 = vcmask 322816  }
 0x1e0   : > { %v2870_v9 = vpop.permute.xlu1 %2869  ;;  %v2872_v10 = vpop.permute.xlu0 %2871  ;;  %v3293_v12 = vor.u32 %v3292_v55, %v3289_v54  ;;  %8928 = vmatpush3.bf16.msra.mxu0 %v9029_v2  ;;  %v3348_v54 = vshrl.u32 %v3203_v26, 16  ;;  %v3359_v55 = vshrl.u32 %v3205_v44, 16 }
 0x1e1   : > { %2965 = vst.msk [vmem:[#allocation4 + $0x4] sm:$0xf] %vm2963_vm10, %v2870_v9  ;;  %2966 = vst.msk [vmem:[#allocation4 + $0x8] sm:$0xf] %vm2963_vm10, %v2872_v10  ;;  %v8680_v9 = vrot.slane %v3754_v59, 9  ;;  %v3856_v10 = vrot.slane %v3755_v60, 5  ;;  %8929 = vmatprep.subr.bf16.mxu0 %v9030_v32 }
 0x1e2   : > { %3115 = vrot.lane.b32.xlu1 %v3024_v4, %s9083_s29  ;;  %3117 = vrot.lane.b32.xlu0 %v3025_v5, %s9083_s29  ;;  %v3852_v4 = vrot.slane %v3753_v53, 5  ;;  %v3198_v5 = vld [vmem:[#allocation2 + $0x38] sm:$0x1]  ;;  %v3294_v25 = vrot.slane %v3293_v12, 4  ;;  %v3328_v35 = vrot.slane %v3327_v31, 4  ;;  %v3344_v53 = vshll.u32 %v3203_v26, 16 }
 0x1e3   : > { %v3857_v22 = vsel %vm9508_vm1, %v8680_v9, %v3856_v10  ;;  %v3858_v23 = vrot.slane %v3856_v10, 4  ;;  %v3337_v59 = vrot.slane %v3335_v40, 4  ;;  %v3340_v60 = vrot.slane %v3338_v43, 5  ;;  %v3209_v26 = vld [vmem:[#allocation2 + $0x64] sm:$0xf] }
 0x1e4   : > { %v2874_v19 = vpop.permute.xlu1 %2873  ;;  %v2876_v20 = vpop.permute.xlu0 %2875  ;;  %8930 = vmatpush3.bf16.msra.mxu0 %v9030_v32  ;;  %v3361_v9 = vrot.slane %v3359_v55, 4  ;;  %v3204_v32 = vld [vmem:[#allocation2 + $0x50] sm:$0x1] }
 0x1e5   : > { %2967 = vst.msk [vmem:[#allocation4 + $0xc] sm:$0xf] %vm2963_vm10, %v2874_v19  ;;  %2968 = vst.msk [vmem:[#allocation4 + $0x10] sm:$0xf] %vm2963_vm10, %v2876_v20  ;;  %v3853_v19 = vsel %vm9508_vm1, %v3851_v58, %v3852_v4  ;;  %v3317_v20 = vor.u32 %v3316_v7, %v3313_v6  ;;  %v8681_v58 = vrot.slane %v3757_v47, 9  ;;  %v3333_v4 = vsel %vm9212_vm13, %v3328_v35, %v3332_v48 }
 0x1e6   : > { %3119 = vrot.lane.b32.xlu1 %v3026_v16, %s9083_s29  ;;  %3121 = vrot.lane.b32.xlu0 %v3027_v17, %s9083_s29  ;;  %v3303_v16 = vor.u32 %v3302_v61, %v10151_v1  ;;  %v3306_v17 = vshll.u32 %v3198_v5, 16  ;;  %v3760_v61 = vld [vmem:[#allocation2 + $0x3c] sm:$0xe]  ;;  %v3866_v6 = vrot.slane %v3759_v52, 5  ;;  %v3346_v7 = vrot.slane %v3344_v53, 5 }
 0x1e7   : > { %v3318_v34 = vrot.slane %v3317_v20, 4  ;;  %v3341_v14 = vor.u32 %v3340_v60, %v3337_v59  ;;  %v3207_v20 = vld [vmem:[#allocation2 + $0x5c] sm:$0x1]  ;;  %v3211_v47 = vld [vmem:[#allocation2 + $0x6c] sm:$0xf]  ;;  %v3392_v52 = vshll.u32 %v3209_v26, 16 }
 0x1e8   : > { %v2878_v37 = vpop.permute.xlu1 %2877  ;;  %v2880_v38 = vpop.permute.xlu0 %2879  ;;  %v3308_v30 = vrot.slane %v3306_v17, 5  ;;  %v3378_v33 = vshll.u32 %v3207_v20, 16  ;;  %v3396_v53 = vshrl.u32 %v3209_v26, 16  ;;  %v3768_v20 = vld [vmem:[#allocation2 + $0x5c] sm:$0x1] }
 0x1e9   : > { %2969 = vst.msk [vmem:[#allocation4 + $0x14] sm:$0xf] %vm2963_vm10, %v2878_v37  ;;  %2970 = vst.msk [vmem:[#allocation4 + $0x18] sm:$0xf] %vm2963_vm10, %v2880_v38  ;;  %v3758_v37 = vld [vmem:[#allocation2 + $0x34] sm:$0xf]  ;;  %v3860_v38 = vsel %vm9508_vm1, %v3858_v23, %v3859_v24 }
 0x1ea   : > { %3123 = vrot.lane.b32.xlu1 %v3028_v27, %s9083_s29  ;;  %3622 = vrot.lane.b32.xlu0 %v3251_v29, %s9084_s7  ;;  %v3304_v29 = vrot.slane %v3303_v16, 4  ;;  %v3863_v50 = vrot.slane %v3758_v37, 5  ;;  %v3354_v23 = vshll.u32 %v3204_v32, 16  ;;  %v3342_v28 = vrot.slane %v3341_v14, 4 }
 0x1ec   : > { %v2882_v56 = vpop.permute.xlu1 %2881  ;;  %v2884_v57 = vpop.permute.xlu0 %2883  ;;  %v3309_v41 = vsel %vm9212_vm13, %v3304_v29, %v3308_v30  ;;  %v3865_v5 = vrot.slane %v3863_v50, 4  ;;  %v3864_v12 = vsel %vm9508_vm1, %v8681_v58, %v3863_v50  ;;  %v3347_v43 = vsel %vm9212_vm13, %v3342_v28, %v3346_v7 }
 0x1ed   : > { %2971 = vst.msk [vmem:[#allocation4 + $0x1c] sm:$0xf] %vm2963_vm10, %v2882_v56  ;;  %2972 = vst.msk [vmem:[#allocation4 + $0x20] sm:$0xf] %vm2963_vm10, %v2884_v57  ;;  %v3362_v56 = vshll.u32 %v3205_v44, 16  ;;  %v3323_v57 = vsel %vm9212_vm13, %v3318_v34, %v10165_v36  ;;  %v3380_v50 = vrot.slane %v3378_v33, 5 }
 0x1ee   : > { %3624 = vrot.lane.b32.xlu1 %v3261_v39, %s9084_s7  ;;  %3626 = vrot.lane.b32.xlu0 %v3275_v51, %s9084_s7  ;;  %v3299_v39 = vsel %vm9212_vm13, %v3294_v25, %v10151_v1  ;;  %v3206_v51 = vld [vmem:[#allocation2 + $0x58] sm:$0xf]  ;;  %v3762_v36 = vld [vmem:[#allocation2 + $0x44] sm:$0x1]  ;;  %v3867_v21 = vsel %vm9508_vm1, %v3865_v5, %v3866_v6  ;;  %v3208_v34 = vld [vmem:[#allocation2 + $0x60] sm:$0xf] }
 0x1ef   : > { %v3368_v0 = vshll.u32 %v3206_v51, 16  ;;  %v3364_v10 = vrot.slane %v3362_v56, 5  ;;  %v3764_v44 = vld [vmem:[#allocation2 + $0x4c] sm:$0xf]  ;;  %v3212_v56 = vld [vmem:[#allocation2 + $0x70] sm:$0xf] }
 0x1f0   : > { %v2886_v63 = vpop.permute.xlu1 %2885  ;;  %v2888_v13 = vpop.permute.xlu0 %2887  ;;  %v3877_v55 = vrot.slane %v3764_v44, 5  ;;  %v3410_v58 = vshll.u32 %v3211_v47, 16  ;;  %v3767_v5 = vld [vmem:[#allocation2 + $0x58] sm:$0xf]  ;;  %v10232_v6 = vrot.slane %v3392_v52, 5 }
 0x1f1   : > { %2973 = vst.msk [vmem:[#allocation4 + $0x24] sm:$0xf] %vm2963_vm10, %v2886_v63  ;;  %2974 = vst.msk [vmem:[#allocation4 + $0x28] sm:$0xf] %vm2963_vm10, %v2888_v13  ;;  %v8682_v63 = vrot.slane %v3760_v61, 9  ;;  %v3870_v13 = vrot.slane %v3761_v62, 5  ;;  %v3365_v24 = vor.u32 %v3364_v10, %v3361_v9 }
 0x1f2   : > { %3628 = vrot.lane.b32.xlu1 %v3285_v3, %s9084_s7  ;;  %3959 = vrot.lane.b32.xlu0 %v3850_v8, %s9085_s12  ;;  %v3372_v3 = vshrl.u32 %v3206_v51, 16  ;;  %v3350_v8 = vrot.slane %v3348_v54, 4  ;;  %v10200_v18 = vrot.slane %v3368_v0, 5  ;;  %v3763_v51 = vld [vmem:[#allocation2 + $0x48] sm:$0xe]  ;;  %v3420_v9 = vshrl.u32 %v3212_v56, 16 }
 0x1f3   : > { %v3871_v25 = vsel %vm9508_vm1, %v8682_v63, %v3870_v13  ;;  %v8683_v60 = vrot.slane %v3763_v51, 9  ;;  %v3879_v10 = vrot.slane %v3877_v55, 4  ;;  %v3210_v63 = vld [vmem:[#allocation2 + $0x68] sm:$0x1]  ;;  %v3412_v14 = vrot.slane %v3410_v58, 5 }
 0x1f4   : > { %v2890_v27 = vpop.permute.xlu1 %2889  ;;  %v2892_v15 = vpop.permute.xlu0 %2891  ;;  %v3770_v44 = vld [vmem:[#allocation2 + $0x64] sm:$0xf]  ;;  %v3769_v52 = vld [vmem:[#allocation2 + $0x60] sm:$0xe]  ;;  %v3771_v58 = vld [vmem:[#allocation2 + $0x68] sm:$0x1] }
 0x1f5   : > { %2975 = vst.msk [vmem:[#allocation4 + $0x2c] sm:$0xf] %vm2963_vm10, %v2890_v27  ;;  %2976 = vst.msk [vmem:[#allocation4 + $0x30] sm:$0xf] %vm2963_vm10, %v2892_v15  ;;  %v3872_v27 = vrot.slane %v3870_v13, 4  ;;  %v3873_v15 = vrot.slane %v3762_v36, 5  ;;  %v3878_v32 = vsel %vm9508_vm1, %v8683_v60, %v3877_v55 }
 0x1f6   : > { %3961 = vrot.lane.b32.xlu1 %v3853_v19, %s9085_s12  ;;  %3963 = vrot.lane.b32.xlu0 %v3857_v22, %s9085_s12  ;;  %v3374_v19 = vrot.slane %v3372_v3, 4  ;;  %v3351_v22 = vor.u32 %v3350_v8, %v3346_v7  ;;  %v3398_v7 = vrot.slane %v3396_v53, 4  ;;  %v3416_v8 = vshll.u32 %v3212_v56, 16 }
 0x1f7   : > { %v3874_v40 = vsel %vm9508_vm1, %v3872_v27, %v3873_v15  ;;  %v3213_v15 = vld [vmem:[#allocation2 + $0x74] sm:$0x1]  ;;  %v3891_v56 = vrot.slane %v3770_v44, 5 }
 0x1f8   : > { %v2894_v45 = vpop.permute.xlu1 %2893  ;;  %v2896_v46 = vpop.permute.xlu0 %2895  ;;  %v3375_v31 = vor.u32 %v3374_v19, %v10200_v18  ;;  %v3352_v37 = vrot.slane %v3351_v22, 4  ;;  %v3402_v22 = vshll.u32 %v3210_v63, 16  ;;  %v3894_v63 = vrot.slane %v3771_v58, 5 }
 0x1f9   : > { %2977 = vst.msk [vmem:[#allocation4 + $0x34] sm:$0xf] %vm2963_vm10, %v2894_v45  ;;  %2978 = vst.msk [vmem:[#allocation4 + $0x38] sm:$0xf] %vm2963_vm10, %v2896_v46  ;;  %v3383_v45 = vshrl.u32 %v3208_v34, 16  ;;  %v3386_v46 = vshll.u32 %v3208_v34, 16 }
 0x1fa   : > { %3965 = vrot.lane.b32.xlu1 %v3860_v38, %s9085_s12  ;;  %3630 = vrot.lane.b32.xlu0 %v3299_v39, %s9084_s7  ;;  %v3356_v38 = vrot.slane %v3354_v23, 5  ;;  %v3366_v39 = vrot.slane %v3365_v24, 4  ;;  %v3376_v48 = vrot.slane %v3375_v31, 4  ;;  %v10241_v23 = vrot.slane %v3416_v8, 5 }
 0x1fb   : > { %v3388_v61 = vrot.slane %v3386_v46, 5  ;;  %v3422_v24 = vrot.slane %v3420_v9, 4 }
 0x1fc   : > { %v2898_v2 = vpop.permute.xlu1 %2897  ;;  %v2900_v1 = vpop.permute.xlu0 %2899  ;;  %v3357_v54 = vsel %vm9212_vm13, %v3352_v37, %v3356_v38  ;;  %v3371_v59 = vsel %vm9212_vm13, %v3366_v39, %v10200_v18  ;;  %v3381_v3 = vsel %vm9212_vm13, %v3376_v48, %v3380_v50  ;;  %v3214_v37 = vld [vmem:[#allocation2 + $0x78] sm:$0xf]  ;;  %v3404_v39 = vrot.slane %v3402_v22, 5  ;;  %v3217_v48 = vld [vmem:[#allocation2 + $0x84] sm:$0xf] }
 0x1fd   : > { %2979 = vst.msk [vmem:[#allocation4 + $0x3c] sm:$0xf] %vm2963_vm10, %v2898_v2  ;;  %2980 = vst.msk [vmem:[#allocation4 + $0x40] sm:$0xf] %vm2963_vm10, %v2900_v1  ;;  %v3765_v2 = vld [vmem:[#allocation2 + $0x50] sm:$0x1]  ;;  %v3423_v26 = vor.u32 %v3422_v24, %v10241_v23 }
 0x1fe   : > { %3632 = vrot.lane.b32.xlu1 %v3309_v41, %s9084_s7  ;;  %3634 = vrot.lane.b32.xlu0 %v3323_v57, %s9084_s7  ;;  %v3407_v57 = vshrl.u32 %v3211_v47, 16  ;;  %v3385_v1 = vrot.slane %v3383_v45, 4  ;;  %v3215_v47 = vld [vmem:[#allocation2 + $0x7c] sm:$0xf] }
 0x1ff   : > { %v3444_v60 = vshrl.u32 %v3215_v47, 16 }
 0x200   : > { %v2902_v16 = vpop.permute.xlu1 %2901  ;;  %v2904_v17 = vpop.permute.xlu0 %2903  ;;  %v3409_v13 = vrot.slane %v3407_v57, 4  ;;  %v3389_v36 = vor.u32 %v3388_v61, %v3385_v1  ;;  %v3218_v57 = vld [vmem:[#allocation2 + $0x88] sm:$0xf]  ;;  %v3458_v1 = vshll.u32 %v3217_v48, 16 }
 0x201   : > { %2981 = vst.msk [vmem:[#allocation4 + $0x44] sm:$0xf] %vm2963_vm10, %v2902_v16  ;;  %2982 = vst.msk [vmem:[#allocation4 + $0x48] sm:$0xf] %vm2963_vm10, %v2904_v17  ;;  %v3884_v17 = vrot.slane %v3767_v5, 5  ;;  %v3464_v8 = vshll.u32 %v3218_v57, 16 }
 0x202   : > { %3636 = vrot.lane.b32.xlu1 %v3333_v4, %s9084_s7  ;;  %3967 = vrot.lane.b32.xlu0 %v3864_v12, %s9085_s12  ;;  %v3766_v4 = vld [vmem:[#allocation2 + $0x54] sm:$0xe]  ;;  %v3880_v12 = vrot.slane %v3765_v2, 5  ;;  %v3413_v27 = vor.u32 %v3412_v14, %v3409_v13  ;;  %v3390_v31 = vrot.slane %v3389_v36, 4  ;;  %v3455_v2 = vshrl.u32 %v3217_v48, 16 }
 0x203   : > { %v8684_v16 = vrot.slane %v3766_v4, 9  ;;  %v3468_v9 = vshrl.u32 %v3218_v57, 16  ;;  %v3446_v14 = vrot.slane %v3444_v60, 4  ;;  %v10276_v24 = vrot.slane %v3464_v8, 5  ;;  %v3776_v48 = vld [vmem:[#allocation2 + $0x7c] sm:$0xf] }
 0x204   : > { %v2906_v29 = vpop.permute.xlu1 %2905  ;;  %v2908_v30 = vpop.permute.xlu0 %2907  ;;  %v3395_v46 = vsel %vm9212_vm13, %v3390_v31, %v10232_v6  ;;  %v3775_v57 = vld [vmem:[#allocation2 + $0x78] sm:$0xe] }
 0x205   : > { %2983 = vst.msk [vmem:[#allocation4 + $0x4c] sm:$0xf] %vm2963_vm10, %v2906_v29  ;;  %2984 = vst.msk [vmem:[#allocation4 + $0x50] sm:$0xf] %vm2963_vm10, %v2908_v30  ;;  %v3885_v28 = vsel %vm9508_vm1, %v8684_v16, %v3884_v17  ;;  %v3886_v29 = vrot.slane %v3884_v17, 4  ;;  %v3887_v30 = vrot.slane %v3768_v20, 5 }
 0x206   : > { %3969 = vrot.lane.b32.xlu1 %v3867_v21, %s9085_s12  ;;  %3971 = vrot.lane.b32.xlu0 %v3871_v25, %s9085_s12  ;;  %v3399_v21 = vor.u32 %v3398_v7, %v10232_v6  ;;  %v3881_v25 = vsel %vm9508_vm1, %v3879_v10, %v3880_v12  ;;  %v3772_v6 = vld [vmem:[#allocation2 + $0x6c] sm:$0xe]  ;;  %v3773_v7 = vld [vmem:[#allocation2 + $0x70] sm:$0xf]  ;;  %v3893_v12 = vrot.slane %v3891_v56, 4  ;;  %v3460_v16 = vrot.slane %v3458_v1, 5 }
 0x207   : > { %v3888_v45 = vsel %vm9508_vm1, %v3886_v29, %v3887_v30  ;;  %v8686_v36 = vrot.slane %v3772_v6, 9  ;;  %v3216_v20 = vld [vmem:[#allocation2 + $0x80] sm:$0x1] }
 0x208   : > { %v2910_v41 = vpop.permute.xlu1 %2909  ;;  %v2912_v35 = vpop.permute.xlu0 %2911  ;;  %v3400_v38 = vrot.slane %v3399_v21, 4  ;;  %v3450_v29 = vshll.u32 %v3216_v20, 16  ;;  %v3224_v1 = vld [vmem:[#allocation2 + $0xa0] sm:$0xf] }
 0x209   : > { %2985 = vst.msk [vmem:[#allocation4 + $0x54] sm:$0xf] %vm2963_vm10, %v2910_v41  ;;  %2986 = vst.msk [vmem:[#allocation4 + $0x58] sm:$0xf] %vm2963_vm10, %v2912_v35  ;;  %v3431_v41 = vshrl.u32 %v3214_v37, 16  ;;  %v3434_v35 = vshll.u32 %v3214_v37, 16 }
 0x20a   : > { %3973 = vrot.lane.b32.xlu1 %v3874_v40, %s9085_s12  ;;  %3638 = vrot.lane.b32.xlu0 %v3347_v43, %s9084_s7  ;;  %v3426_v40 = vshll.u32 %v3213_v15, 16  ;;  %v3414_v43 = vrot.slane %v3413_v27, 4  ;;  %v3405_v53 = vsel %vm9212_vm13, %v3400_v38, %v3404_v39  ;;  %v3219_v27 = vld [vmem:[#allocation2 + $0x8c] sm:$0x1]  ;;  %v3895_v15 = vsel %vm9508_vm1, %v3893_v12, %v3894_v63  ;;  %v3779_v12 = vld [vmem:[#allocation2 + $0x88] sm:$0xf] }
 0x20c   : > { %v2914_v62 = vpop.permute.xlu1 %2913  ;;  %v2916_v0 = vpop.permute.xlu0 %2915  ;;  %v3428_v55 = vrot.slane %v3426_v40, 5  ;;  %v3419_v61 = vsel %vm9212_vm13, %v3414_v43, %v10241_v23  ;;  %v3774_v23 = vld [vmem:[#allocation2 + $0x74] sm:$0x1]  ;;  %v3474_v40 = vshll.u32 %v3219_v27, 16  ;;  %v3220_v43 = vld [vmem:[#allocation2 + $0x90] sm:$0xf] }
 0x20d   : > { %2987 = vst.msk [vmem:[#allocation4 + $0x5c] sm:$0xf] %vm2963_vm10, %v2914_v62  ;;  %2988 = vst.msk [vmem:[#allocation4 + $0x60] sm:$0xf] %vm2963_vm10, %v2916_v0  ;;  %v8685_v62 = vrot.slane %v3769_v52, 9  ;;  %v3433_v0 = vrot.slane %v3431_v41, 4 }
 0x20e   : > { %3640 = vrot.lane.b32.xlu1 %v3357_v54, %s9084_s7  ;;  %3642 = vrot.lane.b32.xlu0 %v3371_v59, %s9084_s7  ;;  %v3424_v54 = vrot.slane %v3423_v26, 4  ;;  %v3440_v59 = vshll.u32 %v3215_v47, 16  ;;  %v3221_v47 = vld [vmem:[#allocation2 + $0x94] sm:$0xf]  ;;  %v3223_v52 = vld [vmem:[#allocation2 + $0x9c] sm:$0xf] }
 0x20f   : > { %v3892_v17 = vsel %vm9508_vm1, %v8685_v62, %v3891_v56  ;;  %v3476_v56 = vrot.slane %v3474_v40, 5  ;;  %v3488_v58 = vshll.u32 %v3221_v47, 16  ;;  %v3506_v62 = vshll.u32 %v3223_v52, 16  ;;  %v3780_v27 = vld [vmem:[#allocation2 + $0x8c] sm:$0x1] }
 0x210   : > { %v2918_v18 = vpop.permute.xlu1 %2917  ;;  %v2920_v19 = vpop.permute.xlu0 %2919  ;;  %v3429_v10 = vsel %vm9212_vm13, %v3424_v54, %v3428_v55  ;;  %v3442_v13 = vrot.slane %v3440_v59, 5  ;;  %v3492_v59 = vshrl.u32 %v3221_v47, 16  ;;  %v3226_v40 = vld [vmem:[#allocation2 + $0xa8] sm:$0xf] }
 0x211   : > { %2989 = vst.msk [vmem:[#allocation4 + $0x64] sm:$0xf] %vm2963_vm10, %v2918_v18  ;;  %2990 = vst.msk [vmem:[#allocation4 + $0x68] sm:$0xf] %vm2963_vm10, %v2920_v19  ;;  %v3898_v18 = vrot.slane %v3773_v7, 5  ;;  %v10308_v63 = vrot.slane %v3488_v58, 5 }
 0x212   : > { %3644 = vrot.lane.b32.xlu1 %v3381_v3, %s9084_s7  ;;  %3975 = vrot.lane.b32.xlu0 %v3878_v32, %s9085_s12  ;;  %v3436_v3 = vrot.slane %v3434_v35, 5  ;;  %v3457_v32 = vrot.slane %v3455_v2, 4  ;;  %v3905_v2 = vrot.slane %v3776_v48, 5  ;;  %v3782_v48 = vld [vmem:[#allocation2 + $0x94] sm:$0xf] }
 0x213   : > { %v3899_v31 = vsel %vm9508_vm1, %v8686_v36, %v3898_v18  ;;  %v3222_v36 = vld [vmem:[#allocation2 + $0x98] sm:$0x1] }
 0x214   : > { %v2922_v33 = vpop.permute.xlu1 %2921  ;;  %v2924_v34 = vpop.permute.xlu0 %2923  ;;  %v3437_v19 = vor.u32 %v3436_v3, %v3433_v0  ;;  %v3461_v30 = vor.u32 %v3460_v16, %v3457_v32  ;;  %v8687_v3 = vrot.slane %v3775_v57, 9  ;;  %v3516_v32 = vshrl.u32 %v3224_v1, 16 }
 0x215   : > { %2991 = vst.msk [vmem:[#allocation4 + $0x6c] sm:$0xf] %vm2963_vm10, %v2922_v33  ;;  %2992 = vst.msk [vmem:[#allocation4 + $0x70] sm:$0xf] %vm2963_vm10, %v2924_v34  ;;  %v3900_v33 = vrot.slane %v3898_v18, 4  ;;  %v3901_v34 = vrot.slane %v3774_v23, 5 }
 0x216   : > { %3977 = vrot.lane.b32.xlu1 %v3881_v25, %s9085_s12  ;;  %3979 = vrot.lane.b32.xlu0 %v3885_v28, %s9085_s12  ;;  %v3470_v25 = vrot.slane %v3468_v9, 4  ;;  %v3447_v28 = vor.u32 %v3446_v14, %v3442_v13  ;;  %v3438_v37 = vrot.slane %v3437_v19, 4  ;;  %v3512_v14 = vshll.u32 %v3224_v1, 16 }
 0x217   : > { %v3902_v41 = vsel %vm9508_vm1, %v3900_v33, %v3901_v34  ;;  %v3907_v16 = vrot.slane %v3905_v2, 4  ;;  %v3508_v19 = vrot.slane %v3506_v62, 5  ;;  %v3906_v20 = vsel %vm9508_vm1, %v8687_v3, %v3905_v2  ;;  %v3230_v62 = vld [vmem:[#allocation2 + $0xb8] sm:$0xf] }
 0x218   : > { %v2926_v50 = vpop.permute.xlu1 %2925  ;;  %v2928_v51 = vpop.permute.xlu0 %2927  ;;  %v3471_v26 = vor.u32 %v3470_v25, %v10276_v24  ;;  %v3448_v44 = vrot.slane %v3447_v28, 4  ;;  %v3443_v35 = vsel %vm9212_vm13, %v3438_v37, %v3442_v13  ;;  %v3494_v13 = vrot.slane %v3492_v59, 4  ;;  %v3229_v59 = vld [vmem:[#allocation2 + $0xb4] sm:$0xf] }
 0x219   : > { %2993 = vst.msk [vmem:[#allocation4 + $0x74] sm:$0xf] %vm2963_vm10, %v2926_v50  ;;  %2994 = vst.msk [vmem:[#allocation4 + $0x78] sm:$0xf] %vm2963_vm10, %v2928_v51  ;;  %v3479_v50 = vshrl.u32 %v3220_v43, 16  ;;  %v3482_v51 = vshll.u32 %v3220_v43, 16 }
 0x21a   : > { %3981 = vrot.lane.b32.xlu1 %v3888_v45, %s9085_s12  ;;  %3646 = vrot.lane.b32.xlu0 %v3395_v46, %s9084_s7  ;;  %v3452_v45 = vrot.slane %v3450_v29, 5  ;;  %v3462_v46 = vrot.slane %v3461_v30, 4  ;;  %v3472_v55 = vrot.slane %v3471_v26, 4  ;;  %v3498_v28 = vshll.u32 %v3222_v36, 16  ;;  %v3225_v30 = vld [vmem:[#allocation2 + $0xa4] sm:$0x1] }
 0x21b   : > { %v3484_v6 = vrot.slane %v3482_v51, 5  ;;  %v10317_v29 = vrot.slane %v3512_v14, 5  ;;  %v3919_v1 = vrot.slane %v3782_v48, 5  ;;  %v3560_v14 = vshll.u32 %v3230_v62, 16 }
 0x21c   : > { %v2930_v4 = vpop.permute.xlu1 %2929  ;;  %v3062_v5 = vpop.permute.xlu0 %3061  ;;  %v3453_v60 = vsel %vm9212_vm13, %v3448_v44, %v3452_v45  ;;  %v3467_v0 = vsel %vm9212_vm13, %v3462_v46, %v10276_v24  ;;  %v3477_v9 = vsel %vm9212_vm13, %v3472_v55, %v3476_v56  ;;  %v3522_v45 = vshll.u32 %v3225_v30, 16 }
 0x21d   : > { %2995 = vst.msk [vmem:[#allocation4 + $0x7c] sm:$0xf] %vm2963_vm10, %v2930_v4  ;;  %v3777_v4 = vld [vmem:[#allocation2 + $0x80] sm:$0x1]  ;;  %v3500_v47 = vrot.slane %v3498_v28, 5  ;;  %v3530_v55 = vshll.u32 %v3226_v40, 16 }
 0x21e   : > { %3158 = vst.msk [vmem:[#allocation4] sm:$0xf] %vm3157_vm11, %v3062_v5  ;;  %3648 = vrot.lane.b32.xlu1 %v3405_v53, %s9084_s7  ;;  %3650 = vrot.lane.b32.xlu0 %v3419_v61, %s9084_s7  ;;  %v3503_v61 = vshrl.u32 %v3223_v52, 16  ;;  %v3481_v5 = vrot.slane %v3479_v50, 4  ;;  %v3527_v50 = vshrl.u32 %v3226_v40, 16  ;;  %v3524_v58 = vrot.slane %v3522_v45, 5 }
 0x21f   : > { %v10352_v30 = vrot.slane %v3560_v14, 5  ;;  %v3232_v45 = vld [vmem:[#allocation2 + $0xc0] sm:$0xf]  ;;  %vm7024_vm10 = vcmask 388416  }
 0x220   : > { %v3064_v21 = vpop.permute.xlu1 %3063  ;;  %v3066_v22 = vpop.permute.xlu0 %3065  ;;  %v3505_v18 = vrot.slane %v3503_v61, 4  ;;  %v3485_v23 = vor.u32 %v3484_v6, %v3481_v5  ;;  %v3783_v61 = vld [vmem:[#allocation2 + $0x98] sm:$0x1]  ;;  %v3529_v5 = vrot.slane %v3527_v50, 4  ;;  %v3787_v50 = vld [vmem:[#allocation2 + $0xa8] sm:$0xe] }
 0x221   : > { %3159 = vst.msk [vmem:[#allocation4 + $0x4] sm:$0xf] %vm3157_vm11, %v3064_v21  ;;  %3160 = vst.msk [vmem:[#allocation4 + $0x8] sm:$0xf] %vm3157_vm11, %v3066_v22  ;;  %v3912_v22 = vrot.slane %v3779_v12, 5  ;;  %v3554_v12 = vshll.u32 %v3229_v59, 16 }
 0x222   : > { %3652 = vrot.lane.b32.xlu1 %v3429_v10, %s9084_s7  ;;  %3983 = vrot.lane.b32.xlu0 %v3892_v17, %s9085_s12  ;;  %v3778_v10 = vld [vmem:[#allocation2 + $0x84] sm:$0xe]  ;;  %v3908_v17 = vrot.slane %v3777_v4, 5  ;;  %v3509_v34 = vor.u32 %v3508_v19, %v3505_v18  ;;  %v3486_v26 = vrot.slane %v3485_v23, 4  ;;  %v3785_v4 = vld [vmem:[#allocation2 + $0xa0] sm:$0xf] }
 0x223   : > { %v8688_v21 = vrot.slane %v3778_v10, 9  ;;  %v3551_v10 = vshrl.u32 %v3229_v59, 16  ;;  %v3922_v36 = vrot.slane %v3783_v61, 5  ;;  %v3235_v61 = vld [vmem:[#allocation2 + $0xcc] sm:$0xf] }
 0x224   : > { %v3068_v38 = vpop.permute.xlu1 %3067  ;;  %v3070_v39 = vpop.permute.xlu0 %3069  ;;  %v3909_v33 = vsel %vm9508_vm1, %v3907_v16, %v3908_v17  ;;  %v3491_v52 = vsel %vm9212_vm13, %v3486_v26, %v10308_v63  ;;  %v3921_v17 = vrot.slane %v3919_v1, 4 }
 0x225   : > { %3161 = vst.msk [vmem:[#allocation4 + $0xc] sm:$0xf] %vm3157_vm11, %v3068_v38  ;;  %3162 = vst.msk [vmem:[#allocation4 + $0x10] sm:$0xf] %vm3157_vm11, %v3070_v39  ;;  %v3913_v37 = vsel %vm9508_vm1, %v8688_v21, %v3912_v22  ;;  %v3914_v38 = vrot.slane %v3912_v22, 4  ;;  %v3915_v39 = vrot.slane %v3780_v27, 5 }
 0x226   : > { %3985 = vrot.lane.b32.xlu1 %v3895_v15, %s9085_s12  ;;  %3987 = vrot.lane.b32.xlu0 %v3899_v31, %s9085_s12  ;;  %v3495_v15 = vor.u32 %v3494_v13, %v10308_v63  ;;  %v3518_v31 = vrot.slane %v3516_v32, 4  ;;  %v3564_v32 = vshrl.u32 %v3230_v62, 16  ;;  %v3786_v22 = vld [vmem:[#allocation2 + $0xa4] sm:$0x1]  ;;  %v3556_v27 = vrot.slane %v3554_v12, 5 }
 0x227   : > { %v3916_v51 = vsel %vm9508_vm1, %v3914_v38, %v3915_v39  ;;  %v3929_v39 = vrot.slane %v3786_v22, 5  ;;  %v8691_v62 = vrot.slane %v3787_v50, 9  ;;  %v3790_v12 = vld [vmem:[#allocation2 + $0xb4] sm:$0xe]  ;;  %v3792_v22 = vld [vmem:[#allocation2 + $0xbc] sm:$0x1] }
 0x228   : > { %v3072_v53 = vpop.permute.xlu1 %3071  ;;  %v3074_v54 = vpop.permute.xlu0 %3073  ;;  %v3496_v46 = vrot.slane %v3495_v15, 4 }
 0x229   : > { %3163 = vst.msk [vmem:[#allocation4 + $0x14] sm:$0xf] %vm3157_vm11, %v3072_v53  ;;  %3164 = vst.msk [vmem:[#allocation4 + $0x18] sm:$0xf] %vm3157_vm11, %v3074_v54  ;;  %v3781_v53 = vld [vmem:[#allocation2 + $0x90] sm:$0xe] }
 0x22a   : > { %3989 = vrot.lane.b32.xlu1 %v3902_v41, %s9085_s12  ;;  %3654 = vrot.lane.b32.xlu0 %v3443_v35, %s9084_s7  ;;  %v3519_v41 = vor.u32 %v3518_v31, %v10317_v29  ;;  %v3510_v35 = vrot.slane %v3509_v34, 4  ;;  %v3227_v54 = vld [vmem:[#allocation2 + $0xac] sm:$0xf]  ;;  %v8689_v3 = vrot.slane %v3781_v53, 9  ;;  %v3566_v31 = vrot.slane %v3564_v32, 4 }
 0x22b   : > { %v3536_v6 = vshll.u32 %v3227_v54, 16  ;;  %v3923_v34 = vsel %vm9508_vm1, %v3921_v17, %v3922_v36  ;;  %v3578_v53 = vshll.u32 %v3232_v45, 16  ;;  %v3236_v17 = vld [vmem:[#allocation2 + $0xd0] sm:$0xf] }
 0x22c   : > { %v3076_v7 = vpop.permute.xlu1 %3075  ;;  %v3078_v8 = vpop.permute.xlu0 %3077  ;;  %v3520_v2 = vrot.slane %v3519_v41, 4  ;;  %v3920_v18 = vsel %vm9508_vm1, %v8689_v3, %v3919_v1  ;;  %v3567_v41 = vor.u32 %v3566_v31, %v10352_v30  ;;  %v3789_v3 = vld [vmem:[#allocation2 + $0xb0] sm:$0x1] }
 0x22d   : > { %3165 = vst.msk [vmem:[#allocation4 + $0x1c] sm:$0xf] %vm3157_vm11, %v3076_v7  ;;  %3166 = vst.msk [vmem:[#allocation4 + $0x20] sm:$0xf] %vm3157_vm11, %v3078_v8  ;;  %v3784_v7 = vld [vmem:[#allocation2 + $0x9c] sm:$0xe] }
 0x22e   : > { %3656 = vrot.lane.b32.xlu1 %v3453_v60, %s9084_s7  ;;  %3658 = vrot.lane.b32.xlu0 %v3467_v0, %s9084_s7  ;;  %v3501_v60 = vsel %vm9212_vm13, %v3496_v46, %v3500_v47  ;;  %v3515_v0 = vsel %vm9212_vm13, %v3510_v35, %v10317_v29  ;;  %v3532_v8 = vrot.slane %v3530_v55, 5  ;;  %v3525_v16 = vsel %vm9212_vm13, %v3520_v2, %v3524_v58  ;;  %v3228_v29 = vld [vmem:[#allocation2 + $0xb0] sm:$0x1]  ;;  %v3233_v58 = vld [vmem:[#allocation2 + $0xc4] sm:$0xf] }
 0x22f   : > { %v8690_v19 = vrot.slane %v3784_v7, 9  ;;  %v3538_v21 = vrot.slane %v3536_v6, 5  ;;  %v3568_v2 = vrot.slane %v3567_v41, 4  ;;  %v3580_v6 = vrot.slane %v3578_v53, 5 }
 0x230   : > { %v3080_v24 = vpop.permute.xlu1 %3079  ;;  %v3082_v25 = vpop.permute.xlu0 %3081  ;;  %v3533_v23 = vor.u32 %v3532_v8, %v3529_v5  ;;  %v3584_v7 = vshll.u32 %v3233_v58, 16  ;;  %v3588_v8 = vshrl.u32 %v3233_v58, 16 }
 0x231   : > { %3167 = vst.msk [vmem:[#allocation4 + $0x24] sm:$0xf] %vm3157_vm11, %v3080_v24  ;;  %3168 = vst.msk [vmem:[#allocation4 + $0x28] sm:$0xf] %vm3157_vm11, %v3082_v25  ;;  %v3553_v25 = vrot.slane %v3551_v10, 4 }
 0x232   : > { %3660 = vrot.lane.b32.xlu1 %v3477_v9, %s9084_s7  ;;  %3991 = vrot.lane.b32.xlu0 %v3906_v20, %s9085_s12  ;;  %v3540_v9 = vshrl.u32 %v3227_v54, 16  ;;  %v3926_v20 = vrot.slane %v3785_v4, 5  ;;  %v3534_v26 = vrot.slane %v3533_v23, 4  ;;  %v3791_v4 = vld [vmem:[#allocation2 + $0xb8] sm:$0xf] }
 0x234   : > { %v3084_v43 = vpop.permute.xlu1 %3083  ;;  %v3086_v44 = vpop.permute.xlu0 %3085  ;;  %v3542_v24 = vrot.slane %v3540_v9, 4  ;;  %v3928_v38 = vrot.slane %v3926_v20, 4  ;;  %v3539_v54 = vsel %vm9212_vm13, %v3534_v26, %v3538_v21 }
 0x235   : > { %3169 = vst.msk [vmem:[#allocation4 + $0x2c] sm:$0xf] %vm3157_vm11, %v3084_v43  ;;  %3170 = vst.msk [vmem:[#allocation4 + $0x30] sm:$0xf] %vm3157_vm11, %v3086_v44  ;;  %v3546_v43 = vshll.u32 %v3228_v29, 16  ;;  %v3557_v44 = vor.u32 %v3556_v27, %v3553_v25  ;;  %v3590_v25 = vrot.slane %v3588_v8, 4 }
 0x236   : > { %3993 = vrot.lane.b32.xlu1 %v3909_v33, %s9085_s12  ;;  %3995 = vrot.lane.b32.xlu0 %v3913_v37, %s9085_s12  ;;  %v3231_v33 = vld [vmem:[#allocation2 + $0xbc] sm:$0x1]  ;;  %v3927_v37 = vsel %vm9508_vm1, %v8690_v19, %v3926_v20  ;;  %v3543_v40 = vor.u32 %v3542_v24, %v3538_v21  ;;  %v3930_v48 = vsel %vm9508_vm1, %v3928_v38, %v3929_v39  ;;  %v3936_v19 = vrot.slane %v3789_v3, 5  ;;  %v3234_v27 = vld [vmem:[#allocation2 + $0xc8] sm:$0x1] }
 0x237   : > { %v3570_v35 = vshll.u32 %v3231_v33, 16  ;;  %v3940_v20 = vrot.slane %v3791_v4, 5  ;;  %v8692_v21 = vrot.slane %v3790_v12, 9  ;;  %v3586_v24 = vrot.slane %v3584_v7, 5  ;;  %v3795_v3 = vld [vmem:[#allocation2 + $0xc8] sm:$0x1] }
 0x238   : > { %v3088_v56 = vpop.permute.xlu1 %3087  ;;  %v3090_v57 = vpop.permute.xlu0 %3089  ;;  %v3544_v55 = vrot.slane %v3543_v40, 4  ;;  %v3608_v29 = vshll.u32 %v3236_v17, 16  ;;  %v3943_v39 = vrot.slane %v3792_v22, 5  ;;  %v3594_v40 = vshll.u32 %v3234_v27, 16  ;;  %v3797_v7 = vld [vmem:[#allocation2 + $0xd0] sm:$0xf] }
 0x239   : > { %3171 = vst.msk [vmem:[#allocation4 + $0x34] sm:$0xf] %vm3157_vm11, %v3088_v56  ;;  %3172 = vst.msk [vmem:[#allocation4 + $0x38] sm:$0xf] %vm3157_vm11, %v3090_v57  ;;  %v3548_v56 = vrot.slane %v3546_v43, 5  ;;  %v3558_v57 = vrot.slane %v3557_v44, 4  ;;  %v3941_v38 = vsel %vm9508_vm1, %v8692_v21, %v3940_v20  ;;  %v3591_v26 = vor.u32 %v3590_v25, %v3586_v24 }
 0x23a   : > { %3997 = vrot.lane.b32.xlu1 %v3916_v51, %s9085_s12  ;;  %3662 = vrot.lane.b32.xlu0 %v3491_v52, %s9084_s7  ;;  %v3788_v51 = vld [vmem:[#allocation2 + $0xac] sm:$0xf]  ;;  %v3575_v52 = vshrl.u32 %v3232_v45, 16  ;;  %v3572_v1 = vrot.slane %v3570_v35, 5  ;;  %v3610_v45 = vrot.slane %v3608_v29, 5 }
 0x23b   : > { %v3549_v9 = vsel %vm9212_vm13, %v3544_v55, %v3548_v56  ;;  %v3563_v10 = vsel %vm9212_vm13, %v3558_v57, %v10352_v30  ;;  %v3612_v30 = vshrl.u32 %v3236_v17, 16  ;;  %v3237_v35 = vld [vmem:[#allocation2 + $0xd4] sm:$0x1]  ;;  %v3592_v50 = vrot.slane %v3591_v26, 4  ;;  %v3794_v56 = vld [vmem:[#allocation2 + $0xc4] sm:$0xf] }
 0x23c   : > { %v3092_v63 = vpop.permute.xlu1 %3091  ;;  %v3094_v13 = vpop.permute.xlu0 %3093  ;;  %v3577_v5 = vrot.slane %v3575_v52, 4  ;;  %v3618_v55 = vshll.u32 %v3237_v35, 16 }
 0x23d   : > { %3173 = vst.msk [vmem:[#allocation4 + $0x3c] sm:$0xf] %vm3157_vm11, %v3092_v63  ;;  %3174 = vst.msk [vmem:[#allocation4 + $0x40] sm:$0xf] %vm3157_vm11, %v3094_v13  ;;  %v3599_v63 = vshrl.u32 %v3235_v61, 16  ;;  %v3602_v13 = vshll.u32 %v3235_v61, 16 }
 0x23e   : > { %3664 = vrot.lane.b32.xlu1 %v3501_v60, %s9084_s7  ;;  %3666 = vrot.lane.b32.xlu0 %v3515_v0, %s9084_s7  ;;  %v3933_v0 = vrot.slane %v3788_v51, 5  ;;  %v3581_v23 = vor.u32 %v3580_v6, %v3577_v5  ;;  %v3596_v51 = vrot.slane %v3594_v40, 5  ;;  %v3796_v6 = vld [vmem:[#allocation2 + $0xcc] sm:$0xe] }
 0x240   : > { %v3096_v15 = vpop.permute.xlu1 %3095  ;;  %v3098_v28 = vpop.permute.xlu0 %3097  ;;  %v3934_v36 = vsel %vm9508_vm1, %v8691_v62, %v3933_v0  ;;  %v3582_v43 = vrot.slane %v3581_v23, 4  ;;  %v3620_v62 = vrot.slane %v3618_v55, 5  ;;  %v365_v23 = vld [vmem:[#allocation3 + $0x18] sm:$0x1] }
 0x241   : > { %3175 = vst.msk [vmem:[#allocation4 + $0x44] sm:$0xf] %vm3157_vm11, %v3096_v15  ;;  %3176 = vst.msk [vmem:[#allocation4 + $0x48] sm:$0xf] %vm3157_vm11, %v3098_v28  ;;  %v3601_v15 = vrot.slane %v3599_v63, 4  ;;  %v3604_v28 = vrot.slane %v3602_v13, 5 }
 0x242   : > { %3668 = vrot.lane.b32.xlu1 %v3525_v16, %s9084_s7  ;;  %3999 = vrot.lane.b32.xlu0 %v3920_v18, %s9085_s12  ;;  %v3573_v16 = vsel %vm9212_vm13, %v3568_v2, %v3572_v1  ;;  %v3935_v18 = vrot.slane %v3933_v0, 4  ;;  %v3587_v52 = vsel %vm9212_vm13, %v3582_v43, %v3586_v24  ;;  %v3947_v2 = vrot.slane %v3794_v56, 5 }
 0x243   : > { %v3605_v44 = vor.u32 %v3604_v28, %v3601_v15  ;;  %v8694_v63 = vrot.slane %v3796_v6, 9  ;;  %v3954_v13 = vrot.slane %v3797_v7, 5  ;;  %v366_v25 = vsel %vm10434_vm8, 0, %v365_v23  ;;  %v420_v23 = vld [vmem:[#allocation3 + $0x20] sm:$0x1] }
 0x244   : > { %v3100_v46 = vpop.permute.xlu1 %3099  ;;  %v3102_v47 = vpop.permute.xlu0 %3101  ;;  %v3949_v8 = vrot.slane %v3947_v2, 4  ;;  %367 = vst [vmem:[#allocation3 + $0x18] sm:$0x1] %v366_v25 }
 0x245   : > { %3177 = vst.msk [vmem:[#allocation4 + $0x4c] sm:$0xf] %vm3157_vm11, %v3100_v46  ;;  %3178 = vst.msk [vmem:[#allocation4 + $0x50] sm:$0xf] %vm3157_vm11, %v3102_v47  ;;  %v3614_v46 = vrot.slane %v3612_v30, 4  ;;  %v3606_v53 = vrot.slane %v3605_v44, 4 }
 0x246   : > { %4001 = vrot.lane.b32.xlu1 %v3923_v34, %s9085_s12  ;;  %4003 = vrot.lane.b32.xlu0 %v3927_v37, %s9085_s12  ;;  %v3937_v34 = vsel %vm9508_vm1, %v3935_v18, %v3936_v19  ;;  %v3942_v37 = vrot.slane %v3940_v20, 4  ;;  %v3956_v18 = vrot.slane %v3954_v13, 4 }
 0x247   : > { %v3611_v1 = vsel %vm9212_vm13, %v3606_v53, %v3610_v45 }
 0x248   : > { %v3104_v59 = vpop.permute.xlu1 %3103  ;;  %v3106_v60 = vpop.permute.xlu0 %3105 }
 0x249   : > { %3179 = vst.msk [vmem:[#allocation4 + $0x54] sm:$0xf] %vm3157_vm11, %v3104_v59  ;;  %3180 = vst.msk [vmem:[#allocation4 + $0x58] sm:$0xf] %vm3157_vm11, %v3106_v60  ;;  %v3793_v59 = vld [vmem:[#allocation2 + $0xc0] sm:$0xe]  ;;  %v3597_v60 = vsel %vm9212_vm13, %v3592_v50, %v3596_v51 }
 0x24a   : > { %4005 = vrot.lane.b32.xlu1 %v3930_v48, %s9085_s12  ;;  %3670 = vrot.lane.b32.xlu0 %v3539_v54, %s9084_s7  ;;  %v3944_v48 = vsel %vm9508_vm1, %v3942_v37, %v3943_v39  ;;  %v3615_v54 = vor.u32 %v3614_v46, %v3610_v45  ;;  %v8693_v0 = vrot.slane %v3793_v59, 9 }
 0x24c   : > { %v3108_v14 = vpop.permute.xlu1 %3107  ;;  %v3110_v32 = vpop.permute.xlu0 %3109  ;;  %v3616_v61 = vrot.slane %v3615_v54, 4  ;;  %v3948_v12 = vsel %vm9508_vm1, %v8693_v0, %v3947_v2 }
 0x24d   : > { %3181 = vst.msk [vmem:[#allocation4 + $0x5c] sm:$0xf] %vm3157_vm11, %v3108_v14  ;;  %3182 = vst.msk [vmem:[#allocation4 + $0x60] sm:$0xf] %vm3157_vm11, %v3110_v32 }
 0x24e   : > { %3672 = vrot.lane.b32.xlu1 %v3549_v9, %s9084_s7  ;;  %3674 = vrot.lane.b32.xlu0 %v3563_v10, %s9084_s7  ;;  %v3950_v9 = vrot.slane %v3795_v3, 5  ;;  %v3621_v10 = vsel %vm9212_vm13, %v3616_v61, %v3620_v62 }
 0x250   : > { %v3112_v31 = vpop.permute.xlu1 %3111  ;;  %v3114_v33 = vpop.permute.xlu0 %3113  ;;  %v3951_v17 = vsel %vm9508_vm1, %v3949_v8, %v3950_v9 }
 0x251   : > { %3183 = vst.msk [vmem:[#allocation4 + $0x64] sm:$0xf] %vm3157_vm11, %v3112_v31  ;;  %3184 = vst.msk [vmem:[#allocation4 + $0x68] sm:$0xf] %vm3157_vm11, %v3114_v33 }
 0x252   : > { %3676 = vrot.lane.b32.xlu1 %v3573_v16, %s9084_s7  ;;  %4007 = vrot.lane.b32.xlu0 %v3934_v36, %s9085_s12  ;;  %v3798_v16 = vld [vmem:[#allocation2 + $0xd4] sm:$0x1]  ;;  %v3955_v36 = vsel %vm9508_vm1, %v8694_v63, %v3954_v13 }
 0x253   : > { %v3957_v19 = vrot.slane %v3798_v16, 5 }
 0x254   : > { %v3116_v47 = vpop.permute.xlu1 %3115  ;;  %v3118_v41 = vpop.permute.xlu0 %3117 }
 0x255   : > { %3185 = vst.msk [vmem:[#allocation4 + $0x6c] sm:$0xf] %vm3157_vm11, %v3116_v47  ;;  %3186 = vst.msk [vmem:[#allocation4 + $0x70] sm:$0xf] %vm3157_vm11, %v3118_v41  ;;  %v3958_v24 = vsel %vm9508_vm1, %v3956_v18, %v3957_v19  ;;  %v362_v18 = vld [vmem:[#allocation3 + $0xc] sm:$0x1] }
 0x256   : > { %4009 = vrot.lane.b32.xlu1 %v3937_v34, %s9085_s12  ;;  %4011 = vrot.lane.b32.xlu0 %v3941_v38, %s9085_s12 }
 0x258   : > { %v3120_v57 = vpop.permute.xlu1 %3119  ;;  %v3122_v58 = vpop.permute.xlu0 %3121 }
 0x259   : > { %3187 = vst.msk [vmem:[#allocation4 + $0x74] sm:$0xf] %vm3157_vm11, %v3120_v57  ;;  %3188 = vst.msk [vmem:[#allocation4 + $0x78] sm:$0xf] %vm3157_vm11, %v3122_v58 }
 0x25a   : > { %4013 = vrot.lane.b32.xlu1 %v3944_v48, %s9085_s12  ;;  %3678 = vrot.lane.b32.xlu0 %v3587_v52, %s9084_s7 }
 0x25c   : > { %v3124_v4 = vpop.permute.xlu1 %3123  ;;  %v3623_v5 = vpop.permute.xlu0 %3622 }
 0x25d   : > { %3189 = vst.msk [vmem:[#allocation4 + $0x7c] sm:$0xf] %vm3157_vm11, %v3124_v4  ;;  %vm7779_vm11 = vcmask 519616  }
 0x25e   : > { %3719 = vst.msk [vmem:[#allocation4] sm:$0xf] %vm3718_vm14, %v3623_v5  ;;  %3680 = vrot.lane.b32.xlu1 %v3597_v60, %s9084_s7  ;;  %3682 = vrot.lane.b32.xlu0 %v3611_v1, %s9084_s7 }
 0x260   : > { %v3625_v14 = vpop.permute.xlu1 %3624  ;;  %v3627_v32 = vpop.permute.xlu0 %3626 }
 0x261   : > { %3720 = vst.msk [vmem:[#allocation4 + $0x4] sm:$0xf] %vm3718_vm14, %v3625_v14  ;;  %3721 = vst.msk [vmem:[#allocation4 + $0x8] sm:$0xf] %vm3718_vm14, %v3627_v32 }
 0x262   : > { %3684 = vrot.lane.b32.xlu1 %v3621_v10, %s9084_s7  ;;  %4015 = vrot.lane.b32.xlu0 %v3948_v12, %s9085_s12 }
 0x264   : > { %v3629_v20 = vpop.permute.xlu1 %3628  ;;  %v3960_v21 = vpop.permute.xlu0 %3959 }
 0x265   : > { %3722 = vst.msk [vmem:[#allocation4 + $0xc] sm:$0xf] %vm3718_vm14, %v3629_v20 }
 0x266   : > { %4056 = vst.msk [vmem:[#allocation4] sm:$0xf] %vm4055_vm15, %v3960_v21  ;;  %4017 = vrot.lane.b32.xlu1 %v3951_v17, %s9085_s12  ;;  %4019 = vrot.lane.b32.xlu0 %v3955_v36, %s9085_s12  ;;  %v363_v21 = vsel %vm10434_vm8, 0, %v362_v18 }
 0x267   : > { %364 = vst [vmem:[#allocation3 + $0xc] sm:$0x1] %v363_v21 }
 0x268   : > { %v3962_v27 = vpop.permute.xlu1 %3961  ;;  %v3964_v15 = vpop.permute.xlu0 %3963 }
 0x269   : > { %4057 = vst.msk [vmem:[#allocation4 + $0x4] sm:$0xf] %vm4055_vm15, %v3962_v27  ;;  %4058 = vst.msk [vmem:[#allocation4 + $0x8] sm:$0xf] %vm4055_vm15, %v3964_v15 }
 0x26a   : > { %4021 = vrot.lane.b32.xlu1 %v3958_v24, %s9085_s12  ;;  %v421_v24 = vsel %vm10497_vm0, 0, %v420_v23  ;;  %v432_v23 = vld [vmem:[#allocation3 + $0x50] sm:$0x1] }
 0x26b   : > { %422 = vst [vmem:[#allocation3 + $0x20] sm:$0x1] %v421_v24  ;;  %v433_v24 = vsel %vm10497_vm0, 0, %v432_v23 }
 0x26c   : > { %v3966_v28 = vpop.permute.xlu1 %3965  ;;  %v3631_v29 = vpop.permute.xlu0 %3630  ;;  %434 = vst [vmem:[#allocation3 + $0x50] sm:$0x1] %v433_v24 }
 0x26d   : > { %4059 = vst.msk [vmem:[#allocation4 + $0xc] sm:$0xf] %vm4055_vm15, %v3966_v28  ;;  %v417_v28 = vld [vmem:[#allocation3 + $0x14] sm:$0x1] }
 0x26e   : > { %3723 = vst.msk [vmem:[#allocation4 + $0x10] sm:$0xf] %vm3718_vm14, %v3631_v29  ;;  %v359_v29 = vld [vmem:[#allocation3] sm:$0x1] }
 0x270   : > { %v3633_v30 = vpop.permute.xlu1 %3632  ;;  %v9031_v31 = vld [vmem:[#allocation4] sm:$0xff]   ;;  %v3635_v33 = vpop.permute.xlu0 %3634 }
 0x271   : > { %3724 = vst.msk [vmem:[#allocation4 + $0x14] sm:$0xf] %vm3718_vm14, %v3633_v30  ;;  %3725 = vst.msk [vmem:[#allocation4 + $0x18] sm:$0xf] %vm3718_vm14, %v3635_v33  ;;  %8931 = vmatprep.mubr.msk.bf16.mxu0 %vm4227_vm2, %v9031_v31  ;;  %v418_v30 = vsel %vm10497_vm0, 0, %v417_v28  ;;  %v360_v31 = vsel %vm10434_vm8, 0, %v359_v29 }
 0x272   : > { %419 = vst [vmem:[#allocation3 + $0x14] sm:$0x1] %v418_v30  ;;  %361 = vst [vmem:[#allocation3] sm:$0x1] %v360_v31  ;;  %v383_v28 = vld [vmem:[#allocation3 + $0x60] sm:$0x1] }
 0x273   : > { %v384_v29 = vsel %vm10434_vm8, 0, %v383_v28  ;;  %v380_v30 = vld [vmem:[#allocation3 + $0x54] sm:$0x1]  ;;  %v4899_v28 = vld [vmem:[#allocation3 + $0x18] sm:$0xf] }
 0x274   : > { %v3637_v34 = vpop.permute.xlu1 %3636  ;;  %v9032_v37 = vld [vmem:[#allocation4 + $0x8] sm:$0xff]   ;;  %v3968_v38 = vpop.permute.xlu0 %3967  ;;  %385 = vst [vmem:[#allocation3 + $0x60] sm:$0x1] %v384_v29  ;;  %v381_v31 = vsel %vm10434_vm8, 0, %v380_v30 }
 0x275   : > { %3726 = vst.msk [vmem:[#allocation4 + $0x1c] sm:$0xf] %vm3718_vm14, %v3637_v34  ;;  %8932 = vmatmul.mubr.msk.bf16.vlgmr.msra.gmra.mxu0 %vm4227_vm2, %v9032_v37  ;;  %382 = vst [vmem:[#allocation3 + $0x54] sm:$0x1] %v381_v31 }
 0x276   : > { %4060 = vst.msk [vmem:[#allocation4 + $0x10] sm:$0xf] %vm4055_vm15, %v3968_v38 }
 0x278   : > { %v3970_v39 = vpop.permute.xlu1 %3969  ;;  %v3972_v26 = vpop.permute.xlu0 %3971 }
 0x279   : > { %4061 = vst.msk [vmem:[#allocation4 + $0x14] sm:$0xf] %vm4055_vm15, %v3970_v39  ;;  %4062 = vst.msk [vmem:[#allocation4 + $0x18] sm:$0xf] %vm4055_vm15, %v3972_v26  ;;  %v414_v26 = vld [vmem:[#allocation3 + $0x8] sm:$0x1] }
 0x27c   : > { %v3974_v40 = vpop.permute.xlu1 %3973  ;;  %v3639_v43 = vpop.permute.xlu0 %3638 }
 0x27d   : > { %4063 = vst.msk [vmem:[#allocation4 + $0x1c] sm:$0xf] %vm4055_vm15, %v3974_v40  ;;  %v371_v40 = vld [vmem:[#allocation3 + $0x30] sm:$0x1] }
 0x27e   : > { %3727 = vst.msk [vmem:[#allocation4 + $0x20] sm:$0xf] %vm3718_vm14, %v3639_v43  ;;  %v5068_v43 = vld [vmem:[#allocation3] sm:$0xf] }
 0x280   : > { %v3641_v44 = vpop.permute.xlu1 %3640  ;;  %v9033_v45 = vld [vmem:[#allocation4 + $0x10] sm:$0xff]   ;;  %v3643_v46 = vpop.permute.xlu0 %3642 }
 0x281   : > { %3728 = vst.msk [vmem:[#allocation4 + $0x24] sm:$0xf] %vm3718_vm14, %v3641_v44  ;;  %3729 = vst.msk [vmem:[#allocation4 + $0x28] sm:$0xf] %vm3718_vm14, %v3643_v46  ;;  %8935 = vmatprep.mubr.msk.bf16.mxu0 %vm4227_vm2, %v9033_v45  ;;  %v372_v44 = vsel %vm10434_vm8, 0, %v371_v40  ;;  %v5117_v45 = vshrl.u32 %v5068_v43, 16 }
 0x282   : > { %v5120_v46 = vshll.u32 %v5068_v43, 16  ;;  %373 = vst [vmem:[#allocation3 + $0x30] sm:$0x1] %v372_v44  ;;  %v386_v40 = vld [vmem:[#allocation3 + $0x6c] sm:$0x1] }
 0x283   : > { %v387_v43 = vsel %vm10434_vm8, 0, %v386_v40  ;;  %v444_v44 = vld [vmem:[#allocation3 + $0x80] sm:$0x1] }
 0x284   : > { %v3645_v47 = vpop.permute.xlu1 %3644  ;;  %v9034_v41 = vld [vmem:[#allocation4 + $0x18] sm:$0xff]   ;;  %v3976_v35 = vpop.permute.xlu0 %3975  ;;  %388 = vst [vmem:[#allocation3 + $0x6c] sm:$0x1] %v387_v43 }
 0x285   : > { %3730 = vst.msk [vmem:[#allocation4 + $0x2c] sm:$0xf] %vm3718_vm14, %v3645_v47  ;;  %8936 = vmatmul.mubr.msk.bf16.gmra.mxu0 %vm4227_vm2, %v9034_v41  ;;  %v415_v47 = vsel %vm10497_vm0, 0, %v414_v26 }
 0x286   : > { %4064 = vst.msk [vmem:[#allocation4 + $0x20] sm:$0xf] %vm4055_vm15, %v3976_v35  ;;  %416 = vst [vmem:[#allocation3 + $0x8] sm:$0x1] %v415_v47 }
 0x288   : > { %v3978_v48 = vpop.permute.xlu1 %3977  ;;  %v3980_v50 = vpop.permute.xlu0 %3979 }
 0x289   : > { %4065 = vst.msk [vmem:[#allocation4 + $0x24] sm:$0xf] %vm4055_vm15, %v3978_v48  ;;  %4066 = vst.msk [vmem:[#allocation4 + $0x28] sm:$0xf] %vm4055_vm15, %v3980_v50  ;;  %v368_v48 = vld [vmem:[#allocation3 + $0x24] sm:$0x1] }
 0x28a   : > { %v369_v50 = vsel %vm10434_vm8, 0, %v368_v48  ;;  %v392_v48 = vld [vmem:[#allocation3 + $0x84] sm:$0x1] }
 0x28b   : > { %370 = vst [vmem:[#allocation3 + $0x24] sm:$0x1] %v369_v50  ;;  %v393_v50 = vsel %vm10434_vm8, 0, %v392_v48 }
 0x28c   : > { %v3982_v51 = vpop.permute.xlu1 %3981  ;;  %v3647_v52 = vpop.permute.xlu0 %3646  ;;  %394 = vst [vmem:[#allocation3 + $0x84] sm:$0x1] %v393_v50 }
 0x28d   : > { %4067 = vst.msk [vmem:[#allocation4 + $0x2c] sm:$0xf] %vm4055_vm15, %v3982_v51  ;;  %v5119_v51 = vrot.slane %v5117_v45, 4  ;;  %v445_v45 = vsel %vm10497_vm0, 0, %v444_v44 }
 0x28e   : > { %3731 = vst.msk [vmem:[#allocation4 + $0x30] sm:$0xf] %vm3718_vm14, %v3647_v52  ;;  %v5122_v52 = vrot.slane %v5120_v46, 5  ;;  %446 = vst [vmem:[#allocation3 + $0x80] sm:$0x1] %v445_v45 }
 0x28f   : > { %v441_v46 = vld [vmem:[#allocation3 + $0x74] sm:$0x1]  ;;  %v4903_v45 = vld [vmem:[#allocation3 + $0x20] sm:$0x1] }
 0x290   : > { %v3649_v53 = vpop.permute.xlu1 %3648  ;;  %v9035_v54 = vld [vmem:[#allocation4 + $0x20] sm:$0xff]   ;;  %v3651_v55 = vpop.permute.xlu0 %3650  ;;  %v442_v47 = vsel %vm10497_vm0, 0, %v441_v46 }
 0x291   : > { %3732 = vst.msk [vmem:[#allocation4 + $0x34] sm:$0xf] %vm3718_vm14, %v3649_v53  ;;  %3733 = vst.msk [vmem:[#allocation4 + $0x38] sm:$0xf] %vm3718_vm14, %v3651_v55  ;;  %8939 = vmatprep.mubr.msk.bf16.mxu0 %vm4227_vm2, %v9035_v54  ;;  %v426_v53 = vld [vmem:[#allocation3 + $0x38] sm:$0x1] }
 0x292   : > { %v5069_v54 = vld [vmem:[#allocation3 + $0x4] sm:$0xf]  ;;  %v427_v55 = vsel %vm10497_vm0, 0, %v426_v53  ;;  %443 = vst [vmem:[#allocation3 + $0x74] sm:$0x1] %v442_v47 }
 0x293   : > { %428 = vst [vmem:[#allocation3 + $0x38] sm:$0x1] %v427_v55  ;;  %v447_v53 = vld [vmem:[#allocation3 + $0x8c] sm:$0x1]  ;;  %v401_v55 = vld [vmem:[#allocation3 + $0xa8] sm:$0x1] }
 0x294   : > { %v3653_v56 = vpop.permute.xlu1 %3652  ;;  %v9036_v57 = vld [vmem:[#allocation4 + $0x28] sm:$0xff]   ;;  %v3984_v58 = vpop.permute.xlu0 %3983 }
 0x295   : > { %3734 = vst.msk [vmem:[#allocation4 + $0x3c] sm:$0xf] %vm3718_vm14, %v3653_v56  ;;  %8940 = vmatmul.mubr.msk.bf16.gmra.mxu0 %vm4227_vm2, %v9036_v57  ;;  %v5123_v56 = vor.u32 %v5122_v52, %v5119_v51  ;;  %v5126_v57 = vshll.u32 %v5069_v54, 16  ;;  %v450_v51 = vld [vmem:[#allocation3 + $0x98] sm:$0x1] }
 0x296   : > { %4068 = vst.msk [vmem:[#allocation4 + $0x30] sm:$0xf] %vm4055_vm15, %v3984_v58  ;;  %v5130_v58 = vshrl.u32 %v5069_v54, 16  ;;  %v451_v52 = vsel %vm10497_vm0, 0, %v450_v51  ;;  %v448_v54 = vsel %vm10497_vm0, 0, %v447_v53 }
 0x297   : > { %452 = vst [vmem:[#allocation3 + $0x98] sm:$0x1] %v451_v52  ;;  %449 = vst [vmem:[#allocation3 + $0x8c] sm:$0x1] %v448_v54 }
 0x298   : > { %v3986_v59 = vpop.permute.xlu1 %3985  ;;  %v3988_v60 = vpop.permute.xlu0 %3987 }
 0x299   : > { %4069 = vst.msk [vmem:[#allocation4 + $0x34] sm:$0xf] %vm4055_vm15, %v3986_v59  ;;  %4070 = vst.msk [vmem:[#allocation4 + $0x38] sm:$0xf] %vm4055_vm15, %v3988_v60 }
 0x29c   : > { %v3990_v2 = vpop.permute.xlu1 %3989  ;;  %v3655_v1 = vpop.permute.xlu0 %3654 }
 0x29d   : > { %4071 = vst.msk [vmem:[#allocation4 + $0x3c] sm:$0xf] %vm4055_vm15, %v3990_v2 }
 0x29e   : > { %3735 = vst.msk [vmem:[#allocation4 + $0x40] sm:$0xf] %vm3718_vm14, %v3655_v1  ;;  %v423_v1 = vld [vmem:[#allocation3 + $0x2c] sm:$0x1] }
 0x2a0   : > { %v3657_v61 = vpop.permute.xlu1 %3656  ;;  %v9037_v62 = vld [vmem:[#allocation4 + $0x30] sm:$0xff]   ;;  %v3659_v0 = vpop.permute.xlu0 %3658 }
 0x2a1   : > { %3736 = vst.msk [vmem:[#allocation4 + $0x44] sm:$0xf] %vm3718_vm14, %v3657_v61  ;;  %3737 = vst.msk [vmem:[#allocation4 + $0x48] sm:$0xf] %vm3718_vm14, %v3659_v0  ;;  %8943 = vmatprep.mubr.msk.bf16.mxu0 %vm4227_vm2, %v9037_v62  ;;  %v5124_v61 = vrot.slane %v5123_v56, 4  ;;  %v5128_v62 = vrot.slane %v5126_v57, 5 }
 0x2a2   : > { %v5132_v0 = vrot.slane %v5130_v58, 4  ;;  %v402_v56 = vsel %vm10434_vm8, 0, %v401_v55  ;;  %v398_v57 = vld [vmem:[#allocation3 + $0x9c] sm:$0x1]  ;;  %v4896_v55 = vld [vmem:[#allocation3 + $0x14] sm:$0x1] }
 0x2a3   : > { %403 = vst [vmem:[#allocation3 + $0xa8] sm:$0x1] %v402_v56  ;;  %v399_v58 = vsel %vm10434_vm8, 0, %v398_v57 }
 0x2a4   : > { %v3661_v3 = vpop.permute.xlu1 %3660  ;;  %v9038_v4 = vld [vmem:[#allocation4 + $0x38] sm:$0xff]   ;;  %v3992_v5 = vpop.permute.xlu0 %3991  ;;  %400 = vst [vmem:[#allocation3 + $0x9c] sm:$0x1] %v399_v58 }
 0x2a5   : > { %3738 = vst.msk [vmem:[#allocation4 + $0x4c] sm:$0xf] %vm3718_vm14, %v3661_v3  ;;  %8944 = vmatmul.mubr.msk.bf16.gmra.mxu0 %vm4227_vm2, %v9038_v4  ;;  %v424_v3 = vsel %vm10497_vm0, 0, %v423_v1  ;;  %v5129_v4 = vsel %vm9212_vm13, %v5124_v61, %v5128_v62  ;;  %v407_v61 = vld [vmem:[#allocation3 + $0xc0] sm:$0x1] }
 0x2a6   : > { %4072 = vst.msk [vmem:[#allocation4 + $0x40] sm:$0xf] %vm4055_vm15, %v3992_v5  ;;  %425 = vst [vmem:[#allocation3 + $0x2c] sm:$0x1] %v424_v3  ;;  %v5070_v5 = vld [vmem:[#allocation3 + $0x8] sm:$0x1]  ;;  %5500 = vrot.lane.b32.xlu0 %v5129_v4, %s9079_s25 }
 0x2a7   : > { %v404_v3 = vld [vmem:[#allocation3 + $0xb4] sm:$0x1] }
 0x2a8   : > { %v3994_v6 = vpop.permute.xlu1 %3993  ;;  %v3996_v7 = vpop.permute.xlu0 %3995 }
 0x2a9   : > { %4073 = vst.msk [vmem:[#allocation4 + $0x44] sm:$0xf] %vm4055_vm15, %v3994_v6  ;;  %4074 = vst.msk [vmem:[#allocation4 + $0x48] sm:$0xf] %vm4055_vm15, %v3996_v7  ;;  %v5133_v6 = vor.u32 %v5132_v0, %v5128_v62  ;;  %v10591_v62 = vld [vmem:[%s11855_s2] ss:$0 sm:$0xff] }
 0x2aa   : > { %v408_v0 = vsel %vm10434_vm8, 0, %v407_v61 }
 0x2ab   : > { %409 = vst [vmem:[#allocation3 + $0xc0] sm:$0x1] %v408_v0 }
 0x2ac   : > { %v3998_v8 = vpop.permute.xlu1 %3997  ;;  %v3663_v9 = vpop.permute.xlu0 %3662 }
 0x2ad   : > { %4075 = vst.msk [vmem:[#allocation4 + $0x4c] sm:$0xf] %vm4055_vm15, %v3998_v8 }
 0x2ae   : > { %3739 = vst.msk [vmem:[#allocation4 + $0x50] sm:$0xf] %vm3718_vm14, %v3663_v9 }
 0x2b0   : > { %v3665_v10 = vpop.permute.xlu1 %3664  ;;  %v9039_v12 = vld [vmem:[#allocation4 + $0x40] sm:$0xff]   ;;  %v3667_v63 = vpop.permute.xlu0 %3666 }
 0x2b1   : > { %3740 = vst.msk [vmem:[#allocation4 + $0x54] sm:$0xf] %vm3718_vm14, %v3665_v10  ;;  %3741 = vst.msk [vmem:[#allocation4 + $0x58] sm:$0xf] %vm3718_vm14, %v3667_v63  ;;  %8947 = vmatprep.mubr.msk.bf16.mxu0 %vm4227_vm2, %v9039_v12  ;;  %v5136_v10 = vshll.u32 %v5070_v5, 16  ;;  %v5134_v12 = vrot.slane %v5133_v6, 4 }
 0x2b2   : > { %v405_v5 = vsel %vm10434_vm8, 0, %v404_v3 }
 0x2b3   : > { %v5138_v63 = vrot.slane %v5136_v10, 5  ;;  %406 = vst [vmem:[#allocation3 + $0xb4] sm:$0x1] %v405_v5 }
 0x2b4   : > { %v3669_v13 = vpop.permute.xlu1 %3668  ;;  %v9040_v14 = vld [vmem:[#allocation4 + $0x48] sm:$0xff]   ;;  %v4000_v32 = vpop.permute.xlu0 %3999 }
 0x2b5   : > { %3742 = vst.msk [vmem:[#allocation4 + $0x5c] sm:$0xf] %vm3718_vm14, %v3669_v13  ;;  %8948 = vmatmul.mubr.msk.bf16.gmra.mxu0 %vm4227_vm2, %v9040_v14 }
 0x2b6   : > { %4076 = vst.msk [vmem:[#allocation4 + $0x50] sm:$0xf] %vm4055_vm15, %v4000_v32  ;;  %v5139_v32 = vsel %vm9212_vm13, %v5134_v12, %v5138_v63 }
 0x2b7   : > { %5502 = vrot.lane.b32.xlu1 %v5139_v32, %s9079_s25 }
 0x2b8   : > { %v4002_v16 = vpop.permute.xlu1 %4001  ;;  %v4004_v17 = vpop.permute.xlu0 %4003 }
 0x2b9   : > { %4077 = vst.msk [vmem:[#allocation4 + $0x54] sm:$0xf] %vm4055_vm15, %v4002_v16  ;;  %4078 = vst.msk [vmem:[#allocation4 + $0x58] sm:$0xf] %vm4055_vm15, %v4004_v17  ;;  %v377_v16 = vld [vmem:[#allocation3 + $0x48] sm:$0x1] }
 0x2ba   : > { %v378_v17 = vsel %vm10434_vm8, 0, %v377_v16 }
 0x2bb   : > { %379 = vst [vmem:[#allocation3 + $0x48] sm:$0x1] %v378_v17 }
 0x2bc   : > { %v4006_v19 = vpop.permute.xlu1 %4005  ;;  %v3671_v20 = vpop.permute.xlu0 %3670 }
 0x2bd   : > { %4079 = vst.msk [vmem:[#allocation4 + $0x5c] sm:$0xf] %vm4055_vm15, %v4006_v19  ;;  %v374_v19 = vld [vmem:[#allocation3 + $0x3c] sm:$0x1] }
 0x2be   : > { %3743 = vst.msk [vmem:[#allocation4 + $0x60] sm:$0xf] %vm3718_vm14, %v3671_v20  ;;  %v375_v20 = vsel %vm10434_vm8, 0, %v374_v19 }
 0x2bf   : > { %376 = vst [vmem:[#allocation3 + $0x3c] sm:$0x1] %v375_v20 }
 0x2c0   : > { %v3673_v25 = vpop.permute.xlu1 %3672  ;;  %v9041_v27 = vld [vmem:[#allocation4 + $0x50] sm:$0xff]   ;;  %v3675_v15 = vpop.permute.xlu0 %3674 }
 0x2c1   : > { %3744 = vst.msk [vmem:[#allocation4 + $0x64] sm:$0xf] %vm3718_vm14, %v3673_v25  ;;  %3745 = vst.msk [vmem:[#allocation4 + $0x68] sm:$0xf] %vm3718_vm14, %v3675_v15  ;;  %8951 = vmatprep.mubr.msk.bf16.mxu0 %vm4227_vm2, %v9041_v27  ;;  %v429_v27 = vld [vmem:[#allocation3 + $0x44] sm:$0x1] }
 0x2c2   : > { %v430_v15 = vsel %vm10497_vm0, 0, %v429_v27 }
 0x2c3   : > { %431 = vst [vmem:[#allocation3 + $0x44] sm:$0x1] %v430_v15 }
 0x2c4   : > { %v3677_v33 = vpop.permute.xlu1 %3676  ;;  %v9042_v34 = vld [vmem:[#allocation4 + $0x58] sm:$0xff]   ;;  %v4008_v37 = vpop.permute.xlu0 %4007 }
 0x2c5   : > { %3746 = vst.msk [vmem:[#allocation4 + $0x6c] sm:$0xf] %vm3718_vm14, %v3677_v33  ;;  %8952 = vmatmul.mubr.msk.bf16.gmra.mxu0 %vm4227_vm2, %v9042_v34  ;;  %v438_v33 = vld [vmem:[#allocation3 + $0x68] sm:$0x1] }
 0x2c6   : > { %4080 = vst.msk [vmem:[#allocation4 + $0x60] sm:$0xf] %vm4055_vm15, %v4008_v37  ;;  %v439_v34 = vsel %vm10497_vm0, 0, %v438_v33  ;;  %v435_v37 = vld [vmem:[#allocation3 + $0x5c] sm:$0x1] }
 0x2c7   : > { %440 = vst [vmem:[#allocation3 + $0x68] sm:$0x1] %v439_v34 }
 0x2c8   : > { %v4010_v38 = vpop.permute.xlu1 %4009  ;;  %v4012_v39 = vpop.permute.xlu0 %4011 }
 0x2c9   : > { %4081 = vst.msk [vmem:[#allocation4 + $0x64] sm:$0xf] %vm4055_vm15, %v4010_v38  ;;  %4082 = vst.msk [vmem:[#allocation4 + $0x68] sm:$0xf] %vm4055_vm15, %v4012_v39  ;;  %v436_v38 = vsel %vm10497_vm0, 0, %v435_v37 }
 0x2ca   : > { %437 = vst [vmem:[#allocation3 + $0x5c] sm:$0x1] %v436_v38  ;;  %v389_v39 = vld [vmem:[#allocation3 + $0x78] sm:$0x1]  ;;  %v4892_v38 = vld [vmem:[#allocation3 + $0xc] sm:$0xf] }
 0x2cb   : > { %v390_v26 = vsel %vm10434_vm8, 0, %v389_v39 }
 0x2cc   : > { %v4014_v41 = vpop.permute.xlu1 %4013  ;;  %v3679_v35 = vpop.permute.xlu0 %3678  ;;  %391 = vst [vmem:[#allocation3 + $0x78] sm:$0x1] %v390_v26 }
 0x2cd   : > { %4083 = vst.msk [vmem:[#allocation4 + $0x6c] sm:$0xf] %vm4055_vm15, %v4014_v41  ;;  %v395_v41 = vld [vmem:[#allocation3 + $0x90] sm:$0x1] }
 0x2ce   : > { %3747 = vst.msk [vmem:[#allocation4 + $0x70] sm:$0xf] %vm3718_vm14, %v3679_v35  ;;  %v396_v35 = vsel %vm10434_vm8, 0, %v395_v41 }
 0x2cf   : > { %397 = vst [vmem:[#allocation3 + $0x90] sm:$0x1] %v396_v35 }
 0x2d0   : > { %v3681_v59 = vpop.permute.xlu1 %3680  ;;  %v9043_v60 = vld [vmem:[#allocation4 + $0x60] sm:$0xff]   ;;  %v3683_v2 = vpop.permute.xlu0 %3682 }
 0x2d1   : > { %3748 = vst.msk [vmem:[#allocation4 + $0x74] sm:$0xf] %vm3718_vm14, %v3681_v59  ;;  %3749 = vst.msk [vmem:[#allocation4 + $0x78] sm:$0xf] %vm3718_vm14, %v3683_v2  ;;  %8955 = vmatprep.mubr.msk.bf16.mxu0 %vm4227_vm2, %v9043_v60  ;;  %v456_v59 = vld [vmem:[#allocation3 + $0xb0] sm:$0x1] }
 0x2d2   : > { %v457_v60 = vsel %vm10497_vm0, 0, %v456_v59  ;;  %v453_v2 = vld [vmem:[#allocation3 + $0xa4] sm:$0x1] }
 0x2d3   : > { %458 = vst [vmem:[#allocation3 + $0xb0] sm:$0x1] %v457_v60  ;;  %v454_v1 = vsel %vm10497_vm0, 0, %v453_v2 }
 0x2d4   : > { %v3685_v7 = vpop.permute.xlu1 %3684  ;;  %v9044_v8 = vld [vmem:[#allocation4 + $0x68] sm:$0xff]   ;;  %v4016_v9 = vpop.permute.xlu0 %4015  ;;  %455 = vst [vmem:[#allocation3 + $0xa4] sm:$0x1] %v454_v1 }
 0x2d5   : > { %3750 = vst.msk [vmem:[#allocation4 + $0x7c] sm:$0xf] %vm3718_vm14, %v3685_v7  ;;  %8956 = vmatmul.mubr.msk.bf16.gmra.mxu0 %vm4227_vm2, %v9044_v8  ;;  %v462_v8 = vld [vmem:[#allocation3 + $0xc8] sm:$0x1]  ;;  %vm8116_vm14 = vcmask 585216  }
 0x2d6   : > { %4084 = vst.msk [vmem:[#allocation4 + $0x70] sm:$0xf] %vm4055_vm15, %v4016_v9  ;;  %v463_v12 = vsel %vm10497_vm0, 0, %v462_v8 }
 0x2d7   : > { %464 = vst [vmem:[#allocation3 + $0xc8] sm:$0x1] %v463_v12 }
 0x2d8   : > { %v4018_v13 = vpop.permute.xlu1 %4017  ;;  %v4020_v14 = vpop.permute.xlu0 %4019 }
 0x2d9   : > { %4085 = vst.msk [vmem:[#allocation4 + $0x74] sm:$0xf] %vm4055_vm15, %v4018_v13  ;;  %4086 = vst.msk [vmem:[#allocation4 + $0x78] sm:$0xf] %vm4055_vm15, %v4020_v14 }
 0x2dc   : > { %v4022_v18 = vpop.permute.xlu1 %4021 }
 0x2dd   : > { %4087 = vst.msk [vmem:[#allocation4 + $0x7c] sm:$0xf] %vm4055_vm15, %v4022_v18  ;;  %vm8304_vm15 = vcmask 588800  }
 0x2e0   : > { %v9045_v21 = vld [vmem:[#allocation4 + $0x70] sm:$0xff]  }
 0x2e1   : > { %8959 = vmatprep.mubr.msk.bf16.mxu0 %vm4227_vm2, %v9045_v21  ;;  %v459_v21 = vld [vmem:[#allocation3 + $0xbc] sm:$0x1] }
 0x2e2   : > { %v460_v30 = vsel %vm10497_vm0, 0, %v459_v21 }
 0x2e3   : > { %461 = vst [vmem:[#allocation3 + $0xbc] sm:$0x1] %v460_v30  ;;  %v4913_v30 = vld [vmem:[#allocation3 + $0x30] sm:$0xf] }
 0x2e4   : > { %v9046_v25 = vld [vmem:[#allocation4 + $0x78] sm:$0xff]  }
 0x2e5   : > { %8960 = vmatmul.mubr.msk.bf16.gmra.mxu0 %vm4227_vm2, %v9046_v25 }
 0x335   : > { %v8933_v4 = vpop.f32.mrf.mxu0 }
 0x336   : > { %v4323_v6 = vadd.f32 %v8933_v4, %v10591_v62  ;;  %v5004_v4 = vld [vmem:[#allocation3] sm:$0xf] }
 0x337   : > { %v4314_v7 = vpop.f32.mrf.mxu0  ;;  %5036 = vst.msk [vmem:[#allocation5] sm:$0xf] %vm348_vm5, %v5004_v4 }
 0x338   : > { %v4443_v9 = vmax.f32 %v4323_v6, 0.0  ;;  %v4315_v10 = vadd.f32 %v10591_v62, %v4314_v7 }
 0x339   : > { %v8934_v63 = vpop.f32.mrf.mxu0 }
 0x33a   : > { %v8855_v13 = vpack.c.bf16 %v4443_v9, %v4443_v9  ;;  %v4441_v14 = vmax.f32 %v4315_v10, 0.0  ;;  %v4326_v32 = vadd.f32 %v8934_v63, %v10591_v62  ;;  %v5501_v9 = vpop.permute.xlu0 %5500 }
 0x33b   : > { %v4317_v16 = vpop.f32.mrf.mxu0  ;;  %5597 = vst.msk [vmem:[#allocation5] sm:$0xf] %vm5596_vm4, %v5501_v9 }
 0x33c   : > { %v4587_v17 = vshrl.u32 %v8855_v13, 16  ;;  %v8853_v18 = vpack.c.bf16 %v4441_v14, %v4441_v14  ;;  %v4444_v19 = vmax.f32 %v4326_v32, 0.0  ;;  %v4318_v20 = vadd.f32 %v10591_v62, %v4317_v16 }
 0x33d   : > { %v4590_v24 = vshll.u32 %v8855_v13, 16 }
 0x33e   : > { %v4589_v23 = vrot.slane %v4587_v17, 7  ;;  %v4570_v25 = vshrl.u32 %v8853_v18, 16  ;;  %v8856_v27 = vpack.c.bf16 %v4444_v19, %v4444_v19  ;;  %v4442_v29 = vmax.f32 %v4318_v20, 0.0 }
 0x33f   : > { %v4573_v34 = vshll.u32 %v8853_v18, 16 }
 0x340   : > { %v4592_v31 = vor.u32 %v4590_v24, %v4589_v23  ;;  %v4572_v33 = vrot.slane %v4570_v25, 7  ;;  %v4595_v37 = vshrl.u32 %v8856_v27, 16  ;;  %v8854_v39 = vpack.c.bf16 %v4442_v29, %v4442_v29 }
 0x341   : > { %v4598_v44 = vshll.u32 %v8856_v27, 16  ;;  %v4593_v47 = vrot.slane %v4589_v23, 4 }
 0x342   : > { %v4900_v26 = vsel %vm10605_vm6, %v4592_v31, %v4899_v28  ;;  %v4575_v40 = vor.u32 %v4573_v34, %v4572_v33  ;;  %v4597_v43 = vrot.slane %v4595_v37, 7  ;;  %v4578_v46 = vshrl.u32 %v8854_v39, 16 }
 0x343   : > { %4901 = vst [vmem:[#allocation3 + $0x18] sm:$0xf] %v4900_v26  ;;  %v4581_v51 = vshll.u32 %v8854_v39, 16  ;;  %v4576_v57 = vrot.slane %v4572_v33, 4 }
 0x344   : > { %v4893_v41 = vsel %vm10605_vm6, %v4575_v40, %v4892_v38  ;;  %v4600_v35 = vor.u32 %v4598_v44, %v4597_v43  ;;  %v4602_v48 = vrot.slane %v4597_v43, 4  ;;  %v4580_v50 = vrot.slane %v4578_v46, 7  ;;  %v4906_v40 = vld [vmem:[#allocation3 + $0x24] sm:$0xf] }
 0x345   : > { %4894 = vst [vmem:[#allocation3 + $0xc] sm:$0xf] %v4893_v41  ;;  %v8937_v52 = vpop.f32.mrf.mxu0 }
 0x346   : > { %v4601_v53 = vsel %vm9196_vm12, %v4593_v47, %v4600_v35  ;;  %v4904_v54 = vsel %vm10434_vm8, %v4602_v48, %v4903_v45  ;;  %v4339_v56 = vadd.f32 %v8937_v52, %v10591_v62  ;;  %v4583_v58 = vor.u32 %v4581_v51, %v4580_v50 }
 0x347   : > { %4902 = vst.msk [vmem:[#allocation3 + $0x1c] sm:$0xf] %vm348_vm5, %v4601_v53  ;;  %4905 = vst [vmem:[#allocation3 + $0x20] sm:$0x1] %v4904_v54  ;;  %v4585_v59 = vrot.slane %v4580_v50, 4  ;;  %v4330_v60 = vpop.f32.mrf.mxu0 }
 0x348   : > { %v4447_v2 = vmax.f32 %v4339_v56, 0.0  ;;  %v4331_v1 = vadd.f32 %v10591_v62, %v4330_v60  ;;  %v4584_v61 = vsel %vm9196_vm12, %v4576_v57, %v4583_v58  ;;  %v5005_v53 = vld [vmem:[#allocation3 + $0x4] sm:$0xf]  ;;  %v5503_v60 = vpop.permute.xlu1 %5502 }
 0x349   : > { %v4897_v0 = vsel %vm10434_vm8, %v4585_v59, %v4896_v55  ;;  %v8938_v3 = vpop.f32.mrf.mxu0  ;;  %4895 = vst.msk [vmem:[#allocation3 + $0x10] sm:$0xf] %vm348_vm5, %v4584_v61  ;;  %v4917_v55 = vld [vmem:[#allocation3 + $0x38] sm:$0x1]  ;;  %5037 = vst.msk [vmem:[#allocation5 + $0x4] sm:$0xf] %vm348_vm5, %v5005_v53 }
 0x34a   : > { %4898 = vst [vmem:[#allocation3 + $0x14] sm:$0x1] %v4897_v0  ;;  %v8859_v5 = vpack.c.bf16 %v4447_v2, %v4447_v2  ;;  %v4445_v6 = vmax.f32 %v4331_v1, 0.0  ;;  %v4342_v7 = vadd.f32 %v8938_v3, %v10591_v62  ;;  %v5074_v8 = vld [vmem:[#allocation3 + $0x18] sm:$0xf] }
 0x34b   : > { %v5008_v10 = vld [vmem:[#allocation3 + $0x18] sm:$0xf]  ;;  %v4333_v12 = vpop.f32.mrf.mxu0  ;;  %v5165_v63 = vshrl.u32 %v5074_v8, 16  ;;  %v5168_v13 = vshll.u32 %v5074_v8, 16  ;;  %5598 = vst.msk [vmem:[#allocation5 + $0x4] sm:$0xf] %vm5596_vm4, %v5503_v60 }
 0x34c   : > { %5040 = vst.msk [vmem:[#allocation5 + $0x10] sm:$0xf] %vm348_vm5, %v5008_v10  ;;  %v4621_v14 = vshrl.u32 %v8859_v5, 16  ;;  %v4624_v32 = vshll.u32 %v8859_v5, 16  ;;  %v8857_v16 = vpack.c.bf16 %v4445_v6, %v4445_v6  ;;  %v4448_v17 = vmax.f32 %v4342_v7, 0.0 }
 0x34d   : > { %v5071_v18 = vld [vmem:[#allocation3 + $0xc] sm:$0xf]  ;;  %v4334_v19 = vadd.f32 %v10591_v62, %v4333_v12  ;;  %v5167_v23 = vrot.slane %v5165_v63, 4  ;;  %v5170_v37 = vrot.slane %v5168_v13, 5  ;;  %v4927_v60 = vld [vmem:[#allocation3 + $0x48] sm:$0xf] }
 0x34e   : > { %v5141_v20 = vshrl.u32 %v5071_v18, 16  ;;  %v5144_v21 = vshll.u32 %v5071_v18, 16  ;;  %v5006_v24 = vld [vmem:[#allocation3 + $0xc] sm:$0xf]  ;;  %v4623_v25 = vrot.slane %v4621_v14, 7  ;;  %v4604_v27 = vshrl.u32 %v8857_v16, 16 }
 0x34f   : > { %v4607_v28 = vshll.u32 %v8857_v16, 16  ;;  %v8860_v29 = vpack.c.bf16 %v4448_v17, %v4448_v17  ;;  %5038 = vst.msk [vmem:[#allocation5 + $0x8] sm:$0xf] %vm348_vm5, %v5006_v24  ;;  %v4446_v31 = vmax.f32 %v4334_v19, 0.0  ;;  %v5171_v35 = vor.u32 %v5170_v37, %v5167_v23  ;;  %v5009_v3 = vld [vmem:[#allocation3 + $0x1c] sm:$0xf] }
 0x350   : > { %v5143_v33 = vrot.slane %v5141_v20, 4  ;;  %v5146_v34 = vrot.slane %v5144_v21, 5  ;;  %v4626_v38 = vor.u32 %v4624_v32, %v4623_v25  ;;  %v4627_v39 = vrot.slane %v4623_v25, 4  ;;  %v5072_v46 = vld [vmem:[#allocation3 + $0x10] sm:$0xf] }
 0x351   : > { %v4606_v26 = vrot.slane %v4604_v27, 7  ;;  %v4629_v43 = vshrl.u32 %v8860_v29, 16  ;;  %v4632_v44 = vshll.u32 %v8860_v29, 16  ;;  %v8858_v45 = vpack.c.bf16 %v4446_v31, %v4446_v31  ;;  %v5073_v41 = vld [vmem:[#allocation3 + $0x14] sm:$0x1] }
 0x352   : > { %v5147_v47 = vor.u32 %v5146_v34, %v5143_v33  ;;  %v4914_v48 = vsel %vm10605_vm6, %v4626_v38, %v4913_v30  ;;  %v5007_v54 = vld [vmem:[#allocation3 + $0x10] sm:$0xf]  ;;  %v5150_v59 = vshll.u32 %v5072_v46, 16  ;;  %v5154_v0 = vshrl.u32 %v5072_v46, 16  ;;  %v5075_v8 = vld [vmem:[#allocation3 + $0x1c] sm:$0xf] }
 0x353   : > { %v4609_v50 = vor.u32 %v4607_v28, %v4606_v26  ;;  %v4610_v51 = vrot.slane %v4606_v26, 4  ;;  %v4631_v52 = vrot.slane %v4629_v43, 7  ;;  %4915 = vst [vmem:[#allocation3 + $0x30] sm:$0xf] %v4914_v48  ;;  %v4612_v56 = vshrl.u32 %v8858_v45, 16 }
 0x354   : > { %v4615_v57 = vshll.u32 %v8858_v45, 16  ;;  %v5148_v58 = vrot.slane %v5147_v47, 4  ;;  %5039 = vst.msk [vmem:[#allocation5 + $0xc] sm:$0xf] %vm348_vm5, %v5007_v54  ;;  %v5152_v6 = vrot.slane %v5150_v59, 5  ;;  %v5160_v7 = vshll.u32 %v5073_v41, 16 }
 0x355   : > { %v4907_v2 = vsel %vm10605_vm6, %v4609_v50, %v4906_v40  ;;  %v4634_v1 = vor.u32 %v4632_v44, %v4631_v52  ;;  %v4636_v61 = vrot.slane %v4631_v52, 4  ;;  %v4614_v4 = vrot.slane %v4612_v56, 7  ;;  %v8941_v5 = vpop.f32.mrf.mxu0  ;;  %5041 = vst.msk [vmem:[#allocation5 + $0x14] sm:$0xf] %vm348_vm5, %v5009_v3  ;;  %v4910_v63 = vld [vmem:[#allocation3 + $0x2c] sm:$0x1] }
 0x356   : > { %4908 = vst [vmem:[#allocation3 + $0x24] sm:$0xf] %v4907_v2  ;;  %v5172_v9 = vrot.slane %v5171_v35, 4  ;;  %v4355_v13 = vadd.f32 %v8941_v5, %v10591_v62  ;;  %v5156_v14 = vrot.slane %v5154_v0, 4  ;;  %v5076_v32 = vld [vmem:[#allocation3 + $0x20] sm:$0x1]  ;;  %v5153_v18 = vsel %vm9212_vm13, %v5148_v58, %v5152_v6 }
 0x357   : > { %v4635_v10 = vsel %vm9196_vm12, %v4627_v39, %v4634_v1  ;;  %v4918_v12 = vsel %vm10434_vm8, %v4636_v61, %v4917_v55  ;;  %v4617_v16 = vor.u32 %v4615_v57, %v4614_v4  ;;  %v4619_v17 = vrot.slane %v4614_v4, 4  ;;  %v4346_v19 = vpop.f32.mrf.mxu0  ;;  %5504 = vrot.lane.b32.xlu0 %v5153_v18, %s9079_s25 }
 0x358   : > { %4916 = vst.msk [vmem:[#allocation3 + $0x34] sm:$0xf] %vm348_vm5, %v4635_v10  ;;  %4919 = vst [vmem:[#allocation3 + $0x38] sm:$0x1] %v4918_v12  ;;  %v5162_v20 = vrot.slane %v5160_v7, 5  ;;  %v4451_v21 = vmax.f32 %v4355_v13, 0.0  ;;  %v4347_v23 = vadd.f32 %v10591_v62, %v4346_v19  ;;  %v5157_v24 = vor.u32 %v5156_v14, %v5152_v6 }
 0x359   : > { %v5174_v25 = vshll.u32 %v5075_v8, 16  ;;  %v4618_v27 = vsel %vm9196_vm12, %v4610_v51, %v4617_v16  ;;  %v4911_v28 = vsel %vm10434_vm8, %v4619_v17, %v4910_v63  ;;  %v8942_v29 = vpop.f32.mrf.mxu0  ;;  %v5178_v30 = vshrl.u32 %v5075_v8, 16  ;;  %v4920_v7 = vld [vmem:[#allocation3 + $0x3c] sm:$0xf]  ;;  %v4931_v17 = vld [vmem:[#allocation3 + $0x50] sm:$0x1] }
 0x35a   : > { %v5184_v31 = vshll.u32 %v5076_v32, 16  ;;  %4909 = vst.msk [vmem:[#allocation3 + $0x28] sm:$0xf] %vm348_vm5, %v4618_v27  ;;  %4912 = vst [vmem:[#allocation3 + $0x2c] sm:$0x1] %v4911_v28  ;;  %v8863_v33 = vpack.c.bf16 %v4451_v21, %v4451_v21  ;;  %v4449_v34 = vmax.f32 %v4347_v23, 0.0  ;;  %v4358_v37 = vadd.f32 %v8942_v29, %v10591_v62 }
 0x35b   : > { %v5158_v38 = vrot.slane %v5157_v24, 4  ;;  %v10657_v39 = vld [vmem:[#allocation3 + $0x30] sm:$0xf]  ;;  %v5176_v26 = vrot.slane %v5174_v25, 5  ;;  %v4349_v40 = vpop.f32.mrf.mxu0  ;;  %v5180_v43 = vrot.slane %v5178_v30, 4 }
 0x35c   : > { %v5186_v44 = vrot.slane %v5184_v31, 5  ;;  %v5213_v45 = vshrl.u32 %v10657_v39, 16  ;;  %v5012_v46 = vld [vmem:[#allocation3 + $0x30] sm:$0xf]  ;;  %v4655_v47 = vshrl.u32 %v8863_v33, 16  ;;  %v4658_v41 = vshll.u32 %v8863_v33, 16 }
 0x35d   : > { %v8861_v35 = vpack.c.bf16 %v4449_v34, %v4449_v34  ;;  %v4452_v48 = vmax.f32 %v4358_v37, 0.0  ;;  %v5077_v50 = vld [vmem:[#allocation3 + $0x24] sm:$0xf]  ;;  %5044 = vst.msk [vmem:[#allocation5 + $0x20] sm:$0xf] %vm348_vm5, %v5012_v46  ;;  %v5163_v51 = vsel %vm9212_vm13, %v5158_v38, %v5162_v20  ;;  %v5177_v52 = vsel %vm9212_vm13, %v5172_v9, %v5176_v26 }
 0x35e   : > { %v4350_v53 = vadd.f32 %v10591_v62, %v4349_v40  ;;  %v5181_v54 = vor.u32 %v5180_v43, %v5176_v26  ;;  %v5010_v55 = vld [vmem:[#allocation3 + $0x24] sm:$0xf]  ;;  %v4657_v56 = vrot.slane %v4655_v47, 7  ;;  %5506 = vrot.lane.b32.xlu1 %v5163_v51, %s9079_s25  ;;  %5508 = vrot.lane.b32.xlu0 %v5177_v52, %s9079_s25  ;;  %v5189_v61 = vshrl.u32 %v5077_v50, 16 }
 0x35f   : > { %v4638_v57 = vshrl.u32 %v8861_v35, 16  ;;  %v4641_v58 = vshll.u32 %v8861_v35, 16  ;;  %v8864_v59 = vpack.c.bf16 %v4452_v48, %v4452_v48  ;;  %5042 = vst.msk [vmem:[#allocation5 + $0x18] sm:$0xf] %vm348_vm5, %v5010_v55  ;;  %v5192_v0 = vshll.u32 %v5077_v50, 16 }
 0x360   : > { %v4450_v2 = vmax.f32 %v4350_v53, 0.0  ;;  %v5182_v1 = vrot.slane %v5181_v54, 4  ;;  %v4660_v3 = vor.u32 %v4658_v41, %v4657_v56  ;;  %v4661_v4 = vrot.slane %v4657_v56, 4  ;;  %v5013_v30 = vld [vmem:[#allocation3 + $0x34] sm:$0xf] }
 0x361   : > { %v4640_v5 = vrot.slane %v4638_v57, 7  ;;  %v4663_v6 = vshrl.u32 %v8864_v59, 16  ;;  %v4666_v8 = vshll.u32 %v8864_v59, 16  ;;  %v5078_v12 = vld [vmem:[#allocation3 + $0x28] sm:$0xf]  ;;  %v5191_v63 = vrot.slane %v5189_v61, 4 }
 0x362   : > { %v8862_v9 = vpack.c.bf16 %v4450_v2, %v4450_v2  ;;  %v5187_v10 = vsel %vm9212_vm13, %v5182_v1, %v5186_v44  ;;  %v4928_v13 = vsel %vm10605_vm6, %v4660_v3, %v4927_v60  ;;  %v5079_v18 = vld [vmem:[#allocation3 + $0x2c] sm:$0x1]  ;;  %v5194_v21 = vrot.slane %v5192_v0, 5  ;;  %v5011_v24 = vld [vmem:[#allocation3 + $0x28] sm:$0xf] }
 0x363   : > { %v4643_v14 = vor.u32 %v4641_v58, %v4640_v5  ;;  %v4644_v32 = vrot.slane %v4640_v5, 4  ;;  %v4665_v16 = vrot.slane %v4663_v6, 7  ;;  %5510 = vrot.lane.b32.xlu1 %v5187_v10, %s9079_s25  ;;  %4929 = vst [vmem:[#allocation3 + $0x48] sm:$0xf] %v4928_v13  ;;  %v5198_v23 = vshll.u32 %v5078_v12, 16 }
 0x364   : > { %v4646_v19 = vshrl.u32 %v8862_v9, 16  ;;  %v4649_v20 = vshll.u32 %v8862_v9, 16  ;;  %v5202_v29 = vshrl.u32 %v5078_v12, 16  ;;  %5043 = vst.msk [vmem:[#allocation5 + $0x1c] sm:$0xf] %vm348_vm5, %v5011_v24  ;;  %v5195_v34 = vor.u32 %v5194_v21, %v5191_v63 }
 0x365   : > { %v4921_v25 = vsel %vm10605_vm6, %v4643_v14, %v4920_v7  ;;  %v4668_v27 = vor.u32 %v4666_v8, %v4665_v16  ;;  %v4670_v28 = vrot.slane %v4665_v16, 4  ;;  %v8945_v33 = vpop.f32.mrf.mxu0  ;;  %v5200_v37 = vrot.slane %v5198_v23, 5  ;;  %5045 = vst.msk [vmem:[#allocation5 + $0x24] sm:$0xf] %vm348_vm5, %v5013_v30  ;;  %v4924_v43 = vld [vmem:[#allocation3 + $0x44] sm:$0x1] }
 0x366   : > { %4922 = vst [vmem:[#allocation3 + $0x3c] sm:$0xf] %v4921_v25  ;;  %v4648_v31 = vrot.slane %v4646_v19, 7  ;;  %v5208_v38 = vshll.u32 %v5079_v18, 16  ;;  %v4371_v44 = vadd.f32 %v8945_v33, %v10591_v62  ;;  %v5204_v46 = vrot.slane %v5202_v29, 4 }
 0x367   : > { %v4669_v26 = vsel %vm9196_vm12, %v4661_v4, %v4668_v27  ;;  %v4932_v40 = vsel %vm10434_vm8, %v4670_v28, %v4931_v17  ;;  %v5196_v35 = vrot.slane %v5195_v34, 4  ;;  %v4362_v48 = vpop.f32.mrf.mxu0  ;;  %v5081_v54 = vld [vmem:[#allocation3 + $0x34] sm:$0xf]  ;;  %v5215_v55 = vrot.slane %v5213_v45, 4  ;;  %v5082_v56 = vld [vmem:[#allocation3 + $0x38] sm:$0x1] }
 0x368   : > { %4930 = vst.msk [vmem:[#allocation3 + $0x4c] sm:$0xf] %vm348_vm5, %v4669_v26  ;;  %4933 = vst [vmem:[#allocation3 + $0x50] sm:$0x1] %v4932_v40  ;;  %v4651_v47 = vor.u32 %v4649_v20, %v4648_v31  ;;  %v4653_v41 = vrot.slane %v4648_v31, 4  ;;  %v5210_v50 = vrot.slane %v5208_v38, 5  ;;  %v4363_v52 = vadd.f32 %v10591_v62, %v4362_v48 }
 0x369   : > { %v4455_v51 = vmax.f32 %v4371_v44, 0.0  ;;  %v5205_v53 = vor.u32 %v5204_v46, %v5200_v37  ;;  %v5201_v59 = vsel %vm9212_vm13, %v5196_v35, %v5200_v37  ;;  %v8946_v60 = vpop.f32.mrf.mxu0  ;;  %v5216_v2 = vshll.u32 %v10657_v39, 16  ;;  %v4941_v21 = vld [vmem:[#allocation3 + $0x60] sm:$0xf]  ;;  %v4934_v34 = vld [vmem:[#allocation3 + $0x54] sm:$0xf] }
 0x36a   : > { %v4652_v57 = vsel %vm9196_vm12, %v4644_v32, %v4651_v47  ;;  %v4925_v58 = vsel %vm10434_vm8, %v4653_v41, %v4924_v43  ;;  %5512 = vrot.lane.b32.xlu0 %v5201_v59, %s9079_s25  ;;  %v4453_v45 = vmax.f32 %v4363_v52, 0.0  ;;  %v4374_v61 = vadd.f32 %v8946_v60, %v10591_v62  ;;  %v5016_v8 = vld [vmem:[#allocation3 + $0x48] sm:$0xf] }
 0x36b   : > { %4923 = vst.msk [vmem:[#allocation3 + $0x40] sm:$0xf] %vm348_vm5, %v4652_v57  ;;  %4926 = vst [vmem:[#allocation3 + $0x44] sm:$0x1] %v4925_v58  ;;  %v8867_v1 = vpack.c.bf16 %v4455_v51, %v4455_v51  ;;  %v5206_v0 = vrot.slane %v5205_v53, 4  ;;  %v5218_v3 = vrot.slane %v5216_v2, 5  ;;  %v4365_v6 = vpop.f32.mrf.mxu0 }
 0x36c   : > { %v5222_v4 = vshll.u32 %v5081_v54, 16  ;;  %v5226_v5 = vshrl.u32 %v5081_v54, 16  ;;  %v5232_v7 = vshll.u32 %v5082_v56, 16  ;;  %v8865_v12 = vpack.c.bf16 %v4453_v45, %v4453_v45  ;;  %5048 = vst.msk [vmem:[#allocation5 + $0x30] sm:$0xf] %vm348_vm5, %v5016_v8 }
 0x36d   : > { %v4689_v9 = vshrl.u32 %v8867_v1, 16  ;;  %v4692_v10 = vshll.u32 %v8867_v1, 16  ;;  %v4456_v39 = vmax.f32 %v4374_v61, 0.0  ;;  %v5211_v63 = vsel %vm9212_vm13, %v5206_v0, %v5210_v50  ;;  %v5014_v16 = vld [vmem:[#allocation3 + $0x3c] sm:$0xf] }
 0x36e   : > { %v5219_v13 = vor.u32 %v5218_v3, %v5215_v55  ;;  %v5224_v14 = vrot.slane %v5222_v4, 5  ;;  %v4366_v32 = vadd.f32 %v10591_v62, %v4365_v6  ;;  %v4672_v18 = vshrl.u32 %v8865_v12, 16  ;;  %5514 = vrot.lane.b32.xlu1 %v5211_v63, %s9079_s25  ;;  %5046 = vst.msk [vmem:[#allocation5 + $0x28] sm:$0xf] %vm348_vm5, %v5014_v16  ;;  %v5083_v33 = vld [vmem:[#allocation3 + $0x3c] sm:$0xf] }
 0x36f   : > { %v4691_v17 = vrot.slane %v4689_v9, 7  ;;  %v4675_v19 = vshll.u32 %v8865_v12, 16  ;;  %v8868_v20 = vpack.c.bf16 %v4456_v39, %v4456_v39  ;;  %v5228_v25 = vrot.slane %v5226_v5, 4  ;;  %v4945_v35 = vld [vmem:[#allocation3 + $0x68] sm:$0x1] }
 0x370   : > { %v5220_v23 = vrot.slane %v5219_v13, 4  ;;  %v4454_v24 = vmax.f32 %v4366_v32, 0.0  ;;  %v5234_v27 = vrot.slane %v5232_v7, 5  ;;  %v4674_v30 = vrot.slane %v4672_v18, 7  ;;  %v5017_v58 = vld [vmem:[#allocation3 + $0x4c] sm:$0xf] }
 0x371   : > { %v4694_v28 = vor.u32 %v4692_v10, %v4691_v17  ;;  %v4695_v29 = vrot.slane %v4691_v17, 4  ;;  %v4697_v31 = vshrl.u32 %v8868_v20, 16  ;;  %v4700_v37 = vshll.u32 %v8868_v20, 16  ;;  %5049 = vst.msk [vmem:[#allocation5 + $0x34] sm:$0xf] %vm348_vm5, %v5017_v58 }
 0x372   : > { %v5225_v38 = vsel %vm9212_vm13, %v5220_v23, %v5224_v14  ;;  %v8866_v26 = vpack.c.bf16 %v4454_v24, %v4454_v24  ;;  %v5229_v40 = vor.u32 %v5228_v25, %v5224_v14  ;;  %v4677_v44 = vor.u32 %v4675_v19, %v4674_v30  ;;  %v5084_v41 = vld [vmem:[#allocation3 + $0x40] sm:$0xf]  ;;  %v5085_v61 = vld [vmem:[#allocation3 + $0x44] sm:$0x1]  ;;  %v4938_v4 = vld [vmem:[#allocation3 + $0x5c] sm:$0x1] }
 0x373   : > { %v4942_v43 = vsel %vm10605_vm6, %v4694_v28, %v4941_v21  ;;  %v4678_v46 = vrot.slane %v4674_v30, 4  ;;  %v4699_v47 = vrot.slane %v4697_v31, 7  ;;  %5516 = vrot.lane.b32.xlu0 %v5225_v38, %s9079_s25  ;;  %v5237_v52 = vshrl.u32 %v5083_v33, 16  ;;  %v5015_v57 = vld [vmem:[#allocation3 + $0x40] sm:$0xf] }
 0x374   : > { %4943 = vst [vmem:[#allocation3 + $0x60] sm:$0xf] %v4942_v43  ;;  %v4680_v48 = vshrl.u32 %v8866_v26, 16  ;;  %v4683_v50 = vshll.u32 %v8866_v26, 16  ;;  %v5230_v51 = vrot.slane %v5229_v40, 4  ;;  %v4935_v53 = vsel %vm10605_vm6, %v4677_v44, %v4934_v34 }
 0x375   : > { %v4702_v54 = vor.u32 %v4700_v37, %v4699_v47  ;;  %v4704_v55 = vrot.slane %v4699_v47, 4  ;;  %v5240_v56 = vshll.u32 %v5083_v33, 16  ;;  %4936 = vst [vmem:[#allocation3 + $0x54] sm:$0xf] %v4935_v53  ;;  %v8949_v2 = vpop.f32.mrf.mxu0  ;;  %v5239_v1 = vrot.slane %v5237_v52, 4 }
 0x376   : > { %v4682_v59 = vrot.slane %v4680_v48, 7  ;;  %v5235_v60 = vsel %vm9212_vm13, %v5230_v51, %v5234_v27  ;;  %v5246_v45 = vshll.u32 %v5084_v41, 16  ;;  %5047 = vst.msk [vmem:[#allocation5 + $0x2c] sm:$0xf] %vm348_vm5, %v5015_v57  ;;  %v4387_v5 = vadd.f32 %v8949_v2, %v10591_v62  ;;  %v5086_v7 = vld [vmem:[#allocation3 + $0x48] sm:$0xf] }
 0x377   : > { %v4703_v0 = vsel %vm9196_vm12, %v4695_v29, %v4702_v54  ;;  %v4946_v3 = vsel %vm10434_vm8, %v4704_v55, %v4945_v35  ;;  %5518 = vrot.lane.b32.xlu1 %v5235_v60, %s9079_s25  ;;  %v5242_v6 = vrot.slane %v5240_v56, 5  ;;  %v5250_v12 = vshrl.u32 %v5084_v41, 16  ;;  %v4378_v39 = vpop.f32.mrf.mxu0  ;;  %v5087_v27 = vld [vmem:[#allocation3 + $0x4c] sm:$0xf]  ;;  %v4955_v52 = vld [vmem:[#allocation3 + $0x78] sm:$0xf] }
 0x378   : > { %4944 = vst.msk [vmem:[#allocation3 + $0x64] sm:$0xf] %vm348_vm5, %v4703_v0  ;;  %4947 = vst [vmem:[#allocation3 + $0x68] sm:$0x1] %v4946_v3  ;;  %v4685_v8 = vor.u32 %v4683_v50, %v4682_v59  ;;  %v4687_v9 = vrot.slane %v4682_v59, 4  ;;  %v5248_v10 = vrot.slane %v5246_v45, 5  ;;  %v4379_v14 = vadd.f32 %v10591_v62, %v4378_v39 }
 0x379   : > { %v4459_v63 = vmax.f32 %v4387_v5, 0.0  ;;  %v5243_v13 = vor.u32 %v5242_v6, %v5239_v1  ;;  %v5256_v32 = vshll.u32 %v5085_v61, 16  ;;  %v8950_v18 = vpop.f32.mrf.mxu0  ;;  %v5252_v19 = vrot.slane %v5250_v12, 4  ;;  %v4948_v53 = vld [vmem:[#allocation3 + $0x6c] sm:$0xf] }
 0x37a   : > { %v4686_v16 = vsel %vm9196_vm12, %v4678_v46, %v4685_v8  ;;  %v4939_v17 = vsel %vm10434_vm8, %v4687_v9, %v4938_v4  ;;  %v5261_v20 = vshrl.u32 %v5086_v7, 16  ;;  %v4457_v24 = vmax.f32 %v4379_v14, 0.0  ;;  %v5088_v1 = vld [vmem:[#allocation3 + $0x50] sm:$0x1] }
 0x37b   : > { %4937 = vst.msk [vmem:[#allocation3 + $0x58] sm:$0xf] %vm348_vm5, %v4686_v16  ;;  %4940 = vst [vmem:[#allocation3 + $0x5c] sm:$0x1] %v4939_v17  ;;  %v8871_v21 = vpack.c.bf16 %v4459_v63, %v4459_v63  ;;  %v5244_v23 = vrot.slane %v5243_v13, 4  ;;  %v4390_v25 = vadd.f32 %v8950_v18, %v10591_v62  ;;  %v5253_v28 = vor.u32 %v5252_v19, %v5248_v10  ;;  %v4381_v47 = vpop.f32.mrf.mxu0 }
 0x37c   : > { %v5258_v29 = vrot.slane %v5256_v32, 5  ;;  %v5263_v30 = vrot.slane %v5261_v20, 4  ;;  %v5264_v31 = vshll.u32 %v5086_v7, 16  ;;  %v5020_v33 = vld [vmem:[#allocation3 + $0x60] sm:$0xf]  ;;  %v8869_v26 = vpack.c.bf16 %v4457_v24, %v4457_v24 }
 0x37d   : > { %v4723_v34 = vshrl.u32 %v8871_v21, 16  ;;  %v4726_v37 = vshll.u32 %v8871_v21, 16  ;;  %v5249_v38 = vsel %vm9212_vm13, %v5244_v23, %v5248_v10  ;;  %5052 = vst.msk [vmem:[#allocation5 + $0x40] sm:$0xf] %vm348_vm5, %v5020_v33  ;;  %v4460_v40 = vmax.f32 %v4390_v25, 0.0 }
 0x37e   : > { %5520 = vrot.lane.b32.xlu0 %v5249_v38, %s9079_s25  ;;  %v5254_v43 = vrot.slane %v5253_v28, 4  ;;  %v5266_v44 = vrot.slane %v5264_v31, 5  ;;  %v5270_v46 = vshll.u32 %v5087_v27, 16  ;;  %v5018_v41 = vld [vmem:[#allocation3 + $0x54] sm:$0xf]  ;;  %v4706_v48 = vshrl.u32 %v8869_v26, 16 }
 0x37f   : > { %v4725_v35 = vrot.slane %v4723_v34, 7  ;;  %v4709_v50 = vshll.u32 %v8869_v26, 16  ;;  %v5274_v51 = vshrl.u32 %v5087_v27, 16  ;;  %5050 = vst.msk [vmem:[#allocation5 + $0x38] sm:$0xf] %vm348_vm5, %v5018_v41  ;;  %v8872_v54 = vpack.c.bf16 %v4460_v40, %v4460_v40 }
 0x380   : > { %v5259_v55 = vsel %vm9212_vm13, %v5254_v43, %v5258_v29  ;;  %v5267_v56 = vor.u32 %v5266_v44, %v5263_v30  ;;  %v5272_v57 = vrot.slane %v5270_v46, 5  ;;  %v10735_v60 = vrot.slane %v4706_v48, 7  ;;  %v5021_v45 = vld [vmem:[#allocation3 + $0x64] sm:$0xf]  ;;  %v5089_v5 = vld [vmem:[#allocation3 + $0x54] sm:$0xf] }
 0x381   : > { %v4728_v58 = vor.u32 %v4726_v37, %v4725_v35  ;;  %v4729_v59 = vrot.slane %v4725_v35, 4  ;;  %5522 = vrot.lane.b32.xlu1 %v5259_v55, %s9079_s25  ;;  %v4382_v2 = vadd.f32 %v10591_v62, %v4381_v47  ;;  %v4731_v61 = vshrl.u32 %v8872_v54, 16  ;;  %5053 = vst.msk [vmem:[#allocation5 + $0x44] sm:$0xf] %vm348_vm5, %v5021_v45  ;;  %v4959_v32 = vld [vmem:[#allocation3 + $0x80] sm:$0x1] }
 0x382   : > { %v4734_v0 = vshll.u32 %v8872_v54, 16  ;;  %v5268_v3 = vrot.slane %v5267_v56, 4  ;;  %v5276_v4 = vrot.slane %v5274_v51, 4  ;;  %v4711_v7 = vor.u32 %v4709_v50, %v10735_v60  ;;  %v5019_v13 = vld [vmem:[#allocation3 + $0x58] sm:$0xf] }
 0x383   : > { %v4956_v6 = vsel %vm10605_vm6, %v4728_v58, %v4955_v52  ;;  %v4712_v8 = vrot.slane %v10735_v60, 4  ;;  %v4458_v9 = vmax.f32 %v4382_v2, 0.0  ;;  %v4733_v10 = vrot.slane %v4731_v61, 7  ;;  %v10749_v19 = vld [vmem:[#allocation3 + $0x60] sm:$0xf] }
 0x384   : > { %4957 = vst [vmem:[#allocation3 + $0x78] sm:$0xf] %v4956_v6  ;;  %v5273_v12 = vsel %vm9212_vm13, %v5268_v3, %v5272_v57  ;;  %v5277_v39 = vor.u32 %v5276_v4, %v5272_v57  ;;  %v5280_v63 = vshll.u32 %v5088_v1, 16  ;;  %v4949_v14 = vsel %vm10605_vm6, %v4711_v7, %v4948_v53  ;;  %5051 = vst.msk [vmem:[#allocation5 + $0x3c] sm:$0xf] %vm348_vm5, %v5019_v13 }
 0x385   : > { %5524 = vrot.lane.b32.xlu0 %v5273_v12, %s9079_s25  ;;  %v8870_v16 = vpack.c.bf16 %v4458_v9, %v4458_v9  ;;  %v5285_v17 = vshrl.u32 %v5089_v5, 16  ;;  %v5288_v18 = vshll.u32 %v5089_v5, 16  ;;  %4950 = vst [vmem:[#allocation3 + $0x6c] sm:$0xf] %v4949_v14  ;;  %v4736_v20 = vor.u32 %v4734_v0, %v4733_v10  ;;  %v8953_v25 = vpop.f32.mrf.mxu0  ;;  %v5090_v27 = vld [vmem:[#allocation3 + $0x58] sm:$0xf] }
 0x386   : > { %v4738_v21 = vrot.slane %v4733_v10, 4  ;;  %v5278_v23 = vrot.slane %v5277_v39, 4  ;;  %v5282_v24 = vrot.slane %v5280_v63, 5  ;;  %v4403_v30 = vadd.f32 %v8953_v25, %v10591_v62  ;;  %v5091_v33 = vld [vmem:[#allocation3 + $0x5c] sm:$0x1] }
 0x387   : > { %v4714_v28 = vshrl.u32 %v8870_v16, 16  ;;  %v4717_v29 = vshll.u32 %v8870_v16, 16  ;;  %v5287_v31 = vrot.slane %v5285_v17, 4  ;;  %v4737_v34 = vsel %vm9196_vm12, %v4729_v59, %v4736_v20  ;;  %v4394_v40 = vpop.f32.mrf.mxu0  ;;  %v4952_v41 = vld [vmem:[#allocation3 + $0x74] sm:$0x1] }
 0x388   : > { %v4960_v37 = vsel %vm10434_vm8, %v4738_v21, %v4959_v32  ;;  %v5283_v38 = vsel %vm9212_vm13, %v5278_v23, %v5282_v24  ;;  %v5290_v26 = vrot.slane %v5288_v18, 5  ;;  %4958 = vst.msk [vmem:[#allocation3 + $0x7c] sm:$0xf] %vm348_vm5, %v4737_v34  ;;  %v4463_v44 = vmax.f32 %v4403_v30, 0.0  ;;  %v5093_v7 = vld [vmem:[#allocation3 + $0x64] sm:$0xf] }
 0x389   : > { %4961 = vst [vmem:[#allocation3 + $0x80] sm:$0x1] %v4960_v37  ;;  %v4716_v43 = vrot.slane %v4714_v28, 7  ;;  %5526 = vrot.lane.b32.xlu1 %v5283_v38, %s9079_s25  ;;  %v5294_v46 = vshll.u32 %v5090_v27, 16  ;;  %v5298_v47 = vshrl.u32 %v5090_v27, 16  ;;  %v4395_v48 = vadd.f32 %v10591_v62, %v4394_v40  ;;  %v8954_v50 = vpop.f32.mrf.mxu0 }
 0x38a   : > { %v5291_v35 = vor.u32 %v5290_v26, %v5287_v31  ;;  %v5304_v51 = vshll.u32 %v5091_v33, 16  ;;  %v5309_v52 = vshrl.u32 %v10749_v19, 16  ;;  %v8875_v55 = vpack.c.bf16 %v4463_v44, %v4463_v44  ;;  %v4969_v63 = vld [vmem:[#allocation3 + $0x90] sm:$0xf]  ;;  %v5094_v24 = vld [vmem:[#allocation3 + $0x68] sm:$0x1] }
 0x38b   : > { %v4719_v53 = vor.u32 %v4717_v29, %v4716_v43  ;;  %v4721_v54 = vrot.slane %v4716_v43, 4  ;;  %v5296_v56 = vrot.slane %v5294_v46, 5  ;;  %v4461_v58 = vmax.f32 %v4395_v48, 0.0  ;;  %v5024_v2 = vld [vmem:[#allocation3 + $0x78] sm:$0xf]  ;;  %v4397_v23 = vpop.f32.mrf.mxu0 }
 0x38c   : > { %v5292_v57 = vrot.slane %v5291_v35, 4  ;;  %v4406_v59 = vadd.f32 %v8954_v50, %v10591_v62  ;;  %v5300_v60 = vrot.slane %v5298_v47, 4  ;;  %v4757_v61 = vshrl.u32 %v8875_v55, 16  ;;  %5056 = vst.msk [vmem:[#allocation5 + $0x50] sm:$0xf] %vm348_vm5, %v5024_v2 }
 0x38d   : > { %v4720_v1 = vsel %vm9196_vm12, %v4712_v8, %v4719_v53  ;;  %v4953_v45 = vsel %vm10434_vm8, %v4721_v54, %v4952_v41  ;;  %v4760_v0 = vshll.u32 %v8875_v55, 16  ;;  %v8873_v4 = vpack.c.bf16 %v4461_v58, %v4461_v58  ;;  %v5022_v9 = vld [vmem:[#allocation3 + $0x6c] sm:$0xf]  ;;  %v4962_v31 = vld [vmem:[#allocation3 + $0x84] sm:$0xf] }
 0x38e   : > { %4951 = vst.msk [vmem:[#allocation3 + $0x70] sm:$0xf] %vm348_vm5, %v4720_v1  ;;  %4954 = vst [vmem:[#allocation3 + $0x74] sm:$0x1] %v4953_v45  ;;  %v5297_v3 = vsel %vm9212_vm13, %v5292_v57, %v5296_v56  ;;  %v4464_v5 = vmax.f32 %v4406_v59, 0.0  ;;  %v5301_v6 = vor.u32 %v5300_v60, %v5296_v56  ;;  %v4759_v10 = vrot.slane %v4757_v61, 7 }
 0x38f   : > { %5528 = vrot.lane.b32.xlu0 %v5297_v3, %s9079_s25  ;;  %v5306_v8 = vrot.slane %v5304_v51, 5  ;;  %v5311_v12 = vrot.slane %v5309_v52, 4  ;;  %v5312_v39 = vshll.u32 %v10749_v19, 16  ;;  %5054 = vst.msk [vmem:[#allocation5 + $0x48] sm:$0xf] %vm348_vm5, %v5022_v9  ;;  %v4740_v13 = vshrl.u32 %v8873_v4, 16 }
 0x390   : > { %v4743_v14 = vshll.u32 %v8873_v4, 16  ;;  %v8876_v32 = vpack.c.bf16 %v4464_v5, %v4464_v5  ;;  %v5302_v16 = vrot.slane %v5301_v6, 4  ;;  %v4762_v17 = vor.u32 %v4760_v0, %v4759_v10  ;;  %v5095_v29 = vld [vmem:[#allocation3 + $0x6c] sm:$0xf]  ;;  %v5025_v38 = vld [vmem:[#allocation3 + $0x7c] sm:$0xf] }
 0x391   : > { %v4763_v18 = vrot.slane %v4759_v10, 4  ;;  %v5314_v20 = vrot.slane %v5312_v39, 5  ;;  %v5318_v21 = vshll.u32 %v5093_v7, 16  ;;  %v10775_v25 = vrot.slane %v4740_v13, 7  ;;  %5057 = vst.msk [vmem:[#allocation5 + $0x54] sm:$0xf] %vm348_vm5, %v5025_v38 }
 0x392   : > { %v4765_v27 = vshrl.u32 %v8876_v32, 16  ;;  %v4768_v28 = vshll.u32 %v8876_v32, 16  ;;  %v5307_v19 = vsel %vm9212_vm13, %v5302_v16, %v5306_v8  ;;  %v4970_v30 = vsel %vm10605_vm6, %v4762_v17, %v4969_v63  ;;  %v4973_v46 = vld [vmem:[#allocation3 + $0x98] sm:$0x1]  ;;  %v10793_v58 = vld [vmem:[%s11855_s2] ss:$0 sm:$0xff] }
 0x393   : > { %5530 = vrot.lane.b32.xlu1 %v5307_v19, %s9079_s25  ;;  %v5315_v33 = vor.u32 %v5314_v20, %v5311_v12  ;;  %v5320_v34 = vrot.slane %v5318_v21, 5  ;;  %v5322_v37 = vshrl.u32 %v5093_v7, 16  ;;  %4971 = vst [vmem:[#allocation3 + $0x90] sm:$0xf] %v4970_v30  ;;  %v4745_v26 = vor.u32 %v4743_v14, %v10775_v25 }
 0x394   : > { %v4746_v40 = vrot.slane %v10775_v25, 4  ;;  %v4767_v43 = vrot.slane %v4765_v27, 7  ;;  %v4398_v44 = vadd.f32 %v10591_v62, %v4397_v23  ;;  %v5328_v35 = vshll.u32 %v5094_v24, 16  ;;  %v4966_v23 = vld [vmem:[#allocation3 + $0x8c] sm:$0x1] }
 0x395   : > { %v5316_v47 = vrot.slane %v5315_v33, 4  ;;  %v5324_v41 = vrot.slane %v5322_v37, 4  ;;  %v5333_v48 = vshrl.u32 %v5095_v29, 16  ;;  %v4963_v50 = vsel %vm10605_vm6, %v4745_v26, %v4962_v31  ;;  %v8957_v54 = vpop.f32.mrf.mxu0  ;;  %v5096_v55 = vld [vmem:[#allocation3 + $0x70] sm:$0xf] }
 0x396   : > { %v4770_v51 = vor.u32 %v4768_v28, %v4767_v43  ;;  %v4772_v52 = vrot.slane %v4767_v43, 4  ;;  %v4462_v53 = vmax.f32 %v4398_v44, 0.0  ;;  %4964 = vst [vmem:[#allocation3 + $0x84] sm:$0xf] %v4963_v50  ;;  %v5330_v57 = vrot.slane %v5328_v35, 5 }
 0x397   : > { %v5321_v56 = vsel %vm9212_vm13, %v5316_v47, %v5320_v34  ;;  %v5325_v62 = vor.u32 %v5324_v41, %v5320_v34  ;;  %v4419_v59 = vadd.f32 %v10793_v58, %v8957_v54  ;;  %v5023_v60 = vld [vmem:[#allocation3 + $0x70] sm:$0xf]  ;;  %v5335_v61 = vrot.slane %v5333_v48, 4  ;;  %v4410_v0 = vpop.f32.mrf.mxu0  ;;  %v5097_v39 = vld [vmem:[#allocation3 + $0x74] sm:$0x1] }
 0x398   : > { %v4771_v2 = vsel %vm9196_vm12, %v4763_v18, %v4770_v51  ;;  %v4974_v1 = vsel %vm10434_vm8, %v4772_v52, %v4973_v46  ;;  %5532 = vrot.lane.b32.xlu0 %v5321_v56, %s9079_s25  ;;  %v8874_v45 = vpack.c.bf16 %v4462_v53, %v4462_v53  ;;  %5055 = vst.msk [vmem:[#allocation5 + $0x4c] sm:$0xf] %vm348_vm5, %v5023_v60  ;;  %v5336_v5 = vshll.u32 %v5095_v29, 16  ;;  %v5098_v34 = vld [vmem:[#allocation3 + $0x78] sm:$0xf] }
 0x399   : > { %4972 = vst.msk [vmem:[#allocation3 + $0x94] sm:$0xf] %vm348_vm5, %v4771_v2  ;;  %4975 = vst [vmem:[#allocation3 + $0x98] sm:$0x1] %v4974_v1  ;;  %v5326_v3 = vrot.slane %v5325_v62, 4  ;;  %v4467_v4 = vmax.f32 %v4419_v59, 0.0  ;;  %v4411_v8 = vadd.f32 %v10793_v58, %v4410_v0  ;;  %v8958_v12 = vpop.f32.mrf.mxu0 }
 0x39a   : > { %v5342_v6 = vshll.u32 %v5096_v55, 16  ;;  %v4748_v7 = vshrl.u32 %v8874_v45, 16  ;;  %v4751_v9 = vshll.u32 %v8874_v45, 16  ;;  %v5346_v10 = vshrl.u32 %v5096_v55, 16  ;;  %v5028_v21 = vld [vmem:[#allocation3 + $0x90] sm:$0xf] }
 0x39b   : > { %v5331_v63 = vsel %vm9212_vm13, %v5326_v3, %v5330_v57  ;;  %v8879_v13 = vpack.c.bf16 %v4467_v4, %v4467_v4  ;;  %v5338_v14 = vrot.slane %v5336_v5, 5  ;;  %v4465_v17 = vmax.f32 %v4411_v8, 0.0  ;;  %5060 = vst.msk [vmem:[#allocation5 + $0x60] sm:$0xf] %vm348_vm5, %v5028_v21  ;;  %v4983_v41 = vld [vmem:[#allocation3 + $0xa8] sm:$0xf] }
 0x39c   : > { %v5344_v32 = vrot.slane %v5342_v6, 5  ;;  %v4750_v16 = vrot.slane %v4748_v7, 7  ;;  %5534 = vrot.lane.b32.xlu1 %v5331_v63, %s9079_s25  ;;  %v4422_v18 = vadd.f32 %v10793_v58, %v8958_v12  ;;  %v5348_v20 = vrot.slane %v5346_v10, 4  ;;  %v5099_v50 = vld [vmem:[#allocation3 + $0x7c] sm:$0xf] }
 0x39d   : > { %v4791_v24 = vshrl.u32 %v8879_v13, 16  ;;  %v4794_v27 = vshll.u32 %v8879_v13, 16  ;;  %v5339_v28 = vor.u32 %v5338_v14, %v5335_v61  ;;  %v5352_v19 = vshll.u32 %v5097_v39, 16  ;;  %v5026_v44 = vld [vmem:[#allocation3 + $0x84] sm:$0xf]  ;;  %v4413_v61 = vpop.f32.mrf.mxu0 }
 0x39e   : > { %v4753_v29 = vor.u32 %v4751_v9, %v4750_v16  ;;  %v4755_v30 = vrot.slane %v4750_v16, 4  ;;  %v8877_v31 = vpack.c.bf16 %v4465_v17, %v4465_v17  ;;  %v4468_v33 = vmax.f32 %v4422_v18, 0.0  ;;  %5058 = vst.msk [vmem:[#allocation5 + $0x58] sm:$0xf] %vm348_vm5, %v5026_v44  ;;  %v4976_v53 = vld [vmem:[#allocation3 + $0x9c] sm:$0xf] }
 0x39f   : > { %v4793_v37 = vrot.slane %v4791_v24, 7  ;;  %v5340_v38 = vrot.slane %v5339_v28, 4  ;;  %v5349_v26 = vor.u32 %v5348_v20, %v5344_v32  ;;  %v5354_v43 = vrot.slane %v5352_v19, 5  ;;  %v5101_v0 = vld [vmem:[#allocation3 + $0x84] sm:$0xf] }
 0x3a0   : > { %v4754_v46 = vsel %vm9196_vm12, %v4746_v40, %v4753_v29  ;;  %v4967_v47 = vsel %vm10434_vm8, %v4755_v30, %v4966_v23  ;;  %v4774_v35 = vshrl.u32 %v8877_v31, 16  ;;  %v4777_v48 = vshll.u32 %v8877_v31, 16  ;;  %v5100_v40 = vld [vmem:[#allocation3 + $0x80] sm:$0x1]  ;;  %v5029_v59 = vld [vmem:[#allocation3 + $0x94] sm:$0xf] }
 0x3a1   : > { %4965 = vst.msk [vmem:[#allocation3 + $0x88] sm:$0xf] %vm348_vm5, %v4754_v46  ;;  %4968 = vst [vmem:[#allocation3 + $0x8c] sm:$0x1] %v4967_v47  ;;  %v4796_v51 = vor.u32 %v4794_v27, %v4793_v37  ;;  %v4797_v52 = vrot.slane %v4793_v37, 4  ;;  %v5345_v25 = vsel %vm9212_vm13, %v5340_v38, %v5344_v32  ;;  %v8880_v54 = vpack.c.bf16 %v4468_v33, %v4468_v33 }
 0x3a2   : > { %5536 = vrot.lane.b32.xlu0 %v5345_v25, %s9079_s25  ;;  %v10820_v55 = vrot.slane %v4774_v35, 7  ;;  %v5350_v56 = vrot.slane %v5349_v26, 4  ;;  %v5357_v62 = vshrl.u32 %v5098_v34, 16  ;;  %v5360_v57 = vshll.u32 %v5098_v34, 16  ;;  %5061 = vst.msk [vmem:[#allocation5 + $0x64] sm:$0xf] %vm348_vm5, %v5029_v59 }
 0x3a3   : > { %v4984_v60 = vsel %vm10605_vm6, %v4796_v51, %v4983_v41  ;;  %v4799_v2 = vshrl.u32 %v8880_v54, 16  ;;  %v4802_v1 = vshll.u32 %v8880_v54, 16  ;;  %v5366_v45 = vshll.u32 %v5099_v50, 16  ;;  %v4987_v39 = vld [vmem:[#allocation3 + $0xb0] sm:$0x1] }
 0x3a4   : > { %4985 = vst [vmem:[#allocation3 + $0xa8] sm:$0xf] %v4984_v60  ;;  %v4779_v3 = vor.u32 %v4777_v48, %v10820_v55  ;;  %v4780_v4 = vrot.slane %v10820_v55, 4  ;;  %v5355_v5 = vsel %vm9212_vm13, %v5350_v56, %v5354_v43  ;;  %v5359_v6 = vrot.slane %v5357_v62, 4 }
 0x3a5   : > { %v4801_v7 = vrot.slane %v4799_v2, 7  ;;  %5538 = vrot.lane.b32.xlu1 %v5355_v5, %s9079_s25  ;;  %v5362_v9 = vrot.slane %v5360_v57, 5  ;;  %v5368_v10 = vrot.slane %v5366_v45, 5  ;;  %v5370_v8 = vshrl.u32 %v5099_v50, 16  ;;  %v8961_v14 = vpop.f32.mrf.mxu0 }
 0x3a6   : > { %v4977_v12 = vsel %vm10605_vm6, %v4779_v3, %v4976_v53  ;;  %v4414_v63 = vadd.f32 %v10793_v58, %v4413_v61  ;;  %v5376_v13 = vshll.u32 %v5100_v40, 16  ;;  %v5381_v32 = vshrl.u32 %v5101_v0, 16 }
 0x3a7   : > { %4978 = vst [vmem:[#allocation3 + $0x9c] sm:$0xf] %v4977_v12  ;;  %v4804_v16 = vor.u32 %v4802_v1, %v4801_v7  ;;  %v4806_v17 = vrot.slane %v4801_v7, 4  ;;  %v5363_v18 = vor.u32 %v5362_v9, %v5359_v6  ;;  %v5372_v20 = vrot.slane %v5370_v8, 4  ;;  %v4426_v19 = vpop.f32.mrf.mxu0  ;;  %v4980_v1 = vld [vmem:[#allocation3 + $0xa4] sm:$0x1] }
 0x3a8   : > { %v4466_v21 = vmax.f32 %v4414_v63, 0.0  ;;  %v5378_v23 = vrot.slane %v5376_v13, 5  ;;  %v4435_v24 = vadd.f32 %v10793_v58, %v8961_v14  ;;  %v5102_v27 = vld [vmem:[#allocation3 + $0x88] sm:$0xf]  ;;  %v5383_v28 = vrot.slane %v5381_v32, 4 }
 0x3a9   : > { %v4805_v29 = vsel %vm9196_vm12, %v4797_v52, %v4804_v16  ;;  %v4988_v30 = vsel %vm10434_vm8, %v4806_v17, %v4987_v39  ;;  %v5364_v31 = vrot.slane %v5363_v18, 4  ;;  %v5373_v33 = vor.u32 %v5372_v20, %v5368_v10  ;;  %v8962_v43 = vpop.f32.mrf.mxu0  ;;  %v5103_v35 = vld [vmem:[#allocation3 + $0x8c] sm:$0x1]  ;;  %v5027_v25 = vld [vmem:[#allocation3 + $0x88] sm:$0xf] }
 0x3aa   : > { %4986 = vst.msk [vmem:[#allocation3 + $0xac] sm:$0xf] %vm348_vm5, %v4805_v29  ;;  %4989 = vst [vmem:[#allocation3 + $0xb0] sm:$0x1] %v4988_v30  ;;  %v8878_v34 = vpack.c.bf16 %v4466_v21, %v4466_v21  ;;  %v4471_v37 = vmax.f32 %v4435_v24, 0.0  ;;  %v5384_v38 = vshll.u32 %v5101_v0, 16  ;;  %v4427_v41 = vadd.f32 %v10793_v58, %v4426_v19 }
 0x3ab   : > { %v5390_v26 = vshll.u32 %v5102_v27, 16  ;;  %v5369_v44 = vsel %vm9212_vm13, %v5364_v31, %v5368_v10  ;;  %v5374_v46 = vrot.slane %v5373_v33, 4  ;;  %v5394_v47 = vshrl.u32 %v5102_v27, 16  ;;  %5059 = vst.msk [vmem:[#allocation5 + $0x5c] sm:$0xf] %vm348_vm5, %v5027_v25 }
 0x3ac   : > { %5540 = vrot.lane.b32.xlu0 %v5369_v44, %s9079_s25  ;;  %v4782_v48 = vshrl.u32 %v8878_v34, 16  ;;  %v4785_v50 = vshll.u32 %v8878_v34, 16  ;;  %v8883_v51 = vpack.c.bf16 %v4471_v37, %v4471_v37  ;;  %v5386_v52 = vrot.slane %v5384_v38, 5  ;;  %v5032_v62 = vld [vmem:[#allocation3 + $0xa8] sm:$0xf]  ;;  %v4429_v38 = vpop.f32.mrf.mxu0 }
 0x3ad   : > { %v5379_v53 = vsel %vm9212_vm13, %v5374_v46, %v5378_v23  ;;  %v5392_v54 = vrot.slane %v5390_v26, 5  ;;  %v4469_v40 = vmax.f32 %v4427_v41, 0.0  ;;  %v4438_v56 = vadd.f32 %v10793_v58, %v8962_v43  ;;  %5064 = vst.msk [vmem:[#allocation5 + $0x70] sm:$0xf] %vm348_vm5, %v5032_v62  ;;  %v4997_v8 = vld [vmem:[#allocation3 + $0xc0] sm:$0xf] }
 0x3ae   : > { %v4784_v57 = vrot.slane %v4782_v48, 7  ;;  %5542 = vrot.lane.b32.xlu1 %v5379_v53, %s9079_s25  ;;  %v4825_v59 = vshrl.u32 %v8883_v51, 16  ;;  %v4828_v60 = vshll.u32 %v8883_v51, 16  ;;  %v5387_v2 = vor.u32 %v5386_v52, %v5383_v28  ;;  %v5030_v10 = vld [vmem:[#allocation3 + $0x9c] sm:$0xf] }
 0x3af   : > { %v8881_v45 = vpack.c.bf16 %v4469_v40, %v4469_v40  ;;  %v4472_v61 = vmax.f32 %v4438_v56, 0.0  ;;  %v5396_v0 = vrot.slane %v5394_v47, 4  ;;  %v5400_v3 = vshll.u32 %v5103_v35, 16  ;;  %v5104_v13 = vld [vmem:[#allocation3 + $0x90] sm:$0xf] }
 0x3b0   : > { %v4787_v5 = vor.u32 %v4785_v50, %v4784_v57  ;;  %v4789_v6 = vrot.slane %v4784_v57, 4  ;;  %v4827_v7 = vrot.slane %v4825_v59, 7  ;;  %v5388_v9 = vrot.slane %v5387_v2, 4  ;;  %5062 = vst.msk [vmem:[#allocation5 + $0x68] sm:$0xf] %vm348_vm5, %v5030_v10 }
 0x3b1   : > { %v4808_v12 = vshrl.u32 %v8881_v45, 16  ;;  %v8884_v39 = vpack.c.bf16 %v4472_v61, %v4472_v61  ;;  %v5397_v63 = vor.u32 %v5396_v0, %v5392_v54  ;;  %v4811_v17 = vshll.u32 %v8881_v45, 16  ;;  %v4990_v18 = vld [vmem:[#allocation3 + $0xb4] sm:$0xf]  ;;  %v5033_v27 = vld [vmem:[#allocation3 + $0xac] sm:$0xf] }
 0x3b2   : > { %v4788_v14 = vsel %vm9196_vm12, %v4780_v4, %v4787_v5  ;;  %v4981_v32 = vsel %vm10434_vm8, %v4789_v6, %v4980_v1  ;;  %v4830_v16 = vor.u32 %v4828_v60, %v4827_v7  ;;  %v5105_v20 = vld [vmem:[#allocation3 + $0x94] sm:$0xf]  ;;  %v4831_v21 = vrot.slane %v4827_v7, 4  ;;  %v5001_v28 = vld [vmem:[#allocation3 + $0xc8] sm:$0x1] }
 0x3b3   : > { %4979 = vst.msk [vmem:[#allocation3 + $0xa0] sm:$0xf] %vm348_vm5, %v4788_v14  ;;  %4982 = vst [vmem:[#allocation3 + $0xa4] sm:$0x1] %v4981_v32  ;;  %v5393_v23 = vsel %vm9212_vm13, %v5388_v9, %v5392_v54  ;;  %v10859_v24 = vrot.slane %v4808_v12, 7  ;;  %v4833_v55 = vshrl.u32 %v8884_v39, 16  ;;  %v4430_v25 = vadd.f32 %v10793_v58, %v4429_v38 }
 0x3b4   : > { %v4998_v4 = vsel %vm10605_vm6, %v4830_v16, %v4997_v8  ;;  %5544 = vrot.lane.b32.xlu0 %v5393_v23, %s9079_s25  ;;  %v5398_v19 = vrot.slane %v5397_v63, 4  ;;  %v5402_v29 = vrot.slane %v5400_v3, 5  ;;  %v5405_v30 = vshrl.u32 %v5104_v13, 16  ;;  %5065 = vst.msk [vmem:[#allocation5 + $0x74] sm:$0xf] %vm348_vm5, %v5033_v27 }
 0x3b5   : > { %4999 = vst [vmem:[#allocation3 + $0xc0] sm:$0xf] %v4998_v4  ;;  %v4813_v31 = vor.u32 %v4811_v17, %v10859_v24  ;;  %v4835_v33 = vrot.slane %v4833_v55, 7  ;;  %v4836_v34 = vshll.u32 %v8884_v39, 16  ;;  %v5408_v37 = vshll.u32 %v5104_v13, 16 }
 0x3b6   : > { %v5106_v26 = vld [vmem:[#allocation3 + $0x98] sm:$0x1]  ;;  %v5403_v43 = vsel %vm9212_vm13, %v5398_v19, %v5402_v29  ;;  %v5407_v44 = vrot.slane %v5405_v30, 4  ;;  %v5414_v46 = vshll.u32 %v5105_v20, 16  ;;  %v5418_v47 = vshrl.u32 %v5105_v20, 16 }
 0x3b7   : > { %v5107_v41 = vld [vmem:[#allocation3 + $0x9c] sm:$0xf]  ;;  %v4991_v35 = vsel %vm10605_vm6, %v4813_v31, %v4990_v18  ;;  %v4838_v48 = vor.u32 %v4836_v34, %v4835_v33  ;;  %v4840_v50 = vrot.slane %v4835_v33, 4  ;;  %5546 = vrot.lane.b32.xlu1 %v5403_v43, %s9079_s25  ;;  %v5410_v51 = vrot.slane %v5408_v37, 5  ;;  %v5110_v57 = vld [vmem:[#allocation3 + $0xa8] sm:$0xf] }
 0x3b8   : > { %4992 = vst [vmem:[#allocation3 + $0xb4] sm:$0xf] %v4991_v35  ;;  %v5416_v52 = vrot.slane %v5414_v46, 5  ;;  %v5420_v53 = vrot.slane %v5418_v47, 4  ;;  %v5424_v54 = vshll.u32 %v5106_v26, 16  ;;  %v5429_v15 = vshrl.u32 %v5107_v41, 16 }
 0x3b9   : > { %v4839_v40 = vsel %vm9196_vm12, %v4831_v21, %v4838_v48  ;;  %v5002_v56 = vsel %vm10434_vm8, %v4840_v50, %v5001_v28  ;;  %v5411_v62 = vor.u32 %v5410_v51, %v5407_v44  ;;  %v4470_v59 = vmax.f32 %v4430_v25, 0.0  ;;  %v5111_v63 = vld [vmem:[#allocation3 + $0xac] sm:$0xf]  ;;  %v4994_v21 = vld [vmem:[#allocation3 + $0xbc] sm:$0x1] }
 0x3ba   : > { %5000 = vst.msk [vmem:[#allocation3 + $0xc4] sm:$0xf] %vm348_vm5, %v4839_v40  ;;  %5003 = vst [vmem:[#allocation3 + $0xc8] sm:$0x1] %v5002_v56  ;;  %v5421_v60 = vor.u32 %v5420_v53, %v5416_v52  ;;  %v5426_v2 = vrot.slane %v5424_v54, 5  ;;  %v5432_v45 = vshll.u32 %v5107_v41, 16 }
 0x3bb   : > { %v5108_v1 = vld [vmem:[#allocation3 + $0xa0] sm:$0xf]  ;;  %v5412_v58 = vrot.slane %v5411_v62, 4  ;;  %v5431_v61 = vrot.slane %v5429_v15, 4  ;;  %v5109_v5 = vld [vmem:[#allocation3 + $0xa4] sm:$0x1]  ;;  %v8882_v6 = vpack.c.bf16 %v4470_v59, %v4470_v59 }
 0x3bc   : > { %v5438_v0 = vshll.u32 %v5108_v1, 16  ;;  %v5442_v3 = vshrl.u32 %v5108_v1, 16  ;;  %v5422_v7 = vrot.slane %v5421_v60, 4  ;;  %v5434_v9 = vrot.slane %v5432_v45, 5  ;;  %v5031_v18 = vld [vmem:[#allocation3 + $0xa0] sm:$0xf] }
 0x3bd   : > { %v5448_v10 = vshll.u32 %v5109_v5, 16  ;;  %v5417_v8 = vsel %vm9212_vm13, %v5412_v58, %v5416_v52  ;;  %v5453_v13 = vshrl.u32 %v5110_v57, 16  ;;  %v4814_v14 = vrot.slane %v10859_v24, 4  ;;  %5063 = vst.msk [vmem:[#allocation5 + $0x6c] sm:$0xf] %vm348_vm5, %v5031_v18 }
 0x3be   : > { %v5440_v12 = vrot.slane %v5438_v0, 5  ;;  %v5444_v39 = vrot.slane %v5442_v3, 4  ;;  %5548 = vrot.lane.b32.xlu0 %v5417_v8, %s9079_s25  ;;  %v4816_v32 = vshrl.u32 %v8882_v6, 16  ;;  %v5427_v16 = vsel %vm9212_vm13, %v5422_v7, %v5426_v2  ;;  %v5112_v30 = vld [vmem:[#allocation3 + $0xb0] sm:$0x1] }
 0x3bf   : > { %v5435_v17 = vor.u32 %v5434_v9, %v5431_v61  ;;  %v4819_v20 = vshll.u32 %v8882_v6, 16  ;;  %5550 = vrot.lane.b32.xlu1 %v5427_v16, %s9079_s25  ;;  %v5455_v55 = vrot.slane %v5453_v13, 4  ;;  %v5456_v27 = vshll.u32 %v5110_v57, 16  ;;  %v5113_v4 = vld [vmem:[#allocation3 + $0xb4] sm:$0xf] }
 0x3c0   : > { %v5445_v23 = vor.u32 %v5444_v39, %v5440_v12  ;;  %v4818_v28 = vrot.slane %v4816_v32, 7  ;;  %v5462_v19 = vshll.u32 %v5111_v63, 16  ;;  %v5466_v29 = vshrl.u32 %v5111_v63, 16  ;;  %v5034_v38 = vld [vmem:[#allocation3 + $0xb4] sm:$0xf] }
 0x3c1   : > { %v5436_v24 = vrot.slane %v5435_v17, 4  ;;  %v5450_v33 = vrot.slane %v5448_v10, 5  ;;  %v5458_v34 = vrot.slane %v5456_v27, 5  ;;  %v5477_v37 = vshrl.u32 %v5113_v4, 16  ;;  %5066 = vst.msk [vmem:[#allocation5 + $0x78] sm:$0xf] %vm348_vm5, %v5034_v38 }
 0x3c2   : > { %v5446_v31 = vrot.slane %v5445_v23, 4  ;;  %v4821_v26 = vor.u32 %v4819_v20, %v4818_v28  ;;  %v4823_v43 = vrot.slane %v4818_v28, 4  ;;  %v5464_v46 = vrot.slane %v5462_v19, 5  ;;  %v5629_v60 = vld [vmem:[#allocation3] sm:$0xe] }
 0x3c3   : > { %v5441_v44 = vsel %vm9212_vm13, %v5436_v24, %v5440_v12  ;;  %v5459_v41 = vor.u32 %v5458_v34, %v5455_v55  ;;  %v5468_v35 = vrot.slane %v5466_v29, 4  ;;  %v5472_v48 = vshll.u32 %v5112_v30, 16  ;;  %v5630_v45 = vld [vmem:[#allocation3 + $0x4] sm:$0xf]  ;;  %v5631_v8 = vld [vmem:[#allocation3 + $0x8] sm:$0x1] }
 0x3c4   : > { %5552 = vrot.lane.b32.xlu0 %v5441_v44, %s9079_s25  ;;  %v5451_v47 = vsel %vm9212_vm13, %v5446_v31, %v5450_v33  ;;  %v4822_v50 = vsel %vm9196_vm12, %v4814_v14, %v4821_v26  ;;  %v4995_v51 = vsel %vm10434_vm8, %v4823_v43, %v4994_v21  ;;  %v5480_v52 = vshll.u32 %v5113_v4, 16  ;;  %v5633_v32 = vld [vmem:[#allocation3 + $0x10] sm:$0xf]  ;;  %v5632_v21 = vld [vmem:[#allocation3 + $0xc] sm:$0xe] }
 0x3c5   : > { %5554 = vrot.lane.b32.xlu1 %v5451_v47, %s9079_s25  ;;  %4993 = vst.msk [vmem:[#allocation3 + $0xb8] sm:$0xf] %vm348_vm5, %v4822_v50  ;;  %4996 = vst [vmem:[#allocation3 + $0xbc] sm:$0x1] %v4995_v51  ;;  %v5460_v25 = vrot.slane %v5459_v41, 4  ;;  %v5469_v53 = vor.u32 %v5468_v35, %v5464_v46  ;;  %v5479_v54 = vrot.slane %v5477_v37, 4 }
 0x3c6   : > { %v5482_v40 = vrot.slane %v5480_v52, 5  ;;  %v5474_v15 = vrot.slane %v5472_v48, 5  ;;  %v8763_v3 = vrot.slane %v5629_v60, 9  ;;  %v5727_v10 = vrot.slane %v5630_v45, 5  ;;  %v5636_v4 = vld [vmem:[#allocation3 + $0x1c] sm:$0xf] }
 0x3c7   : > { %v5465_v56 = vsel %vm9212_vm13, %v5460_v25, %v5464_v46  ;;  %v5470_v62 = vrot.slane %v5469_v53, 4  ;;  %v5730_v14 = vrot.slane %v5631_v8, 5  ;;  %v5734_v55 = vrot.slane %v5633_v32, 5  ;;  %v5634_v19 = vld [vmem:[#allocation3 + $0x14] sm:$0x1] }
 0x3c8   : > { %5556 = vrot.lane.b32.xlu0 %v5465_v56, %s9079_s25  ;;  %v5483_v57 = vor.u32 %v5482_v40, %v5479_v54  ;;  %v5728_v18 = vsel %vm9508_vm1, %v8763_v3, %v5727_v10  ;;  %v5729_v20 = vrot.slane %v5727_v10, 4  ;;  %v8764_v24 = vrot.slane %v5632_v21, 9  ;;  %v5635_v29 = vld [vmem:[#allocation3 + $0x18] sm:$0xe]  ;;  %v5639_v34 = vld [vmem:[#allocation3 + $0x28] sm:$0xf] }
 0x3c9   : > { %v5475_v42 = vsel %vm9212_vm13, %v5470_v62, %v5474_v15  ;;  %v5505_v59 = vpop.permute.xlu0 %5504  ;;  %v5736_v31 = vrot.slane %v5734_v55, 4  ;;  %v5741_v33 = vrot.slane %v5636_v4, 5  ;;  %v5737_v37 = vrot.slane %v5634_v19, 5  ;;  %v5637_v26 = vld [vmem:[#allocation3 + $0x20] sm:$0x1] }
 0x3ca   : > { %5558 = vrot.lane.b32.xlu1 %v5475_v42, %s9079_s25  ;;  %5599 = vst.msk [vmem:[#allocation5 + $0x8] sm:$0xf] %vm5596_vm4, %v5505_v59  ;;  %v5484_v58 = vrot.slane %v5483_v57, 4  ;;  %v5731_v28 = vsel %vm9508_vm1, %v5729_v20, %v5730_v14  ;;  %v5735_v30 = vsel %vm9508_vm1, %v8764_v24, %v5734_v55  ;;  %v8765_v38 = vrot.slane %v5635_v29, 9  ;;  %v5638_v43 = vld [vmem:[#allocation3 + $0x24] sm:$0xe] }
 0x3cb   : > { %v5738_v44 = vsel %vm9508_vm1, %v5736_v31, %v5737_v37  ;;  %v5743_v47 = vrot.slane %v5741_v33, 4  ;;  %v5748_v41 = vrot.slane %v5639_v34, 5  ;;  %v5642_v48 = vld [vmem:[#allocation3 + $0x34] sm:$0xf]  ;;  %v5744_v50 = vrot.slane %v5637_v26, 5 }
 0x3cc   : > { %v5114_v2 = vld [vmem:[#allocation3 + $0xb8] sm:$0xf]  ;;  %v5115_v1 = vld [vmem:[#allocation3 + $0xbc] sm:$0x1]  ;;  %v5742_v46 = vsel %vm9508_vm1, %v8765_v38, %v5741_v33  ;;  %v8766_v51 = vrot.slane %v5638_v43, 9  ;;  %v5755_v56 = vrot.slane %v5642_v48, 5 }
 0x3cd   : > { %v5486_v61 = vshll.u32 %v5114_v2, 16  ;;  %v5490_v0 = vshrl.u32 %v5114_v2, 16  ;;  %v5035_v5 = vld [vmem:[#allocation3 + $0xb8] sm:$0xf]  ;;  %v5496_v9 = vshll.u32 %v5115_v1, 16  ;;  %v5745_v53 = vsel %vm9508_vm1, %v5743_v47, %v5744_v50 }
 0x3ce   : > { %5067 = vst.msk [vmem:[#allocation5 + $0x7c] sm:$0xf] %vm348_vm5, %v5035_v5  ;;  %v5640_v52 = vld [vmem:[#allocation3 + $0x2c] sm:$0x1]  ;;  %v5641_v25 = vld [vmem:[#allocation3 + $0x30] sm:$0xe]  ;;  %v5749_v54 = vsel %vm9508_vm1, %v8766_v51, %v5748_v41 }
 0x3cf   : > { %v5488_v6 = vrot.slane %v5486_v61, 5  ;;  %v5492_v7 = vrot.slane %v5490_v0, 4  ;;  %v5498_v17 = vrot.slane %v5496_v9, 5  ;;  %v5750_v40 = vrot.slane %v5748_v41, 4  ;;  %v5645_v15 = vld [vmem:[#allocation3 + $0x40] sm:$0xf] }
 0x3d0   : > { %v5507_v63 = vpop.permute.xlu1 %5506  ;;  %v5509_v13 = vpop.permute.xlu0 %5508  ;;  %v5751_v42 = vrot.slane %v5640_v52, 5  ;;  %v8767_v57 = vrot.slane %v5641_v25, 9  ;;  %v5643_v59 = vld [vmem:[#allocation3 + $0x38] sm:$0x1]  ;;  %v5644_v60 = vld [vmem:[#allocation3 + $0x3c] sm:$0xe] }
 0x3d1   : > { %v5489_v12 = vsel %vm9212_vm13, %v5484_v58, %v5488_v6  ;;  %v5493_v39 = vor.u32 %v5492_v7, %v5488_v6  ;;  %5600 = vst.msk [vmem:[#allocation5 + $0xc] sm:$0xf] %vm5596_vm4, %v5507_v63  ;;  %5601 = vst.msk [vmem:[#allocation5 + $0x10] sm:$0xf] %vm5596_vm4, %v5509_v13  ;;  %v5757_v58 = vrot.slane %v5755_v56, 4  ;;  %v5762_v61 = vrot.slane %v5645_v15, 5 }
 0x3d2   : > { %5560 = vrot.lane.b32.xlu0 %v5489_v12, %s9079_s25  ;;  %v5752_v2 = vsel %vm9508_vm1, %v5750_v40, %v5751_v42  ;;  %v5756_v1 = vsel %vm9508_vm1, %v8767_v57, %v5755_v56  ;;  %v5648_v0 = vld [vmem:[#allocation3 + $0x4c] sm:$0xf]  ;;  %v5758_v3 = vrot.slane %v5643_v59, 5  ;;  %v8768_v5 = vrot.slane %v5644_v60, 9  ;;  %v5646_v6 = vld [vmem:[#allocation3 + $0x44] sm:$0x1] }
 0x3d3   : > { %v5494_v16 = vrot.slane %v5493_v39, 4  ;;  %v5647_v7 = vld [vmem:[#allocation3 + $0x48] sm:$0xe]  ;;  %v5764_v12 = vrot.slane %v5762_v61, 4  ;;  %v5769_v39 = vrot.slane %v5648_v0, 5  ;;  %v5765_v13 = vrot.slane %v5646_v6, 5 }
 0x3d4   : > { %v5759_v9 = vsel %vm9508_vm1, %v5757_v58, %v5758_v3  ;;  %v5763_v10 = vsel %vm9508_vm1, %v8768_v5, %v5762_v61  ;;  %v5651_v63 = vld [vmem:[#allocation3 + $0x58] sm:$0xf]  ;;  %v8769_v14 = vrot.slane %v5647_v7, 9  ;;  %v5649_v32 = vld [vmem:[#allocation3 + $0x50] sm:$0x1]  ;;  %vm5933_vm5 = vcmask 191616  }
 0x3d5   : > { %v5499_v23 = vsel %vm9212_vm13, %v5494_v16, %v5498_v17  ;;  %v5511_v27 = vpop.permute.xlu1 %5510  ;;  %v5650_v16 = vld [vmem:[#allocation3 + $0x54] sm:$0xe]  ;;  %v5766_v17 = vsel %vm9508_vm1, %v5764_v12, %v5765_v13  ;;  %v5771_v20 = vrot.slane %v5769_v39, 4  ;;  %v5776_v21 = vrot.slane %v5651_v63, 5  ;;  %v5653_v24 = vld [vmem:[#allocation3 + $0x60] sm:$0xe] }
 0x3d6   : > { %5562 = vrot.lane.b32.xlu1 %v5499_v23, %s9079_s25  ;;  %5837 = vrot.lane.b32.xlu0 %v5728_v18, %s9081_s27  ;;  %5602 = vst.msk [vmem:[#allocation5 + $0x14] sm:$0xf] %vm5596_vm4, %v5511_v27  ;;  %v5770_v18 = vsel %vm9508_vm1, %v8769_v14, %v5769_v39  ;;  %v5654_v23 = vld [vmem:[#allocation3 + $0x64] sm:$0xf]  ;;  %v5772_v55 = vrot.slane %v5649_v32, 5  ;;  %v8770_v27 = vrot.slane %v5650_v16, 9 }
 0x3d7   : > { %v5783_v31 = vrot.slane %v5654_v23, 5  ;;  %v5657_v33 = vld [vmem:[#allocation3 + $0x70] sm:$0xf]  ;;  %v8771_v37 = vrot.slane %v5653_v24, 9  ;;  %v5655_v26 = vld [vmem:[#allocation3 + $0x68] sm:$0x1] }
 0x3d8   : > { %v5773_v19 = vsel %vm9508_vm1, %v5771_v20, %v5772_v55  ;;  %v5777_v29 = vsel %vm9508_vm1, %v8770_v27, %v5776_v21  ;;  %v5656_v43 = vld [vmem:[#allocation3 + $0x6c] sm:$0xe]  ;;  %v5790_v41 = vrot.slane %v5657_v33, 5  ;;  %v5786_v50 = vrot.slane %v5655_v26, 5  ;;  %v5658_v52 = vld [vmem:[#allocation3 + $0x74] sm:$0x1] }
 0x3d9   : > { %v5785_v47 = vrot.slane %v5783_v31, 4  ;;  %v8772_v51 = vrot.slane %v5656_v43, 9  ;;  %v5659_v25 = vld [vmem:[#allocation3 + $0x78] sm:$0xe]  ;;  %v5793_v42 = vrot.slane %v5658_v52, 5  ;;  %vm8353_vm12 = vcmask 1043456  }
 0x3da   : > { %5839 = vrot.lane.b32.xlu1 %v5731_v28, %s9081_s27  ;;  %5841 = vrot.lane.b32.xlu0 %v5735_v30, %s9081_s27  ;;  %v5652_v28 = vld [vmem:[#allocation3 + $0x5c] sm:$0x1]  ;;  %v5778_v30 = vrot.slane %v5776_v21, 4  ;;  %v5792_v40 = vrot.slane %v5790_v41, 4  ;;  %v8773_v57 = vrot.slane %v5659_v25, 9  ;;  %s9088_s25 = smov 56  }
 0x3db   : > { %v5779_v34 = vrot.slane %v5652_v28, 5  ;;  %v5661_v59 = vld [vmem:[#allocation3 + $0x80] sm:$0x1]  ;;  %v5662_v60 = vld [vmem:[#allocation3 + $0x84] sm:$0xe] }
 0x3dc   : > { %v5513_v35 = vpop.permute.xlu0 %5512  ;;  %v5666_v61 = vld [vmem:[#allocation3 + $0x94] sm:$0xf]  ;;  %v5800_v0 = vrot.slane %v5661_v59, 5  ;;  %v8774_v3 = vrot.slane %v5662_v60, 9  ;;  %v5664_v5 = vld [vmem:[#allocation3 + $0x8c] sm:$0x1] }
 0x3dd   : > { %5603 = vst.msk [vmem:[#allocation5 + $0x18] sm:$0xf] %vm5596_vm4, %v5513_v35  ;;  %v5660_v35 = vld [vmem:[#allocation3 + $0x7c] sm:$0xf]  ;;  %v5665_v6 = vld [vmem:[#allocation3 + $0x90] sm:$0xe] }
 0x3de   : > { %5843 = vrot.lane.b32.xlu1 %v5738_v44, %s9081_s27  ;;  %5845 = vrot.lane.b32.xlu0 %v5742_v46, %s9081_s27  ;;  %v5780_v44 = vsel %vm9508_vm1, %v5778_v30, %v5779_v34  ;;  %v5784_v46 = vsel %vm9508_vm1, %v8771_v37, %v5783_v31  ;;  %v5797_v56 = vrot.slane %v5660_v35, 5  ;;  %v5811_v12 = vrot.slane %v5666_v61, 5  ;;  %v5669_v39 = vld [vmem:[#allocation3 + $0xa0] sm:$0xf]  ;;  %v5667_v14 = vld [vmem:[#allocation3 + $0x98] sm:$0x1] }
 0x3df   : > { %v5807_v63 = vrot.slane %v5664_v5, 5  ;;  %v8775_v13 = vrot.slane %v5665_v6, 9  ;;  %v5668_v32 = vld [vmem:[#allocation3 + $0x9c] sm:$0xe]  ;;  %v5818_v21 = vrot.slane %v5669_v39, 5  ;;  %v5814_v55 = vrot.slane %v5667_v14, 5 }
 0x3e0   : > { %v5515_v62 = vpop.permute.xlu1 %5514  ;;  %v5813_v20 = vrot.slane %v5811_v12, 4  ;;  %v5672_v23 = vld [vmem:[#allocation3 + $0xac] sm:$0xf]  ;;  %v8776_v27 = vrot.slane %v5668_v32, 9  ;;  %v5671_v28 = vld [vmem:[#allocation3 + $0xa8] sm:$0xe] }
 0x3e1   : > { %5604 = vst.msk [vmem:[#allocation5 + $0x1c] sm:$0xf] %vm5596_vm4, %v5515_v62  ;;  %v5663_v62 = vld [vmem:[#allocation3 + $0x88] sm:$0xf]  ;;  %v5825_v30 = vrot.slane %v5672_v23, 5  ;;  %v8777_v37 = vrot.slane %v5671_v28, 9 }
 0x3e2   : > { %5847 = vrot.lane.b32.xlu1 %v5745_v53, %s9081_s27  ;;  %5849 = vrot.lane.b32.xlu0 %v5749_v54, %s9081_s27  ;;  %v5787_v53 = vsel %vm9508_vm1, %v5785_v47, %v5786_v50  ;;  %v5791_v54 = vsel %vm9508_vm1, %v8772_v51, %v5790_v41  ;;  %v5804_v58 = vrot.slane %v5663_v62, 5  ;;  %v5815_v24 = vsel %vm9508_vm1, %v5813_v20, %v5814_v55  ;;  %v5675_v33 = vld [vmem:[#allocation3 + $0xb8] sm:$0xf]  ;;  %v5674_v26 = vld [vmem:[#allocation3 + $0xb4] sm:$0xe] }
 0x3e3   : > { %v5832_v47 = vrot.slane %v5675_v33, 5  ;;  %v5676_v50 = vld [vmem:[#allocation3 + $0xbc] sm:$0x1]  ;;  %v5970_v59 = vld [vmem:[#allocation3 + $0x24] sm:$0xf] }
 0x3e4   : > { %v5974_v61 = vld [vmem:[#allocation3 + $0x3c] sm:$0xf]  ;;  %v5975_v5 = vld [vmem:[#allocation3 + $0x40] sm:$0xf]  ;;  %v5976_v6 = vld [vmem:[#allocation3 + $0x48] sm:$0xf] }
 0x3e5   : > { %v5517_v45 = vpop.permute.xlu0 %5516  ;;  %v5834_v25 = vrot.slane %v5832_v47, 4  ;;  %v5980_v39 = vld [vmem:[#allocation3 + $0x60] sm:$0xf]  ;;  %v5982_v14 = vld [vmem:[#allocation3 + $0x6c] sm:$0xf] }
 0x3e6   : > { %5851 = vrot.lane.b32.xlu1 %v5752_v2, %s9081_s27  ;;  %5853 = vrot.lane.b32.xlu0 %v5756_v1, %s9081_s27  ;;  %5605 = vst.msk [vmem:[#allocation5 + $0x20] sm:$0xf] %vm5596_vm4, %v5517_v45  ;;  %v5794_v2 = vsel %vm9508_vm1, %v5792_v40, %v5793_v42  ;;  %v5798_v1 = vsel %vm9508_vm1, %v8773_v57, %v5797_v56  ;;  %v5799_v45 = vrot.slane %v5797_v56, 4  ;;  %v5966_v56 = vld [vmem:[#allocation3 + $0xc] sm:$0xf] }
 0x3e7   : > { %v5968_v42 = vld [vmem:[#allocation3 + $0x18] sm:$0xf]  ;;  %v5969_v57 = vld [vmem:[#allocation3 + $0x1c] sm:$0xf]  ;;  %v5983_v20 = vld [vmem:[#allocation3 + $0x70] sm:$0xf] }
 0x3e8   : > { %v5801_v7 = vsel %vm9508_vm1, %v5799_v45, %v5800_v0  ;;  %v5972_v45 = vld [vmem:[#allocation3 + $0x30] sm:$0xf]  ;;  %v5985_v28 = vld [vmem:[#allocation3 + $0x7c] sm:$0xf] }
 0x3e9   : > { %v5519_v8 = vpop.permute.xlu1 %5518 }
 0x3ea   : > { %5855 = vrot.lane.b32.xlu1 %v5759_v9, %s9081_s27  ;;  %5857 = vrot.lane.b32.xlu0 %v5763_v10, %s9081_s27  ;;  %5606 = vst.msk [vmem:[#allocation5 + $0x24] sm:$0xf] %vm5596_vm4, %v5519_v8  ;;  %v5805_v9 = vsel %vm9508_vm1, %v8774_v3, %v5804_v58  ;;  %v5806_v8 = vrot.slane %v5804_v58, 4  ;;  %v5973_v58 = vld [vmem:[#allocation3 + $0x34] sm:$0xf] }
 0x3ec   : > { %v5808_v16 = vsel %vm9508_vm1, %v5806_v8, %v5807_v63 }
 0x3ee   : > { %5859 = vrot.lane.b32.xlu1 %v5766_v17, %s9081_s27  ;;  %5861 = vrot.lane.b32.xlu0 %v5770_v18, %s9081_s27  ;;  %v5812_v17 = vsel %vm9508_vm1, %v8775_v13, %v5811_v12  ;;  %v5979_v12 = vld [vmem:[#allocation3 + $0x58] sm:$0xf]  ;;  %v5981_v13 = vld [vmem:[#allocation3 + $0x64] sm:$0xf] }
 0x3f0   : > { %v5521_v4 = vpop.permute.xlu0 %5520 }
 0x3f1   : > { %5607 = vst.msk [vmem:[#allocation5 + $0x28] sm:$0xf] %vm5596_vm4, %v5521_v4  ;;  %v5670_v4 = vld [vmem:[#allocation3 + $0xa4] sm:$0x1] }
 0x3f2   : > { %5863 = vrot.lane.b32.xlu1 %v5773_v19, %s9081_s27  ;;  %5865 = vrot.lane.b32.xlu0 %v5777_v29, %s9081_s27  ;;  %v5819_v19 = vsel %vm9508_vm1, %v8776_v27, %v5818_v21  ;;  %v5820_v29 = vrot.slane %v5818_v21, 4  ;;  %v5821_v34 = vrot.slane %v5670_v4, 5  ;;  %v5984_v21 = vld [vmem:[#allocation3 + $0x78] sm:$0xf] }
 0x3f3   : > { %v5523_v38 = vpop.permute.xlu1 %5522 }
 0x3f4   : > { %5608 = vst.msk [vmem:[#allocation5 + $0x2c] sm:$0xf] %vm5596_vm4, %v5523_v38  ;;  %v5673_v38 = vld [vmem:[#allocation3 + $0xb0] sm:$0x1]  ;;  %v5822_v43 = vsel %vm9508_vm1, %v5820_v29, %v5821_v34 }
 0x3f5   : > { %v5828_v35 = vrot.slane %v5673_v38, 5  ;;  %v5988_v38 = vld [vmem:[#allocation3 + $0x90] sm:$0xf] }
 0x3f6   : > { %5867 = vrot.lane.b32.xlu1 %v5780_v44, %s9081_s27  ;;  %5869 = vrot.lane.b32.xlu0 %v5784_v46, %s9081_s27  ;;  %v5826_v44 = vsel %vm9508_vm1, %v8777_v37, %v5825_v30  ;;  %v5827_v46 = vrot.slane %v5825_v30, 4  ;;  %v5986_v30 = vld [vmem:[#allocation3 + $0x84] sm:$0xf]  ;;  %v6163_v37 = vld [vmem:[#allocation3 + $0x1c] sm:$0xf] }
 0x3f7   : > { %v5525_v48 = vpop.permute.xlu0 %5524 }
 0x3f8   : > { %5609 = vst.msk [vmem:[#allocation5 + $0x30] sm:$0xf] %vm5596_vm4, %v5525_v48  ;;  %v8778_v48 = vrot.slane %v5674_v26, 9  ;;  %v5829_v51 = vsel %vm9508_vm1, %v5827_v46, %v5828_v35  ;;  %v5987_v46 = vld [vmem:[#allocation3 + $0x88] sm:$0xf]  ;;  %v6241_v35 = vshll.u32 %v6163_v37, 16 }
 0x3fa   : > { %5871 = vrot.lane.b32.xlu1 %v5787_v53, %s9081_s27  ;;  %5873 = vrot.lane.b32.xlu0 %v5791_v54, %s9081_s27  ;;  %v5833_v52 = vsel %vm9508_vm1, %v8778_v48, %v5832_v47  ;;  %v5835_v53 = vrot.slane %v5676_v50, 5  ;;  %v6245_v48 = vshrl.u32 %v6163_v37, 16 }
 0x3fb   : > { %v5527_v15 = vpop.permute.xlu1 %5526 }
 0x3fc   : > { %5610 = vst.msk [vmem:[#allocation5 + $0x34] sm:$0xf] %vm5596_vm4, %v5527_v15  ;;  %v5836_v40 = vsel %vm9508_vm1, %v5834_v25, %v5835_v53  ;;  %v5967_v15 = vld [vmem:[#allocation3 + $0x10] sm:$0xf]  ;;  %v5990_v53 = vld [vmem:[#allocation3 + $0x9c] sm:$0xf] }
 0x3fe   : > { %5875 = vrot.lane.b32.xlu1 %v5794_v2, %s9081_s27  ;;  %5877 = vrot.lane.b32.xlu0 %v5798_v1, %s9081_s27  ;;  %v5971_v1 = vld [vmem:[#allocation3 + $0x28] sm:$0xf] }
 0x401   : > { %v5529_v10 = vpop.permute.xlu0 %5528 }
 0x402   : > { %5879 = vrot.lane.b32.xlu1 %v5801_v7, %s9081_s27  ;;  %5881 = vrot.lane.b32.xlu0 %v5805_v9, %s9081_s27  ;;  %5611 = vst.msk [vmem:[#allocation5 + $0x38] sm:$0xf] %vm5596_vm4, %v5529_v10  ;;  %v5977_v7 = vld [vmem:[#allocation3 + $0x4c] sm:$0xf]  ;;  %v5978_v9 = vld [vmem:[#allocation3 + $0x54] sm:$0xf] }
 0x405   : > { %v5531_v18 = vpop.permute.xlu1 %5530 }
 0x406   : > { %5883 = vrot.lane.b32.xlu1 %v5808_v16, %s9081_s27  ;;  %5885 = vrot.lane.b32.xlu0 %v5812_v17, %s9081_s27  ;;  %5612 = vst.msk [vmem:[#allocation5 + $0x3c] sm:$0xf] %vm5596_vm4, %v5531_v18  ;;  %v6159_v16 = vld [vmem:[#allocation3 + $0xc] sm:$0xf]  ;;  %v6160_v17 = vld [vmem:[#allocation3 + $0x10] sm:$0xf] }
 0x407   : > { %v6162_v18 = vld [vmem:[#allocation3 + $0x18] sm:$0xf]  ;;  %v6208_v23 = vshrl.u32 %v6159_v16, 16  ;;  %v6211_v55 = vshll.u32 %v6159_v16, 16 }
 0x408   : > { %v6232_v29 = vshrl.u32 %v6162_v18, 16  ;;  %v6235_v34 = vshll.u32 %v6162_v18, 16  ;;  %v6723_v16 = vld [vmem:[#allocation3 + $0x18] sm:$0xe] }
 0x409   : > { %v6213_v33 = vrot.slane %v6211_v55, 5 }
 0x40a   : > { %v5533_v31 = vpop.permute.xlu0 %5532  ;;  %5887 = vrot.lane.b32.xlu1 %v5815_v24, %s9081_s27  ;;  %5889 = vrot.lane.b32.xlu0 %v5819_v19, %s9081_s27  ;;  %v6217_v24 = vshll.u32 %v6160_v17, 16  ;;  %v6221_v19 = vshrl.u32 %v6160_v17, 16 }
 0x40b   : > { %5613 = vst.msk [vmem:[#allocation5 + $0x40] sm:$0xf] %vm5596_vm4, %v5533_v31  ;;  %v6210_v31 = vrot.slane %v6208_v23, 4  ;;  %v7252_v23 = vld [vmem:[#allocation3 + $0x1c] sm:$0xf] }
 0x40c   : > { %v6219_v26 = vrot.slane %v6217_v24, 5 }
 0x40d   : > { %v6214_v47 = vor.u32 %v6213_v33, %v6210_v31  ;;  %v7313_v31 = vshrl.u32 %v7252_v23, 16 }
 0x40e   : > { %v5535_v41 = vpop.permute.xlu1 %5534  ;;  %5891 = vrot.lane.b32.xlu1 %v5822_v43, %s9081_s27  ;;  %5893 = vrot.lane.b32.xlu0 %v5826_v44, %s9081_s27  ;;  %v6223_v43 = vrot.slane %v6221_v19, 4  ;;  %v6234_v44 = vrot.slane %v6232_v29, 4  ;;  %v8780_v19 = vrot.slane %v6723_v16, 9  ;;  %v7254_v29 = vld [vmem:[#allocation3 + $0x24] sm:$0xf] }
 0x40f   : > { %5614 = vst.msk [vmem:[#allocation5 + $0x44] sm:$0xf] %vm5596_vm4, %v5535_v41  ;;  %v6237_v41 = vrot.slane %v6235_v34, 5 }
 0x410   : > { %v6224_v25 = vor.u32 %v6223_v43, %v6219_v26 }
 0x412   : > { %5895 = vrot.lane.b32.xlu1 %v5829_v51, %s9081_s27  ;;  %5897 = vrot.lane.b32.xlu0 %v5833_v52, %s9081_s27  ;;  %v5989_v51 = vld [vmem:[#allocation3 + $0x94] sm:$0xf] }
 0x413   : > { %v6161_v52 = vld [vmem:[#allocation3 + $0x14] sm:$0x1] }
 0x414   : > { %v5537_v54 = vpop.permute.xlu0 %5536 }
 0x415   : > { %5615 = vst.msk [vmem:[#allocation5 + $0x48] sm:$0xf] %vm5596_vm4, %v5537_v54  ;;  %v6215_v54 = vrot.slane %v6214_v47, 4  ;;  %v7255_v47 = vld [vmem:[#allocation3 + $0x28] sm:$0xf] }
 0x416   : > { %5899 = vrot.lane.b32.xlu1 %v5836_v40, %s9081_s27  ;;  %6030 = vrot.lane.b32.xlu0 %v5966_v56, %s9083_s29  ;;  %v6238_v40 = vor.u32 %v6237_v41, %v6234_v44  ;;  %v6243_v56 = vrot.slane %v6241_v35, 5  ;;  %v7324_v41 = vshrl.u32 %v7254_v29, 16  ;;  %v7327_v35 = vshll.u32 %v7254_v29, 16 }
 0x417   : > { %v5539_v62 = vpop.permute.xlu1 %5538 }
 0x418   : > { %5616 = vst.msk [vmem:[#allocation5 + $0x4c] sm:$0xf] %vm5596_vm4, %v5539_v62  ;;  %v6247_v62 = vrot.slane %v6245_v48, 4 }
 0x41a   : > { %6032 = vrot.lane.b32.xlu1 %v5967_v15, %s9083_s29  ;;  %6034 = vrot.lane.b32.xlu0 %v5968_v42, %s9083_s29  ;;  %v6227_v15 = vshll.u32 %v6161_v52, 16 }
 0x41e   : > { %v5541_v60 = vpop.permute.xlu0 %5540  ;;  %6036 = vrot.lane.b32.xlu1 %v5969_v57, %s9083_s29  ;;  %6038 = vrot.lane.b32.xlu0 %v5970_v59, %s9083_s29  ;;  %v6164_v59 = vld [vmem:[#allocation3 + $0x20] sm:$0x1] }
 0x41f   : > { %5617 = vst.msk [vmem:[#allocation5 + $0x50] sm:$0xf] %vm5596_vm4, %v5541_v60  ;;  %v5991_v60 = vld [vmem:[#allocation3 + $0xa0] sm:$0xf] }
 0x420   : > { %v5543_v2 = vpop.permute.xlu1 %5542 }
 0x421   : > { %5618 = vst.msk [vmem:[#allocation5 + $0x54] sm:$0xf] %vm5596_vm4, %v5543_v2  ;;  %v6220_v2 = vsel %vm9212_vm13, %v6215_v54, %v6219_v26  ;;  %v6725_v26 = vld [vmem:[#allocation3 + $0x20] sm:$0x1]  ;;  %v7337_v54 = vshrl.u32 %v7255_v47, 16 }
 0x422   : > { %6040 = vrot.lane.b32.xlu1 %v5971_v1, %s9083_s29  ;;  %6042 = vrot.lane.b32.xlu0 %v5972_v45, %s9083_s29  ;;  %v6225_v1 = vrot.slane %v6224_v25, 4  ;;  %v6239_v45 = vrot.slane %v6238_v40, 4  ;;  %v6828_v48 = vrot.slane %v6725_v26, 5 }
 0x426   : > { %v5545_v0 = vpop.permute.xlu0 %5544  ;;  %6044 = vrot.lane.b32.xlu1 %v5973_v58, %s9083_s29  ;;  %6046 = vrot.lane.b32.xlu0 %v5974_v61, %s9083_s29  ;;  %v6248_v58 = vor.u32 %v6247_v62, %v6243_v56  ;;  %v6721_v61 = vld [vmem:[#allocation3 + $0x10] sm:$0xf] }
 0x427   : > { %5619 = vst.msk [vmem:[#allocation5 + $0x58] sm:$0xf] %vm5596_vm4, %v5545_v0  ;;  %v6229_v0 = vrot.slane %v6227_v15, 5  ;;  %v7326_v15 = vrot.slane %v7324_v41, 4 }
 0x429   : > { %v5547_v3 = vpop.permute.xlu1 %5546 }
 0x42a   : > { %5620 = vst.msk [vmem:[#allocation5 + $0x5c] sm:$0xf] %vm5596_vm4, %v5547_v3  ;;  %6048 = vrot.lane.b32.xlu1 %v5975_v5, %s9083_s29  ;;  %6050 = vrot.lane.b32.xlu0 %v5976_v6, %s9083_s29  ;;  %v6251_v3 = vshll.u32 %v6164_v59, 16  ;;  %v9047_v59 = vld [vmem:[%s11856_s3 + $0x20] ss:$0 sps:$4 sm:$0xff]  }
 0x42b   : > { %9006 = vmatprep.subr.msk.bf16.mxu1 %vm8353_vm12, %v9047_v59 }
 0x42e   : > { %6052 = vrot.lane.b32.xlu1 %v5977_v7, %s9083_s29  ;;  %6054 = vrot.lane.b32.xlu0 %v5978_v9, %s9083_s29  ;;  %v6720_v7 = vld [vmem:[#allocation3 + $0xc] sm:$0xe]  ;;  %v6818_v9 = vrot.slane %v6721_v61, 5  ;;  %v7339_v61 = vrot.slane %v7337_v54, 4 }
 0x430   : > { %v5549_v10 = vpop.permute.xlu0 %5548 }
 0x431   : > { %5621 = vst.msk [vmem:[#allocation5 + $0x60] sm:$0xf] %vm5596_vm4, %v5549_v10  ;;  %v5551_v8 = vpop.permute.xlu1 %5550  ;;  %v6230_v10 = vsel %vm9212_vm13, %v6225_v1, %v6229_v0  ;;  %v8355_v0 = vsel %vm8353_vm12, %v9047_v59, 0 }
 0x432   : > { %5622 = vst.msk [vmem:[#allocation5 + $0x64] sm:$0xf] %vm5596_vm4, %v5551_v8  ;;  %6056 = vrot.lane.b32.xlu1 %v5979_v12, %s9083_s29  ;;  %6058 = vrot.lane.b32.xlu0 %v5980_v39, %s9083_s29  ;;  %v6244_v8 = vsel %vm9212_vm13, %v6239_v45, %v6243_v56  ;;  %v6249_v12 = vrot.slane %v6248_v58, 4  ;;  %v6724_v39 = vld [vmem:[#allocation3 + $0x1c] sm:$0xf] }
 0x433   : > { %v7058_v56 = vld [vmem:[#allocation3 + $0x18] sm:$0xf]  ;;  %v7059_v45 = vld [vmem:[#allocation3 + $0x1c] sm:$0xf]  ;;  %8964 = vmatpush3.bf16.msra.mxu1 %v8355_v0 }
 0x436   : > { %v5553_v63 = vpop.permute.xlu0 %5552  ;;  %6060 = vrot.lane.b32.xlu1 %v5981_v13, %s9083_s29  ;;  %6062 = vrot.lane.b32.xlu0 %v5982_v14, %s9083_s29  ;;  %v7251_v13 = vld [vmem:[#allocation3 + $0x18] sm:$0xf]  ;;  %v6253_v14 = vrot.slane %v6251_v3, 5  ;;  %v7060_v3 = vld [vmem:[#allocation3 + $0x24] sm:$0xf] }
 0x437   : > { %5623 = vst.msk [vmem:[#allocation5 + $0x68] sm:$0xf] %vm5596_vm4, %v5553_v63  ;;  %v5555_v32 = vpop.permute.xlu1 %5554  ;;  %v6722_v63 = vld [vmem:[#allocation3 + $0x14] sm:$0x1] }
 0x438   : > { %5624 = vst.msk [vmem:[#allocation5 + $0x6c] sm:$0xf] %vm5596_vm4, %v5555_v32  ;;  %v8779_v32 = vrot.slane %v6720_v7, 9  ;;  %v6254_v55 = vsel %vm9212_vm13, %v6249_v12, %v6253_v14  ;;  %v6821_v24 = vrot.slane %v6722_v63, 5  ;;  %v7256_v12 = vld [vmem:[#allocation3 + $0x2c] sm:$0x1] }
 0x439   : > { %v7812_v14 = vld [vmem:[#allocation3 + $0x18] sm:$0xe] }
 0x43a   : > { %v5557_v27 = vpop.permute.xlu0 %5556  ;;  %6064 = vrot.lane.b32.xlu1 %v5983_v20, %s9083_s29  ;;  %6066 = vrot.lane.b32.xlu0 %v5984_v21, %s9083_s29  ;;  %v6820_v20 = vrot.slane %v6818_v9, 4  ;;  %v6825_v21 = vrot.slane %v6724_v39, 5 }
 0x43b   : > { %5625 = vst.msk [vmem:[#allocation5 + $0x70] sm:$0xf] %vm5596_vm4, %v5557_v27  ;;  %v6819_v27 = vsel %vm9508_vm1, %v8779_v32, %v6818_v9  ;;  %v6165_v9 = vld [vmem:[#allocation3 + $0x24] sm:$0xf]  ;;  %v7813_v32 = vld [vmem:[#allocation3 + $0x1c] sm:$0xf] }
 0x43c   : > { %v5559_v4 = vpop.permute.xlu1 %5558  ;;  %v6822_v37 = vsel %vm9508_vm1, %v6820_v20, %v6821_v24  ;;  %v6827_v43 = vrot.slane %v6825_v21, 4  ;;  %v6256_v16 = vshrl.u32 %v6165_v9, 16  ;;  %v7910_v29 = vrot.slane %v7813_v32, 5 }
 0x43d   : > { %5626 = vst.msk [vmem:[#allocation5 + $0x74] sm:$0xf] %vm5596_vm4, %v5559_v4  ;;  %v7300_v4 = vshrl.u32 %v7251_v13, 16 }
 0x43e   : > { %6068 = vrot.lane.b32.xlu1 %v5985_v28, %s9083_s29  ;;  %6070 = vrot.lane.b32.xlu0 %v5986_v30, %s9083_s29  ;;  %v7303_v28 = vshll.u32 %v7251_v13, 16  ;;  %v7309_v30 = vshll.u32 %v7252_v23, 16  ;;  %v6829_v40 = vsel %vm9508_vm1, %v6827_v43, %v6828_v48  ;;  %v7814_v48 = vld [vmem:[#allocation3 + $0x20] sm:$0x1] }
 0x43f   : > { %v7302_v44 = vrot.slane %v7300_v4, 4  ;;  %v6168_v4 = vld [vmem:[#allocation3 + $0x30] sm:$0xf] }
 0x440   : > { %v6283_v41 = vshll.u32 %v6168_v4, 16 }
 0x442   : > { %6072 = vrot.lane.b32.xlu1 %v5987_v46, %s9083_s29  ;;  %6074 = vrot.lane.b32.xlu0 %v5988_v38, %s9083_s29  ;;  %v6826_v38 = vsel %vm9508_vm1, %v8780_v19, %v6825_v21  ;;  %v7305_v46 = vrot.slane %v7303_v28, 5  ;;  %v9049_v28 = vld [vmem:[%s11856_s3 + $0x10] sm:$0xff]   ;;  %v8795_v19 = vrot.slane %v7812_v14, 9 }
 0x444   : > { %v5561_v50 = vpop.permute.xlu0 %5560  ;;  %v7306_v62 = vor.u32 %v7305_v46, %v7302_v44  ;;  %v6169_v46 = vld [vmem:[#allocation3 + $0x34] sm:$0xf] }
 0x445   : > { %5627 = vst.msk [vmem:[#allocation5 + $0x78] sm:$0xf] %vm5596_vm4, %v5561_v50  ;;  %v7311_v50 = vrot.slane %v7309_v30, 5 }
 0x446   : > { %6076 = vrot.lane.b32.xlu1 %v5989_v51, %s9083_s29  ;;  %6078 = vrot.lane.b32.xlu0 %v5990_v53, %s9083_s29  ;;  %v7315_v51 = vrot.slane %v7313_v31, 4  ;;  %v7333_v53 = vshll.u32 %v7255_v47, 16  ;;  %v6280_v47 = vshrl.u32 %v6168_v4, 16 }
 0x448   : > { %v5563_v42 = vpop.permute.xlu1 %5562  ;;  %v5838_v57 = vpop.permute.xlu0 %5837  ;;  %v7335_v58 = vrot.slane %v7333_v53, 5  ;;  %v6282_v59 = vrot.slane %v6280_v47, 4  ;;  %v6729_v47 = vld [vmem:[#allocation3 + $0x30] sm:$0xe] }
 0x449   : > { %5628 = vst.msk [vmem:[#allocation5 + $0x7c] sm:$0xf] %vm5596_vm4, %v5563_v42  ;;  %v7329_v42 = vrot.slane %v7327_v35, 5 }
 0x44a   : > { %5934 = vst.msk [vmem:[#allocation5] sm:$0xf] %vm5933_vm5, %v5838_v57  ;;  %6080 = vrot.lane.b32.xlu1 %v5991_v60, %s9083_s29  ;;  %6591 = vrot.lane.b32.xlu0 %v6220_v2, %s9085_s12  ;;  %v7253_v57 = vld [vmem:[#allocation3 + $0x20] sm:$0x1]  ;;  %v7316_v60 = vor.u32 %v7315_v51, %v7311_v50  ;;  %v7340_v13 = vor.u32 %v7339_v61, %v7335_v58  ;;  %v7817_v61 = vld [vmem:[#allocation3 + $0x2c] sm:$0x1] }
 0x44b   : > { %v7330_v7 = vor.u32 %v7329_v42, %v7326_v15  ;;  %v7911_v51 = vsel %vm9508_vm1, %v8795_v19, %v7910_v29  ;;  %v6289_v42 = vshll.u32 %v6169_v46, 16 }
 0x44c   : > { %v5840_v5 = vpop.permute.xlu1 %5839  ;;  %v5842_v6 = vpop.permute.xlu0 %5841 }
 0x44d   : > { %5935 = vst.msk [vmem:[#allocation5 + $0x4] sm:$0xf] %vm5933_vm5, %v5840_v5  ;;  %5936 = vst.msk [vmem:[#allocation5 + $0x8] sm:$0xf] %vm5933_vm5, %v5842_v6  ;;  %v7307_v5 = vrot.slane %v7306_v62, 4  ;;  %v7319_v6 = vshll.u32 %v7253_v57, 16 }
 0x44e   : > { %6593 = vrot.lane.b32.xlu1 %v6230_v10, %s9085_s12  ;;  %6595 = vrot.lane.b32.xlu0 %v6244_v8, %s9085_s12  ;;  %v9048_v10 = vld [vmem:[%s11856_s3 + $0x18] sm:$0xff]   ;;  %v7317_v8 = vrot.slane %v7316_v60, 4  ;;  %v7331_v23 = vrot.slane %v7330_v7, 4  ;;  %v6285_v60 = vrot.slane %v6283_v41, 5 }
 0x44f   : > { %8965 = vmatprep.subr.bf16.mxu1 %v9048_v10  ;;  %v7312_v20 = vsel %vm9212_vm13, %v7307_v5, %v7311_v50  ;;  %v7321_v21 = vrot.slane %v7319_v6, 5  ;;  %v9050_v50 = vld [vmem:[%s11856_s3 + $0x8] sm:$0xff]  }
 0x450   : > { %v5844_v17 = vpop.permute.xlu1 %5843  ;;  %v5846_v18 = vpop.permute.xlu0 %5845  ;;  %8966 = vmatpush3.bf16.msra.mxu1 %v9048_v10  ;;  %v7336_v43 = vsel %vm9212_vm13, %v7331_v23, %v7335_v58  ;;  %v9051_v58 = vld [vmem:[%s11856_s3] sm:$0xff]   ;;  %v6291_v10 = vrot.slane %v6289_v42, 5 }
 0x451   : > { %5937 = vst.msk [vmem:[#allocation5 + $0xc] sm:$0xf] %vm5933_vm5, %v5844_v17  ;;  %5938 = vst.msk [vmem:[#allocation5 + $0x10] sm:$0xf] %vm5933_vm5, %v5846_v18  ;;  %v6259_v17 = vshll.u32 %v6165_v9, 16  ;;  %v7322_v24 = vsel %vm9212_vm13, %v7317_v8, %v7321_v21  ;;  %8967 = vmatprep.subr.bf16.mxu1 %v9049_v28 }
 0x452   : > { %6597 = vrot.lane.b32.xlu1 %v6254_v55, %s9085_s12  ;;  %6928 = vrot.lane.b32.xlu0 %v6819_v27, %s9086_s17  ;;  %v7061_v18 = vld [vmem:[#allocation3 + $0x28] sm:$0xf]  ;;  %v7343_v27 = vshll.u32 %v7256_v12, 16  ;;  %v6167_v9 = vld [vmem:[#allocation3 + $0x2c] sm:$0x1] }
 0x453   : > { %v6166_v55 = vld [vmem:[#allocation3 + $0x28] sm:$0xf]  ;;  %v6275_v14 = vshll.u32 %v6167_v9, 16 }
 0x454   : > { %v5848_v33 = vpop.permute.xlu1 %5847  ;;  %v5850_v34 = vpop.permute.xlu0 %5849  ;;  %v6265_v26 = vshll.u32 %v6166_v55, 16  ;;  %v6269_v44 = vshrl.u32 %v6166_v55, 16  ;;  %8968 = vmatpush3.bf16.msra.mxu1 %v9049_v28  ;;  %v7345_v35 = vrot.slane %v7343_v27, 5 }
 0x455   : > { %5939 = vst.msk [vmem:[#allocation5 + $0x14] sm:$0xf] %vm5933_vm5, %v5848_v33  ;;  %5940 = vst.msk [vmem:[#allocation5 + $0x18] sm:$0xf] %vm5933_vm5, %v5850_v34  ;;  %v7341_v33 = vrot.slane %v7340_v13, 4  ;;  %8969 = vmatprep.subr.bf16.mxu1 %v9050_v50  ;;  %v7920_v13 = vrot.slane %v7817_v61, 5 }
 0x456   : > { %6930 = vrot.lane.b32.xlu1 %v6822_v37, %s9086_s17  ;;  %6932 = vrot.lane.b32.xlu0 %v6826_v38, %s9086_s17  ;;  %v7816_v34 = vld [vmem:[#allocation3 + $0x28] sm:$0xf]  ;;  %v6258_v37 = vrot.slane %v6256_v16, 4  ;;  %v6261_v38 = vrot.slane %v6259_v17, 5  ;;  %v6267_v15 = vrot.slane %v6265_v26, 5  ;;  %v6271_v57 = vrot.slane %v6269_v44, 4 }
 0x457   : > { %v7917_v53 = vrot.slane %v7816_v34, 5  ;;  %v6277_v4 = vrot.slane %v6275_v14, 5  ;;  %v6728_v26 = vld [vmem:[#allocation3 + $0x2c] sm:$0x1] }
 0x458   : > { %v5852_v52 = vpop.permute.xlu1 %5851  ;;  %v5854_v25 = vpop.permute.xlu0 %5853  ;;  %v6262_v62 = vor.u32 %v6261_v38, %v6258_v37  ;;  %8970 = vmatpush3.bf16.msra.mxu1 %v9050_v50  ;;  %v6272_v12 = vor.u32 %v6271_v57, %v6267_v15  ;;  %v6730_v37 = vld [vmem:[#allocation3 + $0x34] sm:$0xf]  ;;  %v7257_v38 = vld [vmem:[#allocation3 + $0x30] sm:$0xf] }
 0x459   : > { %5941 = vst.msk [vmem:[#allocation5 + $0x1c] sm:$0xf] %vm5933_vm5, %v5852_v52  ;;  %5942 = vst.msk [vmem:[#allocation5 + $0x20] sm:$0xf] %vm5933_vm5, %v5854_v25  ;;  %v7912_v52 = vrot.slane %v7910_v29, 4  ;;  %v7919_v7 = vrot.slane %v7917_v53, 4  ;;  %8971 = vmatprep.subr.bf16.mxu1 %v9051_v58 }
 0x45a   : > { %6934 = vrot.lane.b32.xlu1 %v6829_v40, %s9086_s17  ;;  %7122 = vrot.lane.b32.xlu0 %v7058_v56, %s9087_s20  ;;  %v7815_v25 = vld [vmem:[#allocation3 + $0x24] sm:$0xe]  ;;  %v7346_v56 = vsel %vm9212_vm13, %v7341_v33, %v7345_v35  ;;  %v6263_v8 = vrot.slane %v6262_v62, 4  ;;  %v6273_v23 = vrot.slane %v6272_v12, 4  ;;  %v7348_v50 = vshrl.u32 %v7257_v38, 16 }
 0x45b   : > { %v7921_v17 = vsel %vm9508_vm1, %v7919_v7, %v7920_v13 }
 0x45c   : > { %v5856_v2 = vpop.permute.xlu1 %5855  ;;  %v5858_v1 = vpop.permute.xlu0 %5857  ;;  %8972 = vmatpush3.bf16.msra.mxu1 %v9051_v58  ;;  %v6268_v21 = vsel %vm9212_vm13, %v6263_v8, %v6267_v15  ;;  %v6731_v15 = vld [vmem:[#allocation3 + $0x38] sm:$0x1] }
 0x45d   : > { %5943 = vst.msk [vmem:[#allocation5 + $0x24] sm:$0xf] %vm5933_vm5, %v5856_v2  ;;  %5944 = vst.msk [vmem:[#allocation5 + $0x28] sm:$0xf] %vm5933_vm5, %v5858_v1  ;;  %v6293_v2 = vshrl.u32 %v6169_v46, 16  ;;  %v7913_v1 = vrot.slane %v7814_v48, 5 }
 0x45e   : > { %7124 = vrot.lane.b32.xlu1 %v7059_v45, %s9087_s20  ;;  %7126 = vrot.lane.b32.xlu0 %v7060_v3, %s9087_s20  ;;  %v8796_v45 = vrot.slane %v7815_v25, 9  ;;  %v6839_v48 = vrot.slane %v6730_v37, 5  ;;  %v6835_v25 = vrot.slane %v6728_v26, 5  ;;  %v7819_v37 = vld [vmem:[#allocation3 + $0x34] sm:$0xf] }
 0x45f   : > { %v7914_v5 = vsel %vm9508_vm1, %v7912_v52, %v7913_v1 }
 0x460   : > { %v5860_v39 = vpop.permute.xlu1 %5859  ;;  %v5862_v63 = vpop.permute.xlu0 %5861  ;;  %v7918_v6 = vsel %vm9508_vm1, %v8796_v45, %v7917_v53  ;;  %v7258_v53 = vld [vmem:[#allocation3 + $0x34] sm:$0xf]  ;;  %v7261_v45 = vld [vmem:[#allocation3 + $0x40] sm:$0xf] }
 0x461   : > { %5945 = vst.msk [vmem:[#allocation5 + $0x2c] sm:$0xf] %vm5933_vm5, %v5860_v39  ;;  %5946 = vst.msk [vmem:[#allocation5 + $0x30] sm:$0xf] %vm5933_vm5, %v5862_v63  ;;  %v6286_v39 = vor.u32 %v6285_v60, %v6282_v59  ;;  %v6295_v63 = vrot.slane %v6293_v2, 4  ;;  %v6841_v60 = vrot.slane %v6839_v48, 4 }
 0x462   : > { %7128 = vrot.lane.b32.xlu1 %v7061_v18, %s9087_s20  ;;  %7683 = vrot.lane.b32.xlu0 %v7312_v20, %s9088_s25  ;;  %v6170_v18 = vld [vmem:[#allocation3 + $0x38] sm:$0x1]  ;;  %v6727_v20 = vld [vmem:[#allocation3 + $0x28] sm:$0xf]  ;;  %v7350_v2 = vrot.slane %v7348_v50, 4  ;;  %v7357_v1 = vshll.u32 %v7258_v53, 16 }
 0x463   : > { %v6287_v55 = vrot.slane %v6286_v39, 4  ;;  %v6296_v27 = vor.u32 %v6295_v63, %v6291_v10  ;;  %v6299_v28 = vshll.u32 %v6170_v18, 16  ;;  %v7361_v61 = vshrl.u32 %v7258_v53, 16  ;;  %v7062_v39 = vld [vmem:[#allocation3 + $0x30] sm:$0xf] }
 0x464   : > { %v5864_v30 = vpop.permute.xlu1 %5863  ;;  %v5866_v31 = vpop.permute.xlu0 %5865  ;;  %v7385_v7 = vshrl.u32 %v7261_v45, 16  ;;  %v7359_v12 = vrot.slane %v7357_v1, 5 }
 0x465   : > { %5947 = vst.msk [vmem:[#allocation5 + $0x34] sm:$0xf] %vm5933_vm5, %v5864_v30  ;;  %5948 = vst.msk [vmem:[#allocation5 + $0x38] sm:$0xf] %vm5933_vm5, %v5866_v31  ;;  %v6726_v30 = vld [vmem:[#allocation3 + $0x24] sm:$0xe]  ;;  %v6278_v31 = vsel %vm9212_vm13, %v6273_v23, %v6277_v4  ;;  %v6292_v33 = vsel %vm9212_vm13, %v6287_v55, %v6291_v10 }
 0x466   : > { %7685 = vrot.lane.b32.xlu1 %v7322_v24, %s9088_s25  ;;  %7687 = vrot.lane.b32.xlu0 %v7336_v43, %s9088_s25  ;;  %v6832_v24 = vrot.slane %v6727_v20, 5  ;;  %v6297_v34 = vrot.slane %v6296_v27, 4  ;;  %v6301_v43 = vrot.slane %v6299_v28, 5  ;;  %v8781_v44 = vrot.slane %v6726_v30, 9  ;;  %v7259_v23 = vld [vmem:[#allocation3 + $0x38] sm:$0x1] }
 0x467   : > { %v7363_v13 = vrot.slane %v7361_v61, 4  ;;  %v7064_v55 = vld [vmem:[#allocation3 + $0x3c] sm:$0xf]  ;;  %v7820_v61 = vld [vmem:[#allocation3 + $0x38] sm:$0x1] }
 0x468   : > { %v5868_v54 = vpop.permute.xlu1 %5867  ;;  %v5870_v40 = vpop.permute.xlu0 %5869  ;;  %v6834_v46 = vrot.slane %v6832_v24, 4  ;;  %v6833_v52 = vsel %vm9508_vm1, %v8781_v44, %v6832_v24  ;;  %v6171_v24 = vld [vmem:[#allocation3 + $0x3c] sm:$0xf] }
 0x469   : > { %5949 = vst.msk [vmem:[#allocation5 + $0x3c] sm:$0xf] %vm5933_vm5, %v5868_v54  ;;  %5950 = vst.msk [vmem:[#allocation5 + $0x40] sm:$0xf] %vm5933_vm5, %v5870_v40  ;;  %v7351_v54 = vshll.u32 %v7257_v38, 16  ;;  %v8782_v40 = vrot.slane %v6729_v47, 9  ;;  %v7364_v4 = vor.u32 %v7363_v13, %v7359_v12 }
 0x46a   : > { %7689 = vrot.lane.b32.xlu1 %v7346_v56, %s9088_s25  ;;  %8020 = vrot.lane.b32.xlu0 %v7911_v51, %s9089_s6  ;;  %v6302_v51 = vsel %vm9212_vm13, %v6297_v34, %v6301_v43  ;;  %v7260_v56 = vld [vmem:[#allocation3 + $0x3c] sm:$0xf]  ;;  %v6836_v62 = vsel %vm9508_vm1, %v6834_v46, %v6835_v25  ;;  %v7818_v34 = vld [vmem:[#allocation3 + $0x30] sm:$0xe]  ;;  %v6304_v38 = vshrl.u32 %v6171_v24, 16  ;;  %v6307_v26 = vshll.u32 %v6171_v24, 16 }
 0x46b   : > { %v6840_v59 = vsel %vm9508_vm1, %v8782_v40, %v6839_v48  ;;  %v7353_v58 = vrot.slane %v7351_v54, 5  ;;  %v7065_v43 = vld [vmem:[#allocation3 + $0x40] sm:$0xf]  ;;  %v7365_v46 = vrot.slane %v7364_v4, 4  ;;  %v6174_v48 = vld [vmem:[#allocation3 + $0x48] sm:$0xf] }
 0x46c   : > { %v5872_v0 = vpop.permute.xlu1 %5871  ;;  %v5874_v3 = vpop.permute.xlu0 %5873  ;;  %v7924_v25 = vrot.slane %v7819_v37, 5  ;;  %v7822_v40 = vld [vmem:[#allocation3 + $0x40] sm:$0xf]  ;;  %v6173_v4 = vld [vmem:[#allocation3 + $0x44] sm:$0x1] }
 0x46d   : > { %5951 = vst.msk [vmem:[#allocation5 + $0x44] sm:$0xf] %vm5933_vm5, %v5872_v0  ;;  %5952 = vst.msk [vmem:[#allocation5 + $0x48] sm:$0xf] %vm5933_vm5, %v5874_v3  ;;  %v7372_v0 = vshrl.u32 %v7260_v56, 16  ;;  %v7375_v3 = vshll.u32 %v7260_v56, 16  ;;  %v7354_v63 = vor.u32 %v7353_v58, %v7350_v2 }
 0x46e   : > { %8022 = vrot.lane.b32.xlu1 %v7914_v5, %s9089_s6  ;;  %8024 = vrot.lane.b32.xlu0 %v7918_v6, %s9089_s6  ;;  %v6842_v5 = vrot.slane %v6731_v15, 5  ;;  %v7381_v6 = vshll.u32 %v7261_v45, 16  ;;  %v6306_v56 = vrot.slane %v6304_v38, 4  ;;  %v6331_v2 = vshll.u32 %v6174_v48, 16  ;;  %v6175_v45 = vld [vmem:[#allocation3 + $0x4c] sm:$0xf] }
 0x46f   : > { %v7374_v14 = vrot.slane %v7372_v0, 4  ;;  %v7355_v27 = vrot.slane %v7354_v63, 4  ;;  %v7926_v0 = vrot.slane %v7924_v25, 4  ;;  %v6337_v13 = vshll.u32 %v6175_v45, 16  ;;  %v6176_v38 = vld [vmem:[#allocation3 + $0x50] sm:$0x1] }
 0x470   : > { %v5876_v32 = vpop.permute.xlu1 %5875  ;;  %v5878_v16 = vpop.permute.xlu0 %5877  ;;  %v6843_v8 = vsel %vm9508_vm1, %v6841_v60, %v6842_v5  ;;  %v6328_v60 = vshrl.u32 %v6174_v48, 16  ;;  %v7931_v5 = vrot.slane %v7822_v40, 5  ;;  %v6333_v63 = vrot.slane %v6331_v2, 5  ;;  %v6736_v40 = vld [vmem:[#allocation3 + $0x4c] sm:$0xf] }
 0x471   : > { %5953 = vst.msk [vmem:[#allocation5 + $0x4c] sm:$0xf] %vm5933_vm5, %v5876_v32  ;;  %5954 = vst.msk [vmem:[#allocation5 + $0x50] sm:$0xf] %vm5933_vm5, %v5878_v16  ;;  %v7377_v32 = vrot.slane %v7375_v3, 5  ;;  %v7383_v16 = vrot.slane %v7381_v6, 5  ;;  %v7360_v44 = vsel %vm9212_vm13, %v7355_v27, %v7359_v12 }
 0x472   : > { %8026 = vrot.lane.b32.xlu1 %v7921_v17, %s9089_s6  ;;  %6599 = vrot.lane.b32.xlu0 %v6268_v21, %s9085_s12  ;;  %v7387_v17 = vrot.slane %v7385_v7, 4  ;;  %v7063_v21 = vld [vmem:[#allocation3 + $0x34] sm:$0xf]  ;;  %v7821_v3 = vld [vmem:[#allocation3 + $0x3c] sm:$0xe] }
 0x473   : > { %v7378_v28 = vor.u32 %v7377_v32, %v7374_v14  ;;  %v6341_v14 = vshrl.u32 %v6175_v45, 16  ;;  %v7927_v32 = vrot.slane %v7820_v61, 5 }
 0x474   : > { %v5880_v19 = vpop.permute.xlu1 %5879  ;;  %v5882_v29 = vpop.permute.xlu0 %5881  ;;  %v7388_v30 = vor.u32 %v7387_v17, %v7383_v16  ;;  %v7823_v17 = vld [vmem:[#allocation3 + $0x44] sm:$0x1] }
 0x475   : > { %5955 = vst.msk [vmem:[#allocation5 + $0x54] sm:$0xf] %vm5933_vm5, %v5880_v19  ;;  %5956 = vst.msk [vmem:[#allocation5 + $0x58] sm:$0xf] %vm5933_vm5, %v5882_v29  ;;  %v7367_v19 = vshll.u32 %v7259_v23, 16  ;;  %v7379_v47 = vrot.slane %v7378_v28, 4 }
 0x476   : > { %6601 = vrot.lane.b32.xlu1 %v6278_v31, %s9085_s12  ;;  %6603 = vrot.lane.b32.xlu0 %v6292_v33, %s9085_s12  ;;  %v7262_v29 = vld [vmem:[#allocation3 + $0x44] sm:$0x1] }
 0x477   : > { %v7369_v50 = vrot.slane %v7367_v19, 5  ;;  %v6339_v19 = vrot.slane %v6337_v13, 5 }
 0x478   : > { %v5884_v41 = vpop.permute.xlu1 %5883  ;;  %v5886_v35 = vpop.permute.xlu0 %5885 }
 0x479   : > { %5957 = vst.msk [vmem:[#allocation5 + $0x5c] sm:$0xf] %vm5933_vm5, %v5884_v41  ;;  %5958 = vst.msk [vmem:[#allocation5 + $0x60] sm:$0xf] %vm5933_vm5, %v5886_v35  ;;  %v6172_v41 = vld [vmem:[#allocation3 + $0x40] sm:$0xf] }
 0x47a   : > { %6605 = vrot.lane.b32.xlu1 %v6302_v51, %s9085_s12  ;;  %6936 = vrot.lane.b32.xlu0 %v6833_v52, %s9086_s17  ;;  %v7391_v35 = vshll.u32 %v7262_v29, 16  ;;  %v7389_v51 = vrot.slane %v7388_v30, 4  ;;  %v8797_v52 = vrot.slane %v7818_v34, 9  ;;  %v6313_v15 = vshll.u32 %v6172_v41, 16 }
 0x47b   : > { %v6343_v29 = vrot.slane %v6341_v14, 4  ;;  %v7934_v30 = vrot.slane %v7823_v17, 5 }
 0x47c   : > { %v5888_v42 = vpop.permute.xlu1 %5887  ;;  %v5890_v57 = vpop.permute.xlu0 %5889  ;;  %v7393_v1 = vrot.slane %v7391_v35, 5  ;;  %v7925_v58 = vsel %vm9508_vm1, %v8797_v52, %v7924_v25  ;;  %v6347_v35 = vshll.u32 %v6176_v38, 16  ;;  %v6732_v52 = vld [vmem:[#allocation3 + $0x3c] sm:$0xe] }
 0x47d   : > { %5959 = vst.msk [vmem:[#allocation5 + $0x64] sm:$0xf] %vm5933_vm5, %v5888_v42  ;;  %5960 = vst.msk [vmem:[#allocation5 + $0x68] sm:$0xf] %vm5933_vm5, %v5890_v57  ;;  %v6317_v42 = vshrl.u32 %v6172_v41, 16  ;;  %v7370_v57 = vsel %vm9212_vm13, %v7365_v46, %v7369_v50 }
 0x47e   : > { %6938 = vrot.lane.b32.xlu1 %v6836_v62, %s9086_s17  ;;  %6940 = vrot.lane.b32.xlu0 %v6840_v59, %s9086_s17  ;;  %v6309_v62 = vrot.slane %v6307_v26, 5  ;;  %v7384_v59 = vsel %vm9212_vm13, %v7379_v47, %v7383_v16  ;;  %v8798_v16 = vrot.slane %v7821_v3, 9  ;;  %v6733_v26 = vld [vmem:[#allocation3 + $0x40] sm:$0xf]  ;;  %v6344_v47 = vor.u32 %v6343_v29, %v6339_v19  ;;  %v7264_v3 = vld [vmem:[#allocation3 + $0x4c] sm:$0xf] }
 0x47f   : > { %v6319_v12 = vrot.slane %v6317_v42, 4  ;;  %v6846_v48 = vrot.slane %v6733_v26, 5  ;;  %v8783_v42 = vrot.slane %v6732_v52, 9  ;;  %v7405_v14 = vshll.u32 %v7264_v3, 16 }
 0x480   : > { %v5892_v9 = vpop.permute.xlu1 %5891  ;;  %v5894_v10 = vpop.permute.xlu0 %5893  ;;  %v7932_v23 = vsel %vm9508_vm1, %v8798_v16, %v7931_v5  ;;  %v7409_v17 = vshrl.u32 %v7264_v3, 16 }
 0x481   : > { %5961 = vst.msk [vmem:[#allocation5 + $0x6c] sm:$0xf] %vm5933_vm5, %v5892_v9  ;;  %5962 = vst.msk [vmem:[#allocation5 + $0x70] sm:$0xf] %vm5933_vm5, %v5894_v10  ;;  %v7394_v9 = vsel %vm9212_vm13, %v7389_v51, %v7393_v1  ;;  %v6310_v10 = vor.u32 %v6309_v62, %v6306_v56  ;;  %v7263_v56 = vld [vmem:[#allocation3 + $0x48] sm:$0xf]  ;;  %v6847_v61 = vsel %vm9508_vm1, %v8783_v42, %v6846_v48 }
 0x482   : > { %6942 = vrot.lane.b32.xlu1 %v6843_v8, %s9086_s17  ;;  %7130 = vrot.lane.b32.xlu0 %v7062_v39, %s9087_s20  ;;  %v6315_v8 = vrot.slane %v6313_v15, 5  ;;  %v6330_v39 = vrot.slane %v6328_v60, 4  ;;  %v6734_v62 = vld [vmem:[#allocation3 + $0x44] sm:$0x1]  ;;  %v6349_v15 = vrot.slane %v6347_v35, 5  ;;  %v6853_v1 = vrot.slane %v6736_v40, 5 }
 0x483   : > { %v6311_v27 = vrot.slane %v6310_v10, 4  ;;  %v7396_v45 = vshrl.u32 %v7263_v56, 16  ;;  %v6737_v10 = vld [vmem:[#allocation3 + $0x50] sm:$0x1]  ;;  %v7825_v40 = vld [vmem:[#allocation3 + $0x4c] sm:$0xf] }
 0x484   : > { %v5896_v18 = vpop.permute.xlu1 %5895  ;;  %v5898_v20 = vpop.permute.xlu0 %5897  ;;  %v6320_v28 = vor.u32 %v6319_v12, %v6315_v8  ;;  %v6334_v24 = vor.u32 %v6333_v63, %v6330_v39  ;;  %v6855_v63 = vrot.slane %v6853_v1, 4 }
 0x485   : > { %5963 = vst.msk [vmem:[#allocation5 + $0x74] sm:$0xf] %vm5933_vm5, %v5896_v18  ;;  %5964 = vst.msk [vmem:[#allocation5 + $0x78] sm:$0xf] %vm5933_vm5, %v5898_v20  ;;  %v7398_v13 = vrot.slane %v7396_v45, 4 }
 0x486   : > { %7132 = vrot.lane.b32.xlu1 %v7063_v21, %s9087_s20  ;;  %7134 = vrot.lane.b32.xlu0 %v7064_v55, %s9087_s20  ;;  %v7928_v21 = vsel %vm9508_vm1, %v7926_v0, %v7927_v32  ;;  %v7933_v55 = vrot.slane %v7931_v5, 4  ;;  %v6335_v46 = vrot.slane %v6334_v24, 4  ;;  %v6849_v0 = vrot.slane %v6734_v62, 5  ;;  %v7267_v32 = vld [vmem:[#allocation3 + $0x58] sm:$0xf] }
 0x487   : > { %v7399_v5 = vshll.u32 %v7263_v56, 16  ;;  %v7407_v24 = vrot.slane %v7405_v14, 5 }
 0x488   : > { %v5900_v31 = vpop.permute.xlu1 %5899  ;;  %v6031_v33 = vpop.permute.xlu0 %6030  ;;  %v7935_v37 = vsel %vm9508_vm1, %v7933_v55, %v7934_v30  ;;  %v7433_v55 = vshrl.u32 %v7267_v32, 16  ;;  %v7411_v30 = vrot.slane %v7409_v17, 4  ;;  %v7826_v17 = vld [vmem:[#allocation3 + $0x50] sm:$0x1] }
 0x489   : > { %5965 = vst.msk [vmem:[#allocation5 + $0x7c] sm:$0xf] %vm5933_vm5, %v5900_v31  ;;  %v6323_v31 = vshll.u32 %v6173_v4, 16  ;;  %v7401_v16 = vrot.slane %v7399_v5, 5 }
 0x48a   : > { %6127 = vst.msk [vmem:[#allocation5] sm:$0xf] %vm6126_vm9, %v6031_v33  ;;  %7136 = vrot.lane.b32.xlu1 %v7065_v43, %s9087_s20  ;;  %7691 = vrot.lane.b32.xlu0 %v7360_v44, %s9088_s25  ;;  %v6316_v43 = vsel %vm9212_vm13, %v6311_v27, %v6315_v8  ;;  %v6321_v44 = vrot.slane %v6320_v28, 4 }
 0x48b   : > { %v6325_v41 = vrot.slane %v6323_v31, 5  ;;  %v7402_v29 = vor.u32 %v7401_v16, %v7398_v13 }
 0x48c   : > { %v6033_v53 = vpop.permute.xlu1 %6032  ;;  %v6035_v54 = vpop.permute.xlu0 %6034 }
 0x48d   : > { %6128 = vst.msk [vmem:[#allocation5 + $0x4] sm:$0xf] %vm6126_vm9, %v6033_v53  ;;  %6129 = vst.msk [vmem:[#allocation5 + $0x8] sm:$0xf] %vm6126_vm9, %v6035_v54  ;;  %v6326_v25 = vsel %vm9212_vm13, %v6321_v44, %v6325_v41  ;;  %v6340_v53 = vsel %vm9212_vm13, %v6335_v46, %v6339_v19  ;;  %v6345_v54 = vrot.slane %v6344_v47, 4  ;;  %v7403_v47 = vrot.slane %v7402_v29, 4 }
 0x48e   : > { %7693 = vrot.lane.b32.xlu1 %v7370_v57, %s9088_s25  ;;  %7695 = vrot.lane.b32.xlu0 %v7384_v59, %s9088_s25  ;;  %v6848_v57 = vrot.slane %v6846_v48, 4  ;;  %v6735_v59 = vld [vmem:[#allocation3 + $0x48] sm:$0xe]  ;;  %v7265_v44 = vld [vmem:[#allocation3 + $0x50] sm:$0x1]  ;;  %v7412_v41 = vor.u32 %v7411_v30, %v7407_v24 }
 0x48f   : > { %v7066_v19 = vld [vmem:[#allocation3 + $0x48] sm:$0xf]  ;;  %v7068_v46 = vld [vmem:[#allocation3 + $0x54] sm:$0xf]  ;;  %v7408_v42 = vsel %vm9212_vm13, %v7403_v47, %v7407_v24 }
 0x490   : > { %v6037_v6 = vpop.permute.xlu1 %6036  ;;  %v6039_v7 = vpop.permute.xlu0 %6038  ;;  %v6177_v48 = vld [vmem:[#allocation3 + $0x54] sm:$0xf] }
 0x491   : > { %6130 = vst.msk [vmem:[#allocation5 + $0xc] sm:$0xf] %vm6126_vm9, %v6037_v6  ;;  %6131 = vst.msk [vmem:[#allocation5 + $0x10] sm:$0xf] %vm6126_vm9, %v6039_v7  ;;  %v8784_v6 = vrot.slane %v6735_v59, 9  ;;  %v6352_v56 = vshrl.u32 %v6177_v48, 16 }
 0x492   : > { %7697 = vrot.lane.b32.xlu1 %v7394_v9, %s9088_s25  ;;  %8028 = vrot.lane.b32.xlu0 %v7925_v58, %s9089_s6  ;;  %v6350_v58 = vsel %vm9212_vm13, %v6345_v54, %v6349_v15  ;;  %v7266_v7 = vld [vmem:[#allocation3 + $0x54] sm:$0xf]  ;;  %v6850_v9 = vsel %vm9508_vm1, %v6848_v57, %v6849_v0  ;;  %v7824_v54 = vld [vmem:[#allocation3 + $0x48] sm:$0xe]  ;;  %v6355_v62 = vshll.u32 %v6177_v48, 16  ;;  %v7413_v57 = vrot.slane %v7412_v41, 4 }
 0x493   : > { %v6854_v39 = vsel %vm9508_vm1, %v8784_v6, %v6853_v1  ;;  %v7069_v15 = vld [vmem:[#allocation3 + $0x58] sm:$0xf]  ;;  %v6180_v1 = vld [vmem:[#allocation3 + $0x60] sm:$0xf]  ;;  %v7938_v0 = vrot.slane %v7825_v40, 5 }
 0x494   : > { %v6041_v18 = vpop.permute.xlu1 %6040  ;;  %v6043_v20 = vpop.permute.xlu0 %6042  ;;  %v7828_v6 = vld [vmem:[#allocation3 + $0x58] sm:$0xf]  ;;  %v6379_v13 = vshll.u32 %v6180_v1, 16  ;;  %v6179_v41 = vld [vmem:[#allocation3 + $0x5c] sm:$0x1] }
 0x495   : > { %6132 = vst.msk [vmem:[#allocation5 + $0x14] sm:$0xf] %vm6126_vm9, %v6041_v18  ;;  %6133 = vst.msk [vmem:[#allocation5 + $0x18] sm:$0xf] %vm6126_vm9, %v6043_v20  ;;  %v7420_v18 = vshrl.u32 %v7266_v7, 16  ;;  %v7423_v20 = vshll.u32 %v7266_v7, 16 }
 0x496   : > { %8030 = vrot.lane.b32.xlu1 %v7928_v21, %s9089_s6  ;;  %8032 = vrot.lane.b32.xlu0 %v7932_v23, %s9089_s6  ;;  %v6856_v21 = vrot.slane %v6737_v10, 5  ;;  %v7429_v23 = vshll.u32 %v7267_v32, 16  ;;  %v6354_v7 = vrot.slane %v6352_v56, 4  ;;  %v6181_v32 = vld [vmem:[#allocation3 + $0x64] sm:$0xf]  ;;  %v6381_v29 = vrot.slane %v6379_v13, 5 }
 0x497   : > { %v7422_v31 = vrot.slane %v7420_v18, 4  ;;  %v7940_v18 = vrot.slane %v7938_v0, 4  ;;  %v6385_v30 = vshll.u32 %v6181_v32, 16  ;;  %v6182_v56 = vld [vmem:[#allocation3 + $0x68] sm:$0x1] }
 0x498   : > { %v6045_v33 = vpop.permute.xlu1 %6044  ;;  %v6047_v34 = vpop.permute.xlu0 %6046  ;;  %v6857_v28 = vsel %vm9508_vm1, %v6855_v63, %v6856_v21  ;;  %v6376_v63 = vshrl.u32 %v6180_v1, 16  ;;  %v7945_v21 = vrot.slane %v7828_v6, 5  ;;  %v6742_v6 = vld [vmem:[#allocation3 + $0x64] sm:$0xf] }
 0x499   : > { %6134 = vst.msk [vmem:[#allocation5 + $0x1c] sm:$0xf] %vm6126_vm9, %v6045_v33  ;;  %6135 = vst.msk [vmem:[#allocation5 + $0x20] sm:$0xf] %vm6126_vm9, %v6047_v34  ;;  %v7425_v33 = vrot.slane %v7423_v20, 5  ;;  %v7431_v34 = vrot.slane %v7429_v23, 5 }
 0x49a   : > { %8034 = vrot.lane.b32.xlu1 %v7935_v37, %s9089_s6  ;;  %6607 = vrot.lane.b32.xlu0 %v6316_v43, %s9085_s12  ;;  %v7435_v37 = vrot.slane %v7433_v55, 4  ;;  %v7067_v43 = vld [vmem:[#allocation3 + $0x4c] sm:$0xf]  ;;  %v7827_v20 = vld [vmem:[#allocation3 + $0x54] sm:$0xe] }
 0x49b   : > { %v7426_v35 = vor.u32 %v7425_v33, %v7422_v31  ;;  %v6389_v31 = vshrl.u32 %v6181_v32, 16  ;;  %v7941_v33 = vrot.slane %v7826_v17, 5 }
 0x49c   : > { %v6049_v50 = vpop.permute.xlu1 %6048  ;;  %v6051_v51 = vpop.permute.xlu0 %6050  ;;  %v7436_v52 = vor.u32 %v7435_v37, %v7431_v34  ;;  %v7829_v37 = vld [vmem:[#allocation3 + $0x5c] sm:$0x1] }
 0x49d   : > { %6136 = vst.msk [vmem:[#allocation5 + $0x24] sm:$0xf] %vm6126_vm9, %v6049_v50  ;;  %6137 = vst.msk [vmem:[#allocation5 + $0x28] sm:$0xf] %vm6126_vm9, %v6051_v51  ;;  %v7415_v50 = vshll.u32 %v7265_v44, 16  ;;  %v7427_v59 = vrot.slane %v7426_v35, 4 }
 0x49e   : > { %6609 = vrot.lane.b32.xlu1 %v6326_v25, %s9085_s12  ;;  %6611 = vrot.lane.b32.xlu0 %v6340_v53, %s9085_s12  ;;  %v7268_v51 = vld [vmem:[#allocation3 + $0x5c] sm:$0x1] }
 0x49f   : > { %v7417_v45 = vrot.slane %v7415_v50, 5  ;;  %v6387_v50 = vrot.slane %v6385_v30, 5 }
 0x4a0   : > { %v6053_v60 = vpop.permute.xlu1 %6052  ;;  %v6055_v2 = vpop.permute.xlu0 %6054 }
 0x4a1   : > { %6138 = vst.msk [vmem:[#allocation5 + $0x2c] sm:$0xf] %vm6126_vm9, %v6053_v60  ;;  %6139 = vst.msk [vmem:[#allocation5 + $0x30] sm:$0xf] %vm6126_vm9, %v6055_v2  ;;  %v6178_v60 = vld [vmem:[#allocation3 + $0x58] sm:$0xf] }
 0x4a2   : > { %6613 = vrot.lane.b32.xlu1 %v6350_v58, %s9085_s12  ;;  %6944 = vrot.lane.b32.xlu0 %v6847_v61, %s9086_s17  ;;  %v7439_v2 = vshll.u32 %v7268_v51, 16  ;;  %v7437_v58 = vrot.slane %v7436_v52, 4  ;;  %v8799_v61 = vrot.slane %v7824_v54, 9  ;;  %v6361_v10 = vshll.u32 %v6178_v60, 16 }
 0x4a3   : > { %v6391_v51 = vrot.slane %v6389_v31, 4  ;;  %v7948_v52 = vrot.slane %v7829_v37, 5 }
 0x4a4   : > { %v6057_v8 = vpop.permute.xlu1 %6056  ;;  %v6059_v12 = vpop.permute.xlu0 %6058  ;;  %v7441_v14 = vrot.slane %v7439_v2, 5  ;;  %v7939_v16 = vsel %vm9508_vm1, %v8799_v61, %v7938_v0  ;;  %v6395_v2 = vshll.u32 %v6182_v56, 16  ;;  %v6738_v61 = vld [vmem:[#allocation3 + $0x54] sm:$0xe] }
 0x4a5   : > { %6140 = vst.msk [vmem:[#allocation5 + $0x34] sm:$0xf] %vm6126_vm9, %v6057_v8  ;;  %6141 = vst.msk [vmem:[#allocation5 + $0x38] sm:$0xf] %vm6126_vm9, %v6059_v12  ;;  %v6365_v8 = vshrl.u32 %v6178_v60, 16  ;;  %v7418_v12 = vsel %vm9212_vm13, %v7413_v57, %v7417_v45 }
 0x4a6   : > { %6946 = vrot.lane.b32.xlu1 %v6850_v9, %s9086_s17  ;;  %6948 = vrot.lane.b32.xlu0 %v6854_v39, %s9086_s17  ;;  %v6357_v9 = vrot.slane %v6355_v62, 5  ;;  %v7432_v39 = vsel %vm9212_vm13, %v7427_v59, %v7431_v34  ;;  %v8800_v34 = vrot.slane %v7827_v20, 9  ;;  %v6739_v62 = vld [vmem:[#allocation3 + $0x58] sm:$0xf]  ;;  %v6392_v59 = vor.u32 %v6391_v51, %v6387_v50  ;;  %v7270_v20 = vld [vmem:[#allocation3 + $0x64] sm:$0xf] }
 0x4a7   : > { %v6367_v24 = vrot.slane %v6365_v8, 4  ;;  %v6860_v1 = vrot.slane %v6739_v62, 5  ;;  %v8785_v8 = vrot.slane %v6738_v61, 9  ;;  %v7453_v31 = vshll.u32 %v7270_v20, 16 }
 0x4a8   : > { %v6061_v27 = vpop.permute.xlu1 %6060  ;;  %v6063_v4 = vpop.permute.xlu0 %6062  ;;  %v7946_v44 = vsel %vm9508_vm1, %v8800_v34, %v7945_v21  ;;  %v7457_v37 = vshrl.u32 %v7270_v20, 16 }
 0x4a9   : > { %6142 = vst.msk [vmem:[#allocation5 + $0x3c] sm:$0xf] %vm6126_vm9, %v6061_v27  ;;  %6143 = vst.msk [vmem:[#allocation5 + $0x40] sm:$0xf] %vm6126_vm9, %v6063_v4  ;;  %v7442_v27 = vsel %vm9212_vm13, %v7437_v58, %v7441_v14  ;;  %v6358_v4 = vor.u32 %v6357_v9, %v6354_v7  ;;  %v7269_v7 = vld [vmem:[#allocation3 + $0x60] sm:$0xf]  ;;  %v6861_v17 = vsel %vm9508_vm1, %v8785_v8, %v6860_v1 }
 0x4aa   : > { %6950 = vrot.lane.b32.xlu1 %v6857_v28, %s9086_s17  ;;  %7138 = vrot.lane.b32.xlu0 %v7066_v19, %s9087_s20  ;;  %v6363_v28 = vrot.slane %v6361_v10, 5  ;;  %v6378_v19 = vrot.slane %v6376_v63, 4  ;;  %v6740_v9 = vld [vmem:[#allocation3 + $0x5c] sm:$0x1]  ;;  %v6397_v10 = vrot.slane %v6395_v2, 5  ;;  %v6867_v14 = vrot.slane %v6742_v6, 5 }
 0x4ab   : > { %v6359_v47 = vrot.slane %v6358_v4, 4  ;;  %v7444_v32 = vshrl.u32 %v7269_v7, 16  ;;  %v6743_v4 = vld [vmem:[#allocation3 + $0x68] sm:$0x1]  ;;  %v7831_v6 = vld [vmem:[#allocation3 + $0x64] sm:$0xf] }
 0x4ac   : > { %v6065_v38 = vpop.permute.xlu1 %6064  ;;  %v6067_v26 = vpop.permute.xlu0 %6066  ;;  %v6368_v35 = vor.u32 %v6367_v24, %v6363_v28  ;;  %v6382_v48 = vor.u32 %v6381_v29, %v6378_v19  ;;  %v6869_v29 = vrot.slane %v6867_v14, 4 }
 0x4ad   : > { %6144 = vst.msk [vmem:[#allocation5 + $0x44] sm:$0xf] %vm6126_vm9, %v6065_v38  ;;  %6145 = vst.msk [vmem:[#allocation5 + $0x48] sm:$0xf] %vm6126_vm9, %v6067_v26  ;;  %v7446_v30 = vrot.slane %v7444_v32, 4 }
 0x4ae   : > { %7140 = vrot.lane.b32.xlu1 %v7067_v43, %s9087_s20  ;;  %7142 = vrot.lane.b32.xlu0 %v7068_v46, %s9087_s20  ;;  %v7942_v43 = vsel %vm9508_vm1, %v7940_v18, %v7941_v33  ;;  %v7947_v46 = vrot.slane %v7945_v21, 4  ;;  %v6383_v57 = vrot.slane %v6382_v48, 4  ;;  %v6863_v18 = vrot.slane %v6740_v9, 5  ;;  %v7273_v33 = vld [vmem:[#allocation3 + $0x70] sm:$0xf] }
 0x4af   : > { %v7447_v21 = vshll.u32 %v7269_v7, 16  ;;  %v7455_v48 = vrot.slane %v7453_v31, 5 }
 0x4b0   : > { %v6069_v25 = vpop.permute.xlu1 %6068  ;;  %v6071_v53 = vpop.permute.xlu0 %6070  ;;  %v7949_v40 = vsel %vm9508_vm1, %v7947_v46, %v7948_v52  ;;  %v7481_v46 = vshrl.u32 %v7273_v33, 16  ;;  %v7459_v52 = vrot.slane %v7457_v37, 4  ;;  %v7832_v37 = vld [vmem:[#allocation3 + $0x68] sm:$0x1] }
 0x4b1   : > { %6146 = vst.msk [vmem:[#allocation5 + $0x4c] sm:$0xf] %vm6126_vm9, %v6069_v25  ;;  %6147 = vst.msk [vmem:[#allocation5 + $0x50] sm:$0xf] %vm6126_vm9, %v6071_v53  ;;  %v6371_v25 = vshll.u32 %v6179_v41, 16  ;;  %v7449_v34 = vrot.slane %v7447_v21, 5 }
 0x4b2   : > { %7144 = vrot.lane.b32.xlu1 %v7069_v15, %s9087_s20  ;;  %7699 = vrot.lane.b32.xlu0 %v7408_v42, %s9088_s25  ;;  %v6364_v15 = vsel %vm9212_vm13, %v6359_v47, %v6363_v28  ;;  %v6369_v42 = vrot.slane %v6368_v35, 4 }
 0x4b3   : > { %v6373_v60 = vrot.slane %v6371_v25, 5  ;;  %v7450_v51 = vor.u32 %v7449_v34, %v7446_v30 }
 0x4b4   : > { %v6073_v3 = vpop.permute.xlu1 %6072  ;;  %v6075_v5 = vpop.permute.xlu0 %6074 }
 0x4b5   : > { %6148 = vst.msk [vmem:[#allocation5 + $0x54] sm:$0xf] %vm6126_vm9, %v6073_v3  ;;  %6149 = vst.msk [vmem:[#allocation5 + $0x58] sm:$0xf] %vm6126_vm9, %v6075_v5  ;;  %v6374_v0 = vsel %vm9212_vm13, %v6369_v42, %v6373_v60  ;;  %v6388_v3 = vsel %vm9212_vm13, %v6383_v57, %v6387_v50  ;;  %v6393_v5 = vrot.slane %v6392_v59, 4  ;;  %v7451_v59 = vrot.slane %v7450_v51, 4 }
 0x4b6   : > { %7701 = vrot.lane.b32.xlu1 %v7418_v12, %s9088_s25  ;;  %7703 = vrot.lane.b32.xlu0 %v7432_v39, %s9088_s25  ;;  %v6862_v12 = vrot.slane %v6860_v1, 4  ;;  %v6741_v39 = vld [vmem:[#allocation3 + $0x60] sm:$0xe]  ;;  %v7271_v42 = vld [vmem:[#allocation3 + $0x68] sm:$0x1]  ;;  %v7460_v60 = vor.u32 %v7459_v52, %v7455_v48 }
 0x4b7   : > { %v7070_v50 = vld [vmem:[#allocation3 + $0x60] sm:$0xf]  ;;  %v7072_v57 = vld [vmem:[#allocation3 + $0x6c] sm:$0xf]  ;;  %v7456_v8 = vsel %vm9212_vm13, %v7451_v59, %v7455_v48 }
 0x4b8   : > { %v6077_v23 = vpop.permute.xlu1 %6076  ;;  %v6079_v55 = vpop.permute.xlu0 %6078  ;;  %v6183_v1 = vld [vmem:[#allocation3 + $0x6c] sm:$0xf] }
 0x4b9   : > { %6150 = vst.msk [vmem:[#allocation5 + $0x5c] sm:$0xf] %vm6126_vm9, %v6077_v23  ;;  %6151 = vst.msk [vmem:[#allocation5 + $0x60] sm:$0xf] %vm6126_vm9, %v6079_v55  ;;  %v8786_v23 = vrot.slane %v6741_v39, 9  ;;  %v6400_v7 = vshrl.u32 %v6183_v1, 16 }
 0x4ba   : > { %7705 = vrot.lane.b32.xlu1 %v7442_v27, %s9088_s25  ;;  %8036 = vrot.lane.b32.xlu0 %v7939_v16, %s9089_s6  ;;  %v6398_v16 = vsel %vm9212_vm13, %v6393_v5, %v6397_v10  ;;  %v7272_v55 = vld [vmem:[#allocation3 + $0x6c] sm:$0xf]  ;;  %v6864_v27 = vsel %vm9508_vm1, %v6862_v12, %v6863_v18  ;;  %v7830_v5 = vld [vmem:[#allocation3 + $0x60] sm:$0xe]  ;;  %v6403_v9 = vshll.u32 %v6183_v1, 16  ;;  %v7461_v12 = vrot.slane %v7460_v60, 4 }
 0x4bb   : > { %v6868_v19 = vsel %vm9508_vm1, %v8786_v23, %v6867_v14  ;;  %v7073_v10 = vld [vmem:[#allocation3 + $0x70] sm:$0xf]  ;;  %v6186_v14 = vld [vmem:[#allocation3 + $0x78] sm:$0xf]  ;;  %v7952_v18 = vrot.slane %v7831_v6, 5 }
 0x4bc   : > { %v6081_v38 = vpop.permute.xlu1 %6080  ;;  %v6592_v26 = vpop.permute.xlu0 %6591  ;;  %v7834_v23 = vld [vmem:[#allocation3 + $0x70] sm:$0xf]  ;;  %v6427_v30 = vshll.u32 %v6186_v14, 16  ;;  %v6185_v60 = vld [vmem:[#allocation3 + $0x74] sm:$0x1] }
 0x4bd   : > { %6152 = vst.msk [vmem:[#allocation5 + $0x64] sm:$0xf] %vm6126_vm9, %v6081_v38  ;;  %v7468_v38 = vshrl.u32 %v7272_v55, 16 }
 0x4be   : > { %6688 = vst.msk [vmem:[#allocation5] sm:$0xf] %vm6687_vm3, %v6592_v26  ;;  %8038 = vrot.lane.b32.xlu1 %v7942_v43, %s9089_s6  ;;  %8040 = vrot.lane.b32.xlu0 %v7946_v44, %s9089_s6  ;;  %v7471_v26 = vshll.u32 %v7272_v55, 16  ;;  %v6870_v43 = vrot.slane %v6743_v4, 5  ;;  %v7477_v44 = vshll.u32 %v7273_v33, 16  ;;  %v6402_v55 = vrot.slane %v6400_v7, 4 }
 0x4bf   : > { %v7470_v25 = vrot.slane %v7468_v38, 4  ;;  %v6187_v33 = vld [vmem:[#allocation3 + $0x7c] sm:$0xf]  ;;  %v7954_v38 = vrot.slane %v7952_v18, 4  ;;  %v6429_v51 = vrot.slane %v6427_v30, 5 }
 0x4c0   : > { %v6594_v53 = vpop.permute.xlu1 %6593  ;;  %v6596_v54 = vpop.permute.xlu0 %6595  ;;  %v6871_v35 = vsel %vm9508_vm1, %v6869_v29, %v6870_v43  ;;  %v6424_v29 = vshrl.u32 %v6186_v14, 16  ;;  %v7959_v43 = vrot.slane %v7834_v23, 5  ;;  %v6433_v52 = vshll.u32 %v6187_v33, 16 }
 0x4c1   : > { %6689 = vst.msk [vmem:[#allocation5 + $0x4] sm:$0xf] %vm6687_vm3, %v6594_v53  ;;  %6690 = vst.msk [vmem:[#allocation5 + $0x8] sm:$0xf] %vm6687_vm3, %v6596_v54  ;;  %v7473_v53 = vrot.slane %v7471_v26, 5  ;;  %v7479_v54 = vrot.slane %v7477_v44, 5 }
 0x4c2   : > { %8042 = vrot.lane.b32.xlu1 %v7949_v40, %s9089_s6  ;;  %6615 = vrot.lane.b32.xlu0 %v6364_v15, %s9085_s12  ;;  %v7483_v40 = vrot.slane %v7481_v46, 4  ;;  %v7071_v15 = vld [vmem:[#allocation3 + $0x64] sm:$0xf]  ;;  %v7833_v26 = vld [vmem:[#allocation3 + $0x6c] sm:$0xe] }
 0x4c3   : > { %v7474_v2 = vor.u32 %v7473_v53, %v7470_v25  ;;  %v6437_v25 = vshrl.u32 %v6187_v33, 16  ;;  %v7955_v53 = vrot.slane %v7832_v37, 5  ;;  %v7276_v37 = vld [vmem:[#allocation3 + $0x7c] sm:$0xf] }
 0x4c4   : > { %v6598_v45 = vpop.permute.xlu1 %6597  ;;  %v6929_v58 = vpop.permute.xlu0 %6928  ;;  %v7484_v61 = vor.u32 %v7483_v40, %v7479_v54  ;;  %v7835_v40 = vld [vmem:[#allocation3 + $0x74] sm:$0x1] }
 0x4c5   : > { %6691 = vst.msk [vmem:[#allocation5 + $0xc] sm:$0xf] %vm6687_vm3, %v6598_v45  ;;  %v7463_v45 = vshll.u32 %v7271_v42, 16  ;;  %v7475_v39 = vrot.slane %v7474_v2, 4 }
 0x4c6   : > { %7025 = vst.msk [vmem:[#allocation5] sm:$0xf] %vm7024_vm10, %v6929_v58  ;;  %6617 = vrot.lane.b32.xlu1 %v6374_v0, %s9085_s12  ;;  %6619 = vrot.lane.b32.xlu0 %v6388_v3, %s9085_s12  ;;  %v7274_v58 = vld [vmem:[#allocation3 + $0x74] sm:$0x1] }
 0x4c7   : > { %v7465_v32 = vrot.slane %v7463_v45, 5  ;;  %v6435_v45 = vrot.slane %v6433_v52, 5 }
 0x4c8   : > { %v6931_v63 = vpop.permute.xlu1 %6930  ;;  %v6933_v13 = vpop.permute.xlu0 %6932 }
 0x4c9   : > { %7026 = vst.msk [vmem:[#allocation5 + $0x4] sm:$0xf] %vm7024_vm10, %v6931_v63  ;;  %7027 = vst.msk [vmem:[#allocation5 + $0x8] sm:$0xf] %vm7024_vm10, %v6933_v13  ;;  %v6184_v63 = vld [vmem:[#allocation3 + $0x70] sm:$0xf] }
 0x4ca   : > { %6621 = vrot.lane.b32.xlu1 %v6398_v16, %s9085_s12  ;;  %6952 = vrot.lane.b32.xlu0 %v6861_v17, %s9086_s17  ;;  %v7487_v13 = vshll.u32 %v7274_v58, 16  ;;  %v7485_v16 = vrot.slane %v7484_v61, 4  ;;  %v8801_v17 = vrot.slane %v7830_v5, 9  ;;  %v6409_v4 = vshll.u32 %v6184_v63, 16 }
 0x4cb   : > { %v6439_v58 = vrot.slane %v6437_v25, 4  ;;  %v7962_v61 = vrot.slane %v7835_v40, 5 }
 0x4cc   : > { %v6935_v28 = vpop.permute.xlu1 %6934  ;;  %v7123_v24 = vpop.permute.xlu0 %7122  ;;  %v7489_v31 = vrot.slane %v7487_v13, 5  ;;  %v7953_v34 = vsel %vm9508_vm1, %v8801_v17, %v7952_v18  ;;  %v6744_v18 = vld [vmem:[#allocation3 + $0x6c] sm:$0xe] }
 0x4cd   : > { %7028 = vst.msk [vmem:[#allocation5 + $0xc] sm:$0xf] %vm7024_vm10, %v6935_v28  ;;  %v6413_v28 = vshrl.u32 %v6184_v63, 16  ;;  %v6745_v63 = vld [vmem:[#allocation3 + $0x70] sm:$0xf] }
 0x4ce   : > { %7219 = vst.msk [vmem:[#allocation5] sm:$0xf] %vm7218_vm7, %v7123_v24  ;;  %6954 = vrot.lane.b32.xlu1 %v6864_v27, %s9086_s17  ;;  %6956 = vrot.lane.b32.xlu0 %v6868_v19, %s9086_s17  ;;  %v6405_v27 = vrot.slane %v6403_v9, 5  ;;  %v7466_v24 = vsel %vm9212_vm13, %v7461_v12, %v7465_v32  ;;  %v7480_v19 = vsel %vm9212_vm13, %v7475_v39, %v7479_v54  ;;  %v8802_v54 = vrot.slane %v7833_v26, 9 }
 0x4cf   : > { %v6415_v48 = vrot.slane %v6413_v28, 4  ;;  %v6440_v39 = vor.u32 %v6439_v58, %v6435_v45 }
 0x4d0   : > { %v7125_v47 = vpop.permute.xlu1 %7124  ;;  %v7127_v41 = vpop.permute.xlu0 %7126  ;;  %v7960_v42 = vsel %vm9508_vm1, %v8802_v54, %v7959_v43 }
 0x4d1   : > { %7220 = vst.msk [vmem:[#allocation5 + $0x4] sm:$0xf] %vm7218_vm7, %v7125_v47  ;;  %7221 = vst.msk [vmem:[#allocation5 + $0x8] sm:$0xf] %vm7218_vm7, %v7127_v41  ;;  %v7490_v47 = vsel %vm9212_vm13, %v7485_v16, %v7489_v31  ;;  %v6406_v41 = vor.u32 %v6405_v27, %v6402_v55  ;;  %v6441_v55 = vrot.slane %v6440_v39, 4 }
 0x4d2   : > { %6958 = vrot.lane.b32.xlu1 %v6871_v35, %s9086_s17  ;;  %7146 = vrot.lane.b32.xlu0 %v7070_v50, %s9087_s20  ;;  %v6411_v35 = vrot.slane %v6409_v4, 5  ;;  %v6426_v50 = vrot.slane %v6424_v29, 4  ;;  %v6748_v27 = vld [vmem:[#allocation3 + $0x7c] sm:$0xf]  ;;  %v7275_v4 = vld [vmem:[#allocation3 + $0x78] sm:$0xf] }
 0x4d3   : > { %v6407_v59 = vrot.slane %v6406_v41, 4  ;;  %v6747_v29 = vld [vmem:[#allocation3 + $0x78] sm:$0xe]  ;;  %v7278_v41 = vld [vmem:[#allocation3 + $0x84] sm:$0xf] }
 0x4d4   : > { %v7129_v56 = vpop.permute.xlu1 %7128  ;;  %v7684_v62 = vpop.permute.xlu0 %7683  ;;  %v6416_v2 = vor.u32 %v6415_v48, %v6411_v35  ;;  %v6430_v1 = vor.u32 %v6429_v51, %v6426_v50  ;;  %v7505_v48 = vshrl.u32 %v7276_v37, 16 }
 0x4d5   : > { %7222 = vst.msk [vmem:[#allocation5 + $0xc] sm:$0xf] %vm7218_vm7, %v7129_v56 }
 0x4d6   : > { %7780 = vst.msk [vmem:[#allocation5] sm:$0xf] %vm7779_vm11, %v7684_v62  ;;  %7148 = vrot.lane.b32.xlu1 %v7071_v15, %s9087_s20  ;;  %7150 = vrot.lane.b32.xlu0 %v7072_v57, %s9087_s20  ;;  %v7956_v15 = vsel %vm9508_vm1, %v7954_v38, %v7955_v53  ;;  %v7961_v57 = vrot.slane %v7959_v43, 4  ;;  %v6431_v12 = vrot.slane %v6430_v1, 4  ;;  %v7492_v43 = vshrl.u32 %v7275_v4, 16 }
 0x4d7   : > { %v6749_v53 = vld [vmem:[#allocation3 + $0x80] sm:$0x1] }
 0x4d8   : > { %v7686_v0 = vpop.permute.xlu1 %7685  ;;  %v7688_v3 = vpop.permute.xlu0 %7687  ;;  %v7963_v7 = vsel %vm9508_vm1, %v7961_v57, %v7962_v61  ;;  %v6436_v23 = vsel %vm9212_vm13, %v6431_v12, %v6435_v45  ;;  %v7494_v40 = vrot.slane %v7492_v43, 4  ;;  %v6884_v57 = vrot.slane %v6749_v53, 5  ;;  %v7075_v12 = vld [vmem:[#allocation3 + $0x7c] sm:$0xf] }
 0x4d9   : > { %7781 = vst.msk [vmem:[#allocation5 + $0x4] sm:$0xf] %vm7779_vm11, %v7686_v0  ;;  %7782 = vst.msk [vmem:[#allocation5 + $0x8] sm:$0xf] %vm7779_vm11, %v7688_v3  ;;  %v6419_v0 = vshll.u32 %v6185_v60, 16  ;;  %v7507_v60 = vrot.slane %v7505_v48, 4 }
 0x4da   : > { %7152 = vrot.lane.b32.xlu1 %v7073_v10, %s9087_s20  ;;  %7707 = vrot.lane.b32.xlu0 %v7456_v8, %s9088_s25  ;;  %v6188_v3 = vld [vmem:[#allocation3 + $0x80] sm:$0x1]  ;;  %v6412_v10 = vsel %vm9212_vm13, %v6407_v59, %v6411_v35  ;;  %v6417_v8 = vrot.slane %v6416_v2, 4  ;;  %v7501_v35 = vshll.u32 %v7276_v37, 16  ;;  %v6192_v37 = vld [vmem:[#allocation3 + $0x90] sm:$0xf] }
 0x4db   : > { %v6421_v13 = vrot.slane %v6419_v0, 5  ;;  %v6443_v14 = vshll.u32 %v6188_v3, 16  ;;  %v7074_v0 = vld [vmem:[#allocation3 + $0x78] sm:$0xf]  ;;  %v7840_v48 = vld [vmem:[#allocation3 + $0x88] sm:$0xf] }
 0x4dc   : > { %v7690_v20 = vpop.permute.xlu1 %7689  ;;  %v8021_v21 = vpop.permute.xlu0 %8020  ;;  %v7503_v59 = vrot.slane %v7501_v35, 5  ;;  %v6475_v22 = vshll.u32 %v6192_v37, 16 }
 0x4dd   : > { %7783 = vst.msk [vmem:[#allocation5 + $0xc] sm:$0xf] %vm7779_vm11, %v7690_v20  ;;  %v6874_v20 = vrot.slane %v6745_v63, 5  ;;  %v6445_v28 = vrot.slane %v6443_v14, 5 }
 0x4de   : > { %8117 = vst.msk [vmem:[#allocation5] sm:$0xf] %vm8116_vm14, %v8021_v21  ;;  %7709 = vrot.lane.b32.xlu1 %v7466_v24, %s9088_s25  ;;  %7711 = vrot.lane.b32.xlu0 %v7480_v19, %s9088_s25  ;;  %v6422_v21 = vsel %vm9212_vm13, %v6417_v8, %v6421_v13  ;;  %v8787_v24 = vrot.slane %v6744_v18, 9  ;;  %v6746_v19 = vld [vmem:[#allocation3 + $0x74] sm:$0x1] }
 0x4df   : > { %v6876_v33 = vrot.slane %v6874_v20, 4  ;;  %v6446_v38 = vsel %vm9212_vm13, %v6441_v55, %v6445_v28  ;;  %v7076_v13 = vld [vmem:[#allocation3 + $0x84] sm:$0xf] }
 0x4e0   : > { %v8023_v44 = vpop.permute.xlu1 %8022  ;;  %v8025_v46 = vpop.permute.xlu0 %8024  ;;  %v6875_v26 = vsel %vm9508_vm1, %v8787_v24, %v6874_v20  ;;  %v7280_v20 = vld [vmem:[#allocation3 + $0x8c] sm:$0x1] }
 0x4e1   : > { %8118 = vst.msk [vmem:[#allocation5 + $0x4] sm:$0xf] %vm8116_vm14, %v8023_v44  ;;  %8119 = vst.msk [vmem:[#allocation5 + $0x8] sm:$0xf] %vm8116_vm14, %v8025_v46  ;;  %v7495_v44 = vshll.u32 %v7275_v4, 16  ;;  %v6877_v46 = vrot.slane %v6746_v19, 5 }
 0x4e2   : > { %7713 = vrot.lane.b32.xlu1 %v7490_v47, %s9088_s25  ;;  %8044 = vrot.lane.b32.xlu0 %v7953_v34, %s9089_s6  ;;  %v6881_v34 = vrot.slane %v6748_v27, 5  ;;  %v8788_v47 = vrot.slane %v6747_v29, 9  ;;  %v7836_v27 = vld [vmem:[#allocation3 + $0x78] sm:$0xe]  ;;  %v7837_v4 = vld [vmem:[#allocation3 + $0x7c] sm:$0xf] }
 0x4e3   : > { %v6878_v52 = vsel %vm9508_vm1, %v6876_v33, %v6877_v46  ;;  %v7077_v19 = vld [vmem:[#allocation3 + $0x88] sm:$0xf]  ;;  %v8803_v43 = vrot.slane %v7836_v27, 9 }
 0x4e4   : > { %v8027_v56 = vpop.permute.xlu1 %8026  ;;  %v6600_v62 = vpop.permute.xlu0 %6599  ;;  %v6882_v25 = vsel %vm9508_vm1, %v8788_v47, %v6881_v34  ;;  %v6883_v54 = vrot.slane %v6881_v34, 4  ;;  %v6190_v33 = vld [vmem:[#allocation3 + $0x88] sm:$0xf]  ;;  %v7535_v34 = vshll.u32 %v7280_v20, 16 }
 0x4e5   : > { %8120 = vst.msk [vmem:[#allocation5 + $0xc] sm:$0xf] %vm8116_vm14, %v8027_v56  ;;  %v7497_v56 = vrot.slane %v7495_v44, 5  ;;  %v7966_v44 = vrot.slane %v7837_v4, 5  ;;  %v6461_v53 = vshrl.u32 %v6190_v33, 16 }
 0x4e6   : > { %6692 = vst.msk [vmem:[#allocation5 + $0x10] sm:$0xf] %vm6687_vm3, %v6600_v62  ;;  %8046 = vrot.lane.b32.xlu1 %v7956_v15, %s9089_s6  ;;  %8048 = vrot.lane.b32.xlu0 %v7960_v42, %s9089_s6  ;;  %v7279_v62 = vld [vmem:[#allocation3 + $0x88] sm:$0xf]  ;;  %v7516_v15 = vshrl.u32 %v7278_v41, 16  ;;  %v7519_v42 = vshll.u32 %v7278_v41, 16  ;;  %v6885_v61 = vsel %vm9508_vm1, %v6883_v54, %v6884_v57 }
 0x4e7   : > { %v7525_v45 = vshll.u32 %v7279_v62, 16  ;;  %v7529_v58 = vshrl.u32 %v7279_v62, 16  ;;  %v7498_v3 = vor.u32 %v7497_v56, %v7494_v40  ;;  %v6193_v54 = vld [vmem:[#allocation3 + $0x94] sm:$0xf]  ;;  %v6472_v40 = vshrl.u32 %v6192_v37, 16 }
 0x4e8   : > { %v6602_v5 = vpop.permute.xlu1 %6601  ;;  %v6604_v6 = vpop.permute.xlu0 %6603  ;;  %v9052_v9 = vld [vmem:[#allocation5] sm:$0xff]   ;;  %v7537_v56 = vrot.slane %v7535_v34, 5  ;;  %v7967_v62 = vsel %vm9508_vm1, %v8803_v43, %v7966_v44  ;;  %v7839_v57 = vld [vmem:[#allocation3 + $0x84] sm:$0xe] }
 0x4e9   : > { %6693 = vst.msk [vmem:[#allocation5 + $0x14] sm:$0xf] %vm6687_vm3, %v6602_v5  ;;  %6694 = vst.msk [vmem:[#allocation5 + $0x18] sm:$0xf] %vm6687_vm3, %v6604_v6  ;;  %8973 = vmatprep.mubr.msk.bf16.mxu1 %vm8304_vm15, %v9052_v9  ;;  %v7518_v5 = vrot.slane %v7516_v15, 4  ;;  %v7521_v6 = vrot.slane %v7519_v42, 5  ;;  %v7508_v9 = vor.u32 %v7507_v60, %v7503_v59 }
 0x4ea   : > { %8050 = vrot.lane.b32.xlu1 %v7963_v7, %s9089_s6  ;;  %6623 = vrot.lane.b32.xlu0 %v6412_v10, %s9085_s12  ;;  %v7277_v7 = vld [vmem:[#allocation3 + $0x80] sm:$0x1]  ;;  %v7527_v39 = vrot.slane %v7525_v45, 5  ;;  %v7531_v63 = vrot.slane %v7529_v58, 4  ;;  %v7499_v14 = vrot.slane %v7498_v3, 4  ;;  %v7968_v42 = vrot.slane %v7966_v44, 4 }
 0x4eb   : > { %v7509_v18 = vrot.slane %v7508_v9, 4  ;;  %v7838_v15 = vld [vmem:[#allocation3 + $0x80] sm:$0x1]  ;;  %v6474_v3 = vrot.slane %v6472_v40, 4  ;;  %v8804_v9 = vrot.slane %v7839_v57, 9 }
 0x4ec   : > { %v6606_v32 = vpop.permute.xlu1 %6605  ;;  %v6937_v16 = vpop.permute.xlu0 %6936  ;;  %v9053_v17 = vld [vmem:[#allocation5 + $0x8] sm:$0xff]   ;;  %v7532_v55 = vor.u32 %v7531_v63, %v7527_v39  ;;  %v7504_v29 = vsel %vm9212_vm13, %v7499_v14, %v7503_v59  ;;  %v7973_v59 = vrot.slane %v7840_v48, 5  ;;  %v6191_v14 = vld [vmem:[#allocation3 + $0x8c] sm:$0x1]  ;;  %v6194_v4 = vld [vmem:[#allocation3 + $0x98] sm:$0x1] }
 0x4ed   : > { %6695 = vst.msk [vmem:[#allocation5 + $0x1c] sm:$0xf] %vm6687_vm3, %v6606_v32  ;;  %8974 = vmatmul.mubr.msk.bf16.vlgmr.msra.gmra.mxu1 %vm8304_vm15, %v9053_v17  ;;  %v7511_v32 = vshll.u32 %v7277_v7, 16  ;;  %v6189_v17 = vld [vmem:[#allocation3 + $0x84] sm:$0xf]  ;;  %v7969_v7 = vrot.slane %v7838_v15, 5 }
 0x4ee   : > { %7029 = vst.msk [vmem:[#allocation5 + $0x10] sm:$0xf] %vm7024_vm10, %v6937_v16  ;;  %6625 = vrot.lane.b32.xlu1 %v6422_v21, %s9085_s12  ;;  %6627 = vrot.lane.b32.xlu0 %v6436_v23, %s9085_s12  ;;  %v7522_v16 = vor.u32 %v7521_v6, %v7518_v5  ;;  %v6448_v28 = vshrl.u32 %v6189_v17, 16  ;;  %v6451_v24 = vshll.u32 %v6189_v17, 16  ;;  %v7533_v35 = vrot.slane %v7532_v55, 4 }
 0x4ef   : > { %v6477_v5 = vrot.slane %v6475_v22, 5  ;;  %v6485_v6 = vshrl.u32 %v6193_v54, 16  ;;  %v7974_v63 = vsel %vm9508_vm1, %v8804_v9, %v7973_v59  ;;  %v6467_v27 = vshll.u32 %v6191_v14, 16  ;;  %v6753_v40 = vld [vmem:[#allocation3 + $0x90] sm:$0xe] }
 0x4f0   : > { %v6939_v30 = vpop.permute.xlu1 %6938  ;;  %v6941_v31 = vpop.permute.xlu0 %6940 }
 0x4f1   : > { %7030 = vst.msk [vmem:[#allocation5 + $0x14] sm:$0xf] %vm7024_vm10, %v6939_v30  ;;  %7031 = vst.msk [vmem:[#allocation5 + $0x18] sm:$0xf] %vm7024_vm10, %v6941_v31  ;;  %v7513_v30 = vrot.slane %v7511_v32, 5  ;;  %v7523_v31 = vrot.slane %v7522_v16, 4 }
 0x4f2   : > { %6629 = vrot.lane.b32.xlu1 %v6446_v38, %s9085_s12  ;;  %6960 = vrot.lane.b32.xlu0 %v6875_v26, %s9086_s17  ;;  %v410_v38 = vld [vmem:[#allocation3 + $0xcc] sm:$0x1]  ;;  %v6487_v20 = vrot.slane %v6485_v6, 4  ;;  %v6469_v37 = vrot.slane %v6467_v27, 5 }
 0x4f3   : > { %v7514_v26 = vsel %vm9212_vm13, %v7509_v18, %v7513_v30  ;;  %v411_v46 = vsel %vm10434_vm8, 0, %v410_v38  ;;  %v6478_v18 = vor.u32 %v6477_v5, %v6474_v3  ;;  %v6491_v38 = vshll.u32 %v6194_v4, 16 }
 0x4f4   : > { %v6943_v50 = vpop.permute.xlu1 %6942  ;;  %v7131_v51 = vpop.permute.xlu0 %7130  ;;  %412 = vst [vmem:[#allocation3 + $0xcc] sm:$0x1] %v411_v46 }
 0x4f5   : > { %7032 = vst.msk [vmem:[#allocation5 + $0x1c] sm:$0xf] %vm7024_vm10, %v6943_v50  ;;  %v6450_v50 = vrot.slane %v6448_v28, 4  ;;  %v6751_v28 = vld [vmem:[#allocation3 + $0x88] sm:$0xf]  ;;  %v6479_v36 = vrot.slane %v6478_v18, 4 }
 0x4f6   : > { %7223 = vst.msk [vmem:[#allocation5 + $0x10] sm:$0xf] %vm7218_vm7, %v7131_v51  ;;  %6962 = vrot.lane.b32.xlu1 %v6878_v52, %s9086_s17  ;;  %6964 = vrot.lane.b32.xlu0 %v6882_v25, %s9086_s17  ;;  %v6453_v51 = vrot.slane %v6451_v24, 5  ;;  %v6457_v52 = vshll.u32 %v6190_v33, 16  ;;  %v7528_v25 = vsel %vm9212_vm13, %v7523_v31, %v7527_v39  ;;  %v7970_v39 = vsel %vm9508_vm1, %v7968_v42, %v7969_v7 }
 0x4f8   : > { %v7133_v2 = vpop.permute.xlu1 %7132  ;;  %v7135_v1 = vpop.permute.xlu0 %7134  ;;  %v6454_v45 = vor.u32 %v6453_v51, %v6450_v50  ;;  %v6459_v58 = vrot.slane %v6457_v52, 5  ;;  %v6752_v50 = vld [vmem:[#allocation3 + $0x8c] sm:$0x1]  ;;  %v6754_v51 = vld [vmem:[#allocation3 + $0x94] sm:$0xf] }
 0x4f9   : > { %7224 = vst.msk [vmem:[#allocation5 + $0x14] sm:$0xf] %vm7218_vm7, %v7133_v2  ;;  %7225 = vst.msk [vmem:[#allocation5 + $0x18] sm:$0xf] %vm7218_vm7, %v7135_v1  ;;  %v7538_v1 = vsel %vm9212_vm13, %v7533_v35, %v7537_v56  ;;  %v7281_v52 = vld [vmem:[#allocation3 + $0x90] sm:$0xf] }
 0x4fa   : > { %6966 = vrot.lane.b32.xlu1 %v6885_v61, %s9086_s17  ;;  %7154 = vrot.lane.b32.xlu0 %v7074_v0, %s9087_s20  ;;  %v6481_v61 = vshll.u32 %v6193_v54, 16  ;;  %v6463_v0 = vrot.slane %v6461_v53, 4  ;;  %v6455_v16 = vrot.slane %v6454_v45, 4  ;;  %v6895_v15 = vrot.slane %v6754_v51, 5  ;;  %v7284_v45 = vld [vmem:[#allocation3 + $0x9c] sm:$0xf] }
 0x4fb   : > { %v7842_v51 = vld [vmem:[#allocation3 + $0x90] sm:$0xe] }
 0x4fc   : > { %v7137_v10 = vpop.permute.xlu1 %7136  ;;  %v7692_v8 = vpop.permute.xlu0 %7691  ;;  %v6483_v32 = vrot.slane %v6481_v61, 5  ;;  %v6464_v17 = vor.u32 %v6463_v0, %v6459_v58  ;;  %v6460_v31 = vsel %vm9212_vm13, %v6455_v16, %v6459_v58  ;;  %v6755_v61 = vld [vmem:[#allocation3 + $0x98] sm:$0x1]  ;;  %v6897_v6 = vrot.slane %v6895_v15, 4 }
 0x4fd   : > { %7226 = vst.msk [vmem:[#allocation5 + $0x1c] sm:$0xf] %vm7218_vm7, %v7137_v10  ;;  %v7841_v10 = vld [vmem:[#allocation3 + $0x8c] sm:$0x1] }
 0x4fe   : > { %7784 = vst.msk [vmem:[#allocation5 + $0x10] sm:$0xf] %vm7779_vm11, %v7692_v8  ;;  %7156 = vrot.lane.b32.xlu1 %v7075_v12, %s9087_s20  ;;  %7158 = vrot.lane.b32.xlu0 %v7076_v13, %s9087_s20  ;;  %v7975_v13 = vrot.slane %v7973_v59, 4  ;;  %v6465_v33 = vrot.slane %v6464_v17, 4  ;;  %v6488_v34 = vor.u32 %v6487_v20, %v6483_v32  ;;  %v6484_v35 = vsel %vm9212_vm13, %v6479_v36, %v6483_v32  ;;  %v7282_v59 = vld [vmem:[#allocation3 + $0x94] sm:$0xf] }
 0x4ff   : > { %v7549_v7 = vshll.u32 %v7282_v59, 16  ;;  %v7553_v9 = vshrl.u32 %v7282_v59, 16  ;;  %v6196_v59 = vld [vmem:[#allocation3 + $0xa0] sm:$0xf] }
 0x500   : > { %v7694_v21 = vpop.permute.xlu1 %7693  ;;  %v7696_v23 = vpop.permute.xlu0 %7695  ;;  %v6489_v48 = vrot.slane %v6488_v34, 4 }
 0x501   : > { %7785 = vst.msk [vmem:[#allocation5 + $0x14] sm:$0xf] %vm7779_vm11, %v7694_v21  ;;  %7786 = vst.msk [vmem:[#allocation5 + $0x18] sm:$0xf] %vm7779_vm11, %v7696_v23  ;;  %v465_v21 = vld [vmem:[#allocation3 + $0xd4] sm:$0x1] }
 0x502   : > { %7160 = vrot.lane.b32.xlu1 %v7077_v19, %s9087_s20  ;;  %7715 = vrot.lane.b32.xlu0 %v7504_v29, %s9088_s25  ;;  %v7976_v23 = vrot.slane %v7841_v10, 5  ;;  %v466_v55 = vsel %vm10497_vm0, 0, %v465_v21  ;;  %v7551_v17 = vrot.slane %v7549_v7, 5  ;;  %v7555_v18 = vrot.slane %v7553_v9, 4  ;;  %v7078_v21 = vld [vmem:[#allocation3 + $0x90] sm:$0xf] }
 0x503   : > { %467 = vst [vmem:[#allocation3 + $0xd4] sm:$0x1] %v466_v55 }
 0x504   : > { %v7698_v47 = vpop.permute.xlu1 %7697  ;;  %v8029_v41 = vpop.permute.xlu0 %8028  ;;  %v7977_v29 = vsel %vm9508_vm1, %v7975_v13, %v7976_v23  ;;  %v6898_v13 = vrot.slane %v6755_v61, 5 }
 0x505   : > { %7787 = vst.msk [vmem:[#allocation5 + $0x1c] sm:$0xf] %vm7779_vm11, %v7698_v47  ;;  %v6750_v47 = vld [vmem:[#allocation3 + $0x84] sm:$0xe] }
 0x506   : > { %8121 = vst.msk [vmem:[#allocation5 + $0x10] sm:$0xf] %vm8116_vm14, %v8029_v41  ;;  %7717 = vrot.lane.b32.xlu1 %v7514_v26, %s9088_s25  ;;  %7719 = vrot.lane.b32.xlu0 %v7528_v25, %s9088_s25  ;;  %v6888_v26 = vrot.slane %v6751_v28, 5  ;;  %v6470_v41 = vsel %vm9212_vm13, %v6465_v33, %v6469_v37  ;;  %v6493_v25 = vrot.slane %v6491_v38, 5  ;;  %v8789_v53 = vrot.slane %v6750_v47, 9 }
 0x507   : > { %v6899_v16 = vsel %vm9508_vm1, %v6897_v6, %v6898_v13  ;;  %v7283_v28 = vld [vmem:[#allocation3 + $0x98] sm:$0x1]  ;;  %v7843_v47 = vld [vmem:[#allocation3 + $0x94] sm:$0xf] }
 0x508   : > { %v8031_v60 = vpop.permute.xlu1 %8030  ;;  %v8033_v2 = vpop.permute.xlu0 %8032  ;;  %v6890_v54 = vrot.slane %v6888_v26, 4  ;;  %v6494_v42 = vsel %vm9212_vm13, %v6489_v48, %v6493_v25  ;;  %v6889_v57 = vsel %vm9508_vm1, %v8789_v53, %v6888_v26  ;;  %v7559_v38 = vshll.u32 %v7283_v28, 16  ;;  %v7286_v26 = vld [vmem:[#allocation3 + $0xa4] sm:$0x1]  ;;  %v6195_v53 = vld [vmem:[#allocation3 + $0x9c] sm:$0xf] }
 0x509   : > { %8122 = vst.msk [vmem:[#allocation5 + $0x14] sm:$0xf] %vm8116_vm14, %v8031_v60  ;;  %8123 = vst.msk [vmem:[#allocation5 + $0x18] sm:$0xf] %vm8116_vm14, %v8033_v2  ;;  %v7540_v60 = vshrl.u32 %v7281_v52, 16  ;;  %v7543_v2 = vshll.u32 %v7281_v52, 16 }
 0x50a   : > { %7721 = vrot.lane.b32.xlu1 %v7538_v1, %s9088_s25  ;;  %8052 = vrot.lane.b32.xlu0 %v7967_v62, %s9089_s6  ;;  %v6891_v62 = vrot.slane %v6752_v50, 5  ;;  %v8790_v1 = vrot.slane %v6753_v40, 9  ;;  %v7561_v52 = vrot.slane %v7559_v38, 5  ;;  %v7583_v25 = vshll.u32 %v7286_v26, 16  ;;  %v7844_v40 = vld [vmem:[#allocation3 + $0x98] sm:$0x1] }
 0x50b   : > { %v7542_v10 = vrot.slane %v7540_v60, 4 }
 0x50c   : > { %v8035_v8 = vpop.permute.xlu1 %8034  ;;  %v6608_v12 = vpop.permute.xlu0 %6607  ;;  %v6892_v58 = vsel %vm9508_vm1, %v6890_v54, %v6891_v62  ;;  %v6896_v5 = vsel %vm9508_vm1, %v8790_v1, %v6895_v15  ;;  %v7980_v54 = vrot.slane %v7843_v47, 5  ;;  %v6496_v1 = vshrl.u32 %v6195_v53, 16 }
 0x50d   : > { %8124 = vst.msk [vmem:[#allocation5 + $0x1c] sm:$0xf] %vm8116_vm14, %v8035_v8  ;;  %v7545_v8 = vrot.slane %v7543_v2, 5  ;;  %v7585_v61 = vrot.slane %v7583_v25, 5  ;;  %v5993_v25 = vld [vmem:[#allocation3 + $0xac] sm:$0xf] }
 0x50e   : > { %6696 = vst.msk [vmem:[#allocation5 + $0x20] sm:$0xf] %vm6687_vm3, %v6608_v12  ;;  %8054 = vrot.lane.b32.xlu1 %v7970_v39, %s9089_s6  ;;  %8056 = vrot.lane.b32.xlu0 %v7974_v63, %s9089_s6  ;;  %v7285_v12 = vld [vmem:[#allocation3 + $0xa0] sm:$0xf]  ;;  %v7564_v39 = vshrl.u32 %v7284_v45, 16  ;;  %v7567_v63 = vshll.u32 %v7284_v45, 16 }
 0x50f   : > { %v7573_v20 = vshll.u32 %v7285_v12, 16  ;;  %v7546_v23 = vor.u32 %v7545_v8, %v7542_v10  ;;  %v7577_v4 = vshrl.u32 %v7285_v12, 16  ;;  %v6499_v45 = vshll.u32 %v6195_v53, 16 }
 0x510   : > { %v6610_v24 = vpop.permute.xlu1 %6609  ;;  %v6612_v19 = vpop.permute.xlu0 %6611  ;;  %v9054_v30 = vld [vmem:[#allocation5 + $0x10] sm:$0xff]   ;;  %v7566_v55 = vrot.slane %v7564_v39, 4  ;;  %v7569_v27 = vrot.slane %v7567_v63, 5  ;;  %v6505_v8 = vshll.u32 %v6196_v59, 16  ;;  %v6509_v12 = vshrl.u32 %v6196_v59, 16 }
 0x511   : > { %6697 = vst.msk [vmem:[#allocation5 + $0x24] sm:$0xf] %vm6687_vm3, %v6610_v24  ;;  %6698 = vst.msk [vmem:[#allocation5 + $0x28] sm:$0xf] %vm6687_vm3, %v6612_v19  ;;  %8977 = vmatprep.mubr.msk.bf16.mxu1 %vm8304_vm15, %v9054_v30  ;;  %v7556_v30 = vor.u32 %v7555_v18, %v7551_v17  ;;  %v7547_v33 = vrot.slane %v7546_v23, 4  ;;  %v7575_v34 = vrot.slane %v7573_v20, 5 }
 0x512   : > { %8058 = vrot.lane.b32.xlu1 %v7977_v29, %s9089_s6  ;;  %6631 = vrot.lane.b32.xlu0 %v6460_v31, %s9085_s12  ;;  %v7079_v29 = vld [vmem:[#allocation3 + $0x94] sm:$0xf]  ;;  %v7080_v31 = vld [vmem:[#allocation3 + $0x9c] sm:$0xf]  ;;  %v7570_v36 = vor.u32 %v7569_v27, %v7566_v55  ;;  %v7579_v37 = vrot.slane %v7577_v4, 4  ;;  %v6498_v13 = vrot.slane %v6496_v1, 4 }
 0x513   : > { %v7847_v20 = vld [vmem:[#allocation3 + $0xa4] sm:$0x1]  ;;  %v6507_v27 = vrot.slane %v6505_v8, 5  ;;  %v6511_v4 = vrot.slane %v6509_v12, 4  ;;  %v6756_v59 = vld [vmem:[#allocation3 + $0x9c] sm:$0xe] }
 0x514   : > { %v6614_v43 = vpop.permute.xlu1 %6613  ;;  %v6945_v44 = vpop.permute.xlu0 %6944  ;;  %v9055_v46 = vld [vmem:[#allocation5 + $0x18] sm:$0xff]   ;;  %v7571_v48 = vrot.slane %v7570_v36, 4  ;;  %v7580_v50 = vor.u32 %v7579_v37, %v7575_v34  ;;  %v7288_v8 = vld [vmem:[#allocation3 + $0xac] sm:$0xf] }
 0x515   : > { %6699 = vst.msk [vmem:[#allocation5 + $0x2c] sm:$0xf] %vm6687_vm3, %v6614_v43  ;;  %8978 = vmatmul.mubr.msk.bf16.gmra.mxu1 %vm8304_vm15, %v9055_v46  ;;  %v7557_v46 = vrot.slane %v7556_v30, 4  ;;  %v6512_v26 = vor.u32 %v6511_v4, %v6507_v27 }
 0x516   : > { %7033 = vst.msk [vmem:[#allocation5 + $0x20] sm:$0xf] %vm7024_vm10, %v6945_v44  ;;  %6633 = vrot.lane.b32.xlu1 %v6470_v41, %s9085_s12  ;;  %6635 = vrot.lane.b32.xlu0 %v6484_v35, %s9085_s12  ;;  %v7081_v41 = vld [vmem:[#allocation3 + $0xa0] sm:$0xf]  ;;  %v7552_v35 = vsel %vm9212_vm13, %v7547_v33, %v7551_v17  ;;  %v7576_v60 = vsel %vm9212_vm13, %v7571_v48, %v7575_v34  ;;  %v7581_v2 = vrot.slane %v7580_v50, 4 }
 0x517   : > { %v7562_v15 = vsel %vm9212_vm13, %v7557_v46, %v7561_v52  ;;  %v6197_v33 = vld [vmem:[#allocation3 + $0xa4] sm:$0x1]  ;;  %v6200_v52 = vld [vmem:[#allocation3 + $0xb0] sm:$0x1] }
 0x518   : > { %v6947_v22 = vpop.permute.xlu1 %6946  ;;  %v6949_v56 = vpop.permute.xlu0 %6948  ;;  %v7586_v63 = vsel %vm9212_vm13, %v7581_v2, %v7585_v61  ;;  %v7287_v61 = vld [vmem:[#allocation3 + $0xa8] sm:$0xf] }
 0x519   : > { %7034 = vst.msk [vmem:[#allocation5 + $0x24] sm:$0xf] %vm7024_vm10, %v6947_v22  ;;  %7035 = vst.msk [vmem:[#allocation5 + $0x28] sm:$0xf] %vm7024_vm10, %v6949_v56  ;;  %v7845_v22 = vld [vmem:[#allocation3 + $0x9c] sm:$0xe] }
 0x51a   : > { %6637 = vrot.lane.b32.xlu1 %v6494_v42, %s9085_s12  ;;  %6968 = vrot.lane.b32.xlu0 %v6889_v57, %s9086_s17  ;;  %v8805_v42 = vrot.slane %v7842_v51, 9  ;;  %v7846_v57 = vld [vmem:[#allocation3 + $0xa0] sm:$0xf]  ;;  %v8806_v10 = vrot.slane %v7845_v22, 9  ;;  %v7588_v12 = vshrl.u32 %v7287_v61, 16 }
 0x51b   : > { %v7987_v6 = vrot.slane %v7846_v57, 5 }
 0x51c   : > { %v6951_v0 = vpop.permute.xlu1 %6950  ;;  %v7139_v3 = vpop.permute.xlu0 %7138 }
 0x51d   : > { %7036 = vst.msk [vmem:[#allocation5 + $0x2c] sm:$0xf] %vm7024_vm10, %v6951_v0  ;;  %v7981_v0 = vsel %vm9508_vm1, %v8805_v42, %v7980_v54  ;;  %v7988_v18 = vsel %vm9508_vm1, %v8806_v10, %v7987_v6  ;;  %v7989_v55 = vrot.slane %v7987_v6, 4  ;;  %v6759_v6 = vld [vmem:[#allocation3 + $0xa8] sm:$0xe] }
 0x51e   : > { %7227 = vst.msk [vmem:[#allocation5 + $0x20] sm:$0xf] %vm7218_vm7, %v7139_v3  ;;  %6970 = vrot.lane.b32.xlu1 %v6892_v58, %s9086_s17  ;;  %6972 = vrot.lane.b32.xlu0 %v6896_v5, %s9086_s17  ;;  %v6198_v58 = vld [vmem:[#allocation3 + $0xa8] sm:$0xf]  ;;  %v7982_v3 = vrot.slane %v7980_v54, 4  ;;  %v7983_v5 = vrot.slane %v7844_v40, 5 }
 0x51f   : > { %v6520_v39 = vshrl.u32 %v6198_v58, 16  ;;  %v6513_v54 = vrot.slane %v6512_v26, 4 }
 0x520   : > { %v7141_v14 = vpop.permute.xlu1 %7140  ;;  %v7143_v32 = vpop.permute.xlu0 %7142  ;;  %v7984_v17 = vsel %vm9508_vm1, %v7982_v3, %v7983_v5  ;;  %v8791_v3 = vrot.slane %v6756_v59, 9  ;;  %v6758_v5 = vld [vmem:[#allocation3 + $0xa4] sm:$0x1]  ;;  %v7085_v59 = vld [vmem:[#allocation3 + $0xb8] sm:$0xf] }
 0x521   : > { %7228 = vst.msk [vmem:[#allocation5 + $0x24] sm:$0xf] %vm7218_vm7, %v7141_v14  ;;  %7229 = vst.msk [vmem:[#allocation5 + $0x28] sm:$0xf] %vm7218_vm7, %v7143_v32  ;;  %v6501_v14 = vrot.slane %v6499_v45, 5  ;;  %v6523_v32 = vshll.u32 %v6198_v58, 16 }
 0x522   : > { %6974 = vrot.lane.b32.xlu1 %v6899_v16, %s9086_s17  ;;  %7162 = vrot.lane.b32.xlu0 %v7078_v21, %s9087_s20  ;;  %v6199_v16 = vld [vmem:[#allocation3 + $0xac] sm:$0xf]  ;;  %v6522_v28 = vrot.slane %v6520_v39, 4  ;;  %v7591_v39 = vshll.u32 %v7287_v61, 16 }
 0x523   : > { %v6533_v30 = vshrl.u32 %v6199_v16, 16  ;;  %v6760_v58 = vld [vmem:[#allocation3 + $0xac] sm:$0xf] }
 0x524   : > { %v7145_v24 = vpop.permute.xlu1 %7144  ;;  %v7700_v19 = vpop.permute.xlu0 %7699  ;;  %v6909_v10 = vrot.slane %v6760_v58, 5  ;;  %v7593_v4 = vrot.slane %v7591_v39, 5  ;;  %v7849_v61 = vld [vmem:[#allocation3 + $0xac] sm:$0xf] }
 0x525   : > { %7230 = vst.msk [vmem:[#allocation5 + $0x2c] sm:$0xf] %vm7218_vm7, %v7145_v24  ;;  %v6502_v24 = vor.u32 %v6501_v14, %v6498_v13  ;;  %v7994_v39 = vrot.slane %v7849_v61, 5 }
 0x526   : > { %7788 = vst.msk [vmem:[#allocation5 + $0x20] sm:$0xf] %vm7779_vm11, %v7700_v19  ;;  %7164 = vrot.lane.b32.xlu1 %v7079_v29, %s9087_s20  ;;  %7166 = vrot.lane.b32.xlu0 %v7080_v31, %s9087_s20  ;;  %v6525_v19 = vrot.slane %v6523_v32, 5  ;;  %v6529_v29 = vshll.u32 %v6199_v16, 16  ;;  %v7990_v31 = vrot.slane %v7847_v20, 5  ;;  %v6905_v16 = vrot.slane %v6758_v5, 5 }
 0x527   : > { %v7290_v32 = vld [vmem:[#allocation3 + $0xb4] sm:$0xf]  ;;  %v7597_v20 = vshll.u32 %v7288_v8, 16 }
 0x528   : > { %v7702_v43 = vpop.permute.xlu1 %7701  ;;  %v7704_v44 = vpop.permute.xlu0 %7703  ;;  %v7991_v37 = vsel %vm9508_vm1, %v7989_v55, %v7990_v31  ;;  %v6526_v46 = vor.u32 %v6525_v19, %v6522_v28  ;;  %v6531_v47 = vrot.slane %v6529_v29, 5  ;;  %v6911_v55 = vrot.slane %v6909_v10, 4 }
 0x529   : > { %7789 = vst.msk [vmem:[#allocation5 + $0x24] sm:$0xf] %vm7779_vm11, %v7702_v43  ;;  %7790 = vst.msk [vmem:[#allocation5 + $0x28] sm:$0xf] %vm7779_vm11, %v7704_v44  ;;  %v5992_v43 = vld [vmem:[#allocation3 + $0xa8] sm:$0xf] }
 0x52a   : > { %7168 = vrot.lane.b32.xlu1 %v7081_v41, %s9087_s20  ;;  %7723 = vrot.lane.b32.xlu0 %v7552_v35, %s9088_s25  ;;  %v6503_v44 = vrot.slane %v6502_v24, 4  ;;  %v6535_v41 = vrot.slane %v6533_v30, 4  ;;  %v6515_v35 = vshll.u32 %v6197_v33, 16  ;;  %v6527_v40 = vrot.slane %v6526_v46, 4  ;;  %v7291_v33 = vld [vmem:[#allocation3 + $0xb8] sm:$0xf] }
 0x52b   : > { %v7601_v28 = vshrl.u32 %v7288_v8, 16  ;;  %v7612_v29 = vshrl.u32 %v7290_v32, 16  ;;  %v7615_v30 = vshll.u32 %v7290_v32, 16  ;;  %v7599_v26 = vrot.slane %v7597_v20, 5  ;;  %v7851_v32 = vld [vmem:[#allocation3 + $0xb4] sm:$0xe] }
 0x52c   : > { %v7706_v56 = vpop.permute.xlu1 %7705  ;;  %v8037_v62 = vpop.permute.xlu0 %8036  ;;  %v6508_v53 = vsel %vm9212_vm13, %v6503_v44, %v6507_v27  ;;  %v6536_v22 = vor.u32 %v6535_v41, %v6531_v47  ;;  %v6532_v2 = vsel %vm9212_vm13, %v6527_v40, %v6531_v47  ;;  %v7590_v27 = vrot.slane %v7588_v12, 4  ;;  %v7082_v44 = vld [vmem:[#allocation3 + $0xa8] sm:$0xf] }
 0x52d   : > { %7791 = vst.msk [vmem:[#allocation5 + $0x2c] sm:$0xf] %vm7779_vm11, %v7706_v56  ;;  %v6757_v56 = vld [vmem:[#allocation3 + $0xa0] sm:$0xf]  ;;  %v7614_v46 = vrot.slane %v7612_v29, 4  ;;  %v7617_v47 = vrot.slane %v7615_v30, 5 }
 0x52e   : > { %8125 = vst.msk [vmem:[#allocation5 + $0x20] sm:$0xf] %vm8116_vm14, %v8037_v62  ;;  %7725 = vrot.lane.b32.xlu1 %v7562_v15, %s9088_s25  ;;  %7727 = vrot.lane.b32.xlu0 %v7576_v60, %s9088_s25  ;;  %v6517_v62 = vrot.slane %v6515_v35, 5  ;;  %v6539_v15 = vshll.u32 %v6200_v52, 16  ;;  %v6537_v1 = vrot.slane %v6536_v22, 4  ;;  %v6902_v45 = vrot.slane %v6757_v56, 5 }
 0x52f   : > { %v7621_v41 = vshll.u32 %v7291_v33, 16  ;;  %v7625_v35 = vshrl.u32 %v7291_v33, 16  ;;  %v7289_v52 = vld [vmem:[#allocation3 + $0xb0] sm:$0x1]  ;;  %v7618_v40 = vor.u32 %v7617_v47, %v7614_v46  ;;  %v7853_v29 = vld [vmem:[#allocation3 + $0xbc] sm:$0x1] }
 0x530   : > { %v8039_v7 = vpop.permute.xlu1 %8038  ;;  %v8041_v9 = vpop.permute.xlu0 %8040  ;;  %v6518_v60 = vsel %vm9212_vm13, %v6513_v54, %v6517_v62  ;;  %v6903_v13 = vsel %vm9508_vm1, %v8791_v3, %v6902_v45  ;;  %v6904_v14 = vrot.slane %v6902_v45, 4  ;;  %v7607_v62 = vshll.u32 %v7289_v52, 16 }
 0x531   : > { %8126 = vst.msk [vmem:[#allocation5 + $0x24] sm:$0xf] %vm8116_vm14, %v8039_v7  ;;  %8127 = vst.msk [vmem:[#allocation5 + $0x28] sm:$0xf] %vm8116_vm14, %v8041_v9  ;;  %v7623_v22 = vrot.slane %v7621_v41, 5  ;;  %v7627_v56 = vrot.slane %v7625_v35, 4 }
 0x532   : > { %7729 = vrot.lane.b32.xlu1 %v7586_v63, %s9088_s25  ;;  %8060 = vrot.lane.b32.xlu0 %v7981_v0, %s9089_s6  ;;  %v6541_v0 = vrot.slane %v6539_v15, 5  ;;  %v6906_v24 = vsel %vm9508_vm1, %v6904_v14, %v6905_v16  ;;  %v7292_v15 = vld [vmem:[#allocation3 + $0xbc] sm:$0x1]  ;;  %v8004_v41 = vrot.slane %v7853_v29, 5  ;;  %v6205_v35 = vld [vmem:[#allocation3 + $0xc4] sm:$0xf] }
 0x533   : > { %v7628_v45 = vor.u32 %v7627_v56, %v7623_v22  ;;  %v7631_v58 = vshll.u32 %v7292_v15, 16  ;;  %v6581_v15 = vshrl.u32 %v6205_v35, 16 }
 0x534   : > { %v8043_v21 = vpop.permute.xlu1 %8042  ;;  %v6616_v23 = vpop.permute.xlu0 %6615  ;;  %v6542_v63 = vsel %vm9212_vm13, %v6537_v1, %v6541_v0  ;;  %v7619_v1 = vrot.slane %v7618_v40, 4  ;;  %v7609_v0 = vrot.slane %v7607_v62, 5  ;;  %v5994_v40 = vld [vmem:[#allocation3 + $0xb4] sm:$0xf]  ;;  %v6577_v62 = vshll.u32 %v6205_v35, 16 }
 0x535   : > { %8128 = vst.msk [vmem:[#allocation5 + $0x2c] sm:$0xf] %vm8116_vm14, %v8043_v21  ;;  %v7629_v12 = vrot.slane %v7628_v45, 4 }
 0x536   : > { %6700 = vst.msk [vmem:[#allocation5 + $0x30] sm:$0xf] %vm6687_vm3, %v6616_v23  ;;  %8062 = vrot.lane.b32.xlu1 %v7984_v17, %s9089_s6  ;;  %8064 = vrot.lane.b32.xlu0 %v7988_v18, %s9089_s6  ;;  %v8792_v17 = vrot.slane %v6759_v6, 9  ;;  %v6761_v18 = vld [vmem:[#allocation3 + $0xb0] sm:$0x1]  ;;  %v7624_v8 = vsel %vm9212_vm13, %v7619_v1, %v7623_v22  ;;  %v6579_v61 = vrot.slane %v6577_v62, 5 }
 0x537   : > { %v6912_v31 = vrot.slane %v6761_v18, 5  ;;  %v7848_v6 = vld [vmem:[#allocation3 + $0xa8] sm:$0xe]  ;;  %v5996_v1 = vld [vmem:[#allocation3 + $0xc0] sm:$0xf] }
 0x538   : > { %v6618_v36 = vpop.permute.xlu1 %6617  ;;  %v6620_v34 = vpop.permute.xlu0 %6619  ;;  %v9056_v38 = vld [vmem:[#allocation5 + $0x20] sm:$0xff]   ;;  %v6910_v19 = vsel %vm9508_vm1, %v8792_v17, %v6909_v10  ;;  %v8807_v14 = vrot.slane %v7848_v6, 9 }
 0x539   : > { %6701 = vst.msk [vmem:[#allocation5 + $0x34] sm:$0xf] %vm6687_vm3, %v6618_v36  ;;  %6702 = vst.msk [vmem:[#allocation5 + $0x38] sm:$0xf] %vm6687_vm3, %v6620_v34  ;;  %8981 = vmatprep.mubr.msk.bf16.mxu1 %vm8304_vm15, %v9056_v38  ;;  %v7594_v38 = vor.u32 %v7593_v4, %v7590_v27  ;;  %v7996_v4 = vrot.slane %v7994_v39, 4 }
 0x53a   : > { %8066 = vrot.lane.b32.xlu1 %v7991_v37, %s9089_s6  ;;  %6082 = vrot.lane.b32.xlu0 %v5992_v43, %s9083_s29  ;;  %v6913_v37 = vsel %vm9508_vm1, %v6911_v55, %v6912_v31  ;;  %v7603_v43 = vrot.slane %v7601_v28, 4  ;;  %v7995_v27 = vsel %vm9508_vm1, %v8807_v14, %v7994_v39 }
 0x53b   : > { %v7595_v54 = vrot.slane %v7594_v38, 4 }
 0x53c   : > { %v6622_v48 = vpop.permute.xlu1 %6621  ;;  %v6953_v50 = vpop.permute.xlu0 %6952  ;;  %v9057_v51 = vld [vmem:[#allocation5 + $0x28] sm:$0xff]  }
 0x53d   : > { %6703 = vst.msk [vmem:[#allocation5 + $0x3c] sm:$0xf] %vm6687_vm3, %v6622_v48  ;;  %8982 = vmatmul.mubr.msk.bf16.gmra.mxu1 %vm8304_vm15, %v9057_v51  ;;  %v7083_v51 = vld [vmem:[#allocation3 + $0xac] sm:$0xf] }
 0x53e   : > { %7037 = vst.msk [vmem:[#allocation5 + $0x30] sm:$0xf] %vm7024_vm10, %v6953_v50  ;;  %6084 = vrot.lane.b32.xlu1 %v5993_v25, %s9083_s29  ;;  %6639 = vrot.lane.b32.xlu0 %v6508_v53, %s9085_s12  ;;  %v7604_v25 = vor.u32 %v7603_v43, %v7599_v26  ;;  %v7084_v53 = vld [vmem:[#allocation3 + $0xb4] sm:$0xf] }
 0x540   : > { %v6955_v42 = vpop.permute.xlu1 %6954  ;;  %v6957_v57 = vpop.permute.xlu0 %6956 }
 0x541   : > { %7038 = vst.msk [vmem:[#allocation5 + $0x34] sm:$0xf] %vm7024_vm10, %v6955_v42  ;;  %7039 = vst.msk [vmem:[#allocation5 + $0x38] sm:$0xf] %vm7024_vm10, %v6957_v57 }
 0x542   : > { %6641 = vrot.lane.b32.xlu1 %v6518_v60, %s9085_s12  ;;  %6643 = vrot.lane.b32.xlu0 %v6532_v2, %s9085_s12  ;;  %v7600_v60 = vsel %vm9212_vm13, %v7595_v54, %v7599_v26  ;;  %v7605_v2 = vrot.slane %v7604_v25, 4 }
 0x544   : > { %v6959_v7 = vpop.permute.xlu1 %6958  ;;  %v7147_v9 = vpop.permute.xlu0 %7146  ;;  %v7610_v10 = vsel %vm9212_vm13, %v7605_v2, %v7609_v0  ;;  %v5995_v2 = vld [vmem:[#allocation3 + $0xb8] sm:$0xf]  ;;  %v6583_v0 = vrot.slane %v6581_v15, 4 }
 0x545   : > { %7040 = vst.msk [vmem:[#allocation5 + $0x3c] sm:$0xf] %vm7024_vm10, %v6959_v7  ;;  %v7852_v7 = vld [vmem:[#allocation3 + $0xb8] sm:$0xf] }
 0x546   : > { %7231 = vst.msk [vmem:[#allocation5 + $0x30] sm:$0xf] %vm7218_vm7, %v7147_v9  ;;  %6645 = vrot.lane.b32.xlu1 %v6542_v63, %s9085_s12  ;;  %6976 = vrot.lane.b32.xlu0 %v6903_v13, %s9086_s17  ;;  %v6201_v9 = vld [vmem:[#allocation3 + $0xb4] sm:$0xf]  ;;  %v7633_v63 = vrot.slane %v7631_v58, 5  ;;  %v8001_v16 = vrot.slane %v7852_v7, 5  ;;  %v6584_v39 = vor.u32 %v6583_v0, %v6579_v61 }
 0x547   : > { %v7850_v13 = vld [vmem:[#allocation3 + $0xb0] sm:$0x1]  ;;  %v6544_v17 = vshrl.u32 %v6201_v9, 16  ;;  %v6547_v18 = vshll.u32 %v6201_v9, 16  ;;  %v6206_v7 = vld [vmem:[#allocation3 + $0xc8] sm:$0x1] }
 0x548   : > { %v7149_v21 = vpop.permute.xlu1 %7148  ;;  %v7151_v23 = vpop.permute.xlu0 %7150  ;;  %v7634_v55 = vsel %vm9212_vm13, %v7629_v12, %v7633_v63  ;;  %v7997_v28 = vrot.slane %v7850_v13, 5  ;;  %v8003_v30 = vrot.slane %v8001_v16, 4  ;;  %v5997_v9 = vld [vmem:[#allocation3 + $0xc4] sm:$0xf]  ;;  %v6763_v63 = vld [vmem:[#allocation3 + $0xb8] sm:$0xf] }
 0x549   : > { %7232 = vst.msk [vmem:[#allocation5 + $0x34] sm:$0xf] %vm7218_vm7, %v7149_v21  ;;  %7233 = vst.msk [vmem:[#allocation5 + $0x38] sm:$0xf] %vm7218_vm7, %v7151_v23  ;;  %v6202_v23 = vld [vmem:[#allocation3 + $0xb8] sm:$0xf] }
 0x54a   : > { %6978 = vrot.lane.b32.xlu1 %v6906_v24, %s9086_s17  ;;  %6980 = vrot.lane.b32.xlu0 %v6910_v19, %s9086_s17  ;;  %v8808_v24 = vrot.slane %v7851_v32, 9  ;;  %v6204_v19 = vld [vmem:[#allocation3 + $0xc0] sm:$0xf]  ;;  %v6546_v31 = vrot.slane %v6544_v17, 4  ;;  %v6549_v33 = vrot.slane %v6547_v18, 5  ;;  %v6557_v26 = vshrl.u32 %v6202_v23, 16 }
 0x54b   : > { %v7998_v43 = vsel %vm9508_vm1, %v7996_v4, %v7997_v28  ;;  %v6568_v46 = vshrl.u32 %v6204_v19, 16  ;;  %v6571_v47 = vshll.u32 %v6204_v19, 16  ;;  %v6587_v14 = vshll.u32 %v6206_v7, 16  ;;  %v6762_v17 = vld [vmem:[#allocation3 + $0xb4] sm:$0xe] }
 0x54c   : > { %v7153_v36 = vpop.permute.xlu1 %7152  ;;  %v7708_v34 = vpop.permute.xlu0 %7707  ;;  %v6550_v25 = vor.u32 %v6549_v33, %v6546_v31  ;;  %v6559_v54 = vrot.slane %v6557_v26, 4  ;;  %v6916_v18 = vrot.slane %v6763_v63, 5  ;;  %v8793_v28 = vrot.slane %v6762_v17, 9  ;;  %v6765_v19 = vld [vmem:[#allocation3 + $0xc0] sm:$0xe] }
 0x54d   : > { %7234 = vst.msk [vmem:[#allocation5 + $0x3c] sm:$0xf] %vm7218_vm7, %v7153_v36  ;;  %v6553_v36 = vshll.u32 %v6202_v23, 16  ;;  %v6570_v22 = vrot.slane %v6568_v46, 4  ;;  %v6573_v56 = vrot.slane %v6571_v47, 5  ;;  %v6585_v23 = vrot.slane %v6584_v39, 4 }
 0x54e   : > { %7792 = vst.msk [vmem:[#allocation5 + $0x30] sm:$0xf] %vm7779_vm11, %v7708_v34  ;;  %6982 = vrot.lane.b32.xlu1 %v6913_v37, %s9086_s17  ;;  %7170 = vrot.lane.b32.xlu0 %v7082_v44, %s9087_s20  ;;  %v8002_v44 = vsel %vm9508_vm1, %v8808_v24, %v8001_v16  ;;  %v6589_v4 = vrot.slane %v6587_v14, 5  ;;  %v6764_v24 = vld [vmem:[#allocation3 + $0xbc] sm:$0x1]  ;;  %v6918_v31 = vrot.slane %v6916_v18, 4 }
 0x54f   : > { %v6574_v58 = vor.u32 %v6573_v56, %v6570_v22  ;;  %v7294_v46 = vld [vmem:[#allocation3 + $0xc4] sm:$0xf]  ;;  %v6767_v47 = vld [vmem:[#allocation3 + $0xc8] sm:$0x1] }
 0x550   : > { %v7710_v48 = vpop.permute.xlu1 %7709  ;;  %v7712_v50 = vpop.permute.xlu0 %7711  ;;  %v7645_v22 = vshll.u32 %v7294_v46, 16  ;;  %v7649_v56 = vshrl.u32 %v7294_v46, 16  ;;  %v6926_v62 = vrot.slane %v6767_v47, 5  ;;  %v7087_v39 = vld [vmem:[#allocation3 + $0xc4] sm:$0xf] }
 0x551   : > { %7793 = vst.msk [vmem:[#allocation5 + $0x34] sm:$0xf] %vm7779_vm11, %v7710_v48  ;;  %7794 = vst.msk [vmem:[#allocation5 + $0x38] sm:$0xf] %vm7779_vm11, %v7712_v50  ;;  %v6575_v12 = vrot.slane %v6574_v58, 4 }
 0x552   : > { %7172 = vrot.lane.b32.xlu1 %v7083_v51, %s9087_s20  ;;  %7174 = vrot.lane.b32.xlu0 %v7084_v53, %s9087_s20  ;;  %v8005_v51 = vsel %vm9508_vm1, %v8003_v30, %v8004_v41  ;;  %v6555_v53 = vrot.slane %v6553_v36, 5  ;;  %v7296_v36 = vld [vmem:[#allocation3 + $0xcc] sm:$0xf]  ;;  %v7651_v0 = vrot.slane %v7649_v56, 4 }
 0x553   : > { %v7660_v41 = vshrl.u32 %v7296_v36, 16  ;;  %v7663_v35 = vshll.u32 %v7296_v36, 16 }
 0x554   : > { %v7714_v42 = vpop.permute.xlu1 %7713  ;;  %v8045_v57 = vpop.permute.xlu0 %8044  ;;  %v6560_v45 = vor.u32 %v6559_v54, %v6555_v53 }
 0x555   : > { %7795 = vst.msk [vmem:[#allocation5 + $0x3c] sm:$0xf] %vm7779_vm11, %v7714_v42  ;;  %v7662_v15 = vrot.slane %v7660_v41, 4 }
 0x556   : > { %8129 = vst.msk [vmem:[#allocation5 + $0x30] sm:$0xf] %vm8116_vm14, %v8045_v57  ;;  %7176 = vrot.lane.b32.xlu1 %v7085_v59, %s9087_s20  ;;  %7731 = vrot.lane.b32.xlu0 %v7600_v60, %s9088_s25  ;;  %v6551_v59 = vrot.slane %v6550_v25, 4  ;;  %v6203_v60 = vld [vmem:[#allocation3 + $0xbc] sm:$0x1] }
 0x558   : > { %v8047_v3 = vpop.permute.xlu1 %8046  ;;  %v8049_v5 = vpop.permute.xlu0 %8048 }
 0x559   : > { %8130 = vst.msk [vmem:[#allocation5 + $0x34] sm:$0xf] %vm8116_vm14, %v8047_v3  ;;  %8131 = vst.msk [vmem:[#allocation5 + $0x38] sm:$0xf] %vm8116_vm14, %v8049_v5  ;;  %v6563_v3 = vshll.u32 %v6203_v60, 16 }
 0x55a   : > { %7733 = vrot.lane.b32.xlu1 %v7610_v10, %s9088_s25  ;;  %7735 = vrot.lane.b32.xlu0 %v7624_v8, %s9088_s25  ;;  %v6556_v10 = vsel %vm9212_vm13, %v6551_v59, %v6555_v53  ;;  %v6561_v8 = vrot.slane %v6560_v45, 4  ;;  %v7297_v53 = vld [vmem:[#allocation3 + $0xd0] sm:$0xf]  ;;  %v7086_v45 = vld [vmem:[#allocation3 + $0xc0] sm:$0xf] }
 0x55b   : > { %v6565_v13 = vrot.slane %v6563_v3, 5  ;;  %v7673_v59 = vshrl.u32 %v7297_v53, 16  ;;  %v7088_v3 = vld [vmem:[#allocation3 + $0xcc] sm:$0xf] }
 0x55c   : > { %v8051_v20 = vpop.permute.xlu1 %8050  ;;  %v6624_v21 = vpop.permute.xlu0 %6623 }
 0x55d   : > { %8132 = vst.msk [vmem:[#allocation5 + $0x3c] sm:$0xf] %vm8116_vm14, %v8051_v20  ;;  %v6566_v20 = vsel %vm9212_vm13, %v6561_v8, %v6565_v13 }
 0x55e   : > { %6704 = vst.msk [vmem:[#allocation5 + $0x40] sm:$0xf] %vm6687_vm3, %v6624_v21  ;;  %7737 = vrot.lane.b32.xlu1 %v7634_v55, %s9088_s25  ;;  %8068 = vrot.lane.b32.xlu0 %v7995_v27, %s9089_s6  ;;  %v6580_v21 = vsel %vm9212_vm13, %v6575_v12, %v6579_v61  ;;  %v6766_v55 = vld [vmem:[#allocation3 + $0xc4] sm:$0xf]  ;;  %v7293_v27 = vld [vmem:[#allocation3 + $0xc0] sm:$0xf] }
 0x55f   : > { %v6923_v33 = vrot.slane %v6766_v55, 5  ;;  %v7639_v26 = vshll.u32 %v7293_v27, 16  ;;  %v7647_v61 = vrot.slane %v7645_v22, 5  ;;  %v7298_v12 = vld [vmem:[#allocation3 + $0xd4] sm:$0x1] }
 0x560   : > { %v6626_v34 = vpop.permute.xlu1 %6625  ;;  %v6628_v37 = vpop.permute.xlu0 %6627  ;;  %v9058_v38 = vld [vmem:[#allocation5 + $0x30] sm:$0xff]  }
 0x561   : > { %6705 = vst.msk [vmem:[#allocation5 + $0x44] sm:$0xf] %vm6687_vm3, %v6626_v34  ;;  %6706 = vst.msk [vmem:[#allocation5 + $0x48] sm:$0xf] %vm6687_vm3, %v6628_v37  ;;  %8985 = vmatprep.mubr.msk.bf16.mxu1 %vm8304_vm15, %v9058_v38  ;;  %v6590_v34 = vsel %vm9212_vm13, %v6585_v23, %v6589_v4  ;;  %v6917_v37 = vsel %vm9508_vm1, %v8793_v28, %v6916_v18  ;;  %v7636_v38 = vshrl.u32 %v7293_v27, 16  ;;  %v6925_v25 = vrot.slane %v6923_v33, 4 }
 0x562   : > { %8070 = vrot.lane.b32.xlu1 %v7998_v43, %s9089_s6  ;;  %8072 = vrot.lane.b32.xlu0 %v8002_v44, %s9089_s6  ;;  %v6919_v43 = vrot.slane %v6764_v24, 5  ;;  %v8794_v44 = vrot.slane %v6765_v19, 9  ;;  %v7652_v13 = vor.u32 %v7651_v0, %v7647_v61  ;;  %v7679_v18 = vshll.u32 %v7298_v12, 16  ;;  %v7854_v4 = vld [vmem:[#allocation3 + $0xc0] sm:$0xe] }
 0x563   : > { %v7638_v54 = vrot.slane %v7636_v38, 4  ;;  %v7855_v28 = vld [vmem:[#allocation3 + $0xc4] sm:$0xf] }
 0x564   : > { %v6630_v48 = vpop.permute.xlu1 %6629  ;;  %v6961_v50 = vpop.permute.xlu0 %6960  ;;  %v9059_v52 = vld [vmem:[#allocation5 + $0x38] sm:$0xff]   ;;  %v7653_v55 = vrot.slane %v7652_v13, 4  ;;  %v8008_v38 = vrot.slane %v7855_v28, 5 }
 0x565   : > { %6707 = vst.msk [vmem:[#allocation5 + $0x4c] sm:$0xf] %vm6687_vm3, %v6630_v48  ;;  %8986 = vmatmul.mubr.msk.bf16.gmra.mxu1 %vm8304_vm15, %v9059_v52  ;;  %v6924_v52 = vsel %vm9508_vm1, %v8794_v44, %v6923_v33  ;;  %v7856_v44 = vld [vmem:[#allocation3 + $0xc8] sm:$0x1] }
 0x566   : > { %7041 = vst.msk [vmem:[#allocation5 + $0x40] sm:$0xf] %vm7024_vm10, %v6961_v50  ;;  %8074 = vrot.lane.b32.xlu1 %v8005_v51, %s9089_s6  ;;  %6086 = vrot.lane.b32.xlu0 %v5994_v40, %s9083_s29  ;;  %v6920_v51 = vsel %vm9508_vm1, %v6918_v31, %v6919_v43  ;;  %v7641_v40 = vrot.slane %v7639_v26, 5  ;;  %v7857_v31 = vld [vmem:[#allocation3 + $0xcc] sm:$0xe]  ;;  %v8809_v43 = vrot.slane %v7854_v4, 9 }
 0x567   : > { %v8810_v47 = vrot.slane %v7857_v31, 9  ;;  %v8011_v11 = vrot.slane %v7856_v44, 5 }
 0x568   : > { %v6963_v42 = vpop.permute.xlu1 %6962  ;;  %v6965_v57 = vpop.permute.xlu0 %6964  ;;  %v7642_v58 = vor.u32 %v7641_v40, %v7638_v54 }
 0x569   : > { %7042 = vst.msk [vmem:[#allocation5 + $0x44] sm:$0xf] %vm7024_vm10, %v6963_v42  ;;  %7043 = vst.msk [vmem:[#allocation5 + $0x48] sm:$0xf] %vm7024_vm10, %v6965_v57  ;;  %v7665_v42 = vrot.slane %v7663_v35, 5  ;;  %v7669_v57 = vshll.u32 %v7297_v53, 16 }
 0x56a   : > { %6088 = vrot.lane.b32.xlu1 %v5995_v2, %s9083_s29  ;;  %6090 = vrot.lane.b32.xlu0 %v5996_v1, %s9083_s29  ;;  %v6927_v1 = vsel %vm9508_vm1, %v6925_v25, %v6926_v62  ;;  %v7643_v63 = vrot.slane %v7642_v58, 4 }
 0x56b   : > { %v7671_v7 = vrot.slane %v7669_v57, 5 }
 0x56c   : > { %v6967_v5 = vpop.permute.xlu1 %6966  ;;  %v7155_v6 = vpop.permute.xlu0 %7154  ;;  %v7648_v23 = vsel %vm9212_vm13, %v7643_v63, %v7647_v61 }
 0x56d   : > { %7044 = vst.msk [vmem:[#allocation5 + $0x4c] sm:$0xf] %vm7024_vm10, %v6967_v5  ;;  %v7295_v5 = vld [vmem:[#allocation3 + $0xc8] sm:$0x1] }
 0x56e   : > { %7235 = vst.msk [vmem:[#allocation5 + $0x40] sm:$0xf] %vm7218_vm7, %v7155_v6  ;;  %6092 = vrot.lane.b32.xlu1 %v5997_v9, %s9083_s29  ;;  %6647 = vrot.lane.b32.xlu0 %v6556_v10, %s9085_s12  ;;  %v7666_v6 = vor.u32 %v7665_v42, %v7662_v15  ;;  %v7675_v9 = vrot.slane %v7673_v59, 4  ;;  %v7655_v14 = vshll.u32 %v7295_v5, 16 }
 0x570   : > { %v7157_v32 = vpop.permute.xlu1 %7156  ;;  %v7159_v16 = vpop.permute.xlu0 %7158  ;;  %v7676_v17 = vor.u32 %v7675_v9, %v7671_v7  ;;  %v7657_v27 = vrot.slane %v7655_v14, 5 }
 0x571   : > { %7236 = vst.msk [vmem:[#allocation5 + $0x44] sm:$0xf] %vm7218_vm7, %v7157_v32  ;;  %7237 = vst.msk [vmem:[#allocation5 + $0x48] sm:$0xf] %vm7218_vm7, %v7159_v16  ;;  %v7089_v32 = vld [vmem:[#allocation3 + $0xd0] sm:$0xf] }
 0x572   : > { %6649 = vrot.lane.b32.xlu1 %v6566_v20, %s9085_s12  ;;  %6651 = vrot.lane.b32.xlu0 %v6580_v21, %s9085_s12  ;;  %v7667_v16 = vrot.slane %v7666_v6, 4  ;;  %v7677_v19 = vrot.slane %v7676_v17, 4  ;;  %v11695_v6 = vld [vmem:[%s11857_s4] ss:$0 sm:$0xff] }
 0x574   : > { %v7161_v29 = vpop.permute.xlu1 %7160  ;;  %v7716_v30 = vpop.permute.xlu0 %7715  ;;  %v7672_v24 = vsel %vm9212_vm13, %v7667_v16, %v7671_v7 }
 0x575   : > { %7238 = vst.msk [vmem:[#allocation5 + $0x4c] sm:$0xf] %vm7218_vm7, %v7161_v29  ;;  %v7681_v29 = vrot.slane %v7679_v18, 5 }
 0x576   : > { %7796 = vst.msk [vmem:[#allocation5 + $0x40] sm:$0xf] %vm7779_vm11, %v7716_v30  ;;  %6653 = vrot.lane.b32.xlu1 %v6590_v34, %s9085_s12  ;;  %6984 = vrot.lane.b32.xlu0 %v6917_v37, %s9086_s17  ;;  %v7858_v30 = vld [vmem:[#allocation3 + $0xd0] sm:$0xf]  ;;  %v7658_v37 = vsel %vm9212_vm13, %v7653_v55, %v7657_v27 }
 0x577   : > { %v7682_v26 = vsel %vm9212_vm13, %v7677_v19, %v7681_v29  ;;  %v8015_v46 = vrot.slane %v7858_v30, 5  ;;  %vm8550_vm13 = vcmask 64512  }
 0x578   : > { %v7718_v48 = vpop.permute.xlu1 %7717  ;;  %v7720_v50 = vpop.permute.xlu0 %7719 }
 0x579   : > { %7797 = vst.msk [vmem:[#allocation5 + $0x44] sm:$0xf] %vm7779_vm11, %v7718_v48  ;;  %7798 = vst.msk [vmem:[#allocation5 + $0x48] sm:$0xf] %vm7779_vm11, %v7720_v50  ;;  %v7859_v50 = vld [vmem:[#allocation3 + $0xd4] sm:$0x1]  ;;  %v8016_v54 = vsel %vm9508_vm1, %v8810_v47, %v8015_v46 }
 0x57a   : > { %6986 = vrot.lane.b32.xlu1 %v6920_v51, %s9086_s17  ;;  %6988 = vrot.lane.b32.xlu0 %v6924_v52, %s9086_s17  ;;  %v8009_v51 = vsel %vm9508_vm1, %v8809_v43, %v8008_v38  ;;  %v8010_v52 = vrot.slane %v8008_v38, 4  ;;  %v8017_v25 = vrot.slane %v8015_v46, 4  ;;  %v8018_v53 = vrot.slane %v7859_v50, 5 }
 0x57c   : > { %v7722_v60 = vpop.permute.xlu1 %7721  ;;  %v8053_v2 = vpop.permute.xlu0 %8052  ;;  %v8012_v56 = vsel %vm9508_vm1, %v8010_v52, %v8011_v11  ;;  %v8019_v62 = vsel %vm9508_vm1, %v8017_v25, %v8018_v53 }
 0x57d   : > { %7799 = vst.msk [vmem:[#allocation5 + $0x4c] sm:$0xf] %vm7779_vm11, %v7722_v60 }
 0x57e   : > { %8133 = vst.msk [vmem:[#allocation5 + $0x40] sm:$0xf] %vm8116_vm14, %v8053_v2  ;;  %6990 = vrot.lane.b32.xlu1 %v6927_v1, %s9086_s17  ;;  %7178 = vrot.lane.b32.xlu0 %v7086_v45, %s9087_s20 }
 0x580   : > { %v8055_v10 = vpop.permute.xlu1 %8054  ;;  %v8057_v8 = vpop.permute.xlu0 %8056 }
 0x581   : > { %8134 = vst.msk [vmem:[#allocation5 + $0x44] sm:$0xf] %vm8116_vm14, %v8055_v10  ;;  %8135 = vst.msk [vmem:[#allocation5 + $0x48] sm:$0xf] %vm8116_vm14, %v8057_v8 }
 0x582   : > { %7180 = vrot.lane.b32.xlu1 %v7087_v39, %s9087_s20  ;;  %7182 = vrot.lane.b32.xlu0 %v7088_v3, %s9087_s20 }
 0x584   : > { %v8059_v20 = vpop.permute.xlu1 %8058  ;;  %v6632_v21 = vpop.permute.xlu0 %6631 }
 0x585   : > { %8136 = vst.msk [vmem:[#allocation5 + $0x4c] sm:$0xf] %vm8116_vm14, %v8059_v20 }
 0x586   : > { %6708 = vst.msk [vmem:[#allocation5 + $0x50] sm:$0xf] %vm6687_vm3, %v6632_v21  ;;  %7184 = vrot.lane.b32.xlu1 %v7089_v32, %s9087_s20  ;;  %7739 = vrot.lane.b32.xlu0 %v7648_v23, %s9088_s25 }
 0x588   : > { %v6634_v33 = vpop.permute.xlu1 %6633  ;;  %v6636_v36 = vpop.permute.xlu0 %6635  ;;  %v9060_v34 = vld [vmem:[#allocation5 + $0x40] sm:$0xff]  }
 0x589   : > { %6709 = vst.msk [vmem:[#allocation5 + $0x54] sm:$0xf] %vm6687_vm3, %v6634_v33  ;;  %6710 = vst.msk [vmem:[#allocation5 + $0x58] sm:$0xf] %vm6687_vm3, %v6636_v36  ;;  %8989 = vmatprep.mubr.msk.bf16.mxu1 %vm8304_vm15, %v9060_v34 }
 0x58a   : > { %7741 = vrot.lane.b32.xlu1 %v7658_v37, %s9088_s25  ;;  %7743 = vrot.lane.b32.xlu0 %v7672_v24, %s9088_s25 }
 0x58c   : > { %v6638_v41 = vpop.permute.xlu1 %6637  ;;  %v6969_v35 = vpop.permute.xlu0 %6968  ;;  %v9061_v48 = vld [vmem:[#allocation5 + $0x48] sm:$0xff]  }
 0x58d   : > { %6711 = vst.msk [vmem:[#allocation5 + $0x5c] sm:$0xf] %vm6687_vm3, %v6638_v41  ;;  %8990 = vmatmul.mubr.msk.bf16.gmra.mxu1 %vm8304_vm15, %v9061_v48 }
 0x58e   : > { %7045 = vst.msk [vmem:[#allocation5 + $0x50] sm:$0xf] %vm7024_vm10, %v6969_v35  ;;  %7745 = vrot.lane.b32.xlu1 %v7682_v26, %s9088_s25  ;;  %8076 = vrot.lane.b32.xlu0 %v8009_v51, %s9089_s6 }
 0x590   : > { %v6971_v40 = vpop.permute.xlu1 %6970  ;;  %v6973_v22 = vpop.permute.xlu0 %6972 }
 0x591   : > { %7046 = vst.msk [vmem:[#allocation5 + $0x54] sm:$0xf] %vm7024_vm10, %v6971_v40  ;;  %7047 = vst.msk [vmem:[#allocation5 + $0x58] sm:$0xf] %vm7024_vm10, %v6973_v22 }
 0x592   : > { %8078 = vrot.lane.b32.xlu1 %v8012_v56, %s9089_s6  ;;  %8080 = vrot.lane.b32.xlu0 %v8016_v54, %s9089_s6 }
 0x594   : > { %v6975_v15 = vpop.permute.xlu1 %6974  ;;  %v7163_v42 = vpop.permute.xlu0 %7162 }
 0x595   : > { %7048 = vst.msk [vmem:[#allocation5 + $0x5c] sm:$0xf] %vm7024_vm10, %v6975_v15 }
 0x596   : > { %7239 = vst.msk [vmem:[#allocation5 + $0x50] sm:$0xf] %vm7218_vm7, %v7163_v42  ;;  %8082 = vrot.lane.b32.xlu1 %v8019_v62, %s9089_s6 }
 0x598   : > { %v7165_v57 = vpop.permute.xlu1 %7164  ;;  %v7167_v59 = vpop.permute.xlu0 %7166 }
 0x599   : > { %7240 = vst.msk [vmem:[#allocation5 + $0x54] sm:$0xf] %vm7218_vm7, %v7165_v57  ;;  %7241 = vst.msk [vmem:[#allocation5 + $0x58] sm:$0xf] %vm7218_vm7, %v7167_v59 }
 0x59c   : > { %v7169_v60 = vpop.permute.xlu1 %7168  ;;  %v7724_v2 = vpop.permute.xlu0 %7723 }
 0x59d   : > { %7242 = vst.msk [vmem:[#allocation5 + $0x5c] sm:$0xf] %vm7218_vm7, %v7169_v60 }
 0x59e   : > { %7800 = vst.msk [vmem:[#allocation5 + $0x50] sm:$0xf] %vm7779_vm11, %v7724_v2 }
 0x5a0   : > { %v7726_v49 = vpop.permute.xlu1 %7725  ;;  %v7728_v1 = vpop.permute.xlu0 %7727 }
 0x5a1   : > { %7801 = vst.msk [vmem:[#allocation5 + $0x54] sm:$0xf] %vm7779_vm11, %v7726_v49  ;;  %7802 = vst.msk [vmem:[#allocation5 + $0x58] sm:$0xf] %vm7779_vm11, %v7728_v1 }
 0x5a4   : > { %v7730_v45 = vpop.permute.xlu1 %7729  ;;  %v8061_v58 = vpop.permute.xlu0 %8060 }
 0x5a5   : > { %7803 = vst.msk [vmem:[#allocation5 + $0x5c] sm:$0xf] %vm7779_vm11, %v7730_v45 }
 0x5a6   : > { %8137 = vst.msk [vmem:[#allocation5 + $0x50] sm:$0xf] %vm8116_vm14, %v8061_v58 }
 0x5a8   : > { %v8063_v61 = vpop.permute.xlu1 %8062  ;;  %v8065_v0 = vpop.permute.xlu0 %8064 }
 0x5a9   : > { %8138 = vst.msk [vmem:[#allocation5 + $0x54] sm:$0xf] %vm8116_vm14, %v8063_v61  ;;  %8139 = vst.msk [vmem:[#allocation5 + $0x58] sm:$0xf] %vm8116_vm14, %v8065_v0 }
 0x5ac   : > { %v8067_v3 = vpop.permute.xlu1 %8066  ;;  %v6083_v5 = vpop.permute.xlu0 %6082 }
 0x5ad   : > { %8140 = vst.msk [vmem:[#allocation5 + $0x5c] sm:$0xf] %vm8116_vm14, %v8067_v3  ;;  %v8975_v7 = vpop.f32.mrf.mxu1 }
 0x5ae   : > { %6153 = vst.msk [vmem:[#allocation5 + $0x68] sm:$0xf] %vm6126_vm9, %v6083_v5  ;;  %v8400_v9 = vadd.f32 %v8975_v7, %v11695_v6 }
 0x5af   : > { %v8391_v39 = vpop.f32.mrf.mxu1 }
 0x5b0   : > { %v6085_v10 = vpop.permute.xlu1 %6084  ;;  %v6640_v8 = vpop.permute.xlu0 %6639  ;;  %v9062_v12 = vld [vmem:[#allocation5 + $0x50] sm:$0xff]   ;;  %v8520_v63 = vmax.f32 %v8400_v9, 0.0  ;;  %v8392_v13 = vadd.f32 %v11695_v6, %v8391_v39 }
 0x5b1   : > { %6154 = vst.msk [vmem:[#allocation5 + $0x6c] sm:$0xf] %vm6126_vm9, %v6085_v10  ;;  %8993 = vmatprep.mubr.msk.bf16.mxu1 %vm8304_vm15, %v9062_v12  ;;  %v8976_v14 = vpop.f32.mrf.mxu1 }
 0x5b2   : > { %6712 = vst.msk [vmem:[#allocation5 + $0x60] sm:$0xf] %vm6687_vm3, %v6640_v8  ;;  %v8518_v32 = vmax.f32 %v8392_v13, 0.0  ;;  %v8403_v16 = vadd.f32 %v8976_v14, %v11695_v6 }
 0x5b3   : > { %8553 = vst.msk [vmem:[%s11702_s13 + $0x10] sm:$0xff] %vm8550_vm13, %v8520_v63  ;;  %v8394_v21 = vpop.f32.mrf.mxu1 }
 0x5b4   : > { %v6642_v17 = vpop.permute.xlu1 %6641  ;;  %v6644_v18 = vpop.permute.xlu0 %6643  ;;  %v9063_v20 = vld [vmem:[#allocation5 + $0x58] sm:$0xff]   ;;  %8551 = vst.msk [vmem:[%s11702_s13] sm:$0xff] %vm8550_vm13, %v8518_v32  ;;  %v8521_v23 = vmax.f32 %v8403_v16, 0.0  ;;  %v8395_v55 = vadd.f32 %v11695_v6, %v8394_v21 }
 0x5b5   : > { %6713 = vst.msk [vmem:[#allocation5 + $0x64] sm:$0xf] %vm6687_vm3, %v6642_v17  ;;  %6714 = vst.msk [vmem:[#allocation5 + $0x68] sm:$0xf] %vm6687_vm3, %v6644_v18  ;;  %8994 = vmatmul.mubr.msk.bf16.gmra.mxu1 %vm8304_vm15, %v9063_v20 }
 0x5b6   : > { %8554 = vst.msk [vmem:[%s11702_s13 + $0x18] sm:$0xff] %vm8550_vm13, %v8521_v23  ;;  %v8519_v27 = vmax.f32 %v8395_v55, 0.0 }
 0x5b8   : > { %v6646_v4 = vpop.permute.xlu1 %6645  ;;  %v6977_v28 = vpop.permute.xlu0 %6976  ;;  %8552 = vst.msk [vmem:[%s11702_s13 + $0x8] sm:$0xff] %vm8550_vm13, %v8519_v27 }
 0x5b9   : > { %6715 = vst.msk [vmem:[#allocation5 + $0x6c] sm:$0xf] %vm6687_vm3, %v6646_v4 }
 0x5ba   : > { %7049 = vst.msk [vmem:[#allocation5 + $0x60] sm:$0xf] %vm7024_vm10, %v6977_v28 }
 0x5bc   : > { %v6979_v24 = vpop.permute.xlu1 %6978  ;;  %v6981_v19 = vpop.permute.xlu0 %6980 }
 0x5bd   : > { %7050 = vst.msk [vmem:[#allocation5 + $0x64] sm:$0xf] %vm7024_vm10, %v6979_v24  ;;  %7051 = vst.msk [vmem:[#allocation5 + $0x68] sm:$0xf] %vm7024_vm10, %v6981_v19 }
 0x5c0   : > { %v6983_v29 = vpop.permute.xlu1 %6982  ;;  %v7171_v30 = vpop.permute.xlu0 %7170 }
 0x5c1   : > { %7052 = vst.msk [vmem:[#allocation5 + $0x6c] sm:$0xf] %vm7024_vm10, %v6983_v29 }
 0x5c2   : > { %7243 = vst.msk [vmem:[#allocation5 + $0x60] sm:$0xf] %vm7218_vm7, %v7171_v30 }
 0x5c4   : > { %v7173_v31 = vpop.permute.xlu1 %7172  ;;  %v7175_v33 = vpop.permute.xlu0 %7174 }
 0x5c5   : > { %7244 = vst.msk [vmem:[#allocation5 + $0x64] sm:$0xf] %vm7218_vm7, %v7173_v31  ;;  %7245 = vst.msk [vmem:[#allocation5 + $0x68] sm:$0xf] %vm7218_vm7, %v7175_v33 }
 0x5c8   : > { %v7177_v36 = vpop.permute.xlu1 %7176  ;;  %v7732_v34 = vpop.permute.xlu0 %7731 }
 0x5c9   : > { %7246 = vst.msk [vmem:[#allocation5 + $0x6c] sm:$0xf] %vm7218_vm7, %v7177_v36 }
 0x5ca   : > { %7804 = vst.msk [vmem:[#allocation5 + $0x60] sm:$0xf] %vm7779_vm11, %v7732_v34 }
 0x5cc   : > { %v7734_v37 = vpop.permute.xlu1 %7733  ;;  %v7736_v38 = vpop.permute.xlu0 %7735 }
 0x5cd   : > { %7805 = vst.msk [vmem:[#allocation5 + $0x64] sm:$0xf] %vm7779_vm11, %v7734_v37  ;;  %7806 = vst.msk [vmem:[#allocation5 + $0x68] sm:$0xf] %vm7779_vm11, %v7736_v38 }
 0x5d0   : > { %v7738_v26 = vpop.permute.xlu1 %7737  ;;  %v8069_v43 = vpop.permute.xlu0 %8068 }
 0x5d1   : > { %7807 = vst.msk [vmem:[#allocation5 + $0x6c] sm:$0xf] %vm7779_vm11, %v7738_v26 }
 0x5d2   : > { %8141 = vst.msk [vmem:[#allocation5 + $0x60] sm:$0xf] %vm8116_vm14, %v8069_v43 }
 0x5d4   : > { %v8071_v44 = vpop.permute.xlu1 %8070  ;;  %v8073_v46 = vpop.permute.xlu0 %8072 }
 0x5d5   : > { %8142 = vst.msk [vmem:[#allocation5 + $0x64] sm:$0xf] %vm8116_vm14, %v8071_v44  ;;  %8143 = vst.msk [vmem:[#allocation5 + $0x68] sm:$0xf] %vm8116_vm14, %v8073_v46  ;;  %v8979_v47 = vpop.f32.mrf.mxu1 }
 0x5d6   : > { %v8416_v41 = vadd.f32 %v8979_v47, %v11695_v6 }
 0x5d7   : > { %v8407_v50 = vpop.f32.mrf.mxu1 }
 0x5d8   : > { %v8075_v35 = vpop.permute.xlu1 %8074  ;;  %v6087_v48 = vpop.permute.xlu0 %6086  ;;  %v8524_v51 = vmax.f32 %v8416_v41, 0.0  ;;  %v8408_v52 = vadd.f32 %v11695_v6, %v8407_v50 }
 0x5d9   : > { %8144 = vst.msk [vmem:[#allocation5 + $0x6c] sm:$0xf] %vm8116_vm14, %v8075_v35  ;;  %v8980_v11 = vpop.f32.mrf.mxu1 }
 0x5da   : > { %6155 = vst.msk [vmem:[#allocation5 + $0x70] sm:$0xf] %vm6126_vm9, %v6087_v48  ;;  %v8522_v25 = vmax.f32 %v8408_v52, 0.0  ;;  %v8419_v53 = vadd.f32 %v8980_v11, %v11695_v6 }
 0x5db   : > { %8557 = vst.msk [vmem:[%s11702_s13 + $0x30] sm:$0xff] %vm8550_vm13, %v8524_v51  ;;  %v8410_v56 = vpop.f32.mrf.mxu1 }
 0x5dc   : > { %v6089_v54 = vpop.permute.xlu1 %6088  ;;  %v6091_v40 = vpop.permute.xlu0 %6090  ;;  %v9064_v22 = vld [vmem:[#allocation5 + $0x60] sm:$0xff]   ;;  %8555 = vst.msk [vmem:[%s11702_s13 + $0x20] sm:$0xff] %vm8550_vm13, %v8522_v25  ;;  %v8525_v62 = vmax.f32 %v8419_v53, 0.0  ;;  %v8411_v15 = vadd.f32 %v11695_v6, %v8410_v56 }
 0x5dd   : > { %6156 = vst.msk [vmem:[#allocation5 + $0x74] sm:$0xf] %vm6126_vm9, %v6089_v54  ;;  %6157 = vst.msk [vmem:[#allocation5 + $0x78] sm:$0xf] %vm6126_vm9, %v6091_v40  ;;  %8997 = vmatprep.mubr.msk.bf16.mxu1 %vm8304_vm15, %v9064_v22 }
 0x5de   : > { %8558 = vst.msk [vmem:[%s11702_s13 + $0x38] sm:$0xff] %vm8550_vm13, %v8525_v62  ;;  %v8523_v42 = vmax.f32 %v8411_v15, 0.0 }
 0x5e0   : > { %v6093_v57 = vpop.permute.xlu1 %6092  ;;  %v6648_v59 = vpop.permute.xlu0 %6647  ;;  %v9065_v60 = vld [vmem:[#allocation5 + $0x68] sm:$0xff]   ;;  %8556 = vst.msk [vmem:[%s11702_s13 + $0x28] sm:$0xff] %vm8550_vm13, %v8523_v42 }
 0x5e1   : > { %6158 = vst.msk [vmem:[#allocation5 + $0x7c] sm:$0xf] %vm6126_vm9, %v6093_v57  ;;  %8998 = vmatmul.mubr.msk.bf16.gmra.mxu1 %vm8304_vm15, %v9065_v60 }
 0x5e2   : > { %6716 = vst.msk [vmem:[#allocation5 + $0x70] sm:$0xf] %vm6687_vm3, %v6648_v59 }
 0x5e4   : > { %v6650_v2 = vpop.permute.xlu1 %6649  ;;  %v6652_v49 = vpop.permute.xlu0 %6651 }
 0x5e5   : > { %6717 = vst.msk [vmem:[#allocation5 + $0x74] sm:$0xf] %vm6687_vm3, %v6650_v2  ;;  %6718 = vst.msk [vmem:[#allocation5 + $0x78] sm:$0xf] %vm6687_vm3, %v6652_v49 }
 0x5e8   : > { %v6654_v1 = vpop.permute.xlu1 %6653  ;;  %v6985_v45 = vpop.permute.xlu0 %6984 }
 0x5e9   : > { %6719 = vst.msk [vmem:[#allocation5 + $0x7c] sm:$0xf] %vm6687_vm3, %v6654_v1 }
 0x5ea   : > { %7053 = vst.msk [vmem:[#allocation5 + $0x70] sm:$0xf] %vm7024_vm10, %v6985_v45 }
 0x5ec   : > { %v6987_v58 = vpop.permute.xlu1 %6986  ;;  %v6989_v61 = vpop.permute.xlu0 %6988 }
 0x5ed   : > { %7054 = vst.msk [vmem:[#allocation5 + $0x74] sm:$0xf] %vm7024_vm10, %v6987_v58  ;;  %7055 = vst.msk [vmem:[#allocation5 + $0x78] sm:$0xf] %vm7024_vm10, %v6989_v61 }
 0x5f0   : > { %v6991_v0 = vpop.permute.xlu1 %6990  ;;  %v7179_v3 = vpop.permute.xlu0 %7178 }
 0x5f1   : > { %7056 = vst.msk [vmem:[#allocation5 + $0x7c] sm:$0xf] %vm7024_vm10, %v6991_v0 }
 0x5f2   : > { %7247 = vst.msk [vmem:[#allocation5 + $0x70] sm:$0xf] %vm7218_vm7, %v7179_v3 }
 0x5f4   : > { %v7181_v5 = vpop.permute.xlu1 %7180  ;;  %v7183_v7 = vpop.permute.xlu0 %7182 }
 0x5f5   : > { %7248 = vst.msk [vmem:[#allocation5 + $0x74] sm:$0xf] %vm7218_vm7, %v7181_v5  ;;  %7249 = vst.msk [vmem:[#allocation5 + $0x78] sm:$0xf] %vm7218_vm7, %v7183_v7 }
 0x5f8   : > { %v7185_v9 = vpop.permute.xlu1 %7184  ;;  %v7740_v10 = vpop.permute.xlu0 %7739 }
 0x5f9   : > { %7250 = vst.msk [vmem:[#allocation5 + $0x7c] sm:$0xf] %vm7218_vm7, %v7185_v9 }
 0x5fa   : > { %7808 = vst.msk [vmem:[#allocation5 + $0x70] sm:$0xf] %vm7779_vm11, %v7740_v10 }
 0x5fc   : > { %v7742_v8 = vpop.permute.xlu1 %7741  ;;  %v7744_v12 = vpop.permute.xlu0 %7743 }
 0x5fd   : > { %7809 = vst.msk [vmem:[#allocation5 + $0x74] sm:$0xf] %vm7779_vm11, %v7742_v8  ;;  %7810 = vst.msk [vmem:[#allocation5 + $0x78] sm:$0xf] %vm7779_vm11, %v7744_v12  ;;  %v8983_v39 = vpop.f32.mrf.mxu1 }
 0x5fe   : > { %v8432_v63 = vadd.f32 %v8983_v39, %v11695_v6 }
 0x5ff   : > { %v8423_v32 = vpop.f32.mrf.mxu1 }
 0x600   : > { %v7746_v13 = vpop.permute.xlu1 %7745  ;;  %v8077_v14 = vpop.permute.xlu0 %8076  ;;  %v8528_v16 = vmax.f32 %v8432_v63, 0.0  ;;  %v8424_v17 = vadd.f32 %v11695_v6, %v8423_v32 }
 0x601   : > { %7811 = vst.msk [vmem:[#allocation5 + $0x7c] sm:$0xf] %vm7779_vm11, %v7746_v13  ;;  %v8984_v18 = vpop.f32.mrf.mxu1 }
 0x602   : > { %8145 = vst.msk [vmem:[#allocation5 + $0x70] sm:$0xf] %vm8116_vm14, %v8077_v14  ;;  %v8526_v20 = vmax.f32 %v8424_v17, 0.0  ;;  %v8435_v21 = vadd.f32 %v8984_v18, %v11695_v6 }
 0x603   : > { %8561 = vst.msk [vmem:[%s11702_s13 + $0x50] sm:$0xff] %vm8550_vm13, %v8528_v16  ;;  %v8426_v27 = vpop.f32.mrf.mxu1 }
 0x604   : > { %v8079_v23 = vpop.permute.xlu1 %8078  ;;  %v8081_v55 = vpop.permute.xlu0 %8080  ;;  %8559 = vst.msk [vmem:[%s11702_s13 + $0x40] sm:$0xff] %vm8550_vm13, %v8526_v20  ;;  %v8529_v4 = vmax.f32 %v8435_v21, 0.0  ;;  %v8427_v28 = vadd.f32 %v11695_v6, %v8426_v27 }
 0x605   : > { %8146 = vst.msk [vmem:[#allocation5 + $0x74] sm:$0xf] %vm8116_vm14, %v8079_v23  ;;  %8147 = vst.msk [vmem:[#allocation5 + $0x78] sm:$0xf] %vm8116_vm14, %v8081_v55 }
 0x606   : > { %8562 = vst.msk [vmem:[%s11702_s13 + $0x58] sm:$0xff] %vm8550_vm13, %v8529_v4  ;;  %v8527_v24 = vmax.f32 %v8427_v28, 0.0 }
 0x608   : > { %v8083_v19 = vpop.permute.xlu1 %8082  ;;  %8560 = vst.msk [vmem:[%s11702_s13 + $0x48] sm:$0xff] %vm8550_vm13, %v8527_v24 }
 0x609   : > { %8148 = vst.msk [vmem:[#allocation5 + $0x7c] sm:$0xf] %vm8116_vm14, %v8083_v19 }
 0x60c   : > { %v9066_v29 = vld [vmem:[#allocation5 + $0x70] sm:$0xff]  }
 0x60d   : > { %9001 = vmatprep.mubr.msk.bf16.mxu1 %vm8304_vm15, %v9066_v29 }
 0x610   : > { %v9067_v30 = vld [vmem:[#allocation5 + $0x78] sm:$0xff]  }
 0x611   : > { %9002 = vmatmul.mubr.msk.bf16.gmra.mxu1 %vm8304_vm15, %v9067_v30 }
 0x625   : > { %v8987_v31 = vpop.f32.mrf.mxu1 }
 0x626   : > { %v8448_v33 = vadd.f32 %v8987_v31, %v11695_v6 }
 0x627   : > { %v8439_v36 = vpop.f32.mrf.mxu1 }
 0x628   : > { %v8532_v34 = vmax.f32 %v8448_v33, 0.0  ;;  %v8440_v37 = vadd.f32 %v11695_v6, %v8439_v36 }
 0x629   : > { %v8988_v38 = vpop.f32.mrf.mxu1 }
 0x62a   : > { %8565 = vst.msk [vmem:[%s11702_s13 + $0x70] sm:$0xff] %vm8550_vm13, %v8532_v34  ;;  %v8530_v26 = vmax.f32 %v8440_v37, 0.0  ;;  %v8451_v43 = vadd.f32 %v8988_v38, %v11695_v6 }
 0x62b   : > { %v8442_v44 = vpop.f32.mrf.mxu1 }
 0x62c   : > { %8563 = vst.msk [vmem:[%s11702_s13 + $0x60] sm:$0xff] %vm8550_vm13, %v8530_v26  ;;  %v8533_v46 = vmax.f32 %v8451_v43, 0.0  ;;  %v8443_v47 = vadd.f32 %v11695_v6, %v8442_v44 }
 0x62e   : > { %8566 = vst.msk [vmem:[%s11702_s13 + $0x78] sm:$0xff] %vm8550_vm13, %v8533_v46  ;;  %v8531_v41 = vmax.f32 %v8443_v47, 0.0 }
 0x630   : > { %8564 = vst.msk [vmem:[%s11702_s13 + $0x68] sm:$0xff] %vm8550_vm13, %v8531_v41 }
 0x64d   : > { %v8991_v35 = vpop.f32.mrf.mxu1 }
 0x64e   : > { %v8464_v48 = vadd.f32 %v8991_v35, %v11695_v6 }
 0x64f   : > { %v8455_v50 = vpop.f32.mrf.mxu1 }
 0x650   : > { %v8536_v51 = vmax.f32 %v8464_v48, 0.0  ;;  %v8456_v52 = vadd.f32 %v11695_v6, %v8455_v50 }
 0x651   : > { %v8992_v11 = vpop.f32.mrf.mxu1 }
 0x652   : > { %8569 = vst.msk [vmem:[%s11702_s13 + $0x90] sm:$0xff] %vm8550_vm13, %v8536_v51  ;;  %v8534_v25 = vmax.f32 %v8456_v52, 0.0  ;;  %v8467_v53 = vadd.f32 %v8992_v11, %v11695_v6 }
 0x653   : > { %v8458_v54 = vpop.f32.mrf.mxu1 }
 0x654   : > { %8567 = vst.msk [vmem:[%s11702_s13 + $0x80] sm:$0xff] %vm8550_vm13, %v8534_v25  ;;  %v8537_v40 = vmax.f32 %v8467_v53, 0.0  ;;  %v8459_v22 = vadd.f32 %v11695_v6, %v8458_v54 }
 0x656   : > { %8570 = vst.msk [vmem:[%s11702_s13 + $0x98] sm:$0xff] %vm8550_vm13, %v8537_v40  ;;  %v8535_v56 = vmax.f32 %v8459_v22, 0.0 }
 0x658   : > { %8568 = vst.msk [vmem:[%s11702_s13 + $0x88] sm:$0xff] %vm8550_vm13, %v8535_v56 }
 0x675   : > { %v8995_v62 = vpop.f32.mrf.mxu1 }
 0x676   : > { %v8480_v15 = vadd.f32 %v8995_v62, %v11695_v6 }
 0x677   : > { %v8471_v42 = vpop.f32.mrf.mxu1 }
 0x678   : > { %v8540_v57 = vmax.f32 %v8480_v15, 0.0  ;;  %v8472_v59 = vadd.f32 %v11695_v6, %v8471_v42 }
 0x679   : > { %v8996_v60 = vpop.f32.mrf.mxu1 }
 0x67a   : > { %8573 = vst.msk [vmem:[%s11702_s13 + $0xb0] sm:$0xff] %vm8550_vm13, %v8540_v57  ;;  %v8538_v2 = vmax.f32 %v8472_v59, 0.0  ;;  %v8483_v49 = vadd.f32 %v8996_v60, %v11695_v6 }
 0x67b   : > { %v8474_v1 = vpop.f32.mrf.mxu1 }
 0x67c   : > { %8571 = vst.msk [vmem:[%s11702_s13 + $0xa0] sm:$0xff] %vm8550_vm13, %v8538_v2  ;;  %v8541_v45 = vmax.f32 %v8483_v49, 0.0  ;;  %v8475_v58 = vadd.f32 %v11695_v6, %v8474_v1 }
 0x67e   : > { %8574 = vst.msk [vmem:[%s11702_s13 + $0xb8] sm:$0xff] %vm8550_vm13, %v8541_v45  ;;  %v8539_v61 = vmax.f32 %v8475_v58, 0.0 }
 0x680   : > { %8572 = vst.msk [vmem:[%s11702_s13 + $0xa8] sm:$0xff] %vm8550_vm13, %v8539_v61 }
 0x6a1   : > { %v8999_v0 = vpop.f32.mrf.mxu1 }
 0x6a2   : > { %v8496_v3 = vadd.f32 %v8999_v0, %v11695_v6 }
 0x6a3   : > { %v8487_v5 = vpop.f32.mrf.mxu1 }
 0x6a4   : > { %v8544_v7 = vmax.f32 %v8496_v3, 0.0  ;;  %v8488_v9 = vadd.f32 %v11695_v6, %v8487_v5 }
 0x6a5   : > { %v9000_v10 = vpop.f32.mrf.mxu1 }
 0x6a6   : > { %8577 = vst.msk [vmem:[%s11702_s13 + $0xd0] sm:$0xff] %vm8550_vm13, %v8544_v7  ;;  %v8542_v8 = vmax.f32 %v8488_v9, 0.0  ;;  %v8499_v12 = vadd.f32 %v9000_v10, %v11695_v6 }
 0x6a7   : > { %v8490_v39 = vpop.f32.mrf.mxu1 }
 0x6a8   : > { %8575 = vst.msk [vmem:[%s11702_s13 + $0xc0] sm:$0xff] %vm8550_vm13, %v8542_v8  ;;  %v8545_v63 = vmax.f32 %v8499_v12, 0.0  ;;  %v8491_v13 = vadd.f32 %v11695_v6, %v8490_v39 }
 0x6aa   : > { %8578 = vst.msk [vmem:[%s11702_s13 + $0xd8] sm:$0xff] %vm8550_vm13, %v8545_v63  ;;  %v8543_v14 = vmax.f32 %v8491_v13, 0.0 }
 0x6ac   : > { %8576 = vst.msk [vmem:[%s11702_s13 + $0xc8] sm:$0xff] %vm8550_vm13, %v8543_v14 }
 0x6d1   : > { %v9003_v32 = vpop.f32.mrf.mxu1 }
 0x6d2   : > { %v8512_v16 = vadd.f32 %v9003_v32, %v11695_v6 }
 0x6d3   : > { %v8503_v17 = vpop.f32.mrf.mxu1 }
 0x6d4   : > { %v8548_v18 = vmax.f32 %v8512_v16, 0.0  ;;  %v8504_v20 = vadd.f32 %v11695_v6, %v8503_v17 }
 0x6d5   : > { %v9004_v21 = vpop.f32.mrf.mxu1 }
 0x6d6   : > { %8581 = vst.msk [vmem:[%s11702_s13 + $0xf0] sm:$0xff] %vm8550_vm13, %v8548_v18  ;;  %v8546_v23 = vmax.f32 %v8504_v20, 0.0  ;;  %v8515_v55 = vadd.f32 %v9004_v21, %v11695_v6 }
 0x6d7   : > { %v8506_v27 = vpop.f32.mrf.mxu1 }
 0x6d8   : > { %8579 = vst.msk [vmem:[%s11702_s13 + $0xe0] sm:$0xff] %vm8550_vm13, %v8546_v23  ;;  %v8549_v4 = vmax.f32 %v8515_v55, 0.0  ;;  %v8507_v28 = vadd.f32 %v11695_v6, %v8506_v27 }
 0x6da   : > { %8582 = vst.msk [vmem:[%s11702_s13 + $0xf8] sm:$0xff] %vm8550_vm13, %v8549_v4  ;;  %v8547_v24 = vmax.f32 %v8507_v28, 0.0 }
 0x6dc   : > { %8580 = vst.msk [vmem:[%s11702_s13 + $0xe8] sm:$0xff] %vm8550_vm13, %v8547_v24 }
 0x6dd PF: > { %s15_s18 = sadd.s32 1, %s9075_s18  }
 0x6de   : > { %p12_p4 = scmp.ge.s32.totalorder %s15_s18, 4  }
 0x6e0   :  { %14 = sbr.rel (!%p12_p4) target bundleno = 1 (0x1), region = 76 }

</bundles_post_ra>
